<compile_context>
chip_gen: v7x
topology: tpu7x:2x2x1
jax: 0.10.0
libtpu: 0.0.40
codegen_flags: <defaults>
</compile_context>

<pallas_src>
import functools

import jax
import jax.numpy as jnp
from jax.experimental import pallas as pl
from jax.experimental.pallas import tpu as pltpu

_VMEM_LIMIT = 48 * 1024 * 1024   # v7x-safe (64 MiB physical VMEM per TensorCore)


# ----------------------------- Pallas kernel -----------------------------

def _conv_gn_relu_kernel(xp_ref, w_ref, b_ref, g_ref, be_ref, gm_ref, *rest,
                         H, W, eps, inv_n, residual, res_scale, cmajor_out):
    """Fused 3x3 conv + bias + GroupNorm + ReLU (+ optional residual add/scale).

    Per grid step (one sample n, one group-aligned Cout tile j):
      xp_ref : (H+2, W+2, Cin)  bf16 zero-padded sample (batch dim squeezed)
      w_ref  : (9, Cin, Ct)     bf16 tap-major conv weights for this Cout tile
      b/g/be : (1, Ct)          f32 conv bias / GN gamma / GN beta
      gm_ref : (Ct, Ct)         f32 within-tile group indicator (same group -> 1)
      res_ref: output-layout residual input (only when residual=True)
      o_ref  : (H*W, Ct)  or (Ct, H*W) when cmajor_out (lane-dense NCHW store)
    """
    if residual:
        res_ref, o_ref = rest
    else:
        (o_ref,) = rest
    cin = xp_ref.shape[-1]
    ct = w_ref.shape[-1]

    # 3x3 conv = 9 shifted (H*W, Cin) @ (Cin, Ct) bf16 MXU matmuls, f32 accumulation.
    acc = jnp.zeros((H * W, ct), jnp.float32)
    for dy in range(3):
        for dx in range(3):
            patch = xp_ref[dy:dy + H, dx:dx + W, :].reshape(H * W, cin)
            acc = acc + jnp.dot(patch, w_ref[dy * 3 + dx],
                                preferred_element_type=jnp.float32)
    acc = acc + b_ref[...]                       # conv bias

    # GroupNorm: two-pass (mean, then centered variance) — numerically stable.
    # Per-channel spatial sums are folded to per-group values (and broadcast back
    # to channels) with a tiny (Ct, Ct) within-tile indicator matmul.
    gmat = gm_ref[...]
    mean = jnp.dot(jnp.sum(acc, axis=0, keepdims=True), gmat,
                   preferred_element_type=jnp.float32) * inv_n
    d = acc - mean
    var = jnp.dot(jnp.sum(d * d, axis=0, keepdims=True), gmat,
                  preferred_element_type=jnp.float32) * inv_n
    y = jnp.maximum(d * jax.lax.rsqrt(var + eps) * g_ref[...] + be_ref[...], 0.0)

    if cmajor_out:
        y = y.T                                  # (Ct, H*W): lane-dense, NCHW layout
    if residual:
        y = (y + res_ref[...]) * res_scale       # fused (x + conv(x)) / 1.414
    o_ref[...] = y.astype(o_ref.dtype)


# ----------------------------- Wrappers -----------------------------

def _choose_cout_tile(cout, gsz):
    """Largest group-aligned Cout tile <= 256 that divides Cout (>= one group)."""
    if cout <= 256:
        return cout
    tn = max(gsz, (256 // gsz) * gsz)
    while cout % tn:
        tn -= gsz
    return max(tn, gsz)


def conv3x3_gn_relu(x, w, b, gamma, beta, *, num_groups=8, eps=1e-5,
                    residual=None, res_scale=1.0,
                    out_dtype=jnp.float32, channels_major_out=False):
    """Fused Conv2d(3x3,s=1,p=1) + GroupNorm(num_groups) + ReLU on NHWC input.

    x: (N,H,W,Cin)  w: (3,3,Cin,Cout) HWIO  b/gamma/beta: (Cout,)
    residual (optional): tensor in the *output* layout, added after ReLU, then
      multiplied by res_scale: (N,H*W,Cout) normally, (N,Cout,H*W) if
      channels_major_out.
    Returns NHWC (N,H,W,Cout), or NCHW (N,Cout,H,W) if channels_major_out.
    """
    N, H, W_, Cin = x.shape
    Cout = w.shape[-1]
    assert Cout % num_groups == 0
    gsz = Cout // num_groups
    tn = _choose_cout_tile(Cout, gsz)
    J = Cout // tn
    HW = H * W_

    xp = jnp.pad(x.astype(jnp.bfloat16), ((0, 0), (1, 1), (1, 1), (0, 0)))
    w9 = w.reshape(9, Cin, Cout).astype(jnp.bfloat16)    # tap-major weights
    b2 = b.reshape(1, Cout).astype(jnp.float32)
    g2 = gamma.reshape(1, Cout).astype(jnp.float32)
    be2 = beta.reshape(1, Cout).astype(jnp.float32)
    lg = jnp.arange(tn) // gsz                           # within-tile group id
    gmat = (lg[:, None] == lg[None, :]).astype(jnp.float32)   # (tn, tn), O(tile^2)
    inv_n = 1.0 / float(HW * gsz)

    kern = functools.partial(_conv_gn_relu_kernel, H=H, W=W_, eps=float(eps),
                             inv_n=inv_n, residual=residual is not None,
                             res_scale=float(res_scale),
                             cmajor_out=channels_major_out)

    in_specs = [
        pl.BlockSpec((None, H + 2, W_ + 2, Cin), lambda n, j: (n, 0, 0, 0)),
        pl.BlockSpec((9, Cin, tn), lambda n, j: (0, 0, j)),
        pl.BlockSpec((1, tn), lambda n, j: (0, j)),
        pl.BlockSpec((1, tn), lambda n, j: (0, j)),
        pl.BlockSpec((1, tn), lambda n, j: (0, j)),
        pl.BlockSpec((tn, tn), lambda n, j: (0, 0)),
    ]
    args = [xp, w9, b2, g2, be2, gmat]

    if channels_major_out:
        out_shape = jax.ShapeDtypeStruct((N, Cout, HW), out_dtype)
        out_spec = pl.BlockSpec((None, tn, HW), lambda n, j: (n, j, 0))
    else:
        out_shape = jax.ShapeDtypeStruct((N, HW, Cout), out_dtype)
        out_spec = pl.BlockSpec((None, HW, tn), lambda n, j: (n, 0, j))

    if residual is not None:
        res = residual.astype(jnp.float32)
        assert res.shape == out_shape.shape, (res.shape, out_shape.shape)
        in_specs.append(out_spec)          # residual uses the output's tiling/layout
        args.append(res)

    flops = 2 * N * HW * 9 * Cin * Cout + 10 * N * HW * Cout
    out_bytes = N * HW * Cout * jnp.dtype(out_dtype).itemsize
    bytes_accessed = (N * (H + 2) * (W_ + 2) * Cin * 2 + 9 * Cin * Cout * 2
                      + out_bytes + (N * HW * Cout * 4 if residual is not None else 0))

    out = pl.pallas_call(
        kern,
        out_shape=out_shape,
        grid=(N, J),
        in_specs=in_specs,
        out_specs=out_spec,
        compiler_params=pltpu.CompilerParams(
            dimension_semantics=("parallel", "parallel"),
            vmem_limit_bytes=_VMEM_LIMIT),
        cost_estimate=pl.CostEstimate(flops=int(flops), transcendentals=0,
                                      bytes_accessed=int(bytes_accessed)),
    )(*args)
    if channels_major_out:
        return out.reshape(N, Cout, H, W_)          # NCHW, no wrapper transpose
    return out.reshape(N, H, W_, Cout)              # NHWC
    # TODO(synk): for very large H*W per sample, add a halo'd spatial-row grid axis;
    # the current kernel keeps one whole (padded) sample in VMEM per grid step.


def conv_block_forward(params, x_nchw, residual=False):
    """ConvBlock.forward: NCHW in, NCHW out (internally channels-last NHWC)."""
    N, C, H, W = x_nchw.shape
    x = jnp.transpose(x_nchw, (0, 2, 3, 1)).astype(jnp.float32)   # NCHW -> NHWC
    # Layer 1: bf16 activations — only consumed by layer 2's bf16 conv feed.
    h = conv3x3_gn_relu(x, params['w1'], params['b1'], params['g1'], params['be1'],
                        out_dtype=jnp.bfloat16)
    # Layer 2: channel-major f32 output == NCHW (kills the output transpose);
    # (x + conv(x)) / 1.414 fused into the kernel for the residual variant.
    res = x_nchw.reshape(N, C, H * W).astype(jnp.float32) if residual else None
    out = conv3x3_gn_relu(h, params['w2'], params['b2'], params['g2'], params['be2'],
                          residual=res,
                          res_scale=(1.0 / 1.414) if residual else 1.0,
                          out_dtype=jnp.float32, channels_major_out=True)
    return out                                                     # already NCHW


# ----------------------------- Reference (pure JAX) -----------------------------

def _ref_conv_block(params, x_nchw, residual=False, num_groups=8, eps=1e-5):
    x = jnp.transpose(x_nchw.astype(jnp.float32), (0, 2, 3, 1))

    def layer(h, w, b, g, be):
        y = jax.lax.conv_general_dilated(
            h, w, (1, 1), 'SAME',
            dimension_numbers=('NHWC', 'HWIO', 'NHWC')) + b
        N, H, W, C = y.shape
        yg = y.reshape(N, H * W, num_groups, C // num_groups)
        m = jnp.mean(yg, axis=(1, 3), keepdims=True)
        v = jnp.mean((yg - m) ** 2, axis=(1, 3), keepdims=True)
        yn = ((yg - m) * jax.lax.rsqrt(v + eps)).reshape(N, H, W, C)
        return jnp.maximum(yn * g + be, 0.0)

    h = layer(x, params['w1'], params['b1'], params['g1'], params['be1'])
    h = layer(h, params['w2'], params['b2'], params['g2'], params['be2'])
    out = (x + h) / 1.414 if residual else h
    return jnp.transpose(out, (0, 3, 1, 2))


# ----------------------------- Params -----------------------------

def init_conv_block(key, cin, cout):
    k = jax.random.split(key, 8)
    return {
        'w1': 0.1 * jax.random.normal(k[0], (3, 3, cin, cout), jnp.float32),
        'b1': 0.05 * jax.random.normal(k[1], (cout,), jnp.float32),
        'g1': 1.0 + 0.1 * jax.random.normal(k[2], (cout,), jnp.float32),
        'be1': 0.05 * jax.random.normal(k[3], (cout,), jnp.float32),
        'w2': 0.1 * jax.random.normal(k[4], (3, 3, cout, cout), jnp.float32),
        'b2': 0.05 * jax.random.normal(k[5], (cout,), jnp.float32),
        'g2': 1.0 + 0.1 * jax.random.normal(k[6], (cout,), jnp.float32),
        'be2': 0.05 * jax.random.normal(k[7], (cout,), jnp.float32),
    }


# ----------------------------- Main -----------------------------

if __name__ == "__main__":
    IN_CH, OUT_CH = 4, 32       # GroupNorm(8) needs out_channels % 8 == 0
    N, H, W = 2, 16, 16

    key = jax.random.PRNGKey(0)
    kx, kp1, kp2 = jax.random.split(key, 3)
    x = jax.random.normal(kx, (N, IN_CH, H, W), jnp.float32)        # NCHW like torch
    p_plain = init_conv_block(kp1, IN_CH, OUT_CH)                   # residual=False
    p_res = init_conv_block(kp2, OUT_CH, OUT_CH)                    # residual=True (in==out)

    fwd_plain = jax.jit(functools.partial(conv_block_forward, residual=False))
    fwd_res = jax.jit(functools.partial(conv_block_forward, residual=True))

    y1 = jax.block_until_ready(fwd_plain(p_plain, x))
    assert y1.shape == (N, OUT_CH, H, W), y1.shape
    y2 = jax.block_until_ready(fwd_res(p_res, y1))
    assert y2.shape == (N, OUT_CH, H, W), y2.shape
    assert bool(jnp.all(jnp.isfinite(y1))) and bool(jnp.all(jnp.isfinite(y2)))

    # Correctness vs pure-JAX reference (tolerance covers the bf16 MXU feed).
    r1 = _ref_conv_block(p_plain, x, residual=False)
    r2 = _ref_conv_block(p_res, y1, residual=True)
    err1 = float(jnp.max(jnp.abs(y1 - r1)))
    err2 = float(jnp.max(jnp.abs(y2 - r2)))
    assert err1 < 0.2, err1
    assert err2 < 0.2, err2

    print("KERNEL_OK")
</pallas_src>

<mosaic_0001>
module attributes {stable_mosaic.version = 11 : i64} {
  func.func @_conv_gn_relu_kernel(%arg0: i32, %arg1: i32, %arg2: memref<1x18x18x4xbf16, #tpu.memory_space<vmem>>, %arg3: memref<9x4x32xbf16, #tpu.memory_space<vmem>>, %arg4: memref<1x32xf32, #tpu.memory_space<vmem>>, %arg5: memref<1x32xf32, #tpu.memory_space<vmem>>, %arg6: memref<1x32xf32, #tpu.memory_space<vmem>>, %arg7: memref<32x32xf32, #tpu.memory_space<vmem>>, %arg8: memref<1x256x32xbf16, #tpu.memory_space<vmem>>) attributes {dimension_semantics = [#tpu.dimension_semantics<parallel>, #tpu.dimension_semantics<parallel>], iteration_bounds = array<i64: 2, 1>, scalar_prefetch = 0 : i64, scratch_operands = 0 : i64, tpu.core_type = #tpu.core_type<tc>, window_params = [{transform_indices = @transform_0, window_bounds = array<i64: 1, 18, 18, 4>}, {transform_indices = @transform_1, window_bounds = array<i64: 9, 4, 32>}, {transform_indices = @transform_2, window_bounds = array<i64: 1, 32>}, {transform_indices = @transform_3, window_bounds = array<i64: 1, 32>}, {transform_indices = @transform_4, window_bounds = array<i64: 1, 32>}, {pipeline_mode = #tpu.pipeline_mode<synchronous>, transform_indices = @transform_5, window_bounds = array<i64: 32, 32>}, {transform_indices = @transform_6, window_bounds = array<i64: 1, 256, 32>}]} {
    %cst = arith.constant 0.000000e+00 : f32
    %0 = vector.broadcast %cst : f32 to vector<256x32xf32>
    %c0 = arith.constant 0 : index
    %c0_0 = arith.constant 0 : index
    %c0_1 = arith.constant 0 : index
    %c0_2 = arith.constant 0 : index
    %1 = vector.load %arg2[%c0, %c0_0, %c0_1, %c0_2] : memref<1x18x18x4xbf16, #tpu.memory_space<vmem>>, vector<1x16x16x4xbf16>
    %2 = vector.shape_cast %1 : vector<1x16x16x4xbf16> to vector<16x16x4xbf16>
    %3 = vector.shape_cast %2 : vector<16x16x4xbf16> to vector<256x4xbf16>
    %c0_3 = arith.constant 0 : index
    %c0_4 = arith.constant 0 : index
    %c0_5 = arith.constant 0 : index
    %4 = vector.load %arg3[%c0_3, %c0_4, %c0_5] : memref<9x4x32xbf16, #tpu.memory_space<vmem>>, vector<1x4x32xbf16>
    %5 = vector.shape_cast %4 : vector<1x4x32xbf16> to vector<4x32xbf16>
    %cst_6 = arith.constant dense<0.000000e+00> : vector<256x32xf32>
    %6 = tpu.matmul %3, %5, %cst_6 {dimension_numbers = #tpu.dot_dimension_numbers<[1], [0], [0], [1], [0, 0, 1, 1], [], []>} : vector<256x4xbf16>, vector<4x32xbf16>, vector<256x32xf32> -> vector<256x32xf32>
    %7 = arith.addf %0, %6 : vector<256x32xf32>
    %c0_7 = arith.constant 0 : index
    %c0_8 = arith.constant 0 : index
    %c1 = arith.constant 1 : index
    %c0_9 = arith.constant 0 : index
    %8 = vector.load %arg2[%c0_7, %c0_8, %c1, %c0_9] : memref<1x18x18x4xbf16, #tpu.memory_space<vmem>>, vector<1x16x16x4xbf16>
    %9 = vector.shape_cast %8 : vector<1x16x16x4xbf16> to vector<16x16x4xbf16>
    %10 = vector.shape_cast %9 : vector<16x16x4xbf16> to vector<256x4xbf16>
    %c1_10 = arith.constant 1 : index
    %c0_11 = arith.constant 0 : index
    %c0_12 = arith.constant 0 : index
    %11 = vector.load %arg3[%c1_10, %c0_11, %c0_12] : memref<9x4x32xbf16, #tpu.memory_space<vmem>>, vector<1x4x32xbf16>
    %12 = vector.shape_cast %11 : vector<1x4x32xbf16> to vector<4x32xbf16>
    %cst_13 = arith.constant dense<0.000000e+00> : vector<256x32xf32>
    %13 = tpu.matmul %10, %12, %cst_13 {dimension_numbers = #tpu.dot_dimension_numbers<[1], [0], [0], [1], [0, 0, 1, 1], [], []>} : vector<256x4xbf16>, vector<4x32xbf16>, vector<256x32xf32> -> vector<256x32xf32>
    %14 = arith.addf %7, %13 : vector<256x32xf32>
    %c0_14 = arith.constant 0 : index
    %c0_15 = arith.constant 0 : index
    %c2 = arith.constant 2 : index
    %c0_16 = arith.constant 0 : index
    %15 = vector.load %arg2[%c0_14, %c0_15, %c2, %c0_16] : memref<1x18x18x4xbf16, #tpu.memory_space<vmem>>, vector<1x16x16x4xbf16>
    %16 = vector.shape_cast %15 : vector<1x16x16x4xbf16> to vector<16x16x4xbf16>
    %17 = vector.shape_cast %16 : vector<16x16x4xbf16> to vector<256x4xbf16>
    %c2_17 = arith.constant 2 : index
    %c0_18 = arith.constant 0 : index
    %c0_19 = arith.constant 0 : index
    %18 = vector.load %arg3[%c2_17, %c0_18, %c0_19] : memref<9x4x32xbf16, #tpu.memory_space<vmem>>, vector<1x4x32xbf16>
    %19 = vector.shape_cast %18 : vector<1x4x32xbf16> to vector<4x32xbf16>
    %cst_20 = arith.constant dense<0.000000e+00> : vector<256x32xf32>
    %20 = tpu.matmul %17, %19, %cst_20 {dimension_numbers = #tpu.dot_dimension_numbers<[1], [0], [0], [1], [0, 0, 1, 1], [], []>} : vector<256x4xbf16>, vector<4x32xbf16>, vector<256x32xf32> -> vector<256x32xf32>
    %21 = arith.addf %14, %20 : vector<256x32xf32>
    %c0_21 = arith.constant 0 : index
    %c1_22 = arith.constant 1 : index
    %c0_23 = arith.constant 0 : index
    %c0_24 = arith.constant 0 : index
    %22 = vector.load %arg2[%c0_21, %c1_22, %c0_23, %c0_24] : memref<1x18x18x4xbf16, #tpu.memory_space<vmem>>, vector<1x16x16x4xbf16>
    %23 = vector.shape_cast %22 : vector<1x16x16x4xbf16> to vector<16x16x4xbf16>
    %24 = vector.shape_cast %23 : vector<16x16x4xbf16> to vector<256x4xbf16>
    %c3 = arith.constant 3 : index
    %c0_25 = arith.constant 0 : index
    %c0_26 = arith.constant 0 : index
    %25 = vector.load %arg3[%c3, %c0_25, %c0_26] : memref<9x4x32xbf16, #tpu.memory_space<vmem>>, vector<1x4x32xbf16>
    %26 = vector.shape_cast %25 : vector<1x4x32xbf16> to vector<4x32xbf16>
    %cst_27 = arith.constant dense<0.000000e+00> : vector<256x32xf32>
    %27 = tpu.matmul %24, %26, %cst_27 {dimension_numbers = #tpu.dot_dimension_numbers<[1], [0], [0], [1], [0, 0, 1, 1], [], []>} : vector<256x4xbf16>, vector<4x32xbf16>, vector<256x32xf32> -> vector<256x32xf32>
    %28 = arith.addf %21, %27 : vector<256x32xf32>
    %c0_28 = arith.constant 0 : index
    %c1_29 = arith.constant 1 : index
    %c1_30 = arith.constant 1 : index
    %c0_31 = arith.constant 0 : index
    %29 = vector.load %arg2[%c0_28, %c1_29, %c1_30, %c0_31] : memref<1x18x18x4xbf16, #tpu.memory_space<vmem>>, vector<1x16x16x4xbf16>
    %30 = vector.shape_cast %29 : vector<1x16x16x4xbf16> to vector<16x16x4xbf16>
    %31 = vector.shape_cast %30 : vector<16x16x4xbf16> to vector<256x4xbf16>
    %c4 = arith.constant 4 : index
    %c0_32 = arith.constant 0 : index
    %c0_33 = arith.constant 0 : index
    %32 = vector.load %arg3[%c4, %c0_32, %c0_33] : memref<9x4x32xbf16, #tpu.memory_space<vmem>>, vector<1x4x32xbf16>
    %33 = vector.shape_cast %32 : vector<1x4x32xbf16> to vector<4x32xbf16>
    %cst_34 = arith.constant dense<0.000000e+00> : vector<256x32xf32>
    %34 = tpu.matmul %31, %33, %cst_34 {dimension_numbers = #tpu.dot_dimension_numbers<[1], [0], [0], [1], [0, 0, 1, 1], [], []>} : vector<256x4xbf16>, vector<4x32xbf16>, vector<256x32xf32> -> vector<256x32xf32>
    %35 = arith.addf %28, %34 : vector<256x32xf32>
    %c0_35 = arith.constant 0 : index
    %c1_36 = arith.constant 1 : index
    %c2_37 = arith.constant 2 : index
    %c0_38 = arith.constant 0 : index
    %36 = vector.load %arg2[%c0_35, %c1_36, %c2_37, %c0_38] : memref<1x18x18x4xbf16, #tpu.memory_space<vmem>>, vector<1x16x16x4xbf16>
    %37 = vector.shape_cast %36 : vector<1x16x16x4xbf16> to vector<16x16x4xbf16>
    %38 = vector.shape_cast %37 : vector<16x16x4xbf16> to vector<256x4xbf16>
    %c5 = arith.constant 5 : index
    %c0_39 = arith.constant 0 : index
    %c0_40 = arith.constant 0 : index
    %39 = vector.load %arg3[%c5, %c0_39, %c0_40] : memref<9x4x32xbf16, #tpu.memory_space<vmem>>, vector<1x4x32xbf16>
    %40 = vector.shape_cast %39 : vector<1x4x32xbf16> to vector<4x32xbf16>
    %cst_41 = arith.constant dense<0.000000e+00> : vector<256x32xf32>
    %41 = tpu.matmul %38, %40, %cst_41 {dimension_numbers = #tpu.dot_dimension_numbers<[1], [0], [0], [1], [0, 0, 1, 1], [], []>} : vector<256x4xbf16>, vector<4x32xbf16>, vector<256x32xf32> -> vector<256x32xf32>
    %42 = arith.addf %35, %41 : vector<256x32xf32>
    %c0_42 = arith.constant 0 : index
    %c2_43 = arith.constant 2 : index
    %c0_44 = arith.constant 0 : index
    %c0_45 = arith.constant 0 : index
    %43 = vector.load %arg2[%c0_42, %c2_43, %c0_44, %c0_45] : memref<1x18x18x4xbf16, #tpu.memory_space<vmem>>, vector<1x16x16x4xbf16>
    %44 = vector.shape_cast %43 : vector<1x16x16x4xbf16> to vector<16x16x4xbf16>
    %45 = vector.shape_cast %44 : vector<16x16x4xbf16> to vector<256x4xbf16>
    %c6 = arith.constant 6 : index
    %c0_46 = arith.constant 0 : index
    %c0_47 = arith.constant 0 : index
    %46 = vector.load %arg3[%c6, %c0_46, %c0_47] : memref<9x4x32xbf16, #tpu.memory_space<vmem>>, vector<1x4x32xbf16>
    %47 = vector.shape_cast %46 : vector<1x4x32xbf16> to vector<4x32xbf16>
    %cst_48 = arith.constant dense<0.000000e+00> : vector<256x32xf32>
    %48 = tpu.matmul %45, %47, %cst_48 {dimension_numbers = #tpu.dot_dimension_numbers<[1], [0], [0], [1], [0, 0, 1, 1], [], []>} : vector<256x4xbf16>, vector<4x32xbf16>, vector<256x32xf32> -> vector<256x32xf32>
    %49 = arith.addf %42, %48 : vector<256x32xf32>
    %c0_49 = arith.constant 0 : index
    %c2_50 = arith.constant 2 : index
    %c1_51 = arith.constant 1 : index
    %c0_52 = arith.constant 0 : index
    %50 = vector.load %arg2[%c0_49, %c2_50, %c1_51, %c0_52] : memref<1x18x18x4xbf16, #tpu.memory_space<vmem>>, vector<1x16x16x4xbf16>
    %51 = vector.shape_cast %50 : vector<1x16x16x4xbf16> to vector<16x16x4xbf16>
    %52 = vector.shape_cast %51 : vector<16x16x4xbf16> to vector<256x4xbf16>
    %c7 = arith.constant 7 : index
    %c0_53 = arith.constant 0 : index
    %c0_54 = arith.constant 0 : index
    %53 = vector.load %arg3[%c7, %c0_53, %c0_54] : memref<9x4x32xbf16, #tpu.memory_space<vmem>>, vector<1x4x32xbf16>
    %54 = vector.shape_cast %53 : vector<1x4x32xbf16> to vector<4x32xbf16>
    %cst_55 = arith.constant dense<0.000000e+00> : vector<256x32xf32>
    %55 = tpu.matmul %52, %54, %cst_55 {dimension_numbers = #tpu.dot_dimension_numbers<[1], [0], [0], [1], [0, 0, 1, 1], [], []>} : vector<256x4xbf16>, vector<4x32xbf16>, vector<256x32xf32> -> vector<256x32xf32>
    %56 = arith.addf %49, %55 : vector<256x32xf32>
    %c0_56 = arith.constant 0 : index
    %c2_57 = arith.constant 2 : index
    %c2_58 = arith.constant 2 : index
    %c0_59 = arith.constant 0 : index
    %57 = vector.load %arg2[%c0_56, %c2_57, %c2_58, %c0_59] : memref<1x18x18x4xbf16, #tpu.memory_space<vmem>>, vector<1x16x16x4xbf16>
    %58 = vector.shape_cast %57 : vector<1x16x16x4xbf16> to vector<16x16x4xbf16>
    %59 = vector.shape_cast %58 : vector<16x16x4xbf16> to vector<256x4xbf16>
    %c8 = arith.constant 8 : index
    %c0_60 = arith.constant 0 : index
    %c0_61 = arith.constant 0 : index
    %60 = vector.load %arg3[%c8, %c0_60, %c0_61] : memref<9x4x32xbf16, #tpu.memory_space<vmem>>, vector<1x4x32xbf16>
    %61 = vector.shape_cast %60 : vector<1x4x32xbf16> to vector<4x32xbf16>
    %cst_62 = arith.constant dense<0.000000e+00> : vector<256x32xf32>
    %62 = tpu.matmul %59, %61, %cst_62 {dimension_numbers = #tpu.dot_dimension_numbers<[1], [0], [0], [1], [0, 0, 1, 1], [], []>} : vector<256x4xbf16>, vector<4x32xbf16>, vector<256x32xf32> -> vector<256x32xf32>
    %63 = arith.addf %56, %62 : vector<256x32xf32>
    %c0_63 = arith.constant 0 : index
    %c0_64 = arith.constant 0 : index
    %64 = vector.load %arg4[%c0_63, %c0_64] : memref<1x32xf32, #tpu.memory_space<vmem>>, vector<1x32xf32>
    %65 = vector.broadcast %64 : vector<1x32xf32> to vector<256x32xf32>
    %66 = arith.addf %63, %65 : vector<256x32xf32>
    %c0_65 = arith.constant 0 : index
    %c0_66 = arith.constant 0 : index
    %67 = vector.load %arg7[%c0_65, %c0_66] : memref<32x32xf32, #tpu.memory_space<vmem>>, vector<32x32xf32>
    %cst_67 = arith.constant dense<0.000000e+00> : vector<32xf32>
    %68 = vector.multi_reduction <add>, %66, %cst_67 [0] : vector<256x32xf32> to vector<32xf32>
    %69 = vector.shape_cast %68 : vector<32xf32> to vector<1x32xf32>
    %cst_68 = arith.constant dense<0.000000e+00> : vector<1x32xf32>
    %70 = tpu.matmul %69, %67, %cst_68 {dimension_numbers = #tpu.dot_dimension_numbers<[1], [0], [0], [1], [0, 0, 1, 1], [], []>} : vector<1x32xf32>, vector<32x32xf32>, vector<1x32xf32> -> vector<1x32xf32>
    %cst_69 = arith.constant 9.765625E-4 : f32
    %71 = vector.broadcast %cst_69 : f32 to vector<1x32xf32>
    %72 = arith.mulf %70, %71 : vector<1x32xf32>
    %73 = vector.broadcast %72 : vector<1x32xf32> to vector<256x32xf32>
    %74 = arith.subf %66, %73 : vector<256x32xf32>
    %75 = arith.mulf %74, %74 : vector<256x32xf32>
    %cst_70 = arith.constant dense<0.000000e+00> : vector<32xf32>
    %76 = vector.multi_reduction <add>, %75, %cst_70 [0] : vector<256x32xf32> to vector<32xf32>
    %77 = vector.shape_cast %76 : vector<32xf32> to vector<1x32xf32>
    %cst_71 = arith.constant dense<0.000000e+00> : vector<1x32xf32>
    %78 = tpu.matmul %77, %67, %cst_71 {dimension_numbers = #tpu.dot_dimension_numbers<[1], [0], [0], [1], [0, 0, 1, 1], [], []>} : vector<1x32xf32>, vector<32x32xf32>, vector<1x32xf32> -> vector<1x32xf32>
    %cst_72 = arith.constant 9.765625E-4 : f32
    %79 = vector.broadcast %cst_72 : f32 to vector<1x32xf32>
    %80 = arith.mulf %78, %79 : vector<1x32xf32>
    %cst_73 = arith.constant 9.99999974E-6 : f32
    %81 = vector.broadcast %cst_73 : f32 to vector<1x32xf32>
    %82 = arith.addf %80, %81 : vector<1x32xf32>
    %83 = math.rsqrt %82 : vector<1x32xf32>
    %84 = vector.broadcast %83 : vector<1x32xf32> to vector<256x32xf32>
    %85 = arith.mulf %74, %84 : vector<256x32xf32>
    %c0_74 = arith.constant 0 : index
    %c0_75 = arith.constant 0 : index
    %86 = vector.load %arg5[%c0_74, %c0_75] : memref<1x32xf32, #tpu.memory_space<vmem>>, vector<1x32xf32>
    %87 = vector.broadcast %86 : vector<1x32xf32> to vector<256x32xf32>
    %88 = arith.mulf %85, %87 : vector<256x32xf32>
    %c0_76 = arith.constant 0 : index
    %c0_77 = arith.constant 0 : index
    %89 = vector.load %arg6[%c0_76, %c0_77] : memref<1x32xf32, #tpu.memory_space<vmem>>, vector<1x32xf32>
    %90 = vector.broadcast %89 : vector<1x32xf32> to vector<256x32xf32>
    %91 = arith.addf %88, %90 : vector<256x32xf32>
    %cst_78 = arith.constant 0.000000e+00 : f32
    %92 = vector.broadcast %cst_78 : f32 to vector<256x32xf32>
    %93 = arith.maximumf %91, %92 : vector<256x32xf32>
    %94 = arith.truncf %93 : vector<256x32xf32> to vector<256x32xbf16>
    %c0_79 = arith.constant 0 : index
    %c0_80 = arith.constant 0 : index
    %c0_81 = arith.constant 0 : index
    %95 = vector.load %arg8[%c0_79, %c0_80, %c0_81] : memref<1x256x32xbf16, #tpu.memory_space<vmem>>, vector<1x256x32xbf16>
    %96 = vector.shape_cast %95 : vector<1x256x32xbf16> to vector<256x32xbf16>
    %97 = vector.shape_cast %94 : vector<256x32xbf16> to vector<1x256x32xbf16>
    tpu.vector_store %arg8[%c0_79, %c0_80, %c0_81], %97 {strides = array<i32>} : memref<1x256x32xbf16, #tpu.memory_space<vmem>>, vector<1x256x32xbf16>,
    return
  }
  func.func @transform_0(%arg0: i32, %arg1: i32) -> (i32, i32, i32, i32) {
    %c0_i32 = arith.constant 0 : i32
    %c0_i32_0 = arith.constant 0 : i32
    %c0_i32_1 = arith.constant 0 : i32
    %c0_i32_2 = arith.constant 0 : i32
    return %arg0, %c0_i32, %c0_i32_0, %c0_i32_1 : i32, i32, i32, i32
  }
  func.func @transform_1(%arg0: i32, %arg1: i32) -> (i32, i32, i32) {
    %c0_i32 = arith.constant 0 : i32
    %c0_i32_0 = arith.constant 0 : i32
    %c0_i32_1 = arith.constant 0 : i32
    return %c0_i32, %c0_i32_0, %arg1 : i32, i32, i32
  }
  func.func @transform_2(%arg0: i32, %arg1: i32) -> (i32, i32) {
    %c0_i32 = arith.constant 0 : i32
    %c0_i32_0 = arith.constant 0 : i32
    return %c0_i32, %arg1 : i32, i32
  }
  func.func @transform_3(%arg0: i32, %arg1: i32) -> (i32, i32) {
    %c0_i32 = arith.constant 0 : i32
    %c0_i32_0 = arith.constant 0 : i32
    return %c0_i32, %arg1 : i32, i32
  }
  func.func @transform_4(%arg0: i32, %arg1: i32) -> (i32, i32) {
    %c0_i32 = arith.constant 0 : i32
    %c0_i32_0 = arith.constant 0 : i32
    return %c0_i32, %arg1 : i32, i32
  }
  func.func @transform_5(%arg0: i32, %arg1: i32) -> (i32, i32) {
    %c0_i32 = arith.constant 0 : i32
    %c0_i32_0 = arith.constant 0 : i32
    %c0_i32_1 = arith.constant 0 : i32
    return %c0_i32, %c0_i32_0 : i32, i32
  }
  func.func @transform_6(%arg0: i32, %arg1: i32) -> (i32, i32, i32) {
    %c0_i32 = arith.constant 0 : i32
    %c0_i32_0 = arith.constant 0 : i32
    return %arg0, %c0_i32, %arg1 : i32, i32, i32
  }
}

module attributes {stable_mosaic.version = 11 : i64} {
  func.func @_conv_gn_relu_kernel(%arg0: i32, %arg1: i32, %arg2: memref<1x18x18x32xbf16, #tpu.memory_space<vmem>>, %arg3: memref<9x32x32xbf16, #tpu.memory_space<vmem>>, %arg4: memref<1x32xf32, #tpu.memory_space<vmem>>, %arg5: memref<1x32xf32, #tpu.memory_space<vmem>>, %arg6: memref<1x32xf32, #tpu.memory_space<vmem>>, %arg7: memref<32x32xf32, #tpu.memory_space<vmem>>, %arg8: memref<1x32x256xf32, #tpu.memory_space<vmem>>) attributes {dimension_semantics = [#tpu.dimension_semantics<parallel>, #tpu.dimension_semantics<parallel>], iteration_bounds = array<i64: 2, 1>, scalar_prefetch = 0 : i64, scratch_operands = 0 : i64, tpu.core_type = #tpu.core_type<tc>, window_params = [{transform_indices = @transform_0, window_bounds = array<i64: 1, 18, 18, 32>}, {transform_indices = @transform_1, window_bounds = array<i64: 9, 32, 32>}, {transform_indices = @transform_2, window_bounds = array<i64: 1, 32>}, {transform_indices = @transform_3, window_bounds = array<i64: 1, 32>}, {transform_indices = @transform_4, window_bounds = array<i64: 1, 32>}, {pipeline_mode = #tpu.pipeline_mode<synchronous>, transform_indices = @transform_5, window_bounds = array<i64: 32, 32>}, {transform_indices = @transform_6, window_bounds = array<i64: 1, 32, 256>}]} {
    %cst = arith.constant 0.000000e+00 : f32
    %0 = vector.broadcast %cst : f32 to vector<256x32xf32>
    %c0 = arith.constant 0 : index
    %c0_0 = arith.constant 0 : index
    %c0_1 = arith.constant 0 : index
    %c0_2 = arith.constant 0 : index
    %1 = vector.load %arg2[%c0, %c0_0, %c0_1, %c0_2] : memref<1x18x18x32xbf16, #tpu.memory_space<vmem>>, vector<1x16x16x32xbf16>
    %2 = vector.shape_cast %1 : vector<1x16x16x32xbf16> to vector<16x16x32xbf16>
    %3 = vector.shape_cast %2 : vector<16x16x32xbf16> to vector<256x32xbf16>
    %c0_3 = arith.constant 0 : index
    %c0_4 = arith.constant 0 : index
    %c0_5 = arith.constant 0 : index
    %4 = vector.load %arg3[%c0_3, %c0_4, %c0_5] : memref<9x32x32xbf16, #tpu.memory_space<vmem>>, vector<1x32x32xbf16>
    %5 = vector.shape_cast %4 : vector<1x32x32xbf16> to vector<32x32xbf16>
    %cst_6 = arith.constant dense<0.000000e+00> : vector<256x32xf32>
    %6 = tpu.matmul %3, %5, %cst_6 {dimension_numbers = #tpu.dot_dimension_numbers<[1], [0], [0], [1], [0, 0, 1, 1], [], []>} : vector<256x32xbf16>, vector<32x32xbf16>, vector<256x32xf32> -> vector<256x32xf32>
    %7 = arith.addf %0, %6 : vector<256x32xf32>
    %c0_7 = arith.constant 0 : index
    %c0_8 = arith.constant 0 : index
    %c1 = arith.constant 1 : index
    %c0_9 = arith.constant 0 : index
    %8 = vector.load %arg2[%c0_7, %c0_8, %c1, %c0_9] : memref<1x18x18x32xbf16, #tpu.memory_space<vmem>>, vector<1x16x16x32xbf16>
    %9 = vector.shape_cast %8 : vector<1x16x16x32xbf16> to vector<16x16x32xbf16>
    %10 = vector.shape_cast %9 : vector<16x16x32xbf16> to vector<256x32xbf16>
    %c1_10 = arith.constant 1 : index
    %c0_11 = arith.constant 0 : index
    %c0_12 = arith.constant 0 : index
    %11 = vector.load %arg3[%c1_10, %c0_11, %c0_12] : memref<9x32x32xbf16, #tpu.memory_space<vmem>>, vector<1x32x32xbf16>
    %12 = vector.shape_cast %11 : vector<1x32x32xbf16> to vector<32x32xbf16>
    %cst_13 = arith.constant dense<0.000000e+00> : vector<256x32xf32>
    %13 = tpu.matmul %10, %12, %cst_13 {dimension_numbers = #tpu.dot_dimension_numbers<[1], [0], [0], [1], [0, 0, 1, 1], [], []>} : vector<256x32xbf16>, vector<32x32xbf16>, vector<256x32xf32> -> vector<256x32xf32>
    %14 = arith.addf %7, %13 : vector<256x32xf32>
    %c0_14 = arith.constant 0 : index
    %c0_15 = arith.constant 0 : index
    %c2 = arith.constant 2 : index
    %c0_16 = arith.constant 0 : index
    %15 = vector.load %arg2[%c0_14, %c0_15, %c2, %c0_16] : memref<1x18x18x32xbf16, #tpu.memory_space<vmem>>, vector<1x16x16x32xbf16>
    %16 = vector.shape_cast %15 : vector<1x16x16x32xbf16> to vector<16x16x32xbf16>
    %17 = vector.shape_cast %16 : vector<16x16x32xbf16> to vector<256x32xbf16>
    %c2_17 = arith.constant 2 : index
    %c0_18 = arith.constant 0 : index
    %c0_19 = arith.constant 0 : index
    %18 = vector.load %arg3[%c2_17, %c0_18, %c0_19] : memref<9x32x32xbf16, #tpu.memory_space<vmem>>, vector<1x32x32xbf16>
    %19 = vector.shape_cast %18 : vector<1x32x32xbf16> to vector<32x32xbf16>
    %cst_20 = arith.constant dense<0.000000e+00> : vector<256x32xf32>
    %20 = tpu.matmul %17, %19, %cst_20 {dimension_numbers = #tpu.dot_dimension_numbers<[1], [0], [0], [1], [0, 0, 1, 1], [], []>} : vector<256x32xbf16>, vector<32x32xbf16>, vector<256x32xf32> -> vector<256x32xf32>
    %21 = arith.addf %14, %20 : vector<256x32xf32>
    %c0_21 = arith.constant 0 : index
    %c1_22 = arith.constant 1 : index
    %c0_23 = arith.constant 0 : index
    %c0_24 = arith.constant 0 : index
    %22 = vector.load %arg2[%c0_21, %c1_22, %c0_23, %c0_24] : memref<1x18x18x32xbf16, #tpu.memory_space<vmem>>, vector<1x16x16x32xbf16>
    %23 = vector.shape_cast %22 : vector<1x16x16x32xbf16> to vector<16x16x32xbf16>
    %24 = vector.shape_cast %23 : vector<16x16x32xbf16> to vector<256x32xbf16>
    %c3 = arith.constant 3 : index
    %c0_25 = arith.constant 0 : index
    %c0_26 = arith.constant 0 : index
    %25 = vector.load %arg3[%c3, %c0_25, %c0_26] : memref<9x32x32xbf16, #tpu.memory_space<vmem>>, vector<1x32x32xbf16>
    %26 = vector.shape_cast %25 : vector<1x32x32xbf16> to vector<32x32xbf16>
    %cst_27 = arith.constant dense<0.000000e+00> : vector<256x32xf32>
    %27 = tpu.matmul %24, %26, %cst_27 {dimension_numbers = #tpu.dot_dimension_numbers<[1], [0], [0], [1], [0, 0, 1, 1], [], []>} : vector<256x32xbf16>, vector<32x32xbf16>, vector<256x32xf32> -> vector<256x32xf32>
    %28 = arith.addf %21, %27 : vector<256x32xf32>
    %c0_28 = arith.constant 0 : index
    %c1_29 = arith.constant 1 : index
    %c1_30 = arith.constant 1 : index
    %c0_31 = arith.constant 0 : index
    %29 = vector.load %arg2[%c0_28, %c1_29, %c1_30, %c0_31] : memref<1x18x18x32xbf16, #tpu.memory_space<vmem>>, vector<1x16x16x32xbf16>
    %30 = vector.shape_cast %29 : vector<1x16x16x32xbf16> to vector<16x16x32xbf16>
    %31 = vector.shape_cast %30 : vector<16x16x32xbf16> to vector<256x32xbf16>
    %c4 = arith.constant 4 : index
    %c0_32 = arith.constant 0 : index
    %c0_33 = arith.constant 0 : index
    %32 = vector.load %arg3[%c4, %c0_32, %c0_33] : memref<9x32x32xbf16, #tpu.memory_space<vmem>>, vector<1x32x32xbf16>
    %33 = vector.shape_cast %32 : vector<1x32x32xbf16> to vector<32x32xbf16>
    %cst_34 = arith.constant dense<0.000000e+00> : vector<256x32xf32>
    %34 = tpu.matmul %31, %33, %cst_34 {dimension_numbers = #tpu.dot_dimension_numbers<[1], [0], [0], [1], [0, 0, 1, 1], [], []>} : vector<256x32xbf16>, vector<32x32xbf16>, vector<256x32xf32> -> vector<256x32xf32>
    %35 = arith.addf %28, %34 : vector<256x32xf32>
    %c0_35 = arith.constant 0 : index
    %c1_36 = arith.constant 1 : index
    %c2_37 = arith.constant 2 : index
    %c0_38 = arith.constant 0 : index
    %36 = vector.load %arg2[%c0_35, %c1_36, %c2_37, %c0_38] : memref<1x18x18x32xbf16, #tpu.memory_space<vmem>>, vector<1x16x16x32xbf16>
    %37 = vector.shape_cast %36 : vector<1x16x16x32xbf16> to vector<16x16x32xbf16>
    %38 = vector.shape_cast %37 : vector<16x16x32xbf16> to vector<256x32xbf16>
    %c5 = arith.constant 5 : index
    %c0_39 = arith.constant 0 : index
    %c0_40 = arith.constant 0 : index
    %39 = vector.load %arg3[%c5, %c0_39, %c0_40] : memref<9x32x32xbf16, #tpu.memory_space<vmem>>, vector<1x32x32xbf16>
    %40 = vector.shape_cast %39 : vector<1x32x32xbf16> to vector<32x32xbf16>
    %cst_41 = arith.constant dense<0.000000e+00> : vector<256x32xf32>
    %41 = tpu.matmul %38, %40, %cst_41 {dimension_numbers = #tpu.dot_dimension_numbers<[1], [0], [0], [1], [0, 0, 1, 1], [], []>} : vector<256x32xbf16>, vector<32x32xbf16>, vector<256x32xf32> -> vector<256x32xf32>
    %42 = arith.addf %35, %41 : vector<256x32xf32>
    %c0_42 = arith.constant 0 : index
    %c2_43 = arith.constant 2 : index
    %c0_44 = arith.constant 0 : index
    %c0_45 = arith.constant 0 : index
    %43 = vector.load %arg2[%c0_42, %c2_43, %c0_44, %c0_45] : memref<1x18x18x32xbf16, #tpu.memory_space<vmem>>, vector<1x16x16x32xbf16>
    %44 = vector.shape_cast %43 : vector<1x16x16x32xbf16> to vector<16x16x32xbf16>
    %45 = vector.shape_cast %44 : vector<16x16x32xbf16> to vector<256x32xbf16>
    %c6 = arith.constant 6 : index
    %c0_46 = arith.constant 0 : index
    %c0_47 = arith.constant 0 : index
    %46 = vector.load %arg3[%c6, %c0_46, %c0_47] : memref<9x32x32xbf16, #tpu.memory_space<vmem>>, vector<1x32x32xbf16>
    %47 = vector.shape_cast %46 : vector<1x32x32xbf16> to vector<32x32xbf16>
    %cst_48 = arith.constant dense<0.000000e+00> : vector<256x32xf32>
    %48 = tpu.matmul %45, %47, %cst_48 {dimension_numbers = #tpu.dot_dimension_numbers<[1], [0], [0], [1], [0, 0, 1, 1], [], []>} : vector<256x32xbf16>, vector<32x32xbf16>, vector<256x32xf32> -> vector<256x32xf32>
    %49 = arith.addf %42, %48 : vector<256x32xf32>
    %c0_49 = arith.constant 0 : index
    %c2_50 = arith.constant 2 : index
    %c1_51 = arith.constant 1 : index
    %c0_52 = arith.constant 0 : index
    %50 = vector.load %arg2[%c0_49, %c2_50, %c1_51, %c0_52] : memref<1x18x18x32xbf16, #tpu.memory_space<vmem>>, vector<1x16x16x32xbf16>
    %51 = vector.shape_cast %50 : vector<1x16x16x32xbf16> to vector<16x16x32xbf16>
    %52 = vector.shape_cast %51 : vector<16x16x32xbf16> to vector<256x32xbf16>
    %c7 = arith.constant 7 : index
    %c0_53 = arith.constant 0 : index
    %c0_54 = arith.constant 0 : index
    %53 = vector.load %arg3[%c7, %c0_53, %c0_54] : memref<9x32x32xbf16, #tpu.memory_space<vmem>>, vector<1x32x32xbf16>
    %54 = vector.shape_cast %53 : vector<1x32x32xbf16> to vector<32x32xbf16>
    %cst_55 = arith.constant dense<0.000000e+00> : vector<256x32xf32>
    %55 = tpu.matmul %52, %54, %cst_55 {dimension_numbers = #tpu.dot_dimension_numbers<[1], [0], [0], [1], [0, 0, 1, 1], [], []>} : vector<256x32xbf16>, vector<32x32xbf16>, vector<256x32xf32> -> vector<256x32xf32>
    %56 = arith.addf %49, %55 : vector<256x32xf32>
    %c0_56 = arith.constant 0 : index
    %c2_57 = arith.constant 2 : index
    %c2_58 = arith.constant 2 : index
    %c0_59 = arith.constant 0 : index
    %57 = vector.load %arg2[%c0_56, %c2_57, %c2_58, %c0_59] : memref<1x18x18x32xbf16, #tpu.memory_space<vmem>>, vector<1x16x16x32xbf16>
    %58 = vector.shape_cast %57 : vector<1x16x16x32xbf16> to vector<16x16x32xbf16>
    %59 = vector.shape_cast %58 : vector<16x16x32xbf16> to vector<256x32xbf16>
    %c8 = arith.constant 8 : index
    %c0_60 = arith.constant 0 : index
    %c0_61 = arith.constant 0 : index
    %60 = vector.load %arg3[%c8, %c0_60, %c0_61] : memref<9x32x32xbf16, #tpu.memory_space<vmem>>, vector<1x32x32xbf16>
    %61 = vector.shape_cast %60 : vector<1x32x32xbf16> to vector<32x32xbf16>
    %cst_62 = arith.constant dense<0.000000e+00> : vector<256x32xf32>
    %62 = tpu.matmul %59, %61, %cst_62 {dimension_numbers = #tpu.dot_dimension_numbers<[1], [0], [0], [1], [0, 0, 1, 1], [], []>} : vector<256x32xbf16>, vector<32x32xbf16>, vector<256x32xf32> -> vector<256x32xf32>
    %63 = arith.addf %56, %62 : vector<256x32xf32>
    %c0_63 = arith.constant 0 : index
    %c0_64 = arith.constant 0 : index
    %64 = vector.load %arg4[%c0_63, %c0_64] : memref<1x32xf32, #tpu.memory_space<vmem>>, vector<1x32xf32>
    %65 = vector.broadcast %64 : vector<1x32xf32> to vector<256x32xf32>
    %66 = arith.addf %63, %65 : vector<256x32xf32>
    %c0_65 = arith.constant 0 : index
    %c0_66 = arith.constant 0 : index
    %67 = vector.load %arg7[%c0_65, %c0_66] : memref<32x32xf32, #tpu.memory_space<vmem>>, vector<32x32xf32>
    %cst_67 = arith.constant dense<0.000000e+00> : vector<32xf32>
    %68 = vector.multi_reduction <add>, %66, %cst_67 [0] : vector<256x32xf32> to vector<32xf32>
    %69 = vector.shape_cast %68 : vector<32xf32> to vector<1x32xf32>
    %cst_68 = arith.constant dense<0.000000e+00> : vector<1x32xf32>
    %70 = tpu.matmul %69, %67, %cst_68 {dimension_numbers = #tpu.dot_dimension_numbers<[1], [0], [0], [1], [0, 0, 1, 1], [], []>} : vector<1x32xf32>, vector<32x32xf32>, vector<1x32xf32> -> vector<1x32xf32>
    %cst_69 = arith.constant 9.765625E-4 : f32
    %71 = vector.broadcast %cst_69 : f32 to vector<1x32xf32>
    %72 = arith.mulf %70, %71 : vector<1x32xf32>
    %73 = vector.broadcast %72 : vector<1x32xf32> to vector<256x32xf32>
    %74 = arith.subf %66, %73 : vector<256x32xf32>
    %75 = arith.mulf %74, %74 : vector<256x32xf32>
    %cst_70 = arith.constant dense<0.000000e+00> : vector<32xf32>
    %76 = vector.multi_reduction <add>, %75, %cst_70 [0] : vector<256x32xf32> to vector<32xf32>
    %77 = vector.shape_cast %76 : vector<32xf32> to vector<1x32xf32>
    %cst_71 = arith.constant dense<0.000000e+00> : vector<1x32xf32>
    %78 = tpu.matmul %77, %67, %cst_71 {dimension_numbers = #tpu.dot_dimension_numbers<[1], [0], [0], [1], [0, 0, 1, 1], [], []>} : vector<1x32xf32>, vector<32x32xf32>, vector<1x32xf32> -> vector<1x32xf32>
    %cst_72 = arith.constant 9.765625E-4 : f32
    %79 = vector.broadcast %cst_72 : f32 to vector<1x32xf32>
    %80 = arith.mulf %78, %79 : vector<1x32xf32>
    %cst_73 = arith.constant 9.99999974E-6 : f32
    %81 = vector.broadcast %cst_73 : f32 to vector<1x32xf32>
    %82 = arith.addf %80, %81 : vector<1x32xf32>
    %83 = math.rsqrt %82 : vector<1x32xf32>
    %84 = vector.broadcast %83 : vector<1x32xf32> to vector<256x32xf32>
    %85 = arith.mulf %74, %84 : vector<256x32xf32>
    %c0_74 = arith.constant 0 : index
    %c0_75 = arith.constant 0 : index
    %86 = vector.load %arg5[%c0_74, %c0_75] : memref<1x32xf32, #tpu.memory_space<vmem>>, vector<1x32xf32>
    %87 = vector.broadcast %86 : vector<1x32xf32> to vector<256x32xf32>
    %88 = arith.mulf %85, %87 : vector<256x32xf32>
    %c0_76 = arith.constant 0 : index
    %c0_77 = arith.constant 0 : index
    %89 = vector.load %arg6[%c0_76, %c0_77] : memref<1x32xf32, #tpu.memory_space<vmem>>, vector<1x32xf32>
    %90 = vector.broadcast %89 : vector<1x32xf32> to vector<256x32xf32>
    %91 = arith.addf %88, %90 : vector<256x32xf32>
    %cst_78 = arith.constant 0.000000e+00 : f32
    %92 = vector.broadcast %cst_78 : f32 to vector<256x32xf32>
    %93 = arith.maximumf %91, %92 : vector<256x32xf32>
    %94 = tpu.transpose %93, [1, 0] : vector<256x32xf32> -> vector<32x256xf32>
    %c0_79 = arith.constant 0 : index
    %c0_80 = arith.constant 0 : index
    %c0_81 = arith.constant 0 : index
    %95 = vector.load %arg8[%c0_79, %c0_80, %c0_81] : memref<1x32x256xf32, #tpu.memory_space<vmem>>, vector<1x32x256xf32>
    %96 = vector.shape_cast %95 : vector<1x32x256xf32> to vector<32x256xf32>
    %97 = vector.shape_cast %94 : vector<32x256xf32> to vector<1x32x256xf32>
    tpu.vector_store %arg8[%c0_79, %c0_80, %c0_81], %97 {strides = array<i32>} : memref<1x32x256xf32, #tpu.memory_space<vmem>>, vector<1x32x256xf32>,
    return
  }
  func.func @transform_0(%arg0: i32, %arg1: i32) -> (i32, i32, i32, i32) {
    %c0_i32 = arith.constant 0 : i32
    %c0_i32_0 = arith.constant 0 : i32
    %c0_i32_1 = arith.constant 0 : i32
    %c0_i32_2 = arith.constant 0 : i32
    return %arg0, %c0_i32, %c0_i32_0, %c0_i32_1 : i32, i32, i32, i32
  }
  func.func @transform_1(%arg0: i32, %arg1: i32) -> (i32, i32, i32) {
    %c0_i32 = arith.constant 0 : i32
    %c0_i32_0 = arith.constant 0 : i32
    %c0_i32_1 = arith.constant 0 : i32
    return %c0_i32, %c0_i32_0, %arg1 : i32, i32, i32
  }
  func.func @transform_2(%arg0: i32, %arg1: i32) -> (i32, i32) {
    %c0_i32 = arith.constant 0 : i32
    %c0_i32_0 = arith.constant 0 : i32
    return %c0_i32, %arg1 : i32, i32
  }
  func.func @transform_3(%arg0: i32, %arg1: i32) -> (i32, i32) {
    %c0_i32 = arith.constant 0 : i32
    %c0_i32_0 = arith.constant 0 : i32
    return %c0_i32, %arg1 : i32, i32
  }
  func.func @transform_4(%arg0: i32, %arg1: i32) -> (i32, i32) {
    %c0_i32 = arith.constant 0 : i32
    %c0_i32_0 = arith.constant 0 : i32
    return %c0_i32, %arg1 : i32, i32
  }
  func.func @transform_5(%arg0: i32, %arg1: i32) -> (i32, i32) {
    %c0_i32 = arith.constant 0 : i32
    %c0_i32_0 = arith.constant 0 : i32
    %c0_i32_1 = arith.constant 0 : i32
    return %c0_i32, %c0_i32_0 : i32, i32
  }
  func.func @transform_6(%arg0: i32, %arg1: i32) -> (i32, i32, i32) {
    %c0_i32 = arith.constant 0 : i32
    %c0_i32_0 = arith.constant 0 : i32
    return %arg0, %arg1, %c0_i32 : i32, i32, i32
  }
}

</mosaic_0001>

<bundles_post_ra>
// kernel: conv_block_forward.2
= control target key start
LH: loop header
LB: loop body
LE: loop exit
PB: predicated region body
PF: predicated region fallthrough
CT: control target
= control target key end

     0   :  { %s7298_s21 = smov 0   ;;  %s7300_s22 = smov 0   ;;  %s9771_s0 = inlined_call_operand.vmem [shape: bf16[2,18,18,4], index: 0, kind: input, shape index: {}]   ;;  %s9772_s1 = inlined_call_operand.vmem [shape: bf16[9,4,32], index: 1, kind: input, shape index: {}]   ;;  %s9773_s2 = inlined_call_operand.vmem [shape: f32[1,32], index: 2, kind: input, shape index: {}]   ;;  %s9774_s3 = inlined_call_operand.vmem [shape: f32[1,32], index: 3, kind: input, shape index: {}]   ;;  %s9775_s4 = inlined_call_operand.vmem [shape: f32[1,32], index: 4, kind: input, shape index: {}]   ;;  %s9776_s5 = inlined_call_operand.vmem [shape: f32[32,32], index: 5, kind: input, shape index: {}]   ;;  %s9777_s6 = inlined_call_operand.vmem [shape: bf16[2,256,32], index: 6, kind: output, shape index: {}]  }
   0x1   :  { %s7302_s23 = smov 0  }
   0x2 LB: > { %s28_s24 = sadd.s32 1, %s7254_s22  ;;  %p5735_p0 = scmp.ge.s32.totalorder %s7258_s23, 1  ;;  %s7258_s23 = sphi %s7302_s23, %s16_s23   ;;  %s7254_s22 = sphi %s7300_s22, %s9879_s22   ;;  %s7250_s21 = sphi %s7298_s21, %s9878_s21  }
   0x3   : > { %p30_p1 = scmp.ge.s32.totalorder %s28_s24, 2  ;;  %p259_p2 = scmp.lt.s32.totalorder %s7258_s23, 3 }
   0x5   : > { %s9881_s24 = smov (%p30_p1, %s28_s24), 0  ;;  %p260_p3 = pnand %p5735_p0, %p259_p2 }
   0x7   : > { %263 = sbr.rel (%p260_p3) target bundleno = 1191 (0x4a7), region = 44 }
   0xe   : > { %vm867_vm0 = vcmask 1041408   ;;  %v5966_v0 = vld [vmem:[%s9772_s1 + $0x8] sm:$0x3]  ;;  %v5739_v1 = vld [vmem:[%s9772_s1 + $0x2] sm:$0x3]  ;;  %p305_p4 = scmp.lt.s32.totalorder %s7250_s21, 1 }
   0xf   : > { %7112 = vmatprep.subr.msk.bf16.mxu0 %vm867_vm0, %v5966_v0  ;;  %7108 = vmatprep.subr.msk.bf16.mxu1 %vm867_vm0, %v5739_v1  ;;  %v7325_v2 = vsel %vm867_vm0, %v5966_v0, 0  ;;  %v869_v3 = vsel %vm867_vm0, %v5739_v1, 0  ;;  %v6031_v4 = vld [vmem:[%s9772_s1 + $0xa] sm:$0x3]  ;;  %v364_v5 = vld [vmem:[%s9772_s1] sm:$0x3] }
  0x10   : > { %9801 = vst [vmem:[#allocation2_spill] sm:$0xff] %v7325_v2  ;;  %6647 = vmatpush3.bf16.msra.mxu0 %v7325_v2  ;;  %6511 = vmatpush3.bf16.msra.mxu1 %v869_v3  ;;  %s9883_s21 = smov (!%p305_p4, %s7250_s21), 1  ;;  %vm381_vm1 = vsmask.f32 3328  ;;  %vm382_vm2 = vsmask.f32 7440 }
  0x11   : > { %7114 = vmatprep.subr.msk.bf16.mxu0 %vm867_vm0, %v6031_v4  ;;  %7109 = vmatprep.subr.msk.bf16.mxu1 %vm867_vm0, %v364_v5  ;;  %s7118_s9 = smul.u32 216, %s9883_s21  ;;  %vm818_vm3 = vcmask 31744   ;;  %v7356_v17 = vsel %vm867_vm0, %v6031_v4, 0  ;;  %v7362_v26 = vld [vmem:[%s9772_s1 + $0xc] sm:$0x3]  ;;  %vm7369_vm4 = vmor %vm381_vm1, %vm382_vm2  ;;  %v7375_v37 = vsel %vm867_vm0, %v364_v5, 0 }
  0x12   : > { %v7379_v41 = vsel %vm867_vm0, %v7362_v26, 0  ;;  %vm1372_vm5 = vcmask 1042432   ;;  %vm1373_vm6 = vcmask 1046532   ;;  %v7260_v32 = vmov 0.0|0.0   ;;  %s6314_s19 = sshll.u32 %s9883_s21, 7 }
  0x13   : > { %s7343_s12 = scalar_lea.vmem %s9771_s0, %s7118_s9  ;;  %vm7656_vm7 = vmor %vm1372_vm5, %vm1373_vm6  ;;  %vm7261_vm8 = vmmov 0   ;;  %vm4934_vm9 = vcmask 261120   ;;  %vm5565_vm10 = vcmask 257024   ;;  %s9692_s25 = scalar_lea.vmem %s9777_s6, %s6314_s19 }
  0x14   : > { %v332_v6 = vld [vmem:[%s7343_s12] sm:$0xf]  ;;  %v333_v7 = vld [vmem:[%s7343_s12 + $0x4] sm:$0xf]  ;;  %v365_v8 = vld [vmem:[%s7343_s12 + $0x8] sm:$0x1] }
  0x15   : > { %v385_v9 = vshrl.u32 %v332_v6, 16  ;;  %v388_v10 = vshll.u32 %v332_v6, 16  ;;  %v394_v11 = vshll.u32 %v333_v7, 16  ;;  %v398_v12 = vshrl.u32 %v333_v7, 16  ;;  %v5918_v13 = vld [vmem:[%s7343_s12 + $0xc] sm:$0xf] }
  0x16   : > { %v404_v14 = vshll.u32 %v365_v8, 16  ;;  %v7350_v15 = vld [vmem:[%s7343_s12 + $0x10] sm:$0xf]  ;;  %v7353_v16 = vld [vmem:[%s7343_s12 + $0x14] sm:$0x1]  ;;  %v2189_v23 = vshrl.u32 %v5918_v13, 16 }
  0x17   : > { %v387_v18 = vrot.slane %v385_v9, 4  ;;  %v390_v19 = vrot.slane %v388_v10, 5  ;;  %v396_v20 = vrot.slane %v394_v11, 5  ;;  %v400_v21 = vrot.slane %v398_v12, 4  ;;  %v334_v31 = vld [vmem:[%s7343_s12 + $0xc] sm:$0xf] }
  0x18   : > { %v406_v22 = vrot.slane %v404_v14, 5  ;;  %v2192_v24 = vshll.u32 %v5918_v13, 16  ;;  %v2198_v25 = vshll.u32 %v7350_v15, 16  ;;  %v2202_v29 = vshrl.u32 %v7350_v15, 16  ;;  %v335_v36 = vld [vmem:[%s7343_s12 + $0x10] sm:$0xf] }
  0x19   : > { %v391_v27 = vor.u32 %v390_v19, %v387_v18  ;;  %v401_v28 = vor.u32 %v400_v21, %v396_v20  ;;  %v2208_v30 = vshll.u32 %v7353_v16, 16  ;;  %v2191_v33 = vrot.slane %v2189_v23, 4  ;;  %v366_v44 = vld [vmem:[%s7343_s12 + $0x14] sm:$0x1]  ;;  %v5921_v55 = vld [vmem:[%s7343_s12 + $0x18] sm:$0xf] }
  0x1a   : > { %v2194_v34 = vrot.slane %v2192_v24, 5  ;;  %v2200_v35 = vrot.slane %v2198_v25, 5  ;;  %v2204_v40 = vrot.slane %v2202_v29, 4  ;;  %v409_v45 = vshrl.u32 %v334_v31, 16  ;;  %v7388_v60 = vld [vmem:[%s7343_s12 + $0x1c] sm:$0xf] }
  0x1b   : > { %v392_v38 = vrot.slane %v391_v27, 4  ;;  %v402_v39 = vrot.slane %v401_v28, 4  ;;  %v2210_v43 = vrot.slane %v2208_v30, 5  ;;  %v412_v46 = vshll.u32 %v334_v31, 16  ;;  %v7396_v1 = vld [vmem:[%s7343_s12 + $0x20] sm:$0x1] }
  0x1c   : > { %v2195_v42 = vor.u32 %v2194_v34, %v2191_v33  ;;  %v2205_v49 = vor.u32 %v2204_v40, %v2200_v35  ;;  %v418_v50 = vshll.u32 %v335_v36, 16  ;;  %v411_v53 = vrot.slane %v409_v45, 4  ;;  %v336_v18 = vld [vmem:[%s7343_s12 + $0x18] sm:$0xf]  ;;  %v337_v23 = vld [vmem:[%s7343_s12 + $0x1c] sm:$0xf] }
  0x1d   : > { %v397_v47 = vsel %vm7369_vm4, %v392_v38, %v396_v20  ;;  %v407_v48 = vsel %vm7369_vm4, %v402_v39, %v406_v22  ;;  %v414_v54 = vrot.slane %v412_v46, 5  ;;  %v422_v58 = vshrl.u32 %v335_v36, 16  ;;  %v367_v31 = vld [vmem:[%s7343_s12 + $0x20] sm:$0x1]  ;;  %v5924_v40 = vld [vmem:[%s7343_s12 + $0x24] sm:$0xf] }
  0x1e   : > { %v5740_v51 = vcombine.low %v397_v47, %v407_v48  ;;  %v2196_v52 = vrot.slane %v2195_v42, 4  ;;  %v2206_v56 = vrot.slane %v2205_v49, 4  ;;  %v420_v57 = vrot.slane %v418_v50, 5  ;;  %v7419_v46 = vld [vmem:[%s7343_s12 + $0x28] sm:$0xf] }
  0x1f   : > { %v428_v59 = vshll.u32 %v366_v44, 16  ;;  %v2932_v62 = vrot.slane %v7350_v15, 5  ;;  %v2935_v63 = vrot.slane %v7353_v16, 5  ;;  %v415_v0 = vor.u32 %v414_v54, %v411_v53  ;;  %v7425_v53 = vld [vmem:[%s7343_s12 + $0x2c] sm:$0x1] }
  0x20   : > { %6512 = vmatprep.mubr.msk.bf16.mxu1 %vm818_vm3, %v5740_v51  ;;  %v2201_v61 = vsel %vm7369_vm4, %v2196_v52, %v2200_v35  ;;  %v2211_v3 = vsel %vm7369_vm4, %v2206_v56, %v2210_v43  ;;  %v424_v4 = vrot.slane %v422_v58, 4  ;;  %v2213_v6 = vshrl.u32 %v5921_v55, 16 }
  0x21   : > { %v430_v5 = vrot.slane %v428_v59, 5  ;;  %v5967_v7 = vcombine.low %v2201_v61, %v2211_v3  ;;  %v416_v8 = vrot.slane %v415_v0, 4  ;;  %v2216_v9 = vshll.u32 %v5921_v55, 16  ;;  %v338_v61 = vld [vmem:[%s7343_s12 + $0x24] sm:$0xf] }
  0x22   : > { %v2222_v10 = vshll.u32 %v7388_v60, 16  ;;  %v425_v11 = vor.u32 %v424_v4, %v420_v57  ;;  %v2215_v12 = vrot.slane %v2213_v6, 4  ;;  %v2226_v13 = vshrl.u32 %v7388_v60, 16  ;;  %v339_v6 = vld [vmem:[%s7343_s12 + $0x28] sm:$0xf] }
  0x23   : > { %v2232_v14 = vshll.u32 %v7396_v1, 16  ;;  %6648 = vmatprep.mubr.msk.bf16.mxu0 %vm818_vm3, %v5967_v7  ;;  %v421_v19 = vsel %vm7369_vm4, %v416_v8, %v420_v57  ;;  %v2218_v20 = vrot.slane %v2216_v9, 5  ;;  %v2939_v22 = vrot.slane %v7388_v60, 5 }
  0x24   : > { %v2224_v21 = vrot.slane %v2222_v10, 5  ;;  %v426_v24 = vrot.slane %v425_v11, 4  ;;  %v2228_v25 = vrot.slane %v2226_v13, 4  ;;  %v2942_v28 = vrot.slane %v7396_v1, 5 }
  0x25   : > { %v2234_v27 = vrot.slane %v2232_v14, 5  ;;  %v2219_v29 = vor.u32 %v2218_v20, %v2215_v12  ;;  %v7412_v30 = vrot.slane %v2939_v22, 4  ;;  %v433_v33 = vshrl.u32 %v336_v18, 16 }
  0x26   : > { %v436_v34 = vshll.u32 %v336_v18, 16  ;;  %v431_v35 = vsel %vm7369_vm4, %v426_v24, %v430_v5  ;;  %v2229_v36 = vor.u32 %v2228_v25, %v2224_v21  ;;  %v442_v38 = vshll.u32 %v337_v23, 16 }
  0x27   : > { %v446_v39 = vshrl.u32 %v337_v23, 16  ;;  %v5741_v42 = vcombine.low %v421_v19, %v431_v35  ;;  %v2220_v43 = vrot.slane %v2219_v29, 4  ;;  %v435_v44 = vrot.slane %v433_v33, 4  ;;  %v5927_v23 = vld [vmem:[%s7343_s12 + $0x30] sm:$0xf] }
  0x28   : > { %v438_v45 = vrot.slane %v436_v34, 5  ;;  %v2230_v47 = vrot.slane %v2229_v36, 4  ;;  %v444_v48 = vrot.slane %v442_v38, 5  ;;  %v452_v50 = vshll.u32 %v367_v31, 16  ;;  %v7444_v31 = vld [vmem:[%s7343_s12 + $0x34] sm:$0xf] }
  0x29   : > { %v448_v49 = vrot.slane %v446_v39, 4  ;;  %6513 = vmatmul.mubr.msk.bf16.vlgmr.msra.gmra.mrb[0].mxu1 %vm818_vm3, %v5741_v42  ;;  %v2225_v51 = vsel %vm7369_vm4, %v2220_v43, %v2224_v21  ;;  %v2237_v54 = vshrl.u32 %v5924_v40, 16  ;;  %v2240_v55 = vshll.u32 %v5924_v40, 16  ;;  %v7452_v39 = vld [vmem:[%s7343_s12 + $0x38] sm:$0x1] }
  0x2a   : > { %v439_v52 = vor.u32 %v438_v45, %v435_v44  ;;  %v2235_v56 = vsel %vm7369_vm4, %v2230_v47, %v2234_v27  ;;  %v454_v58 = vrot.slane %v452_v50, 5  ;;  %v2246_v59 = vshll.u32 %v7419_v46, 16  ;;  %6545 = vmatpush3.bf16.msra.mxu1 %v7375_v37  ;;  %v368_v37 = vld [vmem:[%s7343_s12 + $0x2c] sm:$0x1] }
  0x2b   : > { %v449_v57 = vor.u32 %v448_v49, %v444_v48  ;;  %v5968_v0 = vcombine.low %v2225_v51, %v2235_v56  ;;  %v2239_v4 = vrot.slane %v2237_v54, 4  ;;  %v2242_v5 = vrot.slane %v2240_v55, 5  ;;  %v340_v51 = vld [vmem:[%s7343_s12 + $0x30] sm:$0xf] }
  0x2c   : > { %v440_v3 = vrot.slane %v439_v52, 4  ;;  %v2248_v8 = vrot.slane %v2246_v59, 5  ;;  %v2250_v9 = vshrl.u32 %v7419_v46, 16  ;;  %v2256_v10 = vshll.u32 %v7425_v53, 16 }
  0x2d   : > { %v450_v7 = vrot.slane %v449_v57, 4  ;;  %6649 = vmatmul.mubr.msk.bf16.vlgmr.msra.gmra.mrb[0].mxu0 %vm818_vm3, %v5968_v0  ;;  %v2243_v12 = vor.u32 %v2242_v5, %v2239_v4  ;;  %v457_v13 = vshrl.u32 %v338_v61, 16  ;;  %v460_v14 = vshll.u32 %v338_v61, 16  ;;  %v341_v57 = vld [vmem:[%s7343_s12 + $0x34] sm:$0xf] }
  0x2e   : > { %v445_v11 = vsel %vm7369_vm4, %v440_v3, %v444_v48  ;;  %6681 = vmatpush3.bf16.msra.mxu0 %v7356_v17  ;;  %v2252_v19 = vrot.slane %v2250_v9, 4  ;;  %v2258_v20 = vrot.slane %v2256_v10, 5  ;;  %v466_v21 = vshll.u32 %v339_v6, 16  ;;  %v369_v3 = vld [vmem:[%s7343_s12 + $0x38] sm:$0x1] }
  0x2f   : > { %v455_v18 = vsel %vm7369_vm4, %v450_v7, %v454_v58  ;;  %v2244_v25 = vrot.slane %v2243_v12, 4  ;;  %v459_v27 = vrot.slane %v457_v13, 4  ;;  %v462_v29 = vrot.slane %v460_v14, 5  ;;  %7115 = vmatprep.subr.msk.bf16.mxu0 %vm867_vm0, %v7362_v26  ;;  %v5930_v12 = vld [vmem:[%s7343_s12 + $0x3c] sm:$0xf] }
  0x30   : > { %v5742_v24 = vcombine.low %v445_v11, %v455_v18  ;;  %v2253_v33 = vor.u32 %v2252_v19, %v2248_v8  ;;  %v468_v34 = vrot.slane %v466_v21, 5  ;;  %v470_v17 = vshrl.u32 %v339_v6, 16  ;;  %v7469_v19 = vld [vmem:[%s7343_s12 + $0x40] sm:$0xf] }
  0x31   : > { %v476_v35 = vshll.u32 %v368_v37, 16  ;;  %v2249_v36 = vsel %vm7369_vm4, %v2244_v25, %v2248_v8  ;;  %v463_v38 = vor.u32 %v462_v29, %v459_v27  ;;  %v2261_v40 = vshrl.u32 %v5927_v23, 16 }
  0x32   : > { %6516 = vmatprep.mubr.msk.bf16.mxu1 %vm818_vm3, %v5742_v24  ;;  %v2264_v42 = vshll.u32 %v5927_v23, 16  ;;  %v2254_v43 = vrot.slane %v2253_v33, 4  ;;  %v472_v44 = vrot.slane %v470_v17, 4  ;;  %v2270_v26 = vshll.u32 %v7444_v31, 16  ;;  %v7474_v33 = vld [vmem:[%s7343_s12 + $0x44] sm:$0x1] }
  0x33   : > { %v478_v45 = vrot.slane %v476_v35, 5  ;;  %v464_v47 = vrot.slane %v463_v38, 4  ;;  %v2263_v48 = vrot.slane %v2261_v40, 4  ;;  %v2274_v50 = vshrl.u32 %v7444_v31, 16  ;;  %v342_v40 = vld [vmem:[%s7343_s12 + $0x3c] sm:$0xf] }
  0x34   : > { %v2266_v49 = vrot.slane %v2264_v42, 5  ;;  %v2259_v52 = vsel %vm7369_vm4, %v2254_v43, %v2258_v20  ;;  %v473_v54 = vor.u32 %v472_v44, %v468_v34  ;;  %v2272_v55 = vrot.slane %v2270_v26, 5  ;;  %v343_v26 = vld [vmem:[%s7343_s12 + $0x40] sm:$0xf] }
  0x35   : > { %v2280_v56 = vshll.u32 %v7452_v39, 16  ;;  %v5969_v58 = vcombine.low %v2249_v36, %v2259_v52  ;;  %v469_v59 = vsel %vm7369_vm4, %v464_v47, %v468_v34  ;;  %v2276_v0 = vrot.slane %v2274_v50, 4 }
  0x36   : > { %v2267_v61 = vor.u32 %v2266_v49, %v2263_v48  ;;  %v474_v4 = vrot.slane %v473_v54, 4  ;;  %v481_v6 = vshrl.u32 %v340_v51, 16  ;;  %v484_v7 = vshll.u32 %v340_v51, 16 }
  0x37   : > { %v2282_v5 = vrot.slane %v2280_v56, 5  ;;  %6652 = vmatprep.mubr.msk.bf16.mxu0 %vm818_vm3, %v5969_v58  ;;  %v2277_v9 = vor.u32 %v2276_v0, %v2272_v55  ;;  %v490_v10 = vshll.u32 %v341_v57, 16  ;;  %v494_v11 = vshrl.u32 %v341_v57, 16  ;;  %v5933_v0 = vld [vmem:[%s7343_s12 + $0x48] sm:$0xf] }
  0x38   : > { %v2268_v8 = vrot.slane %v2267_v61, 4  ;;  %v479_v37 = vsel %vm7369_vm4, %v474_v4, %v478_v45  ;;  %v483_v13 = vrot.slane %v481_v6, 4  ;;  %v486_v14 = vrot.slane %v484_v7, 5  ;;  %v7492_v7 = vld [vmem:[%s7343_s12 + $0x4c] sm:$0xf] }
  0x39   : > { %v500_v18 = vshll.u32 %v369_v3, 16  ;;  %v5743_v20 = vcombine.low %v469_v59, %v479_v37  ;;  %v2278_v23 = vrot.slane %v2277_v9, 4  ;;  %v492_v24 = vrot.slane %v490_v10, 5  ;;  %v370_v59 = vld [vmem:[%s7343_s12 + $0x44] sm:$0x1] }
  0x3a   : > { %v2273_v21 = vsel %vm7369_vm4, %v2268_v8, %v2272_v55  ;;  %v487_v25 = vor.u32 %v486_v14, %v483_v13  ;;  %v496_v27 = vrot.slane %v494_v11, 4  ;;  %v2285_v34 = vshrl.u32 %v5930_v12, 16 }
  0x3b   : > { %v502_v29 = vrot.slane %v500_v18, 5  ;;  %6517 = vmatmul.mubr.msk.bf16.gmra.mrb[4].mxu1 %vm818_vm3, %v5743_v20  ;;  %v2283_v17 = vsel %vm7369_vm4, %v2278_v23, %v2282_v5  ;;  %v2288_v35 = vshll.u32 %v5930_v12, 16  ;;  %v2294_v36 = vshll.u32 %v7469_v19, 16 }
  0x3c   : > { %v2298_v38 = vshrl.u32 %v7469_v19, 16  ;;  %v5970_v42 = vcombine.low %v2273_v21, %v2283_v17  ;;  %v488_v43 = vrot.slane %v487_v25, 4  ;;  %v497_v44 = vor.u32 %v496_v27, %v492_v24  ;;  %v7500_v21 = vld [vmem:[%s7343_s12 + $0x50] sm:$0x1]  ;;  %v344_v25 = vld [vmem:[%s7343_s12 + $0x48] sm:$0xf] }
  0x3d   : > { %v2287_v45 = vrot.slane %v2285_v34, 4  ;;  %v2290_v47 = vrot.slane %v2288_v35, 5  ;;  %v2296_v48 = vrot.slane %v2294_v36, 5  ;;  %v2304_v50 = vshll.u32 %v7474_v33, 16  ;;  %v7505_v35 = vld [vmem:[%s7343_s12 + $0x4c] sm:$0xf] }
  0x3e   : > { %v2300_v49 = vrot.slane %v2298_v38, 4  ;;  %6653 = vmatmul.mubr.msk.bf16.gmra.mrb[4].mxu0 %vm818_vm3, %v5970_v42  ;;  %v493_v51 = vsel %vm7369_vm4, %v488_v43, %v492_v24  ;;  %v498_v52 = vrot.slane %v497_v44, 4  ;;  %v505_v54 = vshrl.u32 %v342_v40, 16 }
  0x3f   : > { %v508_v55 = vshll.u32 %v342_v40, 16  ;;  %v2291_v56 = vor.u32 %v2290_v47, %v2287_v45  ;;  %v2306_v58 = vrot.slane %v2304_v50, 5  ;;  %v514_v61 = vshll.u32 %v343_v26, 16 }
  0x40   : > { %v2301_v57 = vor.u32 %v2300_v49, %v2296_v48  ;;  %v503_v3 = vsel %vm7369_vm4, %v498_v52, %v502_v29  ;;  %v507_v4 = vrot.slane %v505_v54, 4  ;;  %v518_v6 = vshrl.u32 %v343_v26, 16  ;;  %v371_v26 = vld [vmem:[%s7343_s12 + $0x50] sm:$0x1]  ;;  %v5936_v52 = vld [vmem:[%s7343_s12 + $0x54] sm:$0xf] }
  0x41   : > { %v510_v5 = vrot.slane %v508_v55, 5  ;;  %v5744_v8 = vcombine.low %v493_v51, %v503_v3  ;;  %v2292_v9 = vrot.slane %v2291_v56, 4  ;;  %v516_v11 = vrot.slane %v514_v61, 5  ;;  %v7519_v3 = vld [vmem:[%s7343_s12 + $0x58] sm:$0xf] }
  0x42   : > { %v2302_v10 = vrot.slane %v2301_v57, 4  ;;  %v520_v37 = vrot.slane %v518_v6, 4  ;;  %v524_v13 = vshll.u32 %v370_v59, 16  ;;  %v2309_v14 = vshrl.u32 %v5933_v0, 16 }
  0x43   : > { %v511_v12 = vor.u32 %v510_v5, %v507_v4  ;;  %6520 = vmatprep.mubr.msk.bf16.mxu1 %vm818_vm3, %v5744_v8  ;;  %v2297_v18 = vsel %vm7369_vm4, %v2292_v9, %v2296_v48  ;;  %v2312_v23 = vshll.u32 %v5933_v0, 16  ;;  %v2318_v24 = vshll.u32 %v7492_v7, 16 }
  0x44   : > { %v2307_v20 = vsel %vm7369_vm4, %v2302_v10, %v2306_v58  ;;  %v521_v34 = vor.u32 %v520_v37, %v516_v11  ;;  %v526_v17 = vrot.slane %v524_v13, 5  ;;  %v2311_v36 = vrot.slane %v2309_v14, 4 }
  0x45   : > { %v5971_v27 = vcombine.low %v2297_v18, %v2307_v20  ;;  %v512_v29 = vrot.slane %v511_v12, 4  ;;  %v2314_v38 = vrot.slane %v2312_v23, 5  ;;  %v2320_v40 = vrot.slane %v2318_v24, 5  ;;  %v7525_v12 = vld [vmem:[%s7343_s12 + $0x5c] sm:$0x1] }
  0x46   : > { %v2322_v42 = vshrl.u32 %v7492_v7, 16  ;;  %v522_v44 = vrot.slane %v521_v34, 4  ;;  %v2328_v45 = vshll.u32 %v7500_v21, 16  ;;  %v529_v47 = vshrl.u32 %v344_v25, 16  ;;  %v7529_v23 = vld [vmem:[%s7343_s12 + $0x54] sm:$0xf] }
  0x47   : > { %6656 = vmatprep.mubr.msk.bf16.mxu0 %vm818_vm3, %v5971_v27  ;;  %v517_v43 = vsel %vm7369_vm4, %v512_v29, %v516_v11  ;;  %v2315_v48 = vor.u32 %v2314_v38, %v2311_v36  ;;  %v532_v50 = vshll.u32 %v344_v25, 16  ;;  %v538_v51 = vshll.u32 %v7505_v35, 16  ;;  %v7535_v34 = vld [vmem:[%s7343_s12 + $0x58] sm:$0xf] }
  0x48   : > { %v2324_v49 = vrot.slane %v2322_v42, 4  ;;  %v527_v54 = vsel %vm7369_vm4, %v522_v44, %v526_v17  ;;  %v2330_v55 = vrot.slane %v2328_v45, 5  ;;  %v531_v56 = vrot.slane %v529_v47, 4  ;;  %v372_v45 = vld [vmem:[%s7343_s12 + $0x5c] sm:$0x1] }
  0x49   : > { %v542_v57 = vshrl.u32 %v7505_v35, 16  ;;  %v5745_v58 = vcombine.low %v517_v43, %v527_v54  ;;  %v2316_v59 = vrot.slane %v2315_v48, 4  ;;  %v534_v0 = vrot.slane %v532_v50, 5 }
  0x4a   : > { %v2325_v61 = vor.u32 %v2324_v49, %v2320_v40  ;;  %v540_v4 = vrot.slane %v538_v51, 5  ;;  %v548_v6 = vshll.u32 %v371_v26, 16  ;;  %v2333_v8 = vshrl.u32 %v5936_v52, 16  ;;  %v5939_v51 = vld [vmem:[%s7343_s12 + $0x60] sm:$0xf] }
  0x4b   : > { %v544_v5 = vrot.slane %v542_v57, 4  ;;  %6521 = vmatmul.mubr.msk.bf16.gmra.mrb[8].mxu1 %vm818_vm3, %v5745_v58  ;;  %v2321_v9 = vsel %vm7369_vm4, %v2316_v59, %v2320_v40  ;;  %v535_v11 = vor.u32 %v534_v0, %v531_v56  ;;  %v2336_v37 = vshll.u32 %v5936_v52, 16  ;;  %v7549_v57 = vld [vmem:[%s7343_s12 + $0x64] sm:$0xf] }
  0x4c   : > { %v2326_v10 = vrot.slane %v2325_v61, 4  ;;  %v550_v14 = vrot.slane %v548_v6, 5  ;;  %v2335_v18 = vrot.slane %v2333_v8, 4  ;;  %v2342_v20 = vshll.u32 %v7519_v3, 16 }
  0x4d   : > { %v545_v13 = vor.u32 %v544_v5, %v540_v4  ;;  %v536_v25 = vrot.slane %v535_v11, 4  ;;  %v2338_v27 = vrot.slane %v2336_v37, 5  ;;  %v2346_v29 = vshrl.u32 %v7519_v3, 16 }
  0x4e   : > { %v2331_v24 = vsel %vm7369_vm4, %v2326_v10, %v2330_v55  ;;  %v2344_v38 = vrot.slane %v2342_v20, 5  ;;  %v2352_v40 = vshll.u32 %v7525_v12, 16  ;;  %v553_v26 = vshrl.u32 %v7529_v23, 16  ;;  %v7559_v10 = vld [vmem:[%s7343_s12 + $0x60] sm:$0xf] }
  0x4f   : > { %v5972_v17 = vcombine.low %v2321_v9, %v2331_v24  ;;  %v546_v36 = vrot.slane %v545_v13, 4  ;;  %v541_v42 = vsel %vm7369_vm4, %v536_v25, %v540_v4  ;;  %v2339_v43 = vor.u32 %v2338_v27, %v2335_v18  ;;  %v7553_v4 = vld [vmem:[%s7343_s12 + $0x68] sm:$0x1]  ;;  %v7563_v18 = vld [vmem:[%s7343_s12 + $0x64] sm:$0xf] }
  0x50   : > { %v2348_v44 = vrot.slane %v2346_v29, 4  ;;  %v2354_v48 = vrot.slane %v2352_v40, 5  ;;  %v556_v49 = vshll.u32 %v7529_v23, 16  ;;  %v562_v50 = vshll.u32 %v7535_v34, 16  ;;  %v7571_v29 = vld [vmem:[%s9772_s1 + $0x4] sm:$0x3] }
  0x51   : > { %6657 = vmatmul.mubr.msk.bf16.gmra.mrb[8].mxu0 %vm818_vm3, %v5972_v17  ;;  %v551_v47 = vsel %vm7369_vm4, %v546_v36, %v550_v14  ;;  %v2340_v54 = vrot.slane %v2339_v43, 4  ;;  %v555_v56 = vrot.slane %v553_v26, 4  ;;  %v566_v61 = vshrl.u32 %v7535_v34, 16  ;;  %7110 = vmatprep.subr.msk.bf16.mxu1 %vm867_vm0, %v7571_v29 }
  0x52   : > { %v5746_v52 = vcombine.low %v541_v42, %v551_v47  ;;  %v2349_v55 = vor.u32 %v2348_v44, %v2344_v38  ;;  %v558_v58 = vrot.slane %v556_v49, 5  ;;  %v564_v59 = vrot.slane %v562_v50, 5 }
  0x53   : > { %v572_v0 = vshll.u32 %v372_v45, 16  ;;  %v2345_v5 = vsel %vm7369_vm4, %v2340_v54, %v2344_v38  ;;  %v2357_v8 = vshrl.u32 %v5939_v51, 16  ;;  %v2360_v9 = vshll.u32 %v5939_v51, 16 }
  0x54   : > { %6524 = vmatprep.mubr.msk.bf16.mxu1 %vm818_vm3, %v5746_v52  ;;  %v2350_v6 = vrot.slane %v2349_v55, 4  ;;  %v559_v11 = vor.u32 %v558_v58, %v555_v56  ;;  %v568_v37 = vrot.slane %v566_v61, 4  ;;  %v2366_v14 = vshll.u32 %v7549_v57, 16  ;;  %v5942_v56 = vld [vmem:[%s7343_s12 + $0x6c] sm:$0xf] }
  0x55   : > { %v574_v13 = vrot.slane %v572_v0, 5  ;;  %v2359_v24 = vrot.slane %v2357_v8, 4  ;;  %v2362_v25 = vrot.slane %v2360_v9, 5  ;;  %v2370_v27 = vshrl.u32 %v7549_v57, 16 }
  0x56   : > { %v2355_v20 = vsel %vm7369_vm4, %v2350_v6, %v2354_v48  ;;  %v560_v36 = vrot.slane %v559_v11, 4  ;;  %v569_v38 = vor.u32 %v568_v37, %v564_v59  ;;  %v2368_v40 = vrot.slane %v2366_v14, 5  ;;  %v373_v48 = vld [vmem:[%s7343_s12 + $0x68] sm:$0x1] }
  0x57   : > { %v5973_v17 = vcombine.low %v2345_v5, %v2355_v20  ;;  %v2363_v42 = vor.u32 %v2362_v25, %v2359_v24  ;;  %v2372_v43 = vrot.slane %v2370_v27, 4  ;;  %v2376_v44 = vshll.u32 %v7553_v4, 16  ;;  %v7593_v20 = vld [vmem:[%s7343_s12 + $0x74] sm:$0x1] }
  0x58   : > { %v577_v45 = vshrl.u32 %v7559_v10, 16  ;;  %v565_v26 = vsel %vm7369_vm4, %v560_v36, %v564_v59  ;;  %v570_v47 = vrot.slane %v569_v38, 4  ;;  %v580_v49 = vshll.u32 %v7559_v10, 16  ;;  %v7588_v59 = vld [vmem:[%s7343_s12 + $0x70] sm:$0xf] }
  0x59   : > { %6660 = vmatprep.mubr.msk.bf16.mxu0 %vm818_vm3, %v5973_v17  ;;  %v586_v50 = vshll.u32 %v7563_v18, 16  ;;  %v2364_v51 = vrot.slane %v2363_v42, 4  ;;  %v2373_v52 = vor.u32 %v2372_v43, %v2368_v40  ;;  %v2378_v54 = vrot.slane %v2376_v44, 5  ;;  %v7601_v38 = vld [vmem:[%s7343_s12 + $0x6c] sm:$0xf] }
  0x5a   : > { %v579_v55 = vrot.slane %v577_v45, 4  ;;  %v575_v58 = vsel %vm7369_vm4, %v570_v47, %v574_v13  ;;  %v582_v61 = vrot.slane %v580_v49, 5  ;;  %v590_v5 = vshrl.u32 %v7563_v18, 16  ;;  %v7604_v45 = vld [vmem:[%s7343_s12 + $0x70] sm:$0xf] }
  0x5b   : > { %v588_v0 = vrot.slane %v586_v50, 5  ;;  %v5747_v6 = vcombine.low %v565_v26, %v575_v58  ;;  %v2369_v8 = vsel %vm7369_vm4, %v2364_v51, %v2368_v40  ;;  %v2374_v9 = vrot.slane %v2373_v52, 4 }
  0x5c   : > { %v596_v11 = vshll.u32 %v373_v48, 16  ;;  %v583_v37 = vor.u32 %v582_v61, %v579_v55  ;;  %v592_v14 = vrot.slane %v590_v5, 4  ;;  %v2381_v24 = vshrl.u32 %v5942_v56, 16  ;;  %v374_v61 = vld [vmem:[%s7343_s12 + $0x74] sm:$0x1] }
  0x5d   : > { %v2384_v13 = vshll.u32 %v5942_v56, 16  ;;  %6525 = vmatmul.mubr.msk.bf16.gmra.mrb[12].mxu1 %vm818_vm3, %v5747_v6  ;;  %v2379_v25 = vsel %vm7369_vm4, %v2374_v9, %v2378_v54  ;;  %v2390_v17 = vshll.u32 %v7588_v59, 16  ;;  %v2394_v36 = vshrl.u32 %v7588_v59, 16  ;;  %v5945_v6 = vld [vmem:[%s7343_s12 + $0x78] sm:$0xf] }
  0x5e   : > { %v598_v27 = vrot.slane %v596_v11, 5  ;;  %v5974_v40 = vcombine.low %v2369_v8, %v2379_v25  ;;  %v584_v42 = vrot.slane %v583_v37, 4  ;;  %v593_v43 = vor.u32 %v592_v14, %v588_v0  ;;  %v7619_v37 = vld [vmem:[%s7343_s12 + $0x7c] sm:$0xf] }
  0x5f   : > { %v2383_v44 = vrot.slane %v2381_v24, 4  ;;  %v2386_v26 = vrot.slane %v2384_v13, 5  ;;  %v2392_v47 = vrot.slane %v2390_v17, 5  ;;  %v2396_v48 = vrot.slane %v2394_v36, 4  ;;  %v7622_v17 = vld [vmem:[%s7343_s12 + $0x80] sm:$0x1] }
  0x60   : > { %v2400_v49 = vshll.u32 %v7593_v20, 16  ;;  %6661 = vmatmul.mubr.msk.bf16.gmra.mrb[12].mxu0 %vm818_vm3, %v5974_v40  ;;  %v589_v50 = vsel %vm7369_vm4, %v584_v42, %v588_v0  ;;  %v594_v51 = vrot.slane %v593_v43, 4  ;;  %v601_v52 = vshrl.u32 %v7601_v38, 16  ;;  %v7625_v36 = vld [vmem:[%s7343_s12 + $0x78] sm:$0xf] }
  0x61   : > { %v604_v54 = vshll.u32 %v7601_v38, 16  ;;  %v2387_v55 = vor.u32 %v2386_v26, %v2383_v44  ;;  %v2397_v56 = vor.u32 %v2396_v48, %v2392_v47  ;;  %v610_v5 = vshll.u32 %v7604_v45, 16 }
  0x62   : > { %v2402_v58 = vrot.slane %v2400_v49, 5  ;;  %v599_v0 = vsel %vm7369_vm4, %v594_v51, %v598_v27  ;;  %v603_v8 = vrot.slane %v601_v52, 4  ;;  %v614_v11 = vshrl.u32 %v7604_v45, 16 }
  0x63   : > { %v606_v9 = vrot.slane %v604_v54, 5  ;;  %v5748_v14 = vcombine.low %v589_v50, %v599_v0  ;;  %v2388_v24 = vrot.slane %v2387_v55, 4  ;;  %v2398_v13 = vrot.slane %v2397_v56, 4  ;;  %v7634_v50 = vld [vmem:[%s7343_s12 + $0x7c] sm:$0xf] }
  0x64   : > { %v612_v25 = vrot.slane %v610_v5, 5  ;;  %v616_v42 = vrot.slane %v614_v11, 4  ;;  %v620_v43 = vshll.u32 %v374_v61, 16  ;;  %v2405_v27 = vshrl.u32 %v5945_v6, 16 }
  0x65   : > { %v607_v40 = vor.u32 %v606_v9, %v603_v8  ;;  %6528 = vmatprep.mubr.msk.bf16.mxu1 %vm818_vm3, %v5748_v14  ;;  %v2393_v44 = vsel %vm7369_vm4, %v2388_v24, %v2392_v47  ;;  %v2403_v26 = vsel %vm7369_vm4, %v2398_v13, %v2402_v58  ;;  %v2408_v48 = vshll.u32 %v5945_v6, 16  ;;  %v7638_v8 = vld [vmem:[%s7343_s12 + $0x80] sm:$0x1]  ;;  %v5999_v47 = vld [vmem:[%s7343_s12 + $0xc] sm:$0xe] }
  0x66   : > { %v2414_v49 = vshll.u32 %v7619_v37, 16  ;;  %v5975_v51 = vcombine.low %v2393_v44, %v2403_v26  ;;  %v617_v54 = vor.u32 %v616_v42, %v612_v25  ;;  %v622_v55 = vrot.slane %v620_v43, 5  ;;  %v7649_v42 = vld [vmem:[%s7343_s12 + $0x84] sm:$0xf] }
  0x67   : > { %v608_v52 = vrot.slane %v607_v40, 4  ;;  %v2407_v56 = vrot.slane %v2405_v27, 4  ;;  %v2410_v61 = vrot.slane %v2408_v48, 5  ;;  %v2418_v0 = vshrl.u32 %v7619_v37, 16 }
  0x68   : > { %v2416_v5 = vrot.slane %v2414_v49, 5  ;;  %6664 = vmatprep.mubr.msk.bf16.mxu0 %vm818_vm3, %v5975_v51  ;;  %v618_v6 = vrot.slane %v617_v54, 4  ;;  %v2424_v9 = vshll.u32 %v7622_v17, 16  ;;  %v625_v11 = vshrl.u32 %v7625_v36, 16 }
  0x69   : > { %v613_v58 = vsel %vm7369_vm4, %v608_v52, %v612_v25  ;;  %v2411_v14 = vor.u32 %v2410_v61, %v2407_v56  ;;  %v2420_v24 = vrot.slane %v2418_v0, 4  ;;  %v628_v13 = vshll.u32 %v7625_v36, 16  ;;  %v7662_v0 = vld [vmem:[%s7343_s12 + $0x88] sm:$0xf] }
  0x6a   : > { %v634_v40 = vshll.u32 %v7634_v50, 16  ;;  %v623_v43 = vsel %vm7369_vm4, %v618_v6, %v622_v55  ;;  %v2426_v27 = vrot.slane %v2424_v9, 5  ;;  %v627_v44 = vrot.slane %v625_v11, 4 }
  0x6b   : > { %v638_v25 = vshrl.u32 %v7634_v50, 16  ;;  %v5749_v26 = vcombine.low %v613_v58, %v623_v43  ;;  %v2412_v48 = vrot.slane %v2411_v14, 4  ;;  %v2421_v49 = vor.u32 %v2420_v24, %v2416_v5  ;;  %v7670_v14 = vld [vmem:[%s7343_s12 + $0x8c] sm:$0x1]  ;;  %v6000_v24 = vld [vmem:[%s7343_s12 + $0x18] sm:$0xe] }
  0x6c   : > { %v630_v51 = vrot.slane %v628_v13, 5  ;;  %v636_v54 = vrot.slane %v634_v40, 5  ;;  %v644_v55 = vshll.u32 %v7638_v8, 16  ;;  %v6015_v61 = vrot.slane %v5999_v47, 9 }
  0x6d   : > { %v640_v56 = vrot.slane %v638_v25, 4  ;;  %6529 = vmatmul.mubr.msk.bf16.gmra.mrb[16].mxu1 %vm818_vm3, %v5749_v26  ;;  %v2417_v58 = vsel %vm7369_vm4, %v2412_v48, %v2416_v5  ;;  %v2422_v6 = vrot.slane %v2421_v49, 4  ;;  %v2934_v11 = vrot.slane %v2932_v62, 4  ;;  %v7686_v48 = vld [vmem:[%s7343_s12 + $0x90] sm:$0xf] }
  0x6e   : > { %v631_v9 = vor.u32 %v630_v51, %v627_v44  ;;  %v646_v40 = vrot.slane %v644_v55, 5  ;;  %v2933_v47 = vsel %vm7656_vm7, %v6015_v61, %v2932_v62  ;;  %v649_v43 = vshrl.u32 %v7649_v42, 16 }
  0x6f   : > { %v641_v13 = vor.u32 %v640_v56, %v636_v54  ;;  %v2427_v5 = vsel %vm7369_vm4, %v2422_v6, %v2426_v27  ;;  %v2936_v25 = vsel %vm7656_vm7, %v2934_v11, %v2935_v63  ;;  %v652_v26 = vshll.u32 %v7649_v42, 16  ;;  %v7689_v56 = vld [vmem:[%s7343_s12 + $0x94] sm:$0xf] }
  0x70   : > { %v632_v44 = vrot.slane %v631_v9, 4  ;;  %v5976_v15 = vcombine.low %v2417_v58, %v2427_v5  ;;  %v6032_v51 = vcombine.low %v2933_v47, %v2936_v25  ;;  %v651_v62 = vrot.slane %v649_v43, 4  ;;  %v7705_v9 = vld [vmem:[%s7343_s12 + $0x98] sm:$0x1] }
  0x71   : > { %v642_v49 = vrot.slane %v641_v13, 4  ;;  %v654_v55 = vrot.slane %v652_v26, 5  ;;  %v658_v16 = vshll.u32 %v7662_v0, 16  ;;  %v662_v61 = vshrl.u32 %v7662_v0, 16 }
  0x72   : > { %v637_v27 = vsel %vm7369_vm4, %v632_v44, %v636_v54  ;;  %6665 = vmatmul.mubr.msk.bf16.gmra.mrb[16].mxu0 %vm818_vm3, %v5976_v15  ;;  %v668_v58 = vshll.u32 %v7670_v14, 16  ;;  %v6016_v6 = vrot.slane %v6000_v24, 9  ;;  %v2943_v54 = vsel %vm7656_vm7, %v7412_v30, %v2942_v28  ;;  %v6001_v30 = vld [vmem:[%s7343_s12 + $0x24] sm:$0xe]  ;;  %v7718_v15 = vld [vmem:[%s7343_s12 + $0x9c] sm:$0xf] }
  0x73   : > { %v647_v63 = vsel %vm7369_vm4, %v642_v49, %v646_v40  ;;  %6682 = vmatprep.mubr.msk.bf16.mxu0 %vm818_vm3, %v6032_v51  ;;  %v655_v13 = vor.u32 %v654_v55, %v651_v62  ;;  %v660_v47 = vrot.slane %v658_v16, 5  ;;  %v664_v43 = vrot.slane %v662_v61, 4  ;;  %v7723_v62 = vld [vmem:[%s7343_s12 + $0xa0] sm:$0xf] }
  0x74   : > { %v5750_v11 = vcombine.low %v637_v27, %v647_v63  ;;  %v670_v40 = vrot.slane %v668_v58, 5  ;;  %v2940_v1 = vsel %vm7656_vm7, %v6016_v6, %v2939_v22  ;;  %v673_v24 = vshrl.u32 %v7686_v48, 16  ;;  %v7728_v63 = vld [vmem:[%s7343_s12 + $0xa4] sm:$0x1]  ;;  %v7733_v58 = vld [vmem:[%s9772_s1 + $0xe] sm:$0x3] }
  0x75   : > { %v676_v28 = vshll.u32 %v7686_v48, 16  ;;  %v656_v5 = vrot.slane %v655_v13, 4  ;;  %v665_v44 = vor.u32 %v664_v43, %v660_v47  ;;  %v6033_v25 = vcombine.low %v2940_v1, %v2943_v54 }
  0x76   : > { %6532 = vmatprep.mubr.msk.bf16.mxu1 %vm818_vm3, %v5750_v11  ;;  %v682_v26 = vshll.u32 %v7689_v56, 16  ;;  %v675_v49 = vrot.slane %v673_v24, 4  ;;  %v686_v51 = vshrl.u32 %v7689_v56, 16  ;;  %v692_v22 = vshll.u32 %v7705_v9, 16 }
  0x77   : > { %v678_v60 = vrot.slane %v676_v28, 5  ;;  %v661_v27 = vsel %vm7369_vm4, %v656_v5, %v660_v47  ;;  %v666_v55 = vrot.slane %v665_v44, 4  ;;  %v6017_v61 = vrot.slane %v6001_v30, 9 }
  0x78   : > { %v684_v16 = vrot.slane %v682_v26, 5  ;;  %v688_v54 = vrot.slane %v686_v51, 4  ;;  %v694_v11 = vrot.slane %v692_v22, 5  ;;  %v2946_v13 = vrot.slane %v7419_v46, 5  ;;  %v6002_v46 = vld [vmem:[%s7343_s12 + $0x30] sm:$0xe] }
  0x79   : > { %v679_v6 = vor.u32 %v678_v60, %v675_v49  ;;  %v671_v47 = vsel %vm7369_vm4, %v666_v55, %v670_v40  ;;  %v2949_v43 = vrot.slane %v7425_v53, 5  ;;  %v697_v1 = vshrl.u32 %v7718_v15, 16  ;;  %v7748_v60 = vld [vmem:[%s7343_s12 + $0xa8] sm:$0xf]  ;;  %v7756_v55 = vld [vmem:[%s7343_s12 + $0xac] sm:$0xf] }
  0x7a   : > { %v700_v24 = vshll.u32 %v7718_v15, 16  ;;  %v5751_v28 = vcombine.low %v661_v27, %v671_v47  ;;  %6683 = vmatmul.mubr.msk.bf16.vlgmr.msra.gmra.mrb[0].mxu0 %vm818_vm3, %v6033_v25  ;;  %v689_v5 = vor.u32 %v688_v54, %v684_v16  ;;  %v2947_v44 = vsel %vm7656_vm7, %v6017_v61, %v2946_v13 }
  0x7b   : > { %v680_v30 = vrot.slane %v679_v6, 4  ;;  %6715 = vmatpush3.bf16.msra.mxu0 %v7379_v41  ;;  %v2948_v26 = vrot.slane %v2946_v13, 4  ;;  %v699_v40 = vrot.slane %v697_v1, 4  ;;  %v706_v53 = vshll.u32 %v7723_v62, 16 }
  0x7c   : > { %v702_v49 = vrot.slane %v700_v24, 5  ;;  %6533 = vmatmul.mubr.msk.bf16.gmra.mrb[20].mxu1 %vm818_vm3, %v5751_v28  ;;  %v690_v51 = vrot.slane %v689_v5, 4  ;;  %v710_v22 = vshrl.u32 %v7723_v62, 16  ;;  %v716_v27 = vshll.u32 %v7728_v63, 16  ;;  %7116 = vmatprep.subr.msk.bf16.mxu0 %vm867_vm0, %v7733_v58  ;;  %v7765_v24 = vld [vmem:[%s7343_s12 + $0xb0] sm:$0x1] }
  0x7d   : > { %v685_v25 = vsel %vm7369_vm4, %v680_v30, %v684_v16  ;;  %v2950_v41 = vsel %vm7656_vm7, %v2948_v26, %v2949_v43  ;;  %v708_v6 = vrot.slane %v706_v53, 5  ;;  %v6018_v54 = vrot.slane %v6002_v46, 9 }
  0x7e   : > { %v703_v61 = vor.u32 %v702_v49, %v699_v40  ;;  %v695_v16 = vsel %vm7369_vm4, %v690_v51, %v694_v11  ;;  %v6034_v13 = vcombine.low %v2947_v44, %v2950_v41  ;;  %v712_v47 = vrot.slane %v710_v22, 4  ;;  %v6003_v44 = vld [vmem:[%s7343_s12 + $0x3c] sm:$0xe] }
  0x7f   : > { %v718_v1 = vrot.slane %v716_v27, 5  ;;  %v5752_v28 = vcombine.low %v685_v25, %v695_v16  ;;  %v2953_v5 = vrot.slane %v7444_v31, 5  ;;  %v2956_v2 = vrot.slane %v7452_v39, 5 }
  0x80   : > { %v704_v30 = vrot.slane %v703_v61, 4  ;;  %6686 = vmatprep.mubr.msk.bf16.mxu0 %vm818_vm3, %v6034_v13  ;;  %v713_v43 = vor.u32 %v712_v47, %v708_v6  ;;  %v721_v26 = vshrl.u32 %v7748_v60, 16  ;;  %v724_v46 = vshll.u32 %v7748_v60, 16 }
  0x81   : > { %v730_v11 = vshll.u32 %v7756_v55, 16  ;;  %6536 = vmatprep.mubr.msk.bf16.mxu1 %vm818_vm3, %v5752_v28  ;;  %v2954_v31 = vsel %vm7656_vm7, %v6018_v54, %v2953_v5  ;;  %v2955_v39 = vrot.slane %v2953_v5, 4  ;;  %v734_v49 = vshrl.u32 %v7756_v55, 16 }
  0x82   : > { %v709_v40 = vsel %vm7369_vm4, %v704_v30, %v708_v6  ;;  %v714_v53 = vrot.slane %v713_v43, 4  ;;  %v723_v25 = vrot.slane %v721_v26, 4  ;;  %v726_v51 = vrot.slane %v724_v46, 5  ;;  %v7784_v6 = vld [vmem:[%s7343_s12 + $0xb4] sm:$0xf] }
  0x83   : > { %v732_v22 = vrot.slane %v730_v11, 5  ;;  %v2957_v27 = vsel %vm7656_vm7, %v2955_v39, %v2956_v2  ;;  %v736_v41 = vrot.slane %v734_v49, 4  ;;  %v740_v61 = vshll.u32 %v7765_v24, 16  ;;  %v7790_v30 = vld [vmem:[%s7343_s12 + $0xb8] sm:$0xf] }
  0x84   : > { %v6019_v16 = vrot.slane %v6003_v44, 9  ;;  %v719_v54 = vsel %vm7369_vm4, %v714_v53, %v718_v1  ;;  %v6035_v13 = vcombine.low %v2954_v31, %v2957_v27  ;;  %v727_v47 = vor.u32 %v726_v51, %v723_v25  ;;  %v7794_v46 = vld [vmem:[%s7343_s12 + $0xbc] sm:$0x1]  ;;  %v6004_v49 = vld [vmem:[%s7343_s12 + $0x48] sm:$0xe] }
  0x85   : > { %v2960_v28 = vrot.slane %v7469_v19, 5  ;;  %v5753_v5 = vcombine.low %v709_v40, %v719_v54  ;;  %v737_v43 = vor.u32 %v736_v41, %v732_v22  ;;  %v742_v26 = vrot.slane %v740_v61, 5  ;;  %v6005_v41 = vld [vmem:[%s7343_s12 + $0x54] sm:$0xe] }
  0x86   : > { %v2963_v2 = vrot.slane %v7474_v33, 5  ;;  %6687 = vmatmul.mubr.msk.bf16.gmra.mrb[4].mxu0 %vm818_vm3, %v6035_v13  ;;  %v728_v11 = vrot.slane %v727_v47, 4  ;;  %v745_v19 = vshrl.u32 %v7784_v6, 16  ;;  %v748_v40 = vshll.u32 %v7784_v6, 16 }
  0x87   : > { %v2961_v1 = vsel %vm7656_vm7, %v6019_v16, %v2960_v28  ;;  %v2962_v44 = vrot.slane %v2960_v28, 4  ;;  %6537 = vmatmul.mubr.msk.bf16.gmra.mrb[24].mxu1 %vm818_vm3, %v5753_v5  ;;  %v738_v31 = vrot.slane %v737_v43, 4  ;;  %v754_v39 = vshll.u32 %v7790_v30, 16 }
  0x88   : > { %v758_v33 = vshrl.u32 %v7790_v30, 16  ;;  %v733_v53 = vsel %vm7369_vm4, %v728_v11, %v732_v22  ;;  %v747_v51 = vrot.slane %v745_v19, 4  ;;  %v764_v27 = vshll.u32 %v7794_v46, 16 }
  0x89   : > { %v2964_v25 = vsel %vm7656_vm7, %v2962_v44, %v2963_v2  ;;  %v743_v61 = vsel %vm7369_vm4, %v738_v31, %v742_v26  ;;  %v750_v54 = vrot.slane %v748_v40, 5  ;;  %v756_v13 = vrot.slane %v754_v39, 5  ;;  %v6006_v31 = vld [vmem:[%s7343_s12 + $0x60] sm:$0xe] }
  0x8a   : > { %v6036_v16 = vcombine.low %v2961_v1, %v2964_v25  ;;  %v5754_v47 = vcombine.low %v733_v53, %v743_v61  ;;  %v760_v28 = vrot.slane %v758_v33, 4  ;;  %v6020_v5 = vrot.slane %v6004_v49, 9  ;;  %v6007_v25 = vld [vmem:[%s7343_s12 + $0x6c] sm:$0xe] }
  0x8b   : > { %v751_v22 = vor.u32 %v750_v54, %v747_v51  ;;  %v2967_v43 = vrot.slane %v7492_v7, 5  ;;  %v2970_v2 = vrot.slane %v7500_v21, 5  ;;  %v6021_v11 = vrot.slane %v6005_v41, 9  ;;  %v7835_v54 = vld [vmem:[%s7343_s12 + $0x4] sm:$0xf] }
  0x8c   : > { %6690 = vmatprep.mubr.msk.bf16.mxu0 %vm818_vm3, %v6036_v16  ;;  %6540 = vmatprep.mubr.msk.bf16.mxu1 %vm818_vm3, %v5754_v47  ;;  %v761_v44 = vor.u32 %v760_v28, %v756_v13  ;;  %v766_v26 = vrot.slane %v764_v27, 5  ;;  %v2974_v1 = vrot.slane %v7519_v3, 5  ;;  %v2977_v19 = vrot.slane %v7525_v12, 5  ;;  %v7196_v16 = vld [vmem:[%s7343_s12] sm:$0xf] }
  0x8d   : > { %v752_v40 = vrot.slane %v751_v22, 4  ;;  %v2968_v39 = vsel %vm7656_vm7, %v6020_v5, %v2967_v43  ;;  %v2969_v7 = vrot.slane %v2967_v43, 4  ;;  %v2981_v53 = vrot.slane %v7549_v57, 5 }
  0x8e   : > { %v762_v33 = vrot.slane %v761_v44, 4  ;;  %v2975_v21 = vsel %vm7656_vm7, %v6021_v11, %v2974_v1  ;;  %v2976_v49 = vrot.slane %v2974_v1, 4  ;;  %v6022_v51 = vrot.slane %v6006_v31, 9  ;;  %v6008_v1 = vld [vmem:[%s7343_s12 + $0x78] sm:$0xe] }
  0x8f   : > { %v757_v3 = vsel %vm7369_vm4, %v752_v40, %v756_v13  ;;  %v2971_v12 = vsel %vm7656_vm7, %v2969_v7, %v2970_v2  ;;  %v2984_v27 = vrot.slane %v7553_v4, 5  ;;  %v5772_v57 = vcombine.low %v7196_v16, %v7835_v54  ;;  %v5949_v2 = vld [vmem:[%s7343_s12 + $0x88] sm:$0xf]  ;;  %v6009_v31 = vld [vmem:[%s7343_s12 + $0x84] sm:$0xe] }
  0x90   : > { %v767_v41 = vsel %vm7369_vm4, %v762_v33, %v766_v26  ;;  %v6037_v61 = vcombine.low %v2968_v39, %v2971_v12  ;;  %v2978_v47 = vsel %vm7656_vm7, %v2976_v49, %v2977_v19  ;;  %v2983_v5 = vrot.slane %v2981_v53, 4  ;;  %v5950_v19 = vld [vmem:[%s7343_s12 + $0x8c] sm:$0x1]  ;;  %v7859_v7 = vld [vmem:[%s7343_s12 + $0x10] sm:$0xf] }
  0x91   : > { %v5755_v13 = vcombine.low %v757_v3, %v767_v41  ;;  %v6038_v28 = vcombine.low %v2975_v21, %v2978_v47  ;;  %v6023_v22 = vrot.slane %v6007_v25, 9  ;;  %v2988_v4 = vrot.slane %v7588_v59, 5  ;;  %v7198_v39 = vld [vmem:[%s7343_s12 + $0xc] sm:$0xf]  ;;  %v7200_v12 = vld [vmem:[%s7343_s12 + $0x18] sm:$0xf] }
  0x92   : > { %6691 = vmatmul.mubr.msk.bf16.gmra.mrb[8].mxu0 %vm818_vm3, %v6037_v61  ;;  %v2991_v43 = vrot.slane %v7593_v20, 5  ;;  %v2982_v11 = vsel %vm7656_vm7, %v6022_v51, %v2981_v53  ;;  %v2985_v44 = vsel %vm7656_vm7, %v2983_v5, %v2984_v27  ;;  %v2995_v26 = vrot.slane %v7619_v37, 5  ;;  %v7867_v51 = vld [vmem:[%s7343_s12 + $0x1c] sm:$0xf]  ;;  %v7889_v5 = vld [vmem:[%s7343_s12 + $0x98] sm:$0x1] }
  0x93   : > { %6541 = vmatmul.mubr.msk.bf16.gmra.mrb[28].mxu1 %vm818_vm3, %v5755_v13  ;;  %6694 = vmatprep.mubr.msk.bf16.mxu0 %vm818_vm3, %v6038_v28  ;;  %v2989_v59 = vsel %vm7656_vm7, %v6023_v22, %v2988_v4  ;;  %v2990_v20 = vrot.slane %v2988_v4, 4  ;;  %v3002_v40 = vrot.slane %v5949_v2, 5  ;;  %v5773_v33 = vcombine.low %v7198_v39, %v7859_v7  ;;  %v5955_v13 = vld [vmem:[%s7343_s12 + $0xa0] sm:$0xf]  ;;  %v6010_v2 = vld [vmem:[%s7343_s12 + $0x90] sm:$0xe] }
  0x94   : > { %6546 = vmatprep.mubr.msk.bf16.mxu1 %vm818_vm3, %v5772_v57  ;;  %v6039_v37 = vcombine.low %v2982_v11, %v2985_v44  ;;  %v6024_v53 = vrot.slane %v6008_v1, 9  ;;  %v2997_v25 = vrot.slane %v2995_v26, 4  ;;  %v2998_v3 = vrot.slane %v7622_v17, 5  ;;  %v7871_v57 = vld [vmem:[%s7343_s12 + $0x94] sm:$0xf] }
  0x95   : > { %v2992_v21 = vsel %vm7656_vm7, %v2990_v20, %v2991_v43  ;;  %v5774_v27 = vcombine.low %v7200_v12, %v7867_v51  ;;  %v6025_v41 = vrot.slane %v6009_v31, 9  ;;  %v3004_v61 = vrot.slane %v3002_v40, 4  ;;  %v7880_v17 = vld [vmem:[%s9772_s1 + $0x6] sm:$0x3]  ;;  %v5956_v44 = vld [vmem:[%s7343_s12 + $0xa4] sm:$0x1] }
  0x96   : > { %v6040_v49 = vcombine.low %v2989_v59, %v2992_v21  ;;  %v3005_v16 = vrot.slane %v5950_v19, 5  ;;  %v1586_v47 = vsel %vm867_vm0, %v7571_v29, 0  ;;  %v2996_v28 = vsel %vm7656_vm7, %v6024_v53, %v2995_v26  ;;  %v6011_v26 = vld [vmem:[%s7343_s12 + $0x9c] sm:$0xe]  ;;  %v7202_v59 = vld [vmem:[%s7343_s12 + $0x24] sm:$0xf] }
  0x97   : > { %v2999_v29 = vsel %vm7656_vm7, %v2997_v25, %v2998_v3  ;;  %v3009_v22 = vrot.slane %v7871_v57, 5  ;;  %v3003_v4 = vsel %vm7656_vm7, %v6025_v41, %v3002_v40  ;;  %v3016_v11 = vrot.slane %v5955_v13, 5  ;;  %v7904_v20 = vld [vmem:[%s7343_s12 + $0x28] sm:$0xf]  ;;  %v5958_v31 = vld [vmem:[%s7343_s12 + $0xac] sm:$0xf] }
  0x98   : > { %v3006_v43 = vsel %vm7656_vm7, %v3004_v61, %v3005_v16  ;;  %v5775_v1 = vcombine.low %v7202_v59, %v7904_v20  ;;  %v6041_v19 = vcombine.low %v2996_v28, %v2999_v29  ;;  %v6026_v39 = vrot.slane %v6010_v2, 9  ;;  %v7204_v21 = vld [vmem:[%s7343_s12 + $0x30] sm:$0xf]  ;;  %v6012_v29 = vld [vmem:[%s7343_s12 + $0xa8] sm:$0xe] }
  0x99   : > { %v6042_v40 = vcombine.low %v3003_v4, %v3006_v43  ;;  %v6027_v25 = vrot.slane %v6011_v26, 9  ;;  %v3018_v3 = vrot.slane %v3016_v11, 4  ;;  %v3019_v12 = vrot.slane %v5956_v44, 5  ;;  %v5959_v28 = vld [vmem:[%s7343_s12 + $0xb0] sm:$0x1] }
  0x9a   : > { %6695 = vmatmul.mubr.msk.bf16.gmra.mrb[12].mxu0 %vm818_vm3, %v6039_v37  ;;  %v3012_v37 = vrot.slane %v7889_v5, 5  ;;  %v3010_v41 = vsel %vm7656_vm7, %v6026_v39, %v3009_v22  ;;  %v3023_v16 = vrot.slane %v5958_v31, 5  ;;  %v5962_v43 = vld [vmem:[%s7343_s12 + $0xbc] sm:$0x1]  ;;  %v6013_v2 = vld [vmem:[%s7343_s12 + $0xb4] sm:$0xe] }
  0x9b   : > { %6547 = vmatmul.mubr.msk.bf16.vlgmr.msra.gmra.mrb[0].mxu1 %vm818_vm3, %v5773_v33  ;;  %6698 = vmatprep.mubr.msk.bf16.mxu0 %vm818_vm3, %v6040_v49  ;;  %v3011_v33 = vrot.slane %v3009_v22, 4  ;;  %v7911_v49 = vld [vmem:[%s7343_s12 + $0x34] sm:$0xf]  ;;  %v3020_v13 = vsel %vm7656_vm7, %v3018_v3, %v3019_v12  ;;  %v7206_v22 = vld [vmem:[%s7343_s12 + $0x3c] sm:$0xf] }
  0x9c   : > { %6550 = vmatprep.mubr.msk.bf16.mxu1 %vm818_vm3, %v5774_v27  ;;  %6579 = vmatpush3.bf16.msra.mxu1 %v1586_v47  ;;  %v5776_v53 = vcombine.low %v7204_v21, %v7911_v49  ;;  %v5961_v27 = vld [vmem:[%s7343_s12 + $0xb8] sm:$0xf]  ;;  %v3017_v47 = vsel %vm7656_vm7, %v6027_v25, %v3016_v11  ;;  %v7933_v44 = vld [vmem:[%s7343_s12 + $0x40] sm:$0xf]  ;;  %v3025_v31 = vrot.slane %v3023_v16, 4  ;;  %v3026_v11 = vrot.slane %v5959_v28, 5 }
  0x9d   : > { %7111 = vmatprep.subr.msk.bf16.mxu1 %vm867_vm0, %v7880_v17  ;;  %v3013_v61 = vsel %vm7656_vm7, %v3011_v33, %v3012_v37  ;;  %v3030_v4 = vrot.slane %v5961_v27, 5  ;;  %v5777_v26 = vcombine.low %v7206_v22, %v7933_v44  ;;  %v7208_v39 = vld [vmem:[%s7343_s12 + $0x48] sm:$0xf]  ;;  %v6029_v37 = vrot.slane %v6013_v2, 9  ;;  %v6014_v12 = vld [vmem:[%s7343_s12 + $0xc0] sm:$0xe] }
  0x9e   : > { %v6043_v59 = vcombine.low %v3010_v41, %v3013_v61  ;;  %v5778_v33 = vcombine.low %v7208_v39, %v7505_v35  ;;  %v3027_v3 = vsel %vm7656_vm7, %v3025_v31, %v3026_v11  ;;  %v5965_v61 = vld [vmem:[%s7343_s12 + $0xc8] sm:$0x1]  ;;  %v5780_v2 = vcombine.low %v7559_v10, %v7563_v18  ;;  %v1324_v18 = vld [vmem:[%s7343_s12] sm:$0xe]  ;;  %v7157_v11 = vld [vmem:[%s7343_s12 + $0x18] sm:$0xff]  }
  0x9f   : > { %v3032_v21 = vrot.slane %v3030_v4, 4  ;;  %v3031_v35 = vsel %vm7656_vm7, %v6029_v37, %v3030_v4  ;;  %v2462_v4 = vshll.u32 %v7871_v57, 16  ;;  %v2466_v22 = vshrl.u32 %v7871_v57, 16 }
  0xa0   : > { %v1384_v10 = vrot.slane %v7859_v7, 5  ;;  %v5781_v31 = vcombine.low %v7601_v38, %v7604_v45  ;;  %v5782_v7 = vcombine.low %v7625_v36, %v7634_v50  ;;  %v1391_v39 = vrot.slane %v7867_v51, 5 }
  0xa1   : > { %v7969_v57 = vrot.slane %v2462_v4, 5  ;;  %v2472_v38 = vshll.u32 %v7889_v5, 16  ;;  %v5804_v45 = vrot.slane %v1324_v18, 9  ;;  %v5783_v5 = vcombine.low %v7649_v42, %v7662_v0  ;;  %v1329_v18 = vld [vmem:[%s7343_s12 + $0x3c] sm:$0xe] }
  0xa2   : > { %6699 = vmatmul.mubr.msk.bf16.gmra.mrb[16].mxu0 %vm818_vm3, %v6041_v19  ;;  %v6028_v19 = vrot.slane %v6012_v29, 9  ;;  %v5784_v42 = vcombine.low %v7686_v48, %v7689_v56  ;;  %v5785_v4 = vcombine.low %v7718_v15, %v7723_v62  ;;  %v8137_v62 = vld [vmem:[%s7343_s12 + $0x20] sm:$0x1] }
  0xa3   : > { %6551 = vmatmul.mubr.msk.bf16.gmra.mrb[4].mxu1 %vm818_vm3, %v5775_v1  ;;  %6702 = vmatprep.mubr.msk.bf16.mxu0 %vm818_vm3, %v6042_v40  ;;  %v6044_v1 = vcombine.low %v3017_v47, %v3020_v13  ;;  %v5964_v40 = vld [vmem:[%s7343_s12 + $0xc4] sm:$0xf]  ;;  %v6030_v13 = vrot.slane %v6014_v12, 9  ;;  %9807 = vst [vmem:[#allocation4_spill] sm:$0xff] %v8137_v62 }
  0xa4   : > { %6554 = vmatprep.mubr.msk.bf16.mxu1 %vm818_vm3, %v5776_v53  ;;  %v3033_v53 = vrot.slane %v5962_v43, 5  ;;  %v3024_v25 = vsel %vm7656_vm7, %v6028_v19, %v3023_v16  ;;  %v3037_v27 = vrot.slane %v5964_v40, 5  ;;  %v5779_v16 = vcombine.low %v7529_v23, %v7535_v34  ;;  %v1326_v19 = vld [vmem:[%s7343_s12 + $0x18] sm:$0xe] }
  0xa5   : > { %v6045_v47 = vcombine.low %v3024_v25, %v3027_v3  ;;  %v3040_v43 = vrot.slane %v5965_v61, 5  ;;  %v1377_v40 = vrot.slane %v7835_v54, 5  ;;  %v1327_v54 = vld [vmem:[%s7343_s12 + $0x24] sm:$0xe]  ;;  %v5806_v12 = vrot.slane %v1326_v19, 9 }
  0xa6   : > { %v3034_v41 = vsel %vm7656_vm7, %v3032_v21, %v3033_v53  ;;  %v3039_v29 = vrot.slane %v3037_v27, 4  ;;  %v3038_v23 = vsel %vm7656_vm7, %v6030_v13, %v3037_v27  ;;  %v1398_v21 = vrot.slane %v7904_v20, 5  ;;  %v7210_v53 = vld [vmem:[%s7343_s12 + $0x14] sm:$0x1]  ;;  %v1333_v3 = vld [vmem:[%s7343_s12 + $0x6c] sm:$0xe] }
  0xa7   : > { %v6046_v28 = vcombine.low %v3031_v35, %v3034_v41  ;;  %v1387_v25 = vrot.slane %v7210_v53, 5  ;;  %v1379_v36 = vrot.slane %v1377_v40, 4  ;;  %v1386_v20 = vrot.slane %v1384_v10, 4  ;;  %v7211_v35 = vld [vmem:[%s7343_s12 + $0x20] sm:$0x1] }
  0xa8   : > { %v3041_v34 = vsel %vm7656_vm7, %v3039_v29, %v3040_v43  ;;  %v1393_v27 = vrot.slane %v1391_v39, 4  ;;  %v1394_v41 = vrot.slane %v7211_v35, 5  ;;  %v1405_v61 = vrot.slane %v7911_v49, 5  ;;  %v1328_v43 = vld [vmem:[%s7343_s12 + $0x30] sm:$0xe] }
  0xa9   : > { %v5807_v13 = vrot.slane %v1327_v54, 9  ;;  %v8008_v49 = vsel %vm7656_vm7, %v5804_v45, %v1377_v40  ;;  %v8021_v48 = vsel %vm7656_vm7, %v1386_v20, %v1387_v25  ;;  %v5809_v25 = vrot.slane %v1329_v18, 9  ;;  %v7215_v54 = vld [vmem:[%s7343_s12 + $0x44] sm:$0x1]  ;;  %v1331_v35 = vld [vmem:[%s7343_s12 + $0x54] sm:$0xe] }
  0xaa   : > { %6703 = vmatmul.mubr.msk.bf16.gmra.mrb[20].mxu0 %vm818_vm3, %v6043_v59  ;;  %v6047_v59 = vcombine.low %v3038_v23, %v3041_v34  ;;  %v8025_v34 = vsel %vm7656_vm7, %v5806_v12, %v1391_v39  ;;  %v1407_v19 = vrot.slane %v1405_v61, 4  ;;  %v1330_v39 = vld [vmem:[%s7343_s12 + $0x48] sm:$0xe]  ;;  %v5813_v15 = vrot.slane %v1333_v3, 9  ;;  %v7168_v12 = vld [vmem:[%s7343_s12 + $0x60] sm:$0xff]  }
  0xab   : > { %6555 = vmatmul.mubr.msk.bf16.gmra.mrb[8].mxu1 %vm818_vm3, %v5777_v26  ;;  %6706 = vmatprep.mubr.msk.bf16.mxu0 %vm818_vm3, %v6044_v1  ;;  %v7971_v26 = vrot.slane %v2466_v22, 4  ;;  %v1325_v1 = vld [vmem:[%s7343_s12 + $0xc] sm:$0xe]  ;;  %v8038_v40 = vsel %vm7656_vm7, %v5807_v13, %v1398_v21  ;;  %v6129_v13 = vld [vmem:[%s7343_s12 + $0x18] sm:$0xf] }
  0xac   : > { %6558 = vmatprep.mubr.msk.bf16.mxu1 %vm818_vm3, %v5778_v33  ;;  %v7209_v33 = vld [vmem:[%s7343_s12 + $0x8] sm:$0x1]  ;;  %v5805_v51 = vrot.slane %v1325_v1, 9  ;;  %v5808_v1 = vrot.slane %v1328_v43, 9  ;;  %v7216_v43 = vld [vmem:[%s7343_s12 + $0x50] sm:$0x1] }
  0xad   : > { %v1380_v37 = vrot.slane %v7209_v33, 5  ;;  %v7214_v33 = vld [vmem:[%s7343_s12 + $0x4c] sm:$0xf]  ;;  %v1335_v20 = vld [vmem:[%s7343_s12 + $0x84] sm:$0xe] }
  0xae   : > { %v8017_v23 = vsel %vm7656_vm7, %v5805_v51, %v1384_v10  ;;  %v8055_v51 = vrot.slane %v2472_v38, 5  ;;  %v7220_v38 = vld [vmem:[%s7343_s12 + $0x70] sm:$0xf] }
  0xaf   : > { %v8013_v22 = vsel %vm7656_vm7, %v1379_v36, %v1380_v37  ;;  %v1419_v37 = vrot.slane %v7214_v33, 5  ;;  %v1415_v36 = vrot.slane %v7215_v54, 5  ;;  %v3744_v33 = vshrl.u32 %v6129_v13, 16 }
  0xb0   : > { %9806 = vst [vmem:[#allocation3_spill] sm:$0xff] %v8055_v51  ;;  %v3747_v54 = vshll.u32 %v6129_v13, 16  ;;  %v6144_v51 = vld [vmem:[%s7343_s12 + $0x54] sm:$0xf] }
  0xb2   : > { %6707 = vmatmul.mubr.msk.bf16.gmra.mrb[24].mxu0 %vm818_vm3, %v6045_v47  ;;  %v4226_v47 = vsel %vm867_vm0, %v7733_v58, 0  ;;  %v1412_v58 = vrot.slane %v7933_v44, 5  ;;  %v8031_v44 = vsel %vm7656_vm7, %v1393_v27, %v1394_v41  ;;  %v1440_v27 = vrot.slane %v7220_v38, 5 }
  0xb3   : > { %6559 = vmatmul.mubr.msk.bf16.gmra.mrb[12].mxu1 %vm818_vm3, %v5779_v16  ;;  %6710 = vmatprep.mubr.msk.bf16.mxu0 %vm818_vm3, %v6046_v28  ;;  %v1400_v16 = vrot.slane %v1398_v21, 4  ;;  %v7212_v28 = vld [vmem:[%s7343_s12 + $0x2c] sm:$0x1]  ;;  %v8053_v21 = vld [vmem:[%s9772_s1 + $0x10] sm:$0x3]  ;;  %v3746_v38 = vrot.slane %v3744_v33, 4 }
  0xb4   : > { %6562 = vmatprep.mubr.msk.bf16.mxu1 %vm818_vm3, %v5780_v2  ;;  %v1401_v29 = vrot.slane %v7212_v28, 5  ;;  %v7159_v2 = vld [vmem:[%s7343_s12 + $0x24] sm:$0xff]   ;;  %v1414_v45 = vrot.slane %v1412_v58, 4  ;;  %v8081_v28 = vsel %vm867_vm0, %v7880_v17, 0  ;;  %v5811_v17 = vrot.slane %v1331_v35, 9 }
  0xb5   : > { %v1442_v33 = vrot.slane %v1440_v27, 4 }
  0xba   : > { %6711 = vmatmul.mubr.msk.bf16.gmra.mrb[28].mxu0 %vm818_vm3, %v6047_v59  ;;  %v7161_v59 = vld [vmem:[%s7343_s12 + $0x30] sm:$0xff]  }
  0xbb   : > { %6563 = vmatmul.mubr.msk.bf16.gmra.mrb[16].mxu1 %vm818_vm3, %v5781_v31  ;;  %6716 = vmatprep.mubr.msk.bf16.mxu0 %vm818_vm3, %v7157_v11  ;;  %v7213_v31 = vld [vmem:[%s7343_s12 + $0x38] sm:$0x1]  ;;  %v5786_v11 = vcombine.low %v7748_v60, %v7756_v55 }
  0xbc   : > { %6566 = vmatprep.mubr.msk.bf16.mxu1 %vm818_vm3, %v5782_v7  ;;  %v1408_v10 = vrot.slane %v7213_v31, 5  ;;  %v8042_v7 = vsel %vm7656_vm7, %v1400_v16, %v1401_v29  ;;  %v6130_v16 = vld [vmem:[%s7343_s12 + $0x1c] sm:$0xf]  ;;  %v1421_v29 = vrot.slane %v1419_v37, 4  ;;  %v7218_v31 = vld [vmem:[%s7343_s12 + $0x64] sm:$0xf] }
  0xbe   : > { %v8075_v41 = vsel %vm7656_vm7, %v1407_v19, %v1408_v10  ;;  %v8095_v19 = vsel %vm7656_vm7, %v1414_v45, %v1415_v36  ;;  %v1433_v10 = vrot.slane %v7218_v31, 5  ;;  %v7219_v45 = vld [vmem:[%s7343_s12 + $0x5c] sm:$0x1]  ;;  %v1334_v31 = vld [vmem:[%s7343_s12 + $0x78] sm:$0xe] }
  0xbf   : > { %v1429_v36 = vrot.slane %v7219_v45, 5  ;;  %v5814_v60 = vrot.slane %v1334_v31, 9 }
  0xc2   : > { %6717 = vmatmul.mubr.msk.bf16.vlgmr.msra.gmra.mrb[0].mxu0 %vm818_vm3, %v7159_v2  ;;  %v1422_v2 = vrot.slane %v7216_v43, 5  ;;  %v3753_v43 = vshll.u32 %v6130_v16, 16 }
  0xc3   : > { %6567 = vmatmul.mubr.msk.bf16.gmra.mrb[20].mxu1 %vm818_vm3, %v5783_v5  ;;  %6749 = vmatpush3.bf16.msra.mxu0 %v4226_v47  ;;  %v8071_v5 = vsel %vm7656_vm7, %v5808_v1, %v1405_v61  ;;  %v5810_v47 = vrot.slane %v1330_v39, 9  ;;  %v1332_v61 = vld [vmem:[%s7343_s12 + $0x60] sm:$0xe]  ;;  %v8091_v1 = vsel %vm7656_vm7, %v5809_v25, %v1412_v58  ;;  %v7165_v39 = vld [vmem:[%s7343_s12 + $0x48] sm:$0xff]   ;;  %v6132_v58 = vld [vmem:[%s7343_s12 + $0x24] sm:$0xf] }
  0xc4   : > { %6570 = vmatprep.mubr.msk.bf16.mxu1 %vm818_vm3, %v5784_v42  ;;  %6720 = vmatprep.mubr.msk.bf16.mxu0 %vm818_vm3, %v7161_v59  ;;  %v7217_v42 = vld [vmem:[%s7343_s12 + $0x58] sm:$0xf]  ;;  %v7163_v59 = vld [vmem:[%s7343_s12 + $0x3c] sm:$0xff]   ;;  %v5812_v35 = vrot.slane %v1332_v61, 9  ;;  %v8110_v13 = vsel %vm7656_vm7, %v1421_v29, %v1422_v2  ;;  %v7221_v61 = vld [vmem:[%s7343_s12 + $0x68] sm:$0x1] }
  0xc5   : > { %v1426_v18 = vrot.slane %v7217_v42, 5  ;;  %7117 = vmatprep.subr.msk.bf16.mxu0 %vm867_vm0, %v8053_v21  ;;  %v3757_v42 = vshrl.u32 %v6130_v16, 16  ;;  %v8103_v25 = vsel %vm7656_vm7, %v5810_v47, %v1419_v37  ;;  %v1435_v47 = vrot.slane %v1433_v10, 4 }
  0xc6   : > { %v1436_v45 = vrot.slane %v7221_v61, 5  ;;  %v1447_v29 = vrot.slane %v7634_v50, 5  ;;  %v3749_v2 = vrot.slane %v3747_v54, 5  ;;  %v7222_v54 = vld [vmem:[%s7343_s12 + $0x74] sm:$0x1]  ;;  %v8150_v61 = vsel %vm7656_vm7, %v5812_v35, %v1433_v10 }
  0xc7   : > { %v1428_v16 = vrot.slane %v1426_v18, 4  ;;  %v8118_v37 = vsel %vm7656_vm7, %v5811_v17, %v1426_v18  ;;  %v8128_v18 = vrot.slane %v3753_v43, 5  ;;  %v3771_v17 = vshll.u32 %v6132_v58, 16 }
  0xc8   : > { %v1443_v43 = vrot.slane %v7222_v54, 5  ;;  %v1449_v3 = vrot.slane %v1447_v29, 4  ;;  %v1450_v50 = vrot.slane %v7638_v8, 5  ;;  %v3763_v54 = vshll.u32 %v8137_v62, 16 }
  0xc9   : > { %v3773_v35 = vrot.slane %v3771_v17, 5  ;;  %v6135_v17 = vld [vmem:[%s7343_s12 + $0x30] sm:$0xf] }
  0xca   : > { %6721 = vmatmul.mubr.msk.bf16.gmra.mrb[4].mxu0 %vm818_vm3, %v7163_v59  ;;  %v3759_v59 = vrot.slane %v3757_v42, 4  ;;  %v8145_v42 = vld [vmem:[%s7343_s12 + $0x28] sm:$0xf] }
  0xcb   : > { %6571 = vmatmul.mubr.msk.bf16.gmra.mrb[24].mxu1 %vm818_vm3, %v5785_v4  ;;  %6724 = vmatprep.mubr.msk.bf16.mxu0 %vm818_vm3, %v7165_v39  ;;  %v3768_v4 = vshrl.u32 %v6132_v58, 16  ;;  %v8141_v39 = vsel %vm7656_vm7, %v1428_v16, %v1429_v36  ;;  %9808 = vst [vmem:[#allocation5_spill] sm:$0xff] %v8145_v42  ;;  %v1454_v58 = vrot.slane %v7662_v0, 5  ;;  %v8157_v36 = vsel %vm7656_vm7, %v1435_v47, %v1436_v45 }
  0xcc   : > { %6574 = vmatprep.mubr.msk.bf16.mxu1 %vm818_vm3, %v5786_v11  ;;  %v7167_v11 = vld [vmem:[%s7343_s12 + $0x54] sm:$0xff]   ;;  %v3750_v16 = vor.u32 %v3749_v2, %v3746_v38  ;;  %v3760_v31 = vor.u32 %v3759_v59, %v8128_v18  ;;  %v3777_v53 = vshll.u32 %v8145_v42, 16  ;;  %v3781_v8 = vshrl.u32 %v8145_v42, 16 }
  0xcd   : > { %v3770_v10 = vrot.slane %v3768_v4, 4  ;;  %v8168_v47 = vsel %vm7656_vm7, %v5813_v15, %v1440_v27  ;;  %v8172_v45 = vsel %vm7656_vm7, %v1442_v33, %v1443_v43  ;;  %v8176_v38 = vsel %vm7656_vm7, %v5814_v60, %v1447_v29  ;;  %v8185_v15 = vld [vmem:[%s7343_s12 + $0x2c] sm:$0x1]  ;;  %v8196_v60 = vld [vmem:[%s7343_s12 + $0x34] sm:$0xf] }
  0xce   : > { %v8181_v2 = vsel %vm7656_vm7, %v1449_v3, %v1450_v50  ;;  %v5815_v59 = vrot.slane %v1335_v20, 9  ;;  %v1456_v4 = vrot.slane %v1454_v58, 4  ;;  %v1457_v27 = vrot.slane %v7670_v14, 5  ;;  %9809 = vst [vmem:[#allocation6_spill] sm:$0xff] %v8185_v15  ;;  %9811 = vst [vmem:[#allocation7_spill] sm:$0xff] %v8196_v60 }
  0xcf   : > { %v9810_v33 = vcombine.low %v7784_v6, %v7790_v30  ;;  %v3751_v50 = vrot.slane %v3750_v16, 4  ;;  %v3761_v20 = vrot.slane %v3760_v31, 4  ;;  %v3765_v43 = vrot.slane %v3763_v54, 5  ;;  %v1336_v3 = vld [vmem:[%s7343_s12 + $0x90] sm:$0xe] }
  0xd0   : > { %v9812_v14 = vcombine.low %v8008_v49, %v8013_v22  ;;  %v3774_v6 = vor.u32 %v3773_v35, %v3770_v10  ;;  %v3792_v54 = vshrl.u32 %v6135_v17, 16  ;;  %v3795_v49 = vshll.u32 %v6135_v17, 16  ;;  %v7169_v22 = vld [vmem:[%s7343_s12 + $0x6c] sm:$0xff]   ;;  %v8230_v16 = vld [vmem:[%s7343_s12 + $0x40] sm:$0xf] }
  0xd1   : > { %v8213_v10 = vsel %vm7656_vm7, %v5815_v59, %v1454_v58  ;;  %v3805_v35 = vshrl.u32 %v8196_v60, 16  ;;  %v3756_v17 = vsel %vm7369_vm4, %v3751_v50, %v8128_v18  ;;  %v3766_v31 = vsel %vm7369_vm4, %v3761_v20, %v3765_v43  ;;  %9813 = vst [vmem:[#allocation8_spill] sm:$0xff] %v8230_v16 }
  0xd2   : > { %6725 = vmatmul.mubr.msk.bf16.gmra.mrb[8].mxu0 %vm818_vm3, %v7167_v11  ;;  %v8202_v11 = vrot.slane %v3777_v53, 5  ;;  %v8217_v53 = vsel %vm7656_vm7, %v1456_v4, %v1457_v27  ;;  %v3787_v58 = vshll.u32 %v8185_v15, 16  ;;  %v5816_v59 = vrot.slane %v1336_v3, 9 }
  0xd3   : > { %6575 = vmatmul.mubr.msk.bf16.gmra.mrb[28].mxu1 %vm818_vm3, %v9810_v33  ;;  %6728 = vmatprep.mubr.msk.bf16.mxu0 %vm818_vm3, %v7168_v12  ;;  %v3783_v12 = vrot.slane %v3781_v8, 4  ;;  %v1461_v33 = vrot.slane %v7689_v56, 5  ;;  %v3801_v56 = vshll.u32 %v8196_v60, 16  ;;  %v6138_v8 = vld [vmem:[%s7343_s12 + $0x3c] sm:$0xf]  ;;  %v8232_v4 = vrot.slane %v3774_v6, 4 }
  0xd4   : > { %6580 = vmatprep.mubr.msk.bf16.mxu1 %vm818_vm3, %v9812_v14  ;;  %v7170_v14 = vld [vmem:[%s7343_s12 + $0x78] sm:$0xff]   ;;  %v1464_v0 = vrot.slane %v7705_v9, 5  ;;  %v3794_v42 = vrot.slane %v3792_v54, 4  ;;  %v3797_v18 = vrot.slane %v3795_v49, 5  ;;  %v3816_v50 = vshrl.u32 %v6138_v8, 16 }
  0xd5   : > { %v3784_v27 = vor.u32 %v3783_v12, %v8202_v11  ;;  %v1463_v29 = vrot.slane %v1461_v33, 4  ;;  %v8237_v60 = vld [vmem:[%s7343_s12 + $0x38] sm:$0x1]  ;;  %v3819_v62 = vshll.u32 %v6138_v8, 16  ;;  %v8240_v20 = vrot.slane %v3801_v56, 5 }
  0xd6   : > { %9814 = vst [vmem:[#allocation9_spill] sm:$0xff] %v8237_v60  ;;  %v3807_v43 = vrot.slane %v3805_v35, 4  ;;  %v3825_v6 = vshll.u32 %v8230_v16, 16  ;;  %v3829_v12 = vshrl.u32 %v8230_v16, 16  ;;  %v9815_v9 = vcombine.low %v8017_v23, %v8021_v48  ;;  %v1337_v56 = vld [vmem:[%s7343_s12 + $0x9c] sm:$0xe] }
  0xd7   : > { %v8249_v3 = vcombine.low %v3756_v17, %v3766_v31  ;;  %v8253_v49 = vrot.slane %v3787_v58, 5  ;;  %v9816_v23 = vcombine.low %v8025_v34, %v8031_v44  ;;  %v8269_v31 = vrot.slane %v3784_v27, 4  ;;  %v6141_v34 = vld [vmem:[%s7343_s12 + $0x48] sm:$0xf]  ;;  %v8278_v44 = vld [vmem:[%s7343_s12 + $0x4c] sm:$0xf] }
  0xd8   : > { %v3811_v35 = vshll.u32 %v8237_v60, 16  ;;  %9817 = vst [vmem:[#allocation10_spill] sm:$0xff] %v8278_v44  ;;  %v3798_v8 = vor.u32 %v3797_v18, %v3794_v42  ;;  %v3821_v17 = vrot.slane %v3819_v62, 5  ;;  %v7223_v58 = vld [vmem:[%s9772_s1 + $0x8] sm:$0x3]  ;;  %v5817_v27 = vrot.slane %v1337_v56, 9 }
  0xd9   : > { %v7172_v42 = vld [vmem:[%s7343_s12 + $0x90] sm:$0xff]   ;;  %v3840_v62 = vshrl.u32 %v6141_v34, 16  ;;  %v3849_v18 = vshll.u32 %v8278_v44, 16  ;;  %v1338_v54 = vld [vmem:[%s7343_s12 + $0xa8] sm:$0xe]  ;;  %v1471_v48 = vrot.slane %v7728_v63, 5  ;;  %v9820_v63 = vcombine.low %v8038_v40, %v8042_v7 }
  0xda   : > { %6729 = vmatmul.mubr.msk.bf16.gmra.mrb[12].mxu0 %vm818_vm3, %v7169_v22  ;;  %v8257_v22 = vsel %vm867_vm0, %v8053_v21, 0  ;;  %v8273_v21 = vsel %vm7656_vm7, %v5816_v59, %v1461_v33  ;;  %v7171_v33 = vld [vmem:[%s7343_s12 + $0x84] sm:$0xff]   ;;  %v3808_v59 = vor.u32 %v3807_v43, %v8240_v20  ;;  %v5818_v40 = vrot.slane %v1338_v54, 9  ;;  %v1339_v54 = vld [vmem:[%s7343_s12 + $0xb4] sm:$0xe] }
  0xdb   : > { %6581 = vmatmul.mubr.msk.bf16.vlgmr.msra.gmra.mrb[0].mxu1 %vm818_vm3, %v9815_v9  ;;  %6732 = vmatprep.mubr.msk.bf16.mxu0 %vm818_vm3, %v7170_v14  ;;  %v3818_v14 = vrot.slane %v3816_v50, 4  ;;  %v8291_v9 = vld [vmem:[%s7343_s12 + $0x44] sm:$0x1]  ;;  %v3853_v50 = vshrl.u32 %v8278_v44, 16  ;;  %v8321_v44 = vld [vmem:[%s7343_s12 + $0x58] sm:$0xf] }
  0xdc   : > { %6584 = vmatprep.mubr.msk.bf16.mxu1 %vm818_vm3, %v9816_v23  ;;  %6613 = vmatpush3.bf16.msra.mxu1 %v8081_v28  ;;  %v8282_v28 = vsel %vm7656_vm7, %v1463_v29, %v1464_v0  ;;  %9818 = vst [vmem:[#allocation11_spill] sm:$0xff] %v8291_v9  ;;  %v8293_v23 = vrot.slane %v3825_v6, 5  ;;  %v3831_v0 = vrot.slane %v3829_v12, 4  ;;  %v3843_v29 = vshll.u32 %v6141_v34, 16  ;;  %v7224_v12 = vld [vmem:[%s7343_s12 + $0xa0] sm:$0xf] }
  0xdd   : > { %7113 = vmatprep.subr.msk.bf16.mxu1 %vm867_vm0, %v7223_v58  ;;  %v8304_v6 = vrot.slane %v3811_v35, 5  ;;  %v1468_v56 = vrot.slane %v7224_v12, 5  ;;  %v8308_v34 = vrot.slane %v3798_v8, 4  ;;  %v3822_v60 = vor.u32 %v3821_v17, %v3818_v14  ;;  %9819 = vst [vmem:[#allocation12_spill] sm:$0xff] %v8321_v44  ;;  %v8329_v8 = vld [vmem:[%s7343_s12 + $0x50] sm:$0x1] }
  0xde   : > { %v3835_v15 = vshll.u32 %v8291_v9, 16  ;;  %v3809_v58 = vrot.slane %v3808_v59, 4  ;;  %v3832_v35 = vor.u32 %v3831_v0, %v8293_v23  ;;  %v1475_v12 = vrot.slane %v7756_v55, 5  ;;  %9821 = vst [vmem:[#allocation13_spill] sm:$0xff] %v8329_v8 }
  0xdf   : > { %v8316_v43 = vsel %vm7656_vm7, %v5817_v27, %v1468_v56  ;;  %v3842_v14 = vrot.slane %v3840_v62, 4  ;;  %v3845_v17 = vrot.slane %v3843_v29, 5  ;;  %v3855_v59 = vrot.slane %v3853_v50, 4  ;;  %v7173_v29 = vld [vmem:[%s7343_s12 + $0x9c] sm:$0xff]  }
  0xe0   : > { %v9822_v55 = vcombine.low %v8071_v5, %v8075_v41  ;;  %v1470_v27 = vrot.slane %v1468_v56, 4  ;;  %v3864_v7 = vshrl.u32 %v6144_v51, 16  ;;  %v3867_v0 = vshll.u32 %v6144_v51, 16  ;;  %v7174_v41 = vld [vmem:[%s7343_s12 + $0xa8] sm:$0xff]  }
  0xe1   : > { %v3873_v9 = vshll.u32 %v8321_v44, 16  ;;  %v3877_v62 = vshrl.u32 %v8321_v44, 16  ;;  %v1477_v50 = vrot.slane %v1475_v12, 4  ;;  %v1478_v16 = vrot.slane %v7765_v24, 5 }
  0xe2   : > { %6733 = vmatmul.mubr.msk.bf16.gmra.mrb[16].mxu0 %vm818_vm3, %v7171_v33  ;;  %v8331_v33 = vrot.slane %v3849_v18, 5  ;;  %v3833_v18 = vrot.slane %v3832_v35, 4  ;;  %v3859_v5 = vshll.u32 %v8329_v8, 16  ;;  %v3804_v51 = vsel %vm7369_vm4, %v8308_v34, %v8240_v20 }
  0xe3   : > { %6585 = vmatmul.mubr.msk.bf16.gmra.mrb[4].mxu1 %vm818_vm3, %v9820_v63  ;;  %6736 = vmatprep.mubr.msk.bf16.mxu0 %vm818_vm3, %v7172_v42  ;;  %v3823_v63 = vrot.slane %v3822_v60, 4  ;;  %v3837_v42 = vrot.slane %v3835_v15, 5  ;;  %v3846_v15 = vor.u32 %v3845_v17, %v3842_v14  ;;  %v1482_v56 = vrot.slane %v7790_v30, 5  ;;  %v8365_v30 = vld [vmem:[%s7343_s12 + $0x5c] sm:$0x1] }
  0xe4   : > { %6588 = vmatprep.mubr.msk.bf16.mxu1 %vm818_vm3, %v9822_v55  ;;  %v3856_v60 = vor.u32 %v3855_v59, %v8331_v33  ;;  %v3814_v24 = vsel %vm7369_vm4, %v3809_v58, %v8304_v6  ;;  %v8355_v35 = vsel %vm7656_vm7, %v1470_v27, %v1471_v48  ;;  %v3866_v55 = vrot.slane %v3864_v7, 4  ;;  %9823 = vst [vmem:[#allocation14_spill] sm:$0xff] %v8365_v30  ;;  %v6147_v58 = vld [vmem:[%s7343_s12 + $0x60] sm:$0xf]  ;;  %v8380_v59 = vld [vmem:[%s7343_s12 + $0x64] sm:$0xf] }
  0xe5   : > { %v3869_v44 = vrot.slane %v3867_v0, 5  ;;  %v3828_v20 = vsel %vm7369_vm4, %v3823_v63, %v8293_v23  ;;  %v8362_v34 = vsel %vm7656_vm7, %v5818_v40, %v1475_v12  ;;  %v8367_v14 = vrot.slane %v3873_v9, 5  ;;  %9825 = vst [vmem:[#allocation16_spill] sm:$0xff] %v8380_v59 }
  0xe6   : > { %v3879_v17 = vrot.slane %v3877_v62, 4  ;;  %v3838_v48 = vsel %vm7369_vm4, %v3833_v18, %v3837_v42  ;;  %v8375_v6 = vsel %vm7656_vm7, %v1477_v50, %v1478_v16  ;;  %v8377_v23 = vrot.slane %v3859_v5, 5 }
  0xe7   : > { %9824 = vst [vmem:[#allocation15_spill] sm:$0xff] %v8375_v6  ;;  %v5819_v12 = vrot.slane %v1339_v54, 9  ;;  %v9826_v9 = vcombine.low %v8091_v1, %v8095_v19  ;;  %v8387_v27 = vrot.slane %v3846_v15, 4  ;;  %v8389_v40 = vrot.slane %v3856_v60, 4 }
  0xe8   : > { %v1484_v16 = vrot.slane %v1482_v56, 4  ;;  %v1485_v7 = vrot.slane %v7794_v46, 5  ;;  %v9827_v0 = vcombine.low %v8103_v25, %v8110_v13  ;;  %v9828_v1 = vsel %vm7369_vm4, %v8269_v31, %v8253_v49 }
  0xe9   : > { %v9829_v19 = vsel %vm7369_vm4, %v8232_v4, %v8202_v11  ;;  %v3870_v42 = vor.u32 %v3869_v44, %v3866_v55  ;;  %v3883_v46 = vshll.u32 %v8365_v30, 16  ;;  %v3888_v62 = vshrl.u32 %v6147_v58, 16  ;;  %v7175_v11 = vld [vmem:[%s7343_s12 + $0xb4] sm:$0xff]   ;;  %v7176_v4 = vld [vmem:[%s7343_s12 + $0xc0] sm:$0xff]  }
  0xea   : > { %6737 = vmatmul.mubr.msk.bf16.gmra.mrb[20].mxu0 %vm818_vm3, %v7173_v29  ;;  %v8406_v63 = vcombine.low %v9829_v19, %v9828_v1  ;;  %v8409_v25 = vcombine.low %v3804_v51, %v3814_v24  ;;  %v3880_v13 = vor.u32 %v3879_v17, %v8367_v14  ;;  %v8413_v29 = vld [vmem:[%s7343_s12 + $0x68] sm:$0x1]  ;;  %v3891_v49 = vshll.u32 %v6147_v58, 16  ;;  %v8443_v24 = vld [vmem:[%s7343_s12 + $0x70] sm:$0xf] }
  0xeb   : > { %6589 = vmatmul.mubr.msk.bf16.gmra.mrb[8].mxu1 %vm818_vm3, %v9826_v9  ;;  %6740 = vmatprep.mubr.msk.bf16.mxu0 %vm818_vm3, %v7174_v41  ;;  %9830 = vst [vmem:[#allocation17_spill] sm:$0xff] %v8413_v29  ;;  %v3897_v31 = vshll.u32 %v8380_v59, 16  ;;  %v8420_v18 = vcombine.low %v3828_v20, %v3838_v48  ;;  %v3901_v5 = vshrl.u32 %v8380_v59, 16  ;;  %v6150_v41 = vld [vmem:[%s7343_s12 + $0x6c] sm:$0xf]  ;;  %v8436_v60 = vsel %vm7656_vm7, %v5819_v12, %v1482_v56 }
  0xec   : > { %6592 = vmatprep.mubr.msk.bf16.mxu1 %vm818_vm3, %v9827_v0  ;;  %v8440_v54 = vsel %vm7656_vm7, %v1484_v16, %v1485_v7  ;;  %9831 = vst [vmem:[#allocation18_spill] sm:$0xff] %v8443_v24  ;;  %v6153_v55 = vld [vmem:[%s7343_s12 + $0x78] sm:$0xf]  ;;  %v8447_v20 = vld [vmem:[%s7343_s12 + $0x7c] sm:$0xf]  ;;  %v8449_v17 = vrot.slane %v3870_v42, 4 }
  0xed   : > { %9832 = vst [vmem:[#allocation19_spill] sm:$0xff] %v8447_v20  ;;  %v8451_v58 = vrot.slane %v3883_v46, 5  ;;  %v3890_v48 = vrot.slane %v3888_v62, 4  ;;  %v3907_v9 = vshll.u32 %v8413_v29, 16  ;;  %v6156_v0 = vld [vmem:[%s7343_s12 + $0x84] sm:$0xf]  ;;  %v9834_v62 = vcombine.low %v8118_v37, %v8141_v39 }
  0xee   : > { %v8455_v1 = vrot.slane %v3880_v13, 4  ;;  %v3893_v56 = vrot.slane %v3891_v49, 5  ;;  %v8457_v12 = vrot.slane %v3897_v31, 5  ;;  %v3912_v16 = vshrl.u32 %v6150_v41, 16  ;;  %v8460_v7 = vld [vmem:[%s7343_s12 + $0x88] sm:$0xf] }
  0xef   : > { %9833 = vst [vmem:[#allocation20_spill] sm:$0xff] %v8460_v7  ;;  %v3903_v19 = vrot.slane %v3901_v5, 4  ;;  %v3915_v50 = vshll.u32 %v6150_v41, 16  ;;  %v3921_v42 = vshll.u32 %v8443_v24, 16  ;;  %v3925_v46 = vshrl.u32 %v8443_v24, 16  ;;  %v7177_v51 = vld [vmem:[%s7343_s12 + $0xcc] sm:$0xff]  }
  0xf0   : > { %v3936_v13 = vshrl.u32 %v6153_v55, 16  ;;  %v3939_v49 = vshll.u32 %v6153_v55, 16  ;;  %v3945_v31 = vshll.u32 %v8447_v20, 16  ;;  %v9835_v5 = vcombine.low %v8150_v61, %v8157_v36  ;;  %v6159_v36 = vld [vmem:[%s7343_s12 + $0x90] sm:$0xf] }
  0xf1   : > { %v3960_v37 = vshrl.u32 %v6156_v0, 16  ;;  %v3963_v39 = vshll.u32 %v6156_v0, 16  ;;  %v3969_v41 = vshll.u32 %v8460_v7, 16  ;;  %v3894_v55 = vor.u32 %v3893_v56, %v3890_v48  ;;  %v8493_v24 = vld [vmem:[%s7343_s12 + $0x74] sm:$0x1] }
  0xf2   : > { %6741 = vmatmul.mubr.msk.bf16.gmra.mrb[24].mxu0 %vm818_vm3, %v7175_v11  ;;  %v3949_v11 = vshrl.u32 %v8447_v20, 16  ;;  %v8482_v44 = vrot.slane %v3907_v9, 5  ;;  %v3914_v61 = vrot.slane %v3912_v16, 4  ;;  %v3917_v0 = vrot.slane %v3915_v50, 5  ;;  %9837 = vst [vmem:[#allocation22_spill] sm:$0xff] %v8493_v24 }
  0xf3   : > { %6593 = vmatmul.mubr.msk.bf16.gmra.mrb[12].mxu1 %vm818_vm3, %v9834_v62  ;;  %6744 = vmatprep.mubr.msk.bf16.mxu0 %vm818_vm3, %v7176_v4  ;;  %v3973_v62 = vshrl.u32 %v8460_v7, 16  ;;  %v8487_v15 = vrot.slane %v3921_v42, 5  ;;  %v3927_v20 = vrot.slane %v3925_v46, 4  ;;  %v8490_v7 = vld [vmem:[%s7343_s12 + $0x94] sm:$0xf]  ;;  %v3938_v29 = vrot.slane %v3936_v13, 4 }
  0xf4   : > { %6596 = vmatprep.mubr.msk.bf16.mxu1 %vm818_vm3, %v9835_v5  ;;  %v3904_v5 = vor.u32 %v3903_v19, %v8457_v12  ;;  %9836 = vst [vmem:[#allocation21_spill] sm:$0xff] %v8490_v7  ;;  %v3941_v4 = vrot.slane %v3939_v49, 5  ;;  %v8495_v59 = vrot.slane %v3945_v31, 5  ;;  %v3951_v48 = vrot.slane %v3949_v11, 4  ;;  %v8498_v9 = vld [vmem:[%s7343_s12 + $0x80] sm:$0x1] }
  0xf5   : > { %9838 = vst [vmem:[#allocation23_spill] sm:$0xff] %v8498_v9  ;;  %v3962_v56 = vrot.slane %v3960_v37, 4  ;;  %v3965_v16 = vrot.slane %v3963_v39, 5  ;;  %v8500_v30 = vrot.slane %v3969_v41, 5  ;;  %v3975_v19 = vrot.slane %v3973_v62, 4 }
  0xf6   : > { %v8503_v50 = vld [vmem:[%s7343_s12 + $0x8c] sm:$0x1]  ;;  %v3984_v42 = vshrl.u32 %v6159_v36, 16  ;;  %v3987_v46 = vshll.u32 %v6159_v36, 16  ;;  %v3993_v8 = vshll.u32 %v8490_v7, 16  ;;  %v3997_v13 = vshrl.u32 %v8490_v7, 16 }
  0xf7   : > { %9839 = vst [vmem:[#allocation24_spill] sm:$0xff] %v8503_v50  ;;  %v8512_v31 = vrot.slane %v3894_v55, 4  ;;  %v3918_v11 = vor.u32 %v3917_v0, %v3914_v61  ;;  %v3931_v37 = vshll.u32 %v8493_v24, 16  ;;  %v9840_v39 = vcombine.low %v8168_v47, %v8172_v45  ;;  %v6162_v36 = vld [vmem:[%s7343_s12 + $0x9c] sm:$0xf] }
  0xf8   : > { %v3942_v41 = vor.u32 %v3941_v4, %v3938_v29  ;;  %v3952_v62 = vor.u32 %v3951_v48, %v8495_v59  ;;  %v3955_v55 = vshll.u32 %v8498_v9, 16  ;;  %v9841_v61 = vcombine.low %v8176_v38, %v8181_v2  ;;  %v8537_v9 = vld [vmem:[%s7343_s12 + $0xa0] sm:$0xf] }
  0xf9   : > { %v3905_v47 = vrot.slane %v3904_v5, 4  ;;  %v3966_v45 = vor.u32 %v3965_v16, %v3962_v56  ;;  %v3976_v0 = vor.u32 %v3975_v19, %v8500_v30  ;;  %v3986_v29 = vrot.slane %v3984_v42, 4 }
  0xfa   : > { %6745 = vmatmul.mubr.msk.bf16.gmra.mrb[28].mxu0 %vm818_vm3, %v7177_v51  ;;  %v3928_v51 = vor.u32 %v3927_v20, %v8487_v15  ;;  %v3989_v20 = vrot.slane %v3987_v46, 5  ;;  %v8534_v4 = vrot.slane %v3993_v8, 5  ;;  %v3999_v48 = vrot.slane %v3997_v13, 4 }
  0xfb   : > { %6597 = vmatmul.mubr.msk.bf16.gmra.mrb[16].mxu1 %vm818_vm3, %v9840_v39  ;;  %6750 = vmatprep.mubr.msk.bf16.mxu0 %vm818_vm3, %v8249_v3  ;;  %v3979_v3 = vshll.u32 %v8503_v50, 16  ;;  %v8532_v39 = vld [vmem:[%s7343_s12 + $0x98] sm:$0x1]  ;;  %v3919_v49 = vrot.slane %v3918_v11, 4  ;;  %v3933_v7 = vrot.slane %v3931_v37, 5  ;;  %v4008_v38 = vshrl.u32 %v6162_v36, 16 }
  0xfc   : > { %6600 = vmatprep.mubr.msk.bf16.mxu1 %vm818_vm3, %v9841_v61  ;;  %v4011_v2 = vshll.u32 %v6162_v36, 16  ;;  %v3929_v61 = vrot.slane %v3928_v51, 4  ;;  %v3943_v5 = vrot.slane %v3942_v41, 4  ;;  %v3953_v56 = vrot.slane %v3952_v62, 4 }
  0xfd   : > { %v3957_v16 = vrot.slane %v3955_v55, 5  ;;  %v3967_v19 = vrot.slane %v3966_v45, 4  ;;  %v3977_v24 = vrot.slane %v3976_v0, 4  ;;  %v3981_v50 = vrot.slane %v3979_v3, 5 }
  0xfe   : > { %v4003_v6 = vshll.u32 %v8532_v39, 16  ;;  %v3990_v42 = vor.u32 %v3989_v20, %v3986_v29  ;;  %v4000_v8 = vor.u32 %v3999_v48, %v8534_v4  ;;  %v4017_v46 = vshll.u32 %v8537_v9, 16 }
  0xff   : > { %v4021_v13 = vshrl.u32 %v8537_v9, 16  ;;  %v3900_v11 = vsel %vm7369_vm4, %v8512_v31, %v8457_v12  ;;  %v3910_v37 = vsel %vm7369_vm4, %v3905_v47, %v8482_v44  ;;  %v4010_v51 = vrot.slane %v4008_v38, 4  ;;  %v8571_v12 = vld [vmem:[%s7343_s12 + $0xa4] sm:$0x1]  ;;  %v6165_v31 = vld [vmem:[%s7343_s12 + $0xa8] sm:$0xf] }
 0x100   : > { %v4013_v41 = vrot.slane %v4011_v2, 5  ;;  %v9842_v62 = vor.u32 %v7971_v26, %v7969_v57  ;;  %v9843_v36 = vcombine.low %v8213_v10, %v8217_v53  ;;  %v3934_v44 = vsel %vm7369_vm4, %v3929_v61, %v3933_v7  ;;  %v6213_v47 = vld [vmem:[%s7343_s12 + $0x3c] sm:$0xe]  ;;  %v6214_v61 = vld [vmem:[%s7343_s12 + $0x48] sm:$0xe] }
 0x101   : > { %v3948_v26 = vsel %vm7369_vm4, %v3943_v5, %v8495_v59  ;;  %v9844_v10 = vcombine.low %v8273_v21, %v8282_v28  ;;  %v3958_v53 = vsel %vm7369_vm4, %v3953_v56, %v3957_v16  ;;  %v3982_v59 = vsel %vm7369_vm4, %v3977_v24, %v3981_v50  ;;  %v6215_v56 = vld [vmem:[%s7343_s12 + $0x54] sm:$0xe] }
 0x102   : > { %6751 = vmatmul.mubr.msk.bf16.vlgmr.msra.gmra.mrb[0].mxu0 %vm818_vm3, %v8406_v63  ;;  %v8555_v55 = vrot.slane %v9842_v62, 4  ;;  %v3924_v63 = vsel %vm7369_vm4, %v3919_v49, %v8487_v15  ;;  %v4005_v15 = vrot.slane %v4003_v6, 5  ;;  %v3991_v7 = vrot.slane %v3990_v42, 4 }
 0x103   : > { %6601 = vmatmul.mubr.msk.bf16.gmra.mrb[20].mxu1 %vm818_vm3, %v9843_v36  ;;  %6783 = vmatpush3.bf16.msra.mxu0 %v8257_v22  ;;  %v3972_v22 = vsel %vm7369_vm4, %v3967_v19, %v8500_v30  ;;  %v4001_v49 = vrot.slane %v4000_v8, 4  ;;  %v8587_v21 = vrot.slane %v4017_v46, 5  ;;  %v4023_v28 = vrot.slane %v4021_v13, 4  ;;  %v9851_v13 = vld [vmem:[#allocation11_spill] sm:$0xff] }
 0x104   : > { %6604 = vmatprep.mubr.msk.bf16.mxu1 %vm818_vm3, %v9844_v10  ;;  %6754 = vmatprep.mubr.msk.bf16.mxu0 %vm818_vm3, %v8409_v25  ;;  %v5836_v25 = vcombine.low %v8436_v60, %v8440_v54  ;;  %v4014_v45 = vor.u32 %v4013_v41, %v4010_v51  ;;  %v4027_v0 = vshll.u32 %v8571_v12, 16  ;;  %v4032_v30 = vshrl.u32 %v6165_v31, 16  ;;  %v9852_v51 = vld [vmem:[#allocation15_spill] sm:$0xff]  ;;  %v8658_v10 = vld [vmem:[%s7343_s12 + $0xb0] sm:$0x1] }
 0x105   : > { %v9845_v6 = vsel %vm7369_vm4, %v8389_v40, %v8377_v23  ;;  %v9846_v24 = vsel %vm7369_vm4, %v8387_v27, %v8331_v33  ;;  %v9847_v3 = vsel %vm7369_vm4, %v8455_v1, %v8451_v58  ;;  %v9848_v29 = vsel %vm7369_vm4, %v8449_v17, %v8367_v14  ;;  %v8616_v23 = vld [vmem:[%s7343_s12 + $0xac] sm:$0xf]  ;;  %v9849_v1 = vld [vmem:[#allocation8_spill] sm:$0xff] }
 0x106   : > { %v6182_v50 = vcombine.low %v9846_v24, %v9845_v6  ;;  %v6183_v20 = vcombine.low %v9848_v29, %v9847_v3  ;;  %v6184_v48 = vcombine.low %v3900_v11, %v3910_v37  ;;  %v8613_v38 = vcombine.low %v3924_v63, %v3934_v44  ;;  %v9855_v63 = vld [vmem:[#allocation13_spill] sm:$0xff]  ;;  %v9860_v54 = vld [vmem:[#allocation3_spill] sm:$0xff] }
 0x107   : > { %v8618_v40 = vcombine.low %v3948_v26, %v3958_v53  ;;  %v8620_v33 = vcombine.low %v3972_v22, %v3982_v59  ;;  %v4035_v27 = vshll.u32 %v6165_v31, 16  ;;  %v6229_v2 = vrot.slane %v6213_v47, 9  ;;  %v9857_v59 = vld [vmem:[#allocation14_spill] sm:$0xff] }
 0x108   : > { %v3996_v58 = vsel %vm7369_vm4, %v3991_v7, %v8534_v4  ;;  %v4006_v14 = vsel %vm7369_vm4, %v4001_v49, %v4005_v15  ;;  %v4024_v17 = vor.u32 %v4023_v28, %v8587_v21  ;;  %v4508_v5 = vrot.slane %v9849_v1, 5 }
 0x109   : > { %v8633_v16 = vrot.slane %v4014_v45, 4  ;;  %v8635_v19 = vrot.slane %v4027_v0, 5  ;;  %v4034_v42 = vrot.slane %v4032_v30, 4  ;;  %v4041_v4 = vshll.u32 %v8616_v23, 16  ;;  %v7178_v45 = vld [vmem:[%s7343_s12 + $0xc] sm:$0xff]  }
 0x10a   : > { %6755 = vmatmul.mubr.msk.bf16.gmra.mrb[4].mxu0 %vm818_vm3, %v8420_v18  ;;  %v9850_v8 = vcombine.low %v8316_v43, %v8355_v35  ;;  %v8645_v46 = vsel %vm7656_vm7, %v6229_v2, %v4508_v5  ;;  %v4510_v18 = vrot.slane %v4508_v5, 4  ;;  %v4511_v11 = vrot.slane %v9851_v13, 5  ;;  %v6168_v43 = vld [vmem:[%s7343_s12 + $0xb4] sm:$0xf]  ;;  %v9854_v35 = vld [vmem:[#allocation10_spill] sm:$0xff] }
 0x10b   : > { %6758 = vmatprep.mubr.msk.bf16.mxu0 %vm818_vm3, %v6182_v50  ;;  %v6230_v37 = vrot.slane %v6214_v61, 9  ;;  %v9853_v41 = vcombine.low %v8362_v34, %v9852_v51  ;;  %v4037_v62 = vrot.slane %v4035_v27, 5  ;;  %v4515_v36 = vrot.slane %v9854_v35, 5  ;;  %v9856_v34 = vld [vmem:[#allocation12_spill] sm:$0xff]  ;;  %v6216_v50 = vld [vmem:[%s7343_s12 + $0x60] sm:$0xe] }
 0x10c   : > { %6605 = vmatmul.mubr.msk.bf16.gmra.mrb[24].mxu1 %vm818_vm3, %v9850_v8  ;;  %v4518_v44 = vrot.slane %v9855_v63, 5  ;;  %v6231_v26 = vrot.slane %v6215_v56, 9  ;;  %v8655_v31 = vrot.slane %v4024_v17, 4  ;;  %v8662_v53 = vsel %vm7656_vm7, %v4510_v18, %v4511_v11  ;;  %v8685_v27 = vld [vmem:[%s7343_s12 + $0xb8] sm:$0xf]  ;;  %v9858_v11 = vld [vmem:[#allocation16_spill] sm:$0xff] }
 0x10d   : > { %6608 = vmatprep.mubr.msk.bf16.mxu1 %vm818_vm3, %v9853_v41  ;;  %v4522_v22 = vrot.slane %v9856_v34, 5  ;;  %v4525_v15 = vrot.slane %v9857_v59, 5  ;;  %v4045_v7 = vshrl.u32 %v8616_v23, 16  ;;  %v6246_v49 = vcombine.low %v8645_v46, %v8662_v53  ;;  %v6217_v18 = vld [vmem:[%s7343_s12 + $0x6c] sm:$0xe]  ;;  %v9859_v51 = vld [vmem:[#allocation17_spill] sm:$0xff] }
 0x10e   : > { %v8671_v28 = vsel %vm7656_vm7, %v6230_v37, %v4515_v36  ;;  %v4517_v47 = vrot.slane %v4515_v36, 4  ;;  %v8674_v0 = vcombine.low %v3996_v58, %v4006_v14  ;;  %v8676_v30 = vrot.slane %v4041_v4, 5  ;;  %v5951_v58 = vld [vmem:[%s7343_s12 + $0x90] sm:$0xf]  ;;  %v6171_v13 = vld [vmem:[%s7343_s12 + $0xc0] sm:$0xf] }
 0x10f   : > { %v8680_v6 = vsel %vm7656_vm7, %v6231_v26, %v4522_v22  ;;  %v4524_v24 = vrot.slane %v4522_v22, 4  ;;  %v4038_v3 = vor.u32 %v4037_v62, %v4034_v42  ;;  %v4051_v29 = vshll.u32 %v8658_v10, 16  ;;  %v7230_v46 = vld [vmem:[%s7343_s12 + $0xac] sm:$0xf] }
 0x110   : > { %v4056_v2 = vshrl.u32 %v6168_v43, 16  ;;  %v8689_v61 = vsel %vm7656_vm7, %v4517_v47, %v4518_v44  ;;  %v4020_v14 = vsel %vm7369_vm4, %v8633_v16, %v8587_v21  ;;  %v4059_v17 = vshll.u32 %v6168_v43, 16  ;;  %v7179_v47 = vld [vmem:[%s7343_s12 + $0x18] sm:$0xff]  }
 0x111   : > { %v6247_v1 = vcombine.low %v8671_v28, %v8689_v61  ;;  %v8700_v5 = vsel %vm7656_vm7, %v4524_v24, %v4525_v15  ;;  %v4030_v56 = vsel %vm7369_vm4, %v8655_v31, %v8635_v19  ;;  %v8707_v42 = vrot.slane %v4045_v7, 4  ;;  %v9861_v15 = vld [vmem:[#allocation18_spill] sm:$0xff]  ;;  %v7225_v31 = vld [vmem:[%s7343_s12 + $0x1c] sm:$0xf] }
 0x112   : > { %6759 = vmatmul.mubr.msk.bf16.gmra.mrb[8].mxu0 %vm818_vm3, %v6183_v20  ;;  %v6248_v4 = vcombine.low %v8680_v6, %v8700_v5  ;;  %v6232_v8 = vrot.slane %v6216_v50, 9  ;;  %v4065_v20 = vshll.u32 %v8685_v27, 16  ;;  %v4529_v37 = vrot.slane %v9858_v11, 5  ;;  %v7232_v6 = vld [vmem:[%s7343_s12 + $0xb0] sm:$0x1] }
 0x113   : > { %6762 = vmatprep.mubr.msk.bf16.mxu0 %vm818_vm3, %v6184_v48  ;;  %v4532_v41 = vrot.slane %v9859_v51, 5  ;;  %v2453_v62 = vshrl.u32 %v5951_v58, 16  ;;  %v8722_v43 = vrot.slane %v4038_v3, 4  ;;  %v8724_v35 = vrot.slane %v4056_v2, 4  ;;  %v8731_v48 = vld [vmem:[%s7343_s12 + $0xc4] sm:$0xf] }
 0x114   : > { %6609 = vmatmul.mubr.msk.bf16.gmra.mrb[28].mxu1 %vm818_vm3, %v5836_v25  ;;  %v2456_v60 = vshll.u32 %v5951_v58, 16  ;;  %v2475_v25 = vsel %vm7369_vm4, %v8555_v55, %v9860_v54  ;;  %v8735_v36 = vsel %vm7656_vm7, %v6232_v8, %v4529_v37  ;;  %v4531_v63 = vrot.slane %v4529_v37, 4  ;;  %v9862_v3 = vld [vmem:[#allocation22_spill] sm:$0xff]  ;;  %v6218_v51 = vld [vmem:[%s7343_s12 + $0x78] sm:$0xe] }
 0x115   : > { %6614 = vmatprep.mubr.msk.bf16.mxu1 %vm818_vm3, %v7178_v45  ;;  %v2455_v44 = vrot.slane %v2453_v62, 4  ;;  %v6233_v26 = vrot.slane %v6217_v18, 9  ;;  %v4069_v34 = vshrl.u32 %v8685_v27, 16  ;;  %v4080_v22 = vshrl.u32 %v6171_v13, 16  ;;  %v8741_v45 = vld [vmem:[%s7343_s12 + $0xbc] sm:$0x1] }
 0x116   : > { %v2458_v59 = vrot.slane %v2456_v60, 5  ;;  %v4536_v7 = vrot.slane %v9861_v15, 5  ;;  %v4061_v55 = vrot.slane %v4059_v17, 5  ;;  %v4083_v24 = vshll.u32 %v6171_v13, 16  ;;  %v7180_v58 = vld [vmem:[%s7343_s12 + $0x24] sm:$0xff]  }
 0x117   : > { %v8745_v50 = vsel %vm7656_vm7, %v4531_v63, %v4532_v41  ;;  %v4539_v2 = vrot.slane %v9862_v3, 5  ;;  %v4089_v8 = vshll.u32 %v8731_v48, 16  ;;  %v4093_v18 = vshrl.u32 %v8731_v48, 16  ;;  %v9863_v15 = vld [vmem:[#allocation19_spill] sm:$0xff] }
 0x118   : > { %v2459_v37 = vor.u32 %v2458_v59, %v2455_v44  ;;  %v4048_v17 = vor.u32 %v8707_v42, %v8676_v30  ;;  %v8756_v13 = vrot.slane %v4065_v20, 5  ;;  %v8760_v41 = vsel %vm7656_vm7, %v6233_v26, %v4536_v7  ;;  %v6174_v44 = vld [vmem:[%s7343_s12 + $0xcc] sm:$0xf] }
 0x119   : > { %v4538_v62 = vrot.slane %v4536_v7, 4  ;;  %v4071_v60 = vrot.slane %v4069_v34, 4  ;;  %v4075_v54 = vshll.u32 %v8741_v45, 16  ;;  %v4082_v63 = vrot.slane %v4080_v22, 4  ;;  %v9864_v34 = vld [vmem:[#allocation2_spill] sm:$0xff] }
 0x11a   : > { %6763 = vmatmul.mubr.msk.bf16.gmra.mrb[12].mxu0 %vm818_vm3, %v8613_v38  ;;  %v2460_v59 = vrot.slane %v2459_v37, 4  ;;  %v4085_v42 = vrot.slane %v4083_v24, 5  ;;  %v6234_v26 = vrot.slane %v6218_v51, 9  ;;  %v4543_v38 = vrot.slane %v9863_v15, 5  ;;  %v8777_v22 = vld [vmem:[%s7343_s12 + $0xc8] sm:$0x1] }
 0x11b   : > { %6766 = vmatprep.mubr.msk.bf16.mxu0 %vm818_vm3, %v8618_v40  ;;  %v8771_v20 = vsel %vm7656_vm7, %v4538_v62, %v4539_v2  ;;  %v8779_v7 = vrot.slane %v4089_v8, 5  ;;  %v4053_v3 = vrot.slane %v4051_v29, 5  ;;  %v4062_v2 = vor.u32 %v4061_v55, %v8724_v35  ;;  %v8792_v8 = vld [vmem:[%s7343_s12 + $0xd0] sm:$0xf]  ;;  %v9865_v62 = vld [vmem:[#allocation23_spill] sm:$0xff] }
 0x11c   : > { %6615 = vmatmul.mubr.msk.bf16.vlgmr.msra.gmra.mrb[0].mxu1 %vm818_vm3, %v7179_v47  ;;  %v4095_v47 = vrot.slane %v4093_v18, 4  ;;  %v2465_v40 = vsel %vm7369_vm4, %v2460_v59, %v7969_v57  ;;  %v4107_v18 = vshll.u32 %v6174_v44, 16  ;;  %v8796_v51 = vsel %vm7656_vm7, %v6234_v26, %v4543_v38  ;;  %v7181_v15 = vld [vmem:[%s7343_s12 + $0x30] sm:$0xff]  }
 0x11d   : > { %6618 = vmatprep.mubr.msk.bf16.mxu1 %vm818_vm3, %v7180_v58  ;;  %6851 = vmatpush3.bf16.msra.mxu1 %v9864_v34  ;;  %v4104_v58 = vshrl.u32 %v6174_v44, 16  ;;  %v8789_v37 = vcombine.low %v2465_v40, %v2475_v25  ;;  %v4545_v57 = vrot.slane %v4543_v38, 4  ;;  %v4546_v59 = vrot.slane %v9865_v62, 5  ;;  %v6219_v34 = vld [vmem:[%s7343_s12 + $0x84] sm:$0xe]  ;;  %v7182_v44 = vld [vmem:[%s7343_s12 + $0x3c] sm:$0xff]  }
 0x11e   : > { %v4044_v29 = vsel %vm7369_vm4, %v8722_v43, %v8676_v30  ;;  %v4049_v35 = vrot.slane %v4048_v17, 4  ;;  %v4072_v25 = vor.u32 %v4071_v60, %v8756_v13  ;;  %v4099_v55 = vshll.u32 %v8777_v22, 16  ;;  %6838 = vmatprep.subr.bf16.mxu1 %v7260_v32 }
 0x11f   : > { %v4077_v40 = vrot.slane %v4075_v54, 5  ;;  %v4086_v24 = vor.u32 %v4085_v42, %v4082_v63  ;;  %v4096_v26 = vor.u32 %v4095_v47, %v8779_v7  ;;  %v8811_v38 = vsel %vm7656_vm7, %v4545_v57, %v4546_v59  ;;  %v9866_v63 = vld [vmem:[#allocation20_spill] sm:$0xff] }
 0x120   : > { %v4063_v62 = vrot.slane %v4062_v2, 4  ;;  %v4113_v11 = vshll.u32 %v8792_v8, 16  ;;  %v4117_v30 = vshrl.u32 %v8792_v8, 16  ;;  %v6251_v43 = vcombine.low %v8796_v51, %v8811_v38  ;;  %v9867_v59 = vld [vmem:[#allocation24_spill] sm:$0xff] }
 0x121   : > { %v4106_v17 = vrot.slane %v4104_v58, 4  ;;  %v4109_v60 = vrot.slane %v4107_v18, 5  ;;  %v6235_v54 = vrot.slane %v6219_v34, 9  ;;  %v4550_v42 = vrot.slane %v9866_v63, 5  ;;  %v9868_v63 = vld [vmem:[#allocation21_spill] sm:$0xff] }
 0x122   : > { %6767 = vmatmul.mubr.msk.bf16.gmra.mrb[16].mxu0 %vm818_vm3, %v8620_v33  ;;  %v4054_v47 = vsel %vm7369_vm4, %v4049_v35, %v4053_v3  ;;  %v4073_v2 = vrot.slane %v4072_v25, 4  ;;  %v4101_v57 = vrot.slane %v4099_v55, 5  ;;  %v4553_v33 = vrot.slane %v9867_v59, 5  ;;  %v6210_v25 = vld [vmem:[%s7343_s12 + $0x18] sm:$0xe] }
 0x123   : > { %6770 = vmatprep.mubr.msk.bf16.mxu0 %vm818_vm3, %v8674_v0  ;;  %v4087_v58 = vrot.slane %v4086_v24, 4  ;;  %v4097_v18 = vrot.slane %v4096_v26, 4  ;;  %v4552_v34 = vrot.slane %v4550_v42, 4  ;;  %v8832_v0 = vld [vmem:[%s7343_s12 + $0xd4] sm:$0x1]  ;;  %v8834_v3 = vrot.slane %v4113_v11, 5 }
 0x124   : > { %6619 = vmatmul.mubr.msk.bf16.gmra.mrb[4].mxu1 %vm818_vm3, %v7181_v15  ;;  %v8829_v15 = vsel %vm7656_vm7, %v6235_v54, %v4550_v42  ;;  %v4119_v35 = vrot.slane %v4117_v30, 4  ;;  %v6189_v24 = vcombine.low %v4020_v14, %v4030_v56  ;;  %v6190_v55 = vcombine.low %v4044_v29, %v4054_v47  ;;  %v6220_v26 = vld [vmem:[%s7343_s12 + $0x90] sm:$0xe]  ;;  %v7183_v30 = vld [vmem:[%s7343_s12 + $0x48] sm:$0xff]   ;;  %v7184_v14 = vld [vmem:[%s7343_s12 + $0x54] sm:$0xff]  }
 0x125   : > { %6622 = vmatprep.mubr.msk.bf16.mxu1 %vm818_vm3, %v7182_v44  ;;  %v4110_v44 = vor.u32 %v4109_v60, %v4106_v17  ;;  %v8849_v11 = vsel %vm7656_vm7, %v4552_v34, %v4553_v33  ;;  %v4068_v54 = vsel %vm7369_vm4, %v4063_v62, %v8756_v13  ;;  %v4078_v19 = vsel %vm7369_vm4, %v4073_v2, %v4077_v40  ;;  %v8870_v17 = vld [vmem:[%s7343_s12 + $0x24] sm:$0xe]  ;;  %v6221_v33 = vld [vmem:[%s7343_s12 + $0x9c] sm:$0xe]  ;;  %v8881_v34 = vld [vmem:[%s7343_s12 + $0x30] sm:$0xe] }
 0x126   : > { %v4487_v21 = vrot.slane %v7225_v31, 5  ;;  %v4092_v56 = vsel %vm7369_vm4, %v4087_v58, %v8779_v7  ;;  %v4102_v29 = vsel %vm7369_vm4, %v4097_v18, %v4101_v57  ;;  %v4123_v13 = vshll.u32 %v8832_v0, 16  ;;  %v9869_v7 = vld [vmem:[#allocation4_spill] sm:$0xff]  ;;  %v9870_v58 = vld [vmem:[#allocation5_spill] sm:$0xff] }
 0x127   : > { %v6226_v62 = vrot.slane %v6210_v25, 9  ;;  %v4120_v40 = vor.u32 %v4119_v35, %v8834_v3  ;;  %v6236_v60 = vrot.slane %v6220_v26, 9  ;;  %v4557_v42 = vrot.slane %v9868_v63, 5  ;;  %v6222_v63 = vld [vmem:[%s7343_s12 + $0xa8] sm:$0xe] }
 0x128   : > { %v4560_v47 = vrot.slane %v8532_v39, 5  ;;  %v4111_v2 = vrot.slane %v4110_v44, 4  ;;  %v4490_v59 = vrot.slane %v9869_v7, 5  ;;  %v4489_v57 = vrot.slane %v4487_v21, 4 }
 0x129   : > { %v4494_v18 = vrot.slane %v9870_v58, 5  ;;  %v8885_v35 = vsel %vm7656_vm7, %v6236_v60, %v4557_v42  ;;  %v4559_v39 = vrot.slane %v4557_v42, 4  ;;  %v6191_v25 = vcombine.low %v4068_v54, %v4078_v19  ;;  %v9871_v42 = vld [vmem:[#allocation6_spill] sm:$0xff] }
 0x12a   : > { %6771 = vmatmul.mubr.msk.bf16.gmra.mrb[20].mxu0 %vm818_vm3, %v6189_v24  ;;  %v6192_v24 = vcombine.low %v4092_v56, %v4102_v29  ;;  %v4125_v44 = vrot.slane %v4123_v13, 5  ;;  %v6227_v26 = vrot.slane %v8870_v17, 9  ;;  %v6237_v60 = vrot.slane %v6221_v33, 9  ;;  %v6223_v56 = vld [vmem:[%s7343_s12 + $0xb4] sm:$0xe]  ;;  %v7185_v29 = vld [vmem:[%s7343_s12 + $0x60] sm:$0xff]  }
 0x12b   : > { %6774 = vmatprep.mubr.msk.bf16.mxu0 %vm818_vm3, %v6190_v55  ;;  %v4121_v55 = vrot.slane %v4120_v40, 4  ;;  %v8895_v31 = vsel %vm7656_vm7, %v4559_v39, %v4560_v47  ;;  %v4497_v7 = vrot.slane %v9871_v42, 5  ;;  %v6228_v54 = vrot.slane %v8881_v34, 9  ;;  %v7186_v47 = vld [vmem:[%s7343_s12 + $0x6c] sm:$0xff]   ;;  %v6224_v19 = vld [vmem:[%s7343_s12 + $0xc0] sm:$0xe] }
 0x12c   : > { %6623 = vmatmul.mubr.msk.bf16.gmra.mrb[8].mxu1 %vm818_vm3, %v7183_v30  ;;  %v8891_v30 = vsel %vm7656_vm7, %v6226_v62, %v4487_v21  ;;  %v4116_v21 = vsel %vm7369_vm4, %v4111_v2, %v8834_v3  ;;  %v4491_v13 = vsel %vm7656_vm7, %v4489_v57, %v4490_v59  ;;  %v4496_v62 = vrot.slane %v4494_v18, 4  ;;  %v9872_v33 = vld [vmem:[#allocation7_spill] sm:$0xff] }
 0x12d   : > { %6626 = vmatprep.mubr.msk.bf16.mxu1 %vm818_vm3, %v7184_v14  ;;  %v4564_v14 = vrot.slane %v8537_v9, 5  ;;  %v4567_v40 = vrot.slane %v8571_v12, 5  ;;  %v4501_v34 = vrot.slane %v9872_v33, 5  ;;  %v6238_v42 = vrot.slane %v6222_v63, 9  ;;  %v9873_v12 = vld [vmem:[#allocation9_spill] sm:$0xff] }
 0x12e   : > { %v4126_v3 = vsel %vm7369_vm4, %v4121_v55, %v4125_v44  ;;  %v4571_v2 = vrot.slane %v8616_v23, 5  ;;  %v4574_v59 = vrot.slane %v8658_v10, 5  ;;  %v6239_v57 = vrot.slane %v6223_v56, 9 }
 0x12f   : > { %v8917_v9 = vsel %vm7656_vm7, %v6237_v60, %v4564_v14  ;;  %v4566_v39 = vrot.slane %v4564_v14, 4  ;;  %v4504_v16 = vrot.slane %v9873_v12, 5  ;;  %v4578_v60 = vrot.slane %v8685_v27, 5  ;;  %v6225_v14 = vld [vmem:[%s7343_s12 + $0xcc] sm:$0xe] }
 0x130   : > { %v4581_v63 = vrot.slane %v8741_v45, 5  ;;  %v6243_v23 = vcombine.low %v8891_v30, %v4491_v13  ;;  %v4573_v44 = vrot.slane %v4571_v2, 4  ;;  %v6193_v27 = vcombine.low %v4116_v21, %v4126_v3 }
 0x131   : > { %v8928_v33 = vsel %vm7656_vm7, %v4566_v39, %v4567_v40  ;;  %v8945_v45 = vsel %vm7656_vm7, %v6239_v57, %v4578_v60  ;;  %v6240_v55 = vrot.slane %v6224_v19, 9  ;;  %v4585_v56 = vrot.slane %v8731_v48, 5  ;;  %v7187_v39 = vld [vmem:[%s7343_s12 + $0x78] sm:$0xff]  }
 0x132   : > { %6775 = vmatmul.mubr.msk.bf16.gmra.mrb[24].mxu0 %vm818_vm3, %v6191_v25  ;;  %v6254_v10 = vcombine.low %v8917_v9, %v8928_v33  ;;  %v8940_v25 = vsel %vm7656_vm7, %v6238_v42, %v4571_v2  ;;  %v8949_v30 = vsel %vm7656_vm7, %v4573_v44, %v4574_v59  ;;  %v6241_v13 = vrot.slane %v6225_v14, 9  ;;  %v7188_v2 = vld [vmem:[%s7343_s12 + $0x84] sm:$0xff]   ;;  %v4933_v9 = vld [vmem:[%s9776_s5 + $0x18] sm:$0xff] }
 0x133   : > { %6778 = vmatprep.mubr.msk.bf16.mxu0 %vm818_vm3, %v6192_v24  ;;  %v4580_v24 = vrot.slane %v4578_v60, 4  ;;  %v6255_v21 = vcombine.low %v8940_v25, %v8949_v30  ;;  %v4595_v19 = vrot.slane %v8832_v0, 5  ;;  %v4503_v42 = vrot.slane %v4501_v34, 4 }
 0x134   : > { %6627 = vmatmul.mubr.msk.bf16.gmra.mrb[12].mxu1 %vm818_vm3, %v7185_v29  ;;  %v4588_v29 = vrot.slane %v8777_v22, 5  ;;  %v8966_v48 = vsel %vm7656_vm7, %v6240_v55, %v4585_v56  ;;  %v4587_v22 = vrot.slane %v4585_v56, 4  ;;  %v4495_v12 = vsel %vm7656_vm7, %v6227_v26, %v4494_v18  ;;  %v7189_v55 = vld [vmem:[%s7343_s12 + $0x90] sm:$0xff]   ;;  %v5954_v56 = vld [vmem:[%s7343_s12 + $0x9c] sm:$0xf] }
 0x135   : > { %6630 = vmatprep.mubr.msk.bf16.mxu1 %vm818_vm3, %v7186_v47  ;;  %v8957_v40 = vsel %vm7656_vm7, %v4580_v24, %v4581_v63  ;;  %v4592_v47 = vrot.slane %v8792_v8, 5  ;;  %v5948_v8 = vld [vmem:[%s7343_s12 + $0x84] sm:$0xf]  ;;  %v4498_v60 = vsel %vm7656_vm7, %v4496_v62, %v4497_v7  ;;  %v4502_v17 = vsel %vm7656_vm7, %v6228_v54, %v4501_v34  ;;  %v7226_v62 = vld [vmem:[%s7343_s12 + $0x88] sm:$0xf] }
 0x136   : > { %v6256_v3 = vcombine.low %v8945_v45, %v8957_v40  ;;  %v8976_v0 = vsel %vm7656_vm7, %v4587_v22, %v4588_v29  ;;  %v4505_v58 = vsel %vm7656_vm7, %v4503_v42, %v4504_v16  ;;  %v2429_v26 = vshrl.u32 %v5948_v8, 16  ;;  %v7190_v29 = vld [vmem:[%s7343_s12 + $0x9c] sm:$0xff]  }
 0x137   : > { %v8971_v59 = vsel %vm7656_vm7, %v6241_v13, %v4592_v47  ;;  %v4594_v57 = vrot.slane %v4592_v47, 4  ;;  %v6257_v63 = vcombine.low %v8966_v48, %v8976_v0  ;;  %v2432_v7 = vshll.u32 %v5948_v8, 16 }
 0x138   : > { %v2438_v44 = vshll.u32 %v7226_v62, 16  ;;  %v6244_v24 = vcombine.low %v4495_v12, %v4498_v60  ;;  %v2431_v54 = vrot.slane %v2429_v26, 4  ;;  %v2477_v13 = vshrl.u32 %v5954_v56, 16  ;;  %v7191_v26 = vld [vmem:[%s7343_s12 + $0xa8] sm:$0xff]  }
 0x139   : > { %v8991_v14 = vsel %vm7656_vm7, %v4594_v57, %v4595_v19  ;;  %v2434_v52 = vrot.slane %v2432_v7, 5  ;;  %v2480_v47 = vshll.u32 %v5954_v56, 16  ;;  %v7227_v19 = vld [vmem:[%s7343_s12 + $0xa0] sm:$0xf]  ;;  %v7228_v57 = vld [vmem:[%s7343_s12 + $0x8c] sm:$0x1] }
 0x13a   : > { %6779 = vmatmul.mubr.msk.bf16.gmra.mrb[28].mxu0 %vm818_vm3, %v6193_v27  ;;  %v6258_v18 = vcombine.low %v8971_v59, %v8991_v14  ;;  %v2442_v27 = vshrl.u32 %v7226_v62, 16  ;;  %v2440_v16 = vrot.slane %v2438_v44, 5  ;;  %v2490_v42 = vshrl.u32 %v7227_v19, 16  ;;  %v7192_v7 = vld [vmem:[%s7343_s12 + $0xb4] sm:$0xff]   ;;  %v7229_v56 = vld [vmem:[%s7343_s12 + $0xa4] sm:$0x1] }
 0x13b   : > { %6784 = vmatprep.mubr.msk.bf16.mxu0 %vm818_vm3, %v6243_v23  ;;  %v6245_v23 = vcombine.low %v4502_v17, %v4505_v58  ;;  %v2435_v22 = vor.u32 %v2434_v52, %v2431_v54  ;;  %v2448_v8 = vshll.u32 %v7228_v57, 16  ;;  %v2479_v12 = vrot.slane %v2477_v13, 4  ;;  %v5960_v54 = vld [vmem:[%s7343_s12 + $0xb4] sm:$0xf]  ;;  %v7193_v57 = vld [vmem:[%s7343_s12 + $0xc0] sm:$0xff]  }
 0x13c   : > { %6631 = vmatmul.mubr.msk.bf16.gmra.mrb[16].mxu1 %vm818_vm3, %v7187_v39  ;;  %v2444_v34 = vrot.slane %v2442_v27, 4  ;;  %v2486_v39 = vshll.u32 %v7227_v19, 16  ;;  %v2482_v60 = vrot.slane %v2480_v47, 5  ;;  %v2492_v58 = vrot.slane %v2490_v42, 4  ;;  %v7231_v42 = vld [vmem:[%s7343_s12 + $0xb8] sm:$0xf] }
 0x13d   : > { %6634 = vmatprep.mubr.msk.bf16.mxu1 %vm818_vm3, %v7188_v2  ;;  %v2436_v62 = vrot.slane %v2435_v22, 4  ;;  %v2450_v27 = vrot.slane %v2448_v8, 5  ;;  %v2510_v53 = vshll.u32 %v7230_v46, 16  ;;  %v2525_v19 = vshrl.u32 %v5960_v54, 16 }
 0x13e   : > { %v2445_v2 = vor.u32 %v2444_v34, %v2440_v16  ;;  %v9012_v17 = vrot.slane %v2486_v39, 5  ;;  %v2528_v39 = vshll.u32 %v5960_v54, 16  ;;  %v2534_v28 = vshll.u32 %v7231_v42, 16 }
 0x13f   : > { %v2441_v13 = vsel %vm7369_vm4, %v2436_v62, %v2440_v16  ;;  %v2538_v61 = vshrl.u32 %v7231_v42, 16  ;;  %v2527_v16 = vrot.slane %v2525_v19, 4  ;;  %v2520_v5 = vshll.u32 %v7232_v6, 16 }
 0x140   : > { %v2446_v44 = vrot.slane %v2445_v2, 4  ;;  %v2536_v62 = vrot.slane %v2534_v28, 5 }
 0x141   : > { %v2522_v19 = vrot.slane %v2520_v5, 5 }
 0x142   : > { %6785 = vmatmul.mubr.msk.bf16.vlgmr.msra.gmra.mrb[0].mxu0 %vm818_vm3, %v6244_v24  ;;  %v5957_v24 = vld [vmem:[%s7343_s12 + $0xa8] sm:$0xf]  ;;  %v2451_v47 = vsel %vm7369_vm4, %v2446_v44, %v2450_v27  ;;  %v2540_v44 = vrot.slane %v2538_v61, 4  ;;  %v5963_v27 = vld [vmem:[%s7343_s12 + $0xc0] sm:$0xf] }
 0x143   : > { %6788 = vmatprep.mubr.msk.bf16.mxu0 %vm818_vm3, %v6245_v23  ;;  %v2493_v23 = vor.u32 %v2492_v58, %v9012_v17  ;;  %v2501_v52 = vshrl.u32 %v5957_v24, 16  ;;  %v2504_v34 = vshll.u32 %v5957_v24, 16  ;;  %v2552_v54 = vshll.u32 %v5963_v27, 16 }
 0x144   : > { %6635 = vmatmul.mubr.msk.bf16.gmra.mrb[20].mxu1 %vm818_vm3, %v7189_v55  ;;  %v2483_v55 = vor.u32 %v2482_v60, %v2479_v12  ;;  %v2512_v60 = vrot.slane %v2510_v53, 5  ;;  %v2541_v53 = vor.u32 %v2540_v44, %v2536_v62  ;;  %v9876_v44 = vcombine.low %v8829_v15, %v8849_v11  ;;  %v4930_v15 = vld [vmem:[%s9776_s5] sm:$0xff]  ;;  %v4931_v11 = vld [vmem:[%s9776_s5 + $0x8] sm:$0xff] }
 0x145   : > { %6638 = vmatprep.mubr.msk.bf16.mxu1 %vm818_vm3, %v7190_v29  ;;  %v2496_v29 = vshll.u32 %v7229_v56, 16  ;;  %v2494_v22 = vrot.slane %v2493_v23, 4  ;;  %v2503_v8 = vrot.slane %v2501_v52, 4  ;;  %v2506_v12 = vrot.slane %v2504_v34, 5 }
 0x146   : > { %v2554_v42 = vrot.slane %v2552_v54, 5 }
 0x147   : > { %v2498_v2 = vrot.slane %v2496_v29, 5  ;;  %v2507_v56 = vor.u32 %v2506_v12, %v2503_v8 }
 0x149   : > { %v2499_v23 = vsel %vm7369_vm4, %v2494_v22, %v2498_v2  ;;  %v2542_v22 = vrot.slane %v2541_v53, 4 }
 0x14a   : > { %6789 = vmatmul.mubr.msk.bf16.gmra.mrb[4].mxu0 %vm818_vm3, %v6246_v49  ;;  %v2514_v49 = vshrl.u32 %v7230_v46, 16 }
 0x14b   : > { %6792 = vmatprep.mubr.msk.bf16.mxu0 %vm818_vm3, %v6247_v1  ;;  %v2484_v1 = vrot.slane %v2483_v55, 4  ;;  %v9874_v55 = vcombine.low %v8735_v36, %v8745_v50 }
 0x14c   : > { %6639 = vmatmul.mubr.msk.bf16.gmra.mrb[24].mxu1 %vm818_vm3, %v7191_v26  ;;  %v2516_v58 = vrot.slane %v2514_v49, 4  ;;  %v5977_v26 = vcombine.low %v2441_v13, %v2451_v47  ;;  %v7234_v49 = vld [vmem:[%s7343_s12 + $0xbc] sm:$0x1]  ;;  %v2508_v13 = vrot.slane %v2507_v56, 4 }
 0x14d   : > { %6642 = vmatprep.mubr.msk.bf16.mxu1 %vm818_vm3, %v7192_v7  ;;  %v2530_v7 = vrot.slane %v2528_v39, 5  ;;  %v2489_v24 = vsel %vm7369_vm4, %v2484_v1, %v9012_v17  ;;  %v7233_v17 = vld [vmem:[%s7343_s12 + $0xc4] sm:$0xf]  ;;  %v2544_v36 = vshll.u32 %v7234_v49, 16 }
 0x14e   : > { %v2517_v29 = vor.u32 %v2516_v58, %v2512_v60  ;;  %v2558_v52 = vshll.u32 %v7233_v17, 16  ;;  %v2562_v34 = vshrl.u32 %v7233_v17, 16  ;;  %v5979_v50 = vcombine.low %v2489_v24, %v2499_v23 }
 0x14f   : > { %v2531_v46 = vor.u32 %v2530_v7, %v2527_v16  ;;  %v2546_v2 = vrot.slane %v2544_v36, 5  ;;  %v2513_v8 = vsel %vm7369_vm4, %v2508_v13, %v2512_v60 }
 0x150   : > { %v2518_v47 = vrot.slane %v2517_v29, 4  ;;  %v2560_v28 = vrot.slane %v2558_v52, 5  ;;  %v2564_v61 = vrot.slane %v2562_v34, 4 }
 0x151   : > { %v2532_v1 = vrot.slane %v2531_v46, 4  ;;  %v2547_v51 = vsel %vm7369_vm4, %v2542_v22, %v2546_v2  ;;  %v9153_v46 = vld [vmem:[%s9773_s2] ss:$0 sm:$0xff] }
 0x152   : > { %6793 = vmatmul.mubr.msk.bf16.gmra.mrb[8].mxu0 %vm818_vm3, %v6248_v4  ;;  %v2549_v4 = vshrl.u32 %v5963_v27, 16  ;;  %v2523_v12 = vsel %vm7369_vm4, %v2518_v47, %v2522_v19  ;;  %v9877_v27 = vcombine.low %v8885_v35, %v8895_v31  ;;  %v9118_v35 = vpack.c.bf16 %v4931_v11, %v4930_v15  ;;  %v4932_v31 = vld [vmem:[%s9776_s5 + $0x10] sm:$0xff] }
 0x153   : > { %6796 = vmatprep.mubr.msk.bf16.mxu0 %vm818_vm3, %v9874_v55  ;;  %v5980_v38 = vcombine.low %v2513_v8, %v2523_v12  ;;  %v9128_v33 = vpack.c.bf16 %v4933_v9, %v4932_v31 }
 0x154   : > { %6643 = vmatmul.mubr.msk.bf16.gmra.mrb[28].mxu1 %vm818_vm3, %v7193_v57  ;;  %v2551_v39 = vrot.slane %v2549_v4, 4  ;;  %v9875_v57 = vcombine.low %v8760_v41, %v8771_v20  ;;  %v2565_v41 = vor.u32 %v2564_v61, %v2560_v28  ;;  %v7235_v20 = vld [vmem:[%s7343_s12 + $0xc8] sm:$0x1] }
 0x155   : > { %6668 = vmatprep.mubr.msk.bf16.mxu1 %vm818_vm3, %v5977_v26  ;;  %v2568_v26 = vshll.u32 %v7235_v20, 16 }
 0x156   : > { %v2555_v58 = vor.u32 %v2554_v42, %v2551_v39  ;;  %v2566_v7 = vrot.slane %v2565_v41, 4 }
 0x157   : > { %v2570_v60 = vrot.slane %v2568_v26, 5 }
 0x158   : > { %v2556_v16 = vrot.slane %v2555_v58, 4 }
 0x159   : > { %v2571_v24 = vsel %vm7369_vm4, %v2566_v7, %v2570_v60 }
 0x15a   : > { %6797 = vmatmul.mubr.msk.bf16.gmra.mrb[12].mxu0 %vm818_vm3, %v9875_v57 }
 0x15b   : > { %6800 = vmatprep.mubr.msk.bf16.mxu0 %vm818_vm3, %v6251_v43 }
 0x15c   : > { %6669 = vmatmul.mubr.msk.bf16.vlgmr.msra.gmra.mrb[20].mxu1 %vm818_vm3, %v8789_v37  ;;  %v2537_v37 = vsel %vm7369_vm4, %v2532_v1, %v2536_v62  ;;  %v2561_v62 = vsel %vm7369_vm4, %v2556_v16, %v2560_v28 }
 0x15d   : > { %6672 = vmatprep.mubr.msk.bf16.mxu1 %vm818_vm3, %v5979_v50  ;;  %v5981_v43 = vcombine.low %v2537_v37, %v2547_v51  ;;  %v5982_v55 = vcombine.low %v2561_v62, %v2571_v24  ;;  %6840 = vmatpush3.bf16.msra.mxu1 %v9118_v35 }
 0x15e   : > { %6841 = vmatprep.subr.bf16.mxu1 %v7260_v32 }
 0x161   : > { %6843 = vmatpush3.bf16.msra.mxu1 %v9128_v33 }
 0x162   : > { %6801 = vmatmul.mubr.msk.bf16.gmra.mrb[16].mxu0 %vm818_vm3, %v9876_v44  ;;  %6844 = vmatprep.subr.bf16.mxu1 %v7260_v32 }
 0x163   : > { %6804 = vmatprep.mubr.msk.bf16.mxu0 %vm818_vm3, %v9877_v27 }
 0x164   : > { %6673 = vmatmul.mubr.msk.bf16.gmra.mrb[24].mxu1 %vm818_vm3, %v5980_v38 }
 0x165   : > { %6676 = vmatprep.mubr.msk.bf16.mxu1 %vm818_vm3, %v5981_v43 }
 0x16a   : > { %6805 = vmatmul.mubr.msk.bf16.gmra.mrb[20].mxu0 %vm818_vm3, %v6254_v10  ;;  %v7262_v10 = vmov 0.0  }
 0x16b   : > { %6808 = vmatprep.mubr.msk.bf16.mxu0 %vm818_vm3, %v6255_v21 }
 0x16c   : > { %6677 = vmatmul.mubr.msk.bf16.gmra.mrb[28].mxu1 %vm818_vm3, %v5982_v55 }
 0x16d   : > { %6824 = vmatprep.mubr.msk.f32.mxu1 %vm7261_vm8, %v7262_v10 }
 0x172   : > { %6809 = vmatmul.mubr.msk.bf16.gmra.mrb[24].mxu0 %vm818_vm3, %v6256_v3 }
 0x173   : > { %6812 = vmatprep.mubr.msk.bf16.mxu0 %vm818_vm3, %v6257_v63 }
 0x17a   : > { %6813 = vmatmul.mubr.msk.bf16.gmra.mrb[28].mxu0 %vm818_vm3, %v6258_v18 }
 0x1ef   : > { %v6616_v25 = vpop.f32.mrb[0].mxu1 }
 0x1f0   : > { %v1981_v45 = vpop.f32.mrb[1].mxu1 }
 0x1f1   : > { %v6617_v30 = vpop.f32.mrb[2].mxu1 }
 0x1f2   : > { %v1984_v21 = vpop.f32.mrb[3].mxu1 }
 0x1f7   : > { %v6620_v40 = vpop.f32.mrb[4].mxu1 }
 0x1f8   : > { %v1997_v3 = vpop.f32.mrb[5].mxu1 }
 0x1f9   : > { %v6621_v48 = vpop.f32.mrb[6].mxu1 }
 0x1fa   : > { %v2000_v59 = vpop.f32.mrb[7].mxu1 }
 0x1ff   : > { %v6624_v0 = vpop.f32.mrb[8].mxu1 }
 0x200   : > { %v2013_v63 = vpop.f32.mrb[9].mxu1 }
 0x201   : > { %v6625_v14 = vpop.f32.mrb[10].mxu1 }
 0x202   : > { %v2016_v18 = vpop.f32.mrb[11].mxu1 }
 0x207   : > { %v9134_v23 = vpop.f32.mrb[12].mxu1 }
 0x208   : > { %v9136_v56 = vpop.f32.mrb[13].mxu1 }
 0x209   : > { %v9138_v29 = vpop.f32.mrb[14].mxu1 }
 0x20a   : > { %v9140_v6 = vpop.f32.mrb[15].mxu1 }
 0x20f   : > { %v9142_v5 = vpop.f32.mrb[16].mxu1 }
 0x210   : > { %v9144_v4 = vpop.f32.mrb[17].mxu1 }
 0x211   : > { %v9146_v54 = vpop.f32.mrb[18].mxu1 }
 0x212   : > { %v9148_v17 = vpop.f32.mrb[19].mxu1 }
 0x215   : > { %v6786_v52 = vpop.f32.mrb[0].mxu0 }
 0x216   : > { %v6852_v34 = vadd.f32 %v6786_v52, %v6616_v25  ;;  %v4732_v53 = vpop.f32.mrb[1].mxu0 }
 0x217   : > { %v6853_v49 = vadd.f32 %v4732_v53, %v1981_v45  ;;  %v6787_v36 = vpop.f32.mrb[2].mxu0 }
 0x218   : > { %v6854_v50 = vadd.f32 %v6787_v36, %v6617_v30  ;;  %v4735_v13 = vpop.f32.mrb[3].mxu0  ;;  %v9159_v39 = vadd.f32 %v6852_v34, %v9153_v46 }
 0x219   : > { %v9156_v47 = vadd.f32 %v6853_v49, %v9153_v46  ;;  %v6855_v19 = vadd.f32 %v4735_v13, %v1984_v21 }
 0x21a   : > { %v9167_v61 = vadd.f32 %v6854_v50, %v9153_v46  ;;  %v4938_v12 = vsel %vm4934_vm9, %v9159_v39, 0.0 }
 0x21b   : > { %v9162_v42 = vadd.f32 %v6855_v19, %v9153_v46  ;;  %v4935_v28 = vsel %vm4934_vm9, %v9156_v47, 0.0 }
 0x21c   : > { %v4940_v51 = vsel %vm4934_vm9, %v9167_v61, 0.0 }
 0x21d   : > { %v4936_v1 = vsel %vm4934_vm9, %v9162_v42, 0.0  ;;  %v6790_v22 = vpop.f32.mrb[4].mxu0 }
 0x21e   : > { %v4937_v2 = vadd.f32 %v4936_v1, %v4935_v28  ;;  %v6856_v57 = vadd.f32 %v6790_v22, %v6620_v40  ;;  %v4748_v8 = vpop.f32.mrb[5].mxu0 }
 0x21f   : > { %v6857_v58 = vadd.f32 %v4748_v8, %v1997_v3  ;;  %v6791_v41 = vpop.f32.mrb[6].mxu0 }
 0x220   : > { %v4939_v20 = vadd.f32 %v4938_v12, %v4937_v2  ;;  %v6858_v26 = vadd.f32 %v6791_v41, %v6621_v48  ;;  %v4751_v37 = vpop.f32.mrb[7].mxu0  ;;  %v9179_v7 = vadd.f32 %v6856_v57, %v9153_v46 }
 0x221   : > { %v9176_v38 = vadd.f32 %v6857_v58, %v9153_v46  ;;  %v6859_v43 = vadd.f32 %v4751_v37, %v2000_v59 }
 0x222   : > { %v4941_v16 = vadd.f32 %v4940_v51, %v4939_v20  ;;  %v9187_v62 = vadd.f32 %v6858_v26, %v9153_v46  ;;  %v4946_v9 = vsel %vm4934_vm9, %v9179_v7, 0.0 }
 0x223   : > { %v4942_v60 = vsel %vm4934_vm9, %v9176_v38, 0.0  ;;  %v9184_v44 = vadd.f32 %v6859_v43, %v9153_v46 }
 0x224   : > { %v4943_v27 = vadd.f32 %v4942_v60, %v4941_v16  ;;  %v4948_v3 = vsel %vm4934_vm9, %v9187_v62, 0.0 }
 0x225   : > { %v4944_v24 = vsel %vm4934_vm9, %v9184_v44, 0.0  ;;  %v6794_v55 = vpop.f32.mrb[8].mxu0 }
 0x226   : > { %v4945_v15 = vadd.f32 %v4944_v24, %v4943_v27  ;;  %v6860_v11 = vadd.f32 %v6794_v55, %v6624_v0  ;;  %v4764_v31 = vpop.f32.mrb[9].mxu0 }
 0x227   : > { %v6861_v25 = vadd.f32 %v4764_v31, %v2013_v63  ;;  %v6795_v45 = vpop.f32.mrb[10].mxu0 }
 0x228   : > { %v4947_v30 = vadd.f32 %v4946_v9, %v4945_v15  ;;  %v6862_v21 = vadd.f32 %v6795_v45, %v6625_v14  ;;  %v4767_v40 = vpop.f32.mrb[11].mxu0  ;;  %v9199_v34 = vadd.f32 %v6860_v11, %v9153_v46 }
 0x229   : > { %v9196_v48 = vadd.f32 %v6861_v25, %v9153_v46  ;;  %v6863_v59 = vadd.f32 %v4767_v40, %v2016_v18 }
 0x22a   : > { %v4949_v52 = vadd.f32 %v4948_v3, %v4947_v30  ;;  %v9207_v14 = vadd.f32 %v6862_v21, %v9153_v46  ;;  %v4954_v28 = vsel %vm4934_vm9, %v9199_v34, 0.0 }
 0x22b   : > { %v4950_v0 = vsel %vm4934_vm9, %v9196_v48, 0.0  ;;  %v9204_v63 = vadd.f32 %v6863_v59, %v9153_v46 }
 0x22c   : > { %v4951_v53 = vadd.f32 %v4950_v0, %v4949_v52  ;;  %v4956_v41 = vsel %vm4934_vm9, %v9207_v14, 0.0 }
 0x22d   : > { %v4952_v49 = vsel %vm4934_vm9, %v9204_v63, 0.0  ;;  %v6798_v36 = vpop.f32.mrb[12].mxu0 }
 0x22e   : > { %v4953_v50 = vadd.f32 %v4952_v49, %v4951_v53  ;;  %v6864_v13 = vadd.f32 %v6798_v36, %v9134_v23  ;;  %v4780_v19 = vpop.f32.mrb[13].mxu0 }
 0x22f   : > { %v6670_v18 = vpop.f32.mrb[20].mxu1  ;;  %v6865_v22 = vadd.f32 %v4780_v19, %v9136_v56  ;;  %v6799_v2 = vpop.f32.mrb[14].mxu0 }
 0x230   : > { %v2787_v1 = vpop.f32.mrb[21].mxu1  ;;  %v4955_v57 = vadd.f32 %v4954_v28, %v4953_v50  ;;  %v6866_v12 = vadd.f32 %v6799_v2, %v9138_v29  ;;  %v4783_v58 = vpop.f32.mrb[15].mxu0  ;;  %v9223_v51 = vadd.f32 %v6864_v13, %v9153_v46 }
 0x231   : > { %v6671_v8 = vpop.f32.mrb[22].mxu1  ;;  %v9219_v20 = vadd.f32 %v6865_v22, %v9153_v46  ;;  %v6867_v26 = vadd.f32 %v4783_v58, %v9140_v6 }
 0x232   : > { %v2790_v23 = vpop.f32.mrb[23].mxu1  ;;  %v4957_v37 = vadd.f32 %v4956_v41, %v4955_v57  ;;  %v9231_v16 = vadd.f32 %v6866_v12, %v9153_v46  ;;  %v4962_v11 = vsel %vm4934_vm9, %v9223_v51, 0.0 }
 0x233   : > { %v4958_v56 = vsel %vm4934_vm9, %v9219_v20, 0.0  ;;  %v9228_v43 = vadd.f32 %v6867_v26, %v9153_v46 }
 0x234   : > { %v4959_v29 = vadd.f32 %v4958_v56, %v4957_v37  ;;  %v4964_v3 = vsel %vm4934_vm9, %v9231_v16, 0.0 }
 0x235   : > { %v4960_v60 = vsel %vm4934_vm9, %v9228_v43, 0.0  ;;  %v6802_v27 = vpop.f32.mrb[16].mxu0 }
 0x236   : > { %v4961_v24 = vadd.f32 %v4960_v60, %v4959_v29  ;;  %v6868_v55 = vadd.f32 %v6802_v27, %v9142_v5  ;;  %v4796_v15 = vpop.f32.mrb[17].mxu0 }
 0x237   : > { %v6674_v6 = vpop.f32.mrb[24].mxu1  ;;  %v6869_v9 = vadd.f32 %v4796_v15, %v9144_v4  ;;  %v6803_v25 = vpop.f32.mrb[18].mxu0 }
 0x238   : > { %v2803_v31 = vpop.f32.mrb[25].mxu1  ;;  %v4963_v45 = vadd.f32 %v4962_v11, %v4961_v24  ;;  %v6870_v21 = vadd.f32 %v6803_v25, %v9146_v54  ;;  %v4799_v40 = vpop.f32.mrb[19].mxu0  ;;  %v9247_v53 = vadd.f32 %v6868_v55, %v9153_v46 }
 0x239   : > { %v6675_v30 = vpop.f32.mrb[26].mxu1  ;;  %v9243_v59 = vadd.f32 %v6869_v9, %v9153_v46  ;;  %v6871_v52 = vadd.f32 %v4799_v40, %v9148_v17 }
 0x23a   : > { %v2806_v5 = vpop.f32.mrb[27].mxu1  ;;  %v4965_v0 = vadd.f32 %v4964_v3, %v4963_v45  ;;  %v9255_v36 = vadd.f32 %v6870_v21, %v9153_v46  ;;  %v4970_v2 = vsel %vm4934_vm9, %v9247_v53, 0.0 }
 0x23b   : > { %v4966_v4 = vsel %vm4934_vm9, %v9243_v59, 0.0  ;;  %v9252_v49 = vadd.f32 %v6871_v52, %v9153_v46 }
 0x23c   : > { %v4967_v54 = vadd.f32 %v4966_v4, %v4965_v0  ;;  %v4972_v29 = vsel %vm4934_vm9, %v9255_v36, 0.0 }
 0x23d   : > { %v4968_v50 = vsel %vm4934_vm9, %v9252_v49, 0.0  ;;  %v6806_v13 = vpop.f32.mrb[20].mxu0 }
 0x23e   : > { %v4969_v19 = vadd.f32 %v4968_v50, %v4967_v54  ;;  %v6872_v28 = vadd.f32 %v6806_v13, %v6670_v18  ;;  %v4812_v22 = vpop.f32.mrb[21].mxu0 }
 0x23f   : > { %v6678_v17 = vpop.f32.mrb[28].mxu1  ;;  %v6873_v12 = vadd.f32 %v4812_v22, %v2787_v1  ;;  %v6807_v58 = vpop.f32.mrb[22].mxu0 }
 0x240   : > { %v2819_v57 = vpop.f32.mrb[29].mxu1  ;;  %v4971_v41 = vadd.f32 %v4970_v2, %v4969_v19  ;;  %v6874_v37 = vadd.f32 %v6807_v58, %v6671_v8  ;;  %v4815_v56 = vpop.f32.mrb[23].mxu0  ;;  %v9267_v55 = vadd.f32 %v6872_v28, %v9153_v46 }
 0x241   : > { %v6679_v26 = vpop.f32.mrb[30].mxu1  ;;  %v9264_v60 = vadd.f32 %v6873_v12, %v9153_v46  ;;  %v6875_v24 = vadd.f32 %v4815_v56, %v2790_v23 }
 0x242   : > { %v2822_v27 = vpop.f32.mrb[31].mxu1  ;;  %v4973_v18 = vadd.f32 %v4972_v29, %v4971_v41  ;;  %v9275_v11 = vadd.f32 %v6874_v37, %v9153_v46  ;;  %v4978_v40 = vsel %vm4934_vm9, %v9267_v55, 0.0 }
 0x243   : > { %v4974_v1 = vsel %vm4934_vm9, %v9264_v60, 0.0  ;;  %v9272_v15 = vadd.f32 %v6875_v24, %v9153_v46 }
 0x244   : > { %v4975_v8 = vadd.f32 %v4974_v1, %v4973_v18  ;;  %v4980_v50 = vsel %vm4934_vm9, %v9275_v11, 0.0 }
 0x245   : > { %v4976_v9 = vsel %vm4934_vm9, %v9272_v15, 0.0  ;;  %v6810_v25 = vpop.f32.mrb[24].mxu0 }
 0x246   : > { %v4977_v45 = vadd.f32 %v4976_v9, %v4975_v8  ;;  %v6876_v23 = vadd.f32 %v6810_v25, %v6674_v6  ;;  %v4828_v21 = vpop.f32.mrb[25].mxu0 }
 0x247   : > { %v6877_v3 = vadd.f32 %v4828_v21, %v2803_v31  ;;  %v6811_v52 = vpop.f32.mrb[26].mxu0 }
 0x248   : > { %v4979_v0 = vadd.f32 %v4978_v40, %v4977_v45  ;;  %v6878_v4 = vadd.f32 %v6811_v52, %v6675_v30  ;;  %v4831_v54 = vpop.f32.mrb[27].mxu0  ;;  %v9287_v22 = vadd.f32 %v6876_v23, %v9153_v46 }
 0x249   : > { %v9284_v13 = vadd.f32 %v6877_v3, %v9153_v46  ;;  %v6879_v19 = vadd.f32 %v4831_v54, %v2806_v5 }
 0x24a   : > { %v4981_v28 = vadd.f32 %v4980_v50, %v4979_v0  ;;  %v9295_v30 = vadd.f32 %v6878_v4, %v9153_v46  ;;  %v4986_v56 = vsel %vm4934_vm9, %v9287_v22, 0.0 }
 0x24b   : > { %v4982_v6 = vsel %vm4934_vm9, %v9284_v13, 0.0  ;;  %v9292_v31 = vadd.f32 %v6879_v19, %v9153_v46 }
 0x24c   : > { %v4983_v2 = vadd.f32 %v4982_v6, %v4981_v28  ;;  %v4988_v9 = vsel %vm4934_vm9, %v9295_v30, 0.0 }
 0x24d   : > { %v4984_v12 = vsel %vm4934_vm9, %v9292_v31, 0.0  ;;  %v6814_v58 = vpop.f32.mrb[28].mxu0 }
 0x24e   : > { %v4985_v41 = vadd.f32 %v4984_v12, %v4983_v2  ;;  %v6880_v5 = vadd.f32 %v6814_v58, %v6678_v17  ;;  %v4844_v37 = vpop.f32.mrb[29].mxu0 }
 0x24f   : > { %v6881_v29 = vadd.f32 %v4844_v37, %v2819_v57  ;;  %v6815_v24 = vpop.f32.mrb[30].mxu0 }
 0x250   : > { %v4987_v18 = vadd.f32 %v4986_v56, %v4985_v41  ;;  %v6882_v1 = vadd.f32 %v6815_v24, %v6679_v26  ;;  %v4847_v8 = vpop.f32.mrb[31].mxu0  ;;  %v9307_v21 = vadd.f32 %v6880_v5, %v9153_v46 }
 0x251   : > { %v9304_v25 = vadd.f32 %v6881_v29, %v9153_v46  ;;  %v6883_v45 = vadd.f32 %v4847_v8, %v2822_v27 }
 0x252   : > { %v4989_v23 = vadd.f32 %v4988_v9, %v4987_v18  ;;  %v9315_v26 = vadd.f32 %v6882_v1, %v9153_v46  ;;  %v4994_v27 = vsel %vm4934_vm9, %v9307_v21, 0.0 }
 0x253   : > { %v4990_v17 = vsel %vm4934_vm9, %v9304_v25, 0.0  ;;  %v9312_v57 = vadd.f32 %v6883_v45, %v9153_v46  ;;  %v5078_v46 = vlaneseq }
 0x254   : > { %v4991_v40 = vadd.f32 %v4990_v17, %v4989_v23  ;;  %v4996_v4 = vsel %vm4934_vm9, %v9315_v26, 0.0 }
 0x255   : > { %v4992_v3 = vsel %vm4934_vm9, %v9312_v57, 0.0  ;;  %v9329_v41 = vshrl.u32 %v5078_v46, 7 }
 0x256   : > { %v4993_v52 = vadd.f32 %v4992_v3, %v4991_v40 }
 0x257   : > { %v5080_v56 = vsub.s32 0, %v9329_v41 }
 0x258   : > { %v4995_v0 = vadd.f32 %v4994_v27, %v4993_v52 }
 0x25a   : > { %v4997_v54 = vadd.f32 %v4996_v4, %v4995_v0 }
 0x25c   : > { %v4998_v50 = vrot.slane %v4997_v54, 4 }
 0x25e   : > { %v4999_v19 = vadd.f32 %v4998_v50, %v4997_v54 }
 0x260   : > { %v5000_v28 = vrot.slane %v4999_v19, 2 }
 0x262   : > { %v5001_v6 = vadd.f32 %v5000_v28, %v4999_v19 }
 0x264   : > { %v5002_v2 = vrot.slane %v5001_v6, 1 }
 0x266   : > { %v5003_v12 = vadd.f32 %v5002_v2, %v5001_v6 }
 0x268   : > { %6825 = vmatmul.mubr.msk.f32.vlgmr.msra.gmra.mrb[32].mxu1 %vm4934_vm9, %v5003_v12 }
 0x269   : > { %6846 = vmatpush3.bf16.msra.mxu1 %v9118_v35  ;;  %6835 = vmatprep.mubr.msk.f32.mxu1 %vm7261_vm8, %v7262_v10 }
 0x26a   : > { %6847 = vmatprep.subr.bf16.mxu1 %v7260_v32 }
 0x26d   : > { %6849 = vmatpush3.bf16.msra.mxu1 %v9128_v33 }
 0x33b   : > { %v5073_v58 = vpop.f32.mrb[32].mxu1 }
 0x33c   : > { %v6826_v5 = vpop.f32.mrb[33].mxu1  ;;  %v5077_v37 = vmul.f32 0.0009765625, %v5073_v58 }
 0x33e   : > { %v9334_v29 = vrot.slane %v5077_v37, %v5080_v56 }
 0x340   : > { %v9338_v35 = vsub.f32 %v9156_v47, %v9334_v29  ;;  %v9342_v32 = vsub.f32 %v9162_v42, %v9334_v29  ;;  %v9346_v33 = vsub.f32 %v9159_v39, %v9334_v29  ;;  %v9350_v10 = vsub.f32 %v9167_v61, %v9334_v29 }
 0x341   : > { %v9358_v47 = vsub.f32 %v9176_v38, %v9334_v29  ;;  %v9364_v39 = vsub.f32 %v9184_v44, %v9334_v29  ;;  %v9372_v45 = vsub.f32 %v9179_v7, %v9334_v29  ;;  %v9379_v44 = vsub.f32 %v9187_v62, %v9334_v29 }
 0x342   : > { %v5114_v24 = vmul.f32 %v9338_v35, %v9338_v35  ;;  %v5115_v18 = vmul.f32 %v9342_v32, %v9342_v32  ;;  %v5116_v42 = vmul.f32 %v9346_v33, %v9346_v33  ;;  %v5117_v61 = vmul.f32 %v9350_v10, %v9350_v10 }
 0x343   : > { %v5118_v38 = vmul.f32 %v9358_v47, %v9358_v47  ;;  %v5119_v40 = vmul.f32 %v9364_v39, %v9364_v39  ;;  %v9386_v7 = vsub.f32 %v9196_v48, %v9334_v29  ;;  %v5120_v27 = vmul.f32 %v9372_v45, %v9372_v45 }
 0x344   : > { %v5146_v1 = vsel %vm4934_vm9, %v5114_v24, 0.0  ;;  %v5147_v8 = vsel %vm4934_vm9, %v5115_v18, 0.0  ;;  %v5149_v23 = vsel %vm4934_vm9, %v5116_v42, 0.0  ;;  %v5151_v3 = vsel %vm4934_vm9, %v5117_v61, 0.0 }
 0x345   : > { %v5148_v9 = vadd.f32 %v5147_v8, %v5146_v1  ;;  %v5153_v0 = vsel %vm4934_vm9, %v5118_v38, 0.0  ;;  %v9393_v62 = vsub.f32 %v9204_v63, %v9334_v29  ;;  %v5121_v54 = vmul.f32 %v9379_v44, %v9379_v44 }
 0x346   : > { %v5155_v50 = vsel %vm4934_vm9, %v5119_v40, 0.0  ;;  %v9400_v48 = vsub.f32 %v9199_v34, %v9334_v29  ;;  %v5122_v28 = vmul.f32 %v9386_v7, %v9386_v7  ;;  %v5157_v6 = vsel %vm4934_vm9, %v5120_v27, 0.0 }
 0x347   : > { %v5150_v17 = vadd.f32 %v5149_v23, %v5148_v9  ;;  %v9407_v63 = vsub.f32 %v9207_v14, %v9334_v29  ;;  %v5123_v12 = vmul.f32 %v9393_v62, %v9393_v62  ;;  %v5159_v46 = vsel %vm4934_vm9, %v5121_v54, 0.0 }
 0x348   : > { %v9414_v34 = vsub.f32 %v9219_v20, %v9334_v29  ;;  %v5124_v5 = vmul.f32 %v9400_v48, %v9400_v48  ;;  %v5161_v37 = vsel %vm4934_vm9, %v5122_v28, 0.0  ;;  %v9421_v14 = vsub.f32 %v9228_v43, %v9334_v29 }
 0x349   : > { %v5152_v52 = vadd.f32 %v5151_v3, %v5150_v17  ;;  %v5125_v18 = vmul.f32 %v9407_v63, %v9407_v63  ;;  %v5163_v42 = vsel %vm4934_vm9, %v5123_v12, 0.0  ;;  %v9428_v20 = vsub.f32 %v9223_v51, %v9334_v29 }
 0x34a   : > { %v5126_v1 = vmul.f32 %v9414_v34, %v9414_v34  ;;  %v5165_v8 = vsel %vm4934_vm9, %v5124_v5, 0.0  ;;  %v9435_v43 = vsub.f32 %v9231_v16, %v9334_v29  ;;  %v5127_v38 = vmul.f32 %v9421_v14, %v9421_v14 }
 0x34b   : > { %v5154_v4 = vadd.f32 %v5153_v0, %v5152_v52  ;;  %v5167_v23 = vsel %vm4934_vm9, %v5125_v18, 0.0  ;;  %v9442_v51 = vsub.f32 %v9243_v59, %v9334_v29  ;;  %v5128_v40 = vmul.f32 %v9428_v20, %v9428_v20 }
 0x34c   : > { %v5169_v3 = vsel %vm4934_vm9, %v5126_v1, 0.0  ;;  %v9449_v16 = vsub.f32 %v9252_v49, %v9334_v29  ;;  %v5129_v27 = vmul.f32 %v9435_v43, %v9435_v43  ;;  %v5171_v0 = vsel %vm4934_vm9, %v5127_v38, 0.0 }
 0x34d   : > { %v5156_v19 = vadd.f32 %v5155_v50, %v5154_v4  ;;  %v9456_v59 = vsub.f32 %v9247_v53, %v9334_v29  ;;  %v5130_v54 = vmul.f32 %v9442_v51, %v9442_v51  ;;  %v5173_v50 = vsel %vm4934_vm9, %v5128_v40, 0.0 }
 0x34e   : > { %v9463_v49 = vsub.f32 %v9255_v36, %v9334_v29  ;;  %v5131_v28 = vmul.f32 %v9449_v16, %v9449_v16  ;;  %v9470_v53 = vsub.f32 %v9264_v60, %v9334_v29  ;;  %v9477_v36 = vsub.f32 %v9272_v15, %v9334_v29 }
 0x34f   : > { %v5158_v2 = vadd.f32 %v5157_v6, %v5156_v19  ;;  %v5175_v6 = vsel %vm4934_vm9, %v5129_v27, 0.0  ;;  %v5132_v12 = vmul.f32 %v9456_v59, %v9456_v59  ;;  %v9484_v60 = vsub.f32 %v9267_v55, %v9334_v29 }
 0x350   : > { %v5133_v5 = vmul.f32 %v9463_v49, %v9463_v49  ;;  %v5134_v18 = vmul.f32 %v9470_v53, %v9470_v53  ;;  %v9491_v15 = vsub.f32 %v9275_v11, %v9334_v29  ;;  %v5135_v1 = vmul.f32 %v9477_v36, %v9477_v36 }
 0x351   : > { %v5160_v58 = vadd.f32 %v5159_v46, %v5158_v2  ;;  %v5177_v46 = vsel %vm4934_vm9, %v5130_v54, 0.0  ;;  %v9498_v55 = vsub.f32 %v9284_v13, %v9334_v29  ;;  %v5136_v38 = vmul.f32 %v9484_v60, %v9484_v60 }
 0x352   : > { %v9505_v11 = vsub.f32 %v9292_v31, %v9334_v29  ;;  %v5137_v40 = vmul.f32 %v9491_v15, %v9491_v15  ;;  %v9512_v13 = vsub.f32 %v9287_v22, %v9334_v29  ;;  %v9519_v31 = vsub.f32 %v9295_v30, %v9334_v29 }
 0x353   : > { %v5162_v24 = vadd.f32 %v5161_v37, %v5160_v58  ;;  %v5179_v37 = vsel %vm4934_vm9, %v5131_v28, 0.0  ;;  %v5138_v27 = vmul.f32 %v9498_v55, %v9498_v55  ;;  %v9526_v22 = vsub.f32 %v9304_v25, %v9334_v29 }
 0x354   : > { %v5139_v54 = vmul.f32 %v9505_v11, %v9505_v11  ;;  %v5140_v28 = vmul.f32 %v9512_v13, %v9512_v13  ;;  %v9533_v30 = vsub.f32 %v9312_v57, %v9334_v29  ;;  %v9540_v25 = vsub.f32 %v9307_v21, %v9334_v29 }
 0x355   : > { %v5164_v61 = vadd.f32 %v5163_v42, %v5162_v24  ;;  %v5181_v42 = vsel %vm4934_vm9, %v5132_v12, 0.0  ;;  %v5141_v12 = vmul.f32 %v9519_v31, %v9519_v31  ;;  %v5113_v57 = vsub.f32 %v9315_v26, %v9334_v29 }
 0x357   : > { %v5166_v9 = vadd.f32 %v5165_v8, %v5164_v61  ;;  %v5183_v8 = vsel %vm4934_vm9, %v5133_v5, 0.0  ;;  %v5142_v5 = vmul.f32 %v9526_v22, %v9526_v22 }
 0x359   : > { %v5168_v17 = vadd.f32 %v5167_v23, %v5166_v9  ;;  %v5185_v23 = vsel %vm4934_vm9, %v5134_v18, 0.0  ;;  %v5143_v18 = vmul.f32 %v9533_v30, %v9533_v30  ;;  %v5201_v21 = vsel %vm4934_vm9, %v5142_v5, 0.0 }
 0x35b   : > { %v5170_v52 = vadd.f32 %v5169_v3, %v5168_v17  ;;  %v5187_v3 = vsel %vm4934_vm9, %v5135_v1, 0.0  ;;  %v5144_v1 = vmul.f32 %v9540_v25, %v9540_v25 }
 0x35d   : > { %v5172_v4 = vadd.f32 %v5171_v0, %v5170_v52  ;;  %v5189_v0 = vsel %vm4934_vm9, %v5136_v38, 0.0  ;;  %v5203_v38 = vsel %vm4934_vm9, %v5143_v18, 0.0 }
 0x35f   : > { %v5174_v19 = vadd.f32 %v5173_v50, %v5172_v4  ;;  %v5191_v50 = vsel %vm4934_vm9, %v5137_v40, 0.0 }
 0x361   : > { %v5176_v2 = vadd.f32 %v5175_v6, %v5174_v19  ;;  %v5193_v6 = vsel %vm4934_vm9, %v5138_v27, 0.0 }
 0x363   : > { %v5178_v58 = vadd.f32 %v5177_v46, %v5176_v2  ;;  %v5195_v46 = vsel %vm4934_vm9, %v5139_v54, 0.0 }
 0x365   : > { %v5180_v24 = vadd.f32 %v5179_v37, %v5178_v58  ;;  %v5197_v37 = vsel %vm4934_vm9, %v5140_v28, 0.0 }
 0x367   : > { %v5182_v61 = vadd.f32 %v5181_v42, %v5180_v24  ;;  %v5199_v42 = vsel %vm4934_vm9, %v5141_v12, 0.0 }
 0x369   : > { %v5184_v9 = vadd.f32 %v5183_v8, %v5182_v61 }
 0x36b   : > { %v5186_v17 = vadd.f32 %v5185_v23, %v5184_v9  ;;  %v5145_v9 = vmul.f32 %v5113_v57, %v5113_v57 }
 0x36d   : > { %v5188_v52 = vadd.f32 %v5187_v3, %v5186_v17  ;;  %v5205_v17 = vsel %vm4934_vm9, %v5144_v1, 0.0  ;;  %v5207_v26 = vsel %vm4934_vm9, %v5145_v9, 0.0 }
 0x36f   : > { %v5190_v4 = vadd.f32 %v5189_v0, %v5188_v52 }
 0x371   : > { %v5192_v19 = vadd.f32 %v5191_v50, %v5190_v4 }
 0x373   : > { %v5194_v2 = vadd.f32 %v5193_v6, %v5192_v19 }
 0x375   : > { %v5196_v58 = vadd.f32 %v5195_v46, %v5194_v2 }
 0x377   : > { %v5198_v24 = vadd.f32 %v5197_v37, %v5196_v58 }
 0x379   : > { %v5200_v61 = vadd.f32 %v5199_v42, %v5198_v24 }
 0x37b   : > { %v5202_v8 = vadd.f32 %v5201_v21, %v5200_v61 }
 0x37d   : > { %v5204_v23 = vadd.f32 %v5203_v38, %v5202_v8 }
 0x37f   : > { %v5206_v40 = vadd.f32 %v5205_v17, %v5204_v23 }
 0x381   : > { %v5208_v29 = vadd.f32 %v5207_v26, %v5206_v40 }
 0x383   : > { %v5209_v3 = vrot.slane %v5208_v29, 4 }
 0x385   : > { %v5210_v52 = vadd.f32 %v5209_v3, %v5208_v29 }
 0x387   : > { %v5211_v27 = vrot.slane %v5210_v52, 2 }
 0x389   : > { %v5212_v0 = vadd.f32 %v5211_v27, %v5210_v52 }
 0x38b   : > { %v5213_v4 = vrot.slane %v5212_v0, 1 }
 0x38d   : > { %v5214_v54 = vadd.f32 %v5213_v4, %v5212_v0 }
 0x38f   : > { %6836 = vmatmul.mubr.msk.f32.vlgmr.msra.gmra.mrb[34].mxu1 %vm4934_vm9, %v5214_v54  ;;  %v6279_v54 = vld [vmem:[%s9775_s4] ss:$0 sm:$0xff] }
 0x462   : > { %v5284_v50 = vpop.f32.mrb[34].mxu1 }
 0x463   : > { %v5288_v19 = vmul.f32 0.0009765625, %v5284_v50  ;;  %v6837_v28 = vpop.f32.mrb[35].mxu1 }
 0x465   : > { %v5289_v6 = vadd.f32 1e-05, %v5288_v19 }
 0x467   : > { %7194 = vrsqrt.f32 %v5289_v6 }
 0x471   : > { %v7195_v2 = vpop.eup %7194 }
 0x472   : > { %v5294_v12 = vrot.slane %v7195_v2, %v5080_v56 }
 0x474   : > { %v5295_v46 = vmul.f32 %v5294_v12, %v9338_v35  ;;  %v5296_v58 = vmul.f32 %v5294_v12, %v9342_v32  ;;  %v5297_v5 = vmul.f32 %v5294_v12, %v9346_v33  ;;  %v5298_v37 = vmul.f32 %v5294_v12, %v9350_v10 }
 0x475   : > { %v5299_v24 = vmul.f32 %v5294_v12, %v9358_v47  ;;  %v5300_v18 = vmul.f32 %v5294_v12, %v9364_v39  ;;  %v5301_v42 = vmul.f32 %v5294_v12, %v9372_v45  ;;  %v5302_v61 = vmul.f32 %v5294_v12, %v9379_v44 }
 0x476   : > { %v5303_v1 = vmul.f32 %v5294_v12, %v9386_v7  ;;  %v5304_v41 = vmul.f32 %v5294_v12, %v9393_v62  ;;  %v5305_v56 = vmul.f32 %v5294_v12, %v9400_v48  ;;  %v5306_v35 = vmul.f32 %v5294_v12, %v9407_v63 }
 0x477   : > { %v5307_v32 = vmul.f32 %v5294_v12, %v9414_v34  ;;  %v5308_v33 = vmul.f32 %v5294_v12, %v9421_v14  ;;  %v5309_v10 = vmul.f32 %v5294_v12, %v9428_v20  ;;  %v5310_v47 = vmul.f32 %v5294_v12, %v9435_v43  ;;  %v6278_v14 = vld [vmem:[%s9774_s3] ss:$0 sm:$0xff] }
 0x478   : > { %v5311_v39 = vmul.f32 %v5294_v12, %v9442_v51  ;;  %v5312_v45 = vmul.f32 %v5294_v12, %v9449_v16  ;;  %v5313_v44 = vmul.f32 %v5294_v12, %v9456_v59  ;;  %v5314_v7 = vmul.f32 %v5294_v12, %v9463_v49 }
 0x479   : > { %v5315_v62 = vmul.f32 %v5294_v12, %v9470_v53  ;;  %v5316_v48 = vmul.f32 %v5294_v12, %v9477_v36  ;;  %v5317_v63 = vmul.f32 %v5294_v12, %v9484_v60  ;;  %v5318_v34 = vmul.f32 %v5294_v12, %v9491_v15 }
 0x47a   : > { %v5319_v20 = vmul.f32 %v5294_v12, %v9498_v55  ;;  %v5320_v43 = vmul.f32 %v5294_v12, %v9505_v11  ;;  %v5321_v51 = vmul.f32 %v5294_v12, %v9512_v13  ;;  %v5322_v16 = vmul.f32 %v5294_v12, %v9519_v31 }
 0x47b   : > { %v5323_v59 = vmul.f32 %v5294_v12, %v9526_v22  ;;  %v5324_v49 = vmul.f32 %v5294_v12, %v9533_v30  ;;  %v5325_v53 = vmul.f32 %v5294_v12, %v9540_v25  ;;  %v5326_v36 = vmul.f32 %v5294_v12, %v5113_v57 }
 0x47c   : > { %v5334_v60 = vmul.f32 %v6278_v14, %v5295_v46  ;;  %v5335_v15 = vmul.f32 %v6278_v14, %v5296_v58  ;;  %v5336_v21 = vmul.f32 %v6278_v14, %v5297_v5  ;;  %v5337_v8 = vmul.f32 %v6278_v14, %v5298_v37 }
 0x47d   : > { %v5338_v9 = vmul.f32 %v6278_v14, %v5299_v24  ;;  %v5339_v38 = vmul.f32 %v6278_v14, %v5300_v18  ;;  %v5340_v55 = vmul.f32 %v6278_v14, %v5301_v42  ;;  %v5341_v23 = vmul.f32 %v6278_v14, %v5302_v61 }
 0x47e   : > { %v5342_v11 = vmul.f32 %v6278_v14, %v5303_v1  ;;  %v5343_v17 = vmul.f32 %v6278_v14, %v5304_v41  ;;  %v5344_v13 = vmul.f32 %v6278_v14, %v5305_v56  ;;  %v5345_v40 = vmul.f32 %v6278_v14, %v5306_v35 }
 0x47f   : > { %v5346_v31 = vmul.f32 %v6278_v14, %v5307_v32  ;;  %v5347_v26 = vmul.f32 %v6278_v14, %v5308_v33  ;;  %v5348_v22 = vmul.f32 %v6278_v14, %v5309_v10  ;;  %v5349_v29 = vmul.f32 %v6278_v14, %v5310_v47 }
 0x480   : > { %v5350_v30 = vmul.f32 %v6278_v14, %v5311_v39  ;;  %v5351_v3 = vmul.f32 %v6278_v14, %v5312_v45  ;;  %v5352_v25 = vmul.f32 %v6278_v14, %v5313_v44  ;;  %v5353_v57 = vmul.f32 %v6278_v14, %v5314_v7 }
 0x481   : > { %v5354_v52 = vmul.f32 %v6278_v14, %v5315_v62  ;;  %v5355_v27 = vmul.f32 %v6278_v14, %v5316_v48  ;;  %v5356_v0 = vmul.f32 %v6278_v14, %v5317_v63  ;;  %v5357_v4 = vmul.f32 %v6278_v14, %v5318_v34 }
 0x482   : > { %v5358_v50 = vmul.f32 %v6278_v14, %v5319_v20  ;;  %v5359_v19 = vmul.f32 %v6278_v14, %v5320_v43  ;;  %v5360_v28 = vmul.f32 %v6278_v14, %v5321_v51  ;;  %v5361_v6 = vmul.f32 %v6278_v14, %v5322_v16 }
 0x483   : > { %v5362_v2 = vmul.f32 %v6278_v14, %v5323_v59  ;;  %v5363_v12 = vmul.f32 %v6278_v14, %v5324_v49  ;;  %v5364_v46 = vmul.f32 %v6278_v14, %v5325_v53  ;;  %v5365_v58 = vmul.f32 %v6278_v14, %v5326_v36 }
 0x484   : > { %v9596_v5 = vadd.f32 %v6279_v54, %v5334_v60  ;;  %v9598_v37 = vadd.f32 %v6279_v54, %v5335_v15  ;;  %v9600_v24 = vadd.f32 %v6279_v54, %v5336_v21  ;;  %v9602_v18 = vadd.f32 %v6279_v54, %v5337_v8 }
 0x485   : > { %v9604_v42 = vadd.f32 %v6279_v54, %v5338_v9  ;;  %v9606_v61 = vadd.f32 %v6279_v54, %v5339_v38  ;;  %v9608_v1 = vadd.f32 %v6279_v54, %v5340_v55  ;;  %v9610_v41 = vadd.f32 %v6279_v54, %v5341_v23 }
 0x486   : > { %v9612_v56 = vadd.f32 %v6279_v54, %v5342_v11  ;;  %v9614_v35 = vadd.f32 %v6279_v54, %v5343_v17  ;;  %v9616_v32 = vadd.f32 %v6279_v54, %v5344_v13  ;;  %v9618_v33 = vadd.f32 %v6279_v54, %v5345_v40 }
 0x487   : > { %v9620_v10 = vadd.f32 %v6279_v54, %v5346_v31  ;;  %v9622_v47 = vadd.f32 %v6279_v54, %v5347_v26  ;;  %v9624_v39 = vadd.f32 %v6279_v54, %v5348_v22  ;;  %v9626_v45 = vadd.f32 %v6279_v54, %v5349_v29 }
 0x488   : > { %v9628_v44 = vadd.f32 %v6279_v54, %v5350_v30  ;;  %v9630_v7 = vadd.f32 %v6279_v54, %v5351_v3  ;;  %v9632_v62 = vadd.f32 %v6279_v54, %v5352_v25  ;;  %v9634_v48 = vadd.f32 %v6279_v54, %v5353_v57 }
 0x489   : > { %v9636_v63 = vadd.f32 %v6279_v54, %v5354_v52  ;;  %v9638_v34 = vadd.f32 %v6279_v54, %v5355_v27  ;;  %v9640_v14 = vadd.f32 %v6279_v54, %v5356_v0  ;;  %v9642_v20 = vadd.f32 %v6279_v54, %v5357_v4 }
 0x48a   : > { %v9644_v43 = vadd.f32 %v6279_v54, %v5358_v50  ;;  %v9646_v51 = vadd.f32 %v6279_v54, %v5359_v19  ;;  %v9648_v16 = vadd.f32 %v6279_v54, %v5360_v28  ;;  %v9650_v59 = vadd.f32 %v6279_v54, %v5361_v6 }
 0x48b   : > { %v9652_v49 = vadd.f32 %v6279_v54, %v5362_v2  ;;  %v9654_v53 = vadd.f32 %v6279_v54, %v5363_v12  ;;  %v9656_v36 = vadd.f32 %v6279_v54, %v5364_v46  ;;  %v9658_v60 = vadd.f32 %v6279_v54, %v5365_v58 }
 0x48c   : > { %v5405_v15 = vmax.f32 %v9596_v5, 0.0  ;;  %v5406_v21 = vmax.f32 %v9598_v37, 0.0  ;;  %v5407_v8 = vmax.f32 %v9600_v24, 0.0  ;;  %v5408_v9 = vmax.f32 %v9602_v18, 0.0 }
 0x48d   : > { %v5409_v38 = vmax.f32 %v9604_v42, 0.0  ;;  %v5410_v55 = vmax.f32 %v9606_v61, 0.0  ;;  %v5411_v23 = vmax.f32 %v9608_v1, 0.0  ;;  %v5412_v11 = vmax.f32 %v9610_v41, 0.0 }
 0x48e   : > { %v5413_v17 = vmax.f32 %v9612_v56, 0.0  ;;  %v5414_v13 = vmax.f32 %v9614_v35, 0.0  ;;  %v5415_v40 = vmax.f32 %v9616_v32, 0.0  ;;  %v5416_v31 = vmax.f32 %v9618_v33, 0.0 }
 0x48f   : > { %v5417_v26 = vmax.f32 %v9620_v10, 0.0  ;;  %v5418_v22 = vmax.f32 %v9622_v47, 0.0  ;;  %v5419_v29 = vmax.f32 %v9624_v39, 0.0  ;;  %v5420_v30 = vmax.f32 %v9626_v45, 0.0 }
 0x490   : > { %v5421_v3 = vmax.f32 %v9628_v44, 0.0  ;;  %v5422_v25 = vmax.f32 %v9630_v7, 0.0  ;;  %v5423_v57 = vmax.f32 %v9632_v62, 0.0  ;;  %v5424_v52 = vmax.f32 %v9634_v48, 0.0 }
 0x491   : > { %v5425_v27 = vmax.f32 %v9636_v63, 0.0  ;;  %v5426_v0 = vmax.f32 %v9638_v34, 0.0  ;;  %v5427_v4 = vmax.f32 %v9640_v14, 0.0  ;;  %v5428_v54 = vmax.f32 %v9642_v20, 0.0 }
 0x492   : > { %v5429_v50 = vmax.f32 %v9644_v43, 0.0  ;;  %v5430_v19 = vmax.f32 %v9646_v51, 0.0  ;;  %v5431_v28 = vmax.f32 %v9648_v16, 0.0  ;;  %v5432_v6 = vmax.f32 %v9650_v59, 0.0 }
 0x493   : > { %v5433_v2 = vmax.f32 %v9652_v49, 0.0  ;;  %v5434_v12 = vmax.f32 %v9654_v53, 0.0  ;;  %v5435_v46 = vmax.f32 %v9656_v36, 0.0  ;;  %v5436_v58 = vmax.f32 %v9658_v60, 0.0 }
 0x494   : > { %v6315_v5 = vpack.c.bf16 %v5405_v15, %v5405_v15  ;;  %v6316_v37 = vpack.c.bf16 %v5406_v21, %v5406_v21  ;;  %v6317_v24 = vpack.c.bf16 %v5407_v8, %v5407_v8  ;;  %v6318_v18 = vpack.c.bf16 %v5408_v9, %v5408_v9 }
 0x495   : > { %v6319_v42 = vpack.c.bf16 %v5409_v38, %v5409_v38  ;;  %v6320_v61 = vpack.c.bf16 %v5410_v55, %v5410_v55  ;;  %v6321_v1 = vpack.c.bf16 %v5411_v23, %v5411_v23  ;;  %v6322_v41 = vpack.c.bf16 %v5412_v11, %v5412_v11 }
 0x496   : > { %v6323_v56 = vpack.c.bf16 %v5413_v17, %v5413_v17  ;;  %v6324_v35 = vpack.c.bf16 %v5414_v13, %v5414_v13  ;;  %v6325_v32 = vpack.c.bf16 %v5415_v40, %v5415_v40  ;;  %v6326_v33 = vpack.c.bf16 %v5416_v31, %v5416_v31  ;;  %5566 = vst.msk [vmem:[%s9692_s25] sm:$0xf] %vm5565_vm10, %v6315_v5 }
 0x497   : > { %5567 = vst.msk [vmem:[%s9692_s25 + $0x4] sm:$0xf] %vm5565_vm10, %v6316_v37  ;;  %5568 = vst.msk [vmem:[%s9692_s25 + $0x8] sm:$0xf] %vm5565_vm10, %v6317_v24  ;;  %v6327_v10 = vpack.c.bf16 %v5417_v26, %v5417_v26  ;;  %v6328_v47 = vpack.c.bf16 %v5418_v22, %v5418_v22  ;;  %v6329_v39 = vpack.c.bf16 %v5419_v29, %v5419_v29 }
 0x498   : > { %5569 = vst.msk [vmem:[%s9692_s25 + $0xc] sm:$0xf] %vm5565_vm10, %v6318_v18  ;;  %v6330_v45 = vpack.c.bf16 %v5420_v30, %v5420_v30  ;;  %5570 = vst.msk [vmem:[%s9692_s25 + $0x10] sm:$0xf] %vm5565_vm10, %v6319_v42  ;;  %v6331_v44 = vpack.c.bf16 %v5421_v3, %v5421_v3  ;;  %v6332_v7 = vpack.c.bf16 %v5422_v25, %v5422_v25 }
 0x499   : > { %5571 = vst.msk [vmem:[%s9692_s25 + $0x14] sm:$0xf] %vm5565_vm10, %v6320_v61  ;;  %5572 = vst.msk [vmem:[%s9692_s25 + $0x18] sm:$0xf] %vm5565_vm10, %v6321_v1  ;;  %v6333_v62 = vpack.c.bf16 %v5423_v57, %v5423_v57  ;;  %v6334_v48 = vpack.c.bf16 %v5424_v52, %v5424_v52  ;;  %v6335_v63 = vpack.c.bf16 %v5425_v27, %v5425_v27 }
 0x49a   : > { %5573 = vst.msk [vmem:[%s9692_s25 + $0x1c] sm:$0xf] %vm5565_vm10, %v6322_v41  ;;  %5574 = vst.msk [vmem:[%s9692_s25 + $0x20] sm:$0xf] %vm5565_vm10, %v6323_v56  ;;  %v6336_v34 = vpack.c.bf16 %v5426_v0, %v5426_v0  ;;  %v6337_v14 = vpack.c.bf16 %v5427_v4, %v5427_v4  ;;  %v6338_v20 = vpack.c.bf16 %v5428_v54, %v5428_v54 }
 0x49b   : > { %5575 = vst.msk [vmem:[%s9692_s25 + $0x24] sm:$0xf] %vm5565_vm10, %v6324_v35  ;;  %5576 = vst.msk [vmem:[%s9692_s25 + $0x28] sm:$0xf] %vm5565_vm10, %v6325_v32  ;;  %v6339_v43 = vpack.c.bf16 %v5429_v50, %v5429_v50  ;;  %v6340_v51 = vpack.c.bf16 %v5430_v19, %v5430_v19  ;;  %v6341_v16 = vpack.c.bf16 %v5431_v28, %v5431_v28 }
 0x49c   : > { %5577 = vst.msk [vmem:[%s9692_s25 + $0x2c] sm:$0xf] %vm5565_vm10, %v6326_v33  ;;  %5578 = vst.msk [vmem:[%s9692_s25 + $0x30] sm:$0xf] %vm5565_vm10, %v6327_v10  ;;  %v6342_v59 = vpack.c.bf16 %v5432_v6, %v5432_v6  ;;  %v6343_v49 = vpack.c.bf16 %v5433_v2, %v5433_v2  ;;  %v6344_v53 = vpack.c.bf16 %v5434_v12, %v5434_v12 }
 0x49d   : > { %5579 = vst.msk [vmem:[%s9692_s25 + $0x34] sm:$0xf] %vm5565_vm10, %v6328_v47  ;;  %5580 = vst.msk [vmem:[%s9692_s25 + $0x38] sm:$0xf] %vm5565_vm10, %v6329_v39  ;;  %v6345_v36 = vpack.c.bf16 %v5435_v46, %v5435_v46  ;;  %v6346_v60 = vpack.c.bf16 %v5436_v58, %v5436_v58 }
 0x49e   : > { %5581 = vst.msk [vmem:[%s9692_s25 + $0x3c] sm:$0xf] %vm5565_vm10, %v6330_v45  ;;  %5582 = vst.msk [vmem:[%s9692_s25 + $0x40] sm:$0xf] %vm5565_vm10, %v6331_v44 }
 0x49f   : > { %5583 = vst.msk [vmem:[%s9692_s25 + $0x44] sm:$0xf] %vm5565_vm10, %v6332_v7  ;;  %5584 = vst.msk [vmem:[%s9692_s25 + $0x48] sm:$0xf] %vm5565_vm10, %v6333_v62 }
 0x4a0   : > { %5585 = vst.msk [vmem:[%s9692_s25 + $0x4c] sm:$0xf] %vm5565_vm10, %v6334_v48  ;;  %5586 = vst.msk [vmem:[%s9692_s25 + $0x50] sm:$0xf] %vm5565_vm10, %v6335_v63 }
 0x4a1   : > { %5587 = vst.msk [vmem:[%s9692_s25 + $0x54] sm:$0xf] %vm5565_vm10, %v6336_v34  ;;  %5588 = vst.msk [vmem:[%s9692_s25 + $0x58] sm:$0xf] %vm5565_vm10, %v6337_v14 }
 0x4a2   : > { %5589 = vst.msk [vmem:[%s9692_s25 + $0x5c] sm:$0xf] %vm5565_vm10, %v6338_v20  ;;  %5590 = vst.msk [vmem:[%s9692_s25 + $0x60] sm:$0xf] %vm5565_vm10, %v6339_v43 }
 0x4a3   : > { %5591 = vst.msk [vmem:[%s9692_s25 + $0x64] sm:$0xf] %vm5565_vm10, %v6340_v51  ;;  %5592 = vst.msk [vmem:[%s9692_s25 + $0x68] sm:$0xf] %vm5565_vm10, %v6341_v16 }
 0x4a4   : > { %5593 = vst.msk [vmem:[%s9692_s25 + $0x6c] sm:$0xf] %vm5565_vm10, %v6342_v59  ;;  %5594 = vst.msk [vmem:[%s9692_s25 + $0x70] sm:$0xf] %vm5565_vm10, %v6343_v49 }
 0x4a5   : > { %5595 = vst.msk [vmem:[%s9692_s25 + $0x74] sm:$0xf] %vm5565_vm10, %v6344_v53  ;;  %5596 = vst.msk [vmem:[%s9692_s25 + $0x78] sm:$0xf] %vm5565_vm10, %v6345_v36 }
 0x4a6   : > { %5597 = vst.msk [vmem:[%s9692_s25 + $0x7c] sm:$0xf] %vm5565_vm10, %v6346_v60 }
 0x4a7 PF: > { %s16_s23 = sadd.s32 1, %s7258_s23   ;;  %s9878_s21 = smov %s7254_s22 }
 0x4a8   : > { %p13_p5 = scmp.ge.s32.totalorder %s16_s23, 4   ;;  %s9879_s22 = smov %s9881_s24 }
 0x4aa   :  { %15 = sbr.rel (!%p13_p5) target bundleno = 2 (0x2), region = 96 }

// kernel: conv_block_forward.3
= control target key start
LH: loop header
LB: loop body
LE: loop exit
PB: predicated region body
PF: predicated region fallthrough
CT: control target
= control target key end

     0   :  { %s7353_s21 = smov 0   ;;  %s7355_s22 = smov 0   ;;  %s9744_s0 = inlined_call_operand.vmem [shape: bf16[2,18,18,32], index: 0, kind: input, shape index: {}]   ;;  %s9745_s1 = inlined_call_operand.vmem [shape: bf16[9,32,32], index: 1, kind: input, shape index: {}]   ;;  %s9746_s2 = inlined_call_operand.vmem [shape: f32[1,32], index: 2, kind: input, shape index: {}]   ;;  %s9747_s3 = inlined_call_operand.vmem [shape: f32[1,32], index: 3, kind: input, shape index: {}]   ;;  %s9748_s4 = inlined_call_operand.vmem [shape: f32[1,32], index: 4, kind: input, shape index: {}]   ;;  %s9749_s5 = inlined_call_operand.vmem [shape: f32[32,32], index: 5, kind: input, shape index: {}]   ;;  %s9750_s6 = inlined_call_operand.vmem [shape: f32[2,32,256], index: 6, kind: output, shape index: {}]  }
   0x1   :  { %s7357_s23 = smov 0  }
   0x2 LB: > { %s28_s24 = sadd.s32 1, %s7309_s22  ;;  %p5766_p0 = scmp.ge.s32.totalorder %s7313_s23, 1  ;;  %s7313_s23 = sphi %s7357_s23, %s16_s23   ;;  %s7309_s22 = sphi %s7355_s22, %s9838_s22   ;;  %s7305_s21 = sphi %s7353_s21, %s9837_s21  }
   0x3   : > { %p30_p1 = scmp.ge.s32.totalorder %s28_s24, 2  ;;  %p259_p2 = scmp.lt.s32.totalorder %s7313_s23, 3 }
   0x5   : > { %s9840_s24 = smov (%p30_p1, %s28_s24), 0  ;;  %p260_p3 = pnand %p5766_p0, %p259_p2 }
   0x7   : > { %263 = sbr.rel (%p260_p3) target bundleno = 1290 (0x50a), region = 44 }
   0xe   : > { %v7174_v0 = vld [vmem:[%s9745_s1 + $0x40] sm:$0xff]   ;;  %p307_p4 = scmp.lt.s32.totalorder %s7305_s21, 1  ;;  %v7175_v1 = vld [vmem:[%s9745_s1 + $0x10] sm:$0xff]   ;;  %v7176_v2 = vld [vmem:[%s9745_s1 + $0x48] sm:$0xff]   ;;  %vm389_vm0 = vsmask.f32 3328 }
   0xf   : > { %6672 = vmatprep.subr.bf16.mxu0 %v7174_v0  ;;  %6528 = vmatprep.subr.bf16.mxu1 %v7175_v1  ;;  %v7177_v3 = vld [vmem:[%s9745_s1 + $0x18] sm:$0xff]   ;;  %v7389_v4 = vld [vmem:[%s9745_s1 + $0x50] sm:$0xff]   ;;  %vm390_vm1 = vsmask.f32 7440  ;;  %v7399_v5 = vld [vmem:[%s9745_s1] sm:$0xff]   ;;  %vm841_vm3 = vcmask 261120  }
  0x10   : > { %s9842_s21 = smov (!%p307_p4, %s7305_s21), 1  ;;  %6673 = vmatpush3.bf16.msra.mxu0 %v7174_v0  ;;  %6529 = vmatpush3.bf16.msra.mxu1 %v7175_v1  ;;  %vm7419_vm2 = vmor %vm389_vm0, %vm390_vm1  ;;  %vm1400_vm4 = vcmask 1042432   ;;  %vm1401_vm5 = vcmask 1046532   ;;  %v7315_v30 = vmov 0.0|0.0   ;;  %vm7316_vm7 = vmmov 0  }
  0x11   : > { %6674 = vmatprep.subr.bf16.mxu0 %v7176_v2  ;;  %s7146_s9 = smul.u32 216, %s9842_s21  ;;  %6530 = vmatprep.subr.bf16.mxu1 %v7177_v3  ;;  %vm7699_vm6 = vmor %vm1400_vm4, %vm1401_vm5  ;;  %s6355_s26 = sshll.u32 %s9842_s21, 6 }
  0x12   : > { %s334_s29 = scalar_lea.vmem %s9750_s6, %s6355_s26 }
  0x13   : > { %s7394_s14 = scalar_lea.vmem %s9744_s0, %s7146_s9 }
  0x14   : > { %6675 = vmatpush3.bf16.msra.mxu0 %v7176_v2  ;;  %v337_v6 = vld [vmem:[%s7394_s14] sm:$0xf]  ;;  %v338_v7 = vld [vmem:[%s7394_s14 + $0x4] sm:$0xf]  ;;  %v373_v8 = vld [vmem:[%s7394_s14 + $0x8] sm:$0x1]  ;;  %6531 = vmatpush3.bf16.msra.mxu1 %v7177_v3 }
  0x15   : > { %v393_v9 = vshrl.u32 %v337_v6, 16  ;;  %v396_v10 = vshll.u32 %v337_v6, 16  ;;  %v402_v11 = vshll.u32 %v338_v7, 16  ;;  %v406_v12 = vshrl.u32 %v338_v7, 16  ;;  %v5966_v13 = vld [vmem:[%s7394_s14 + $0xc] sm:$0xf]  ;;  %6708 = vmatprep.subr.bf16.mxu0 %v7389_v4  ;;  %6564 = vmatprep.subr.bf16.mxu1 %v7399_v5 }
  0x16   : > { %v412_v14 = vshll.u32 %v373_v8, 16  ;;  %v7407_v15 = vld [vmem:[%s7394_s14 + $0x10] sm:$0xf]  ;;  %v7410_v16 = vld [vmem:[%s7394_s14 + $0x14] sm:$0x1]  ;;  %v2241_v22 = vshrl.u32 %v5966_v13, 16 }
  0x17   : > { %v395_v17 = vrot.slane %v393_v9, 4  ;;  %v398_v18 = vrot.slane %v396_v10, 5  ;;  %v404_v19 = vrot.slane %v402_v11, 5  ;;  %v408_v20 = vrot.slane %v406_v12, 4  ;;  %v339_v29 = vld [vmem:[%s7394_s14 + $0xc] sm:$0xf] }
  0x18   : > { %v414_v21 = vrot.slane %v412_v14, 5  ;;  %v2244_v23 = vshll.u32 %v5966_v13, 16  ;;  %v2250_v24 = vshll.u32 %v7407_v15, 16  ;;  %v2254_v27 = vshrl.u32 %v7407_v15, 16  ;;  %v340_v34 = vld [vmem:[%s7394_s14 + $0x10] sm:$0xf] }
  0x19   : > { %v399_v25 = vor.u32 %v398_v18, %v395_v17  ;;  %v409_v26 = vor.u32 %v408_v20, %v404_v19  ;;  %v2260_v28 = vshll.u32 %v7410_v16, 16  ;;  %v2243_v31 = vrot.slane %v2241_v22, 4  ;;  %v374_v40 = vld [vmem:[%s7394_s14 + $0x14] sm:$0x1]  ;;  %v5969_v51 = vld [vmem:[%s7394_s14 + $0x18] sm:$0xf] }
  0x1a   : > { %v2246_v32 = vrot.slane %v2244_v23, 5  ;;  %v2252_v33 = vrot.slane %v2250_v24, 5  ;;  %v2256_v37 = vrot.slane %v2254_v27, 4  ;;  %v417_v41 = vshrl.u32 %v339_v29, 16  ;;  %v7431_v56 = vld [vmem:[%s7394_s14 + $0x1c] sm:$0xf] }
  0x1b   : > { %v400_v35 = vrot.slane %v399_v25, 4  ;;  %v410_v36 = vrot.slane %v409_v26, 4  ;;  %v2262_v39 = vrot.slane %v2260_v28, 5  ;;  %v420_v42 = vshll.u32 %v339_v29, 16  ;;  %v7439_v61 = vld [vmem:[%s7394_s14 + $0x20] sm:$0x1] }
  0x1c   : > { %v2247_v38 = vor.u32 %v2246_v32, %v2243_v31  ;;  %v2257_v45 = vor.u32 %v2256_v37, %v2252_v33  ;;  %v426_v46 = vshll.u32 %v340_v34, 16  ;;  %v419_v49 = vrot.slane %v417_v41, 4  ;;  %v341_v12 = vld [vmem:[%s7394_s14 + $0x18] sm:$0xf]  ;;  %v375_v26 = vld [vmem:[%s7394_s14 + $0x20] sm:$0x1] }
  0x1d   : > { %v405_v43 = vsel %vm7419_vm2, %v400_v35, %v404_v19  ;;  %v415_v44 = vsel %vm7419_vm2, %v410_v36, %v414_v21  ;;  %v422_v50 = vrot.slane %v420_v42, 5  ;;  %v430_v54 = vshrl.u32 %v340_v34, 16  ;;  %v342_v19 = vld [vmem:[%s7394_s14 + $0x1c] sm:$0xf]  ;;  %v5972_v34 = vld [vmem:[%s7394_s14 + $0x24] sm:$0xf] }
  0x1e   : > { %v5774_v47 = vcombine.low %v405_v43, %v415_v44  ;;  %v2248_v48 = vrot.slane %v2247_v38, 4  ;;  %v2258_v52 = vrot.slane %v2257_v45, 4  ;;  %v428_v53 = vrot.slane %v426_v46, 5 }
  0x1f   : > { %v436_v55 = vshll.u32 %v374_v40, 16  ;;  %v2996_v58 = vrot.slane %v7407_v15, 5  ;;  %v2999_v59 = vrot.slane %v7410_v16, 5  ;;  %v423_v60 = vor.u32 %v422_v50, %v419_v49  ;;  %v7182_v40 = vld [vmem:[%s9745_s1 + $0x8] sm:$0xff]  }
  0x20   : > { %6532 = vmatprep.mubr.msk.bf16.mxu1 %vm841_vm3, %v5774_v47  ;;  %v2253_v57 = vsel %vm7419_vm2, %v2248_v48, %v2252_v33  ;;  %v2263_v62 = vsel %vm7419_vm2, %v2258_v52, %v2262_v39  ;;  %v432_v63 = vrot.slane %v430_v54, 4  ;;  %v2265_v1 = vshrl.u32 %v5969_v51, 16  ;;  %v7462_v39 = vld [vmem:[%s7394_s14 + $0x28] sm:$0xf]  ;;  %v7471_v47 = vld [vmem:[%s7394_s14 + $0x2c] sm:$0x1] }
  0x21   : > { %v438_v0 = vrot.slane %v436_v55, 5  ;;  %v6018_v2 = vcombine.low %v2253_v57, %v2263_v62  ;;  %v424_v3 = vrot.slane %v423_v60, 4  ;;  %v2268_v6 = vshll.u32 %v5969_v51, 16  ;;  %v343_v54 = vld [vmem:[%s7394_s14 + $0x24] sm:$0xf]  ;;  %v7180_v55 = vld [vmem:[%s9745_s1 + $0x58] sm:$0xff]  }
  0x22   : > { %v2274_v7 = vshll.u32 %v7431_v56, 16  ;;  %v433_v8 = vor.u32 %v432_v63, %v428_v53  ;;  %v2267_v9 = vrot.slane %v2265_v1, 4  ;;  %v2278_v10 = vshrl.u32 %v7431_v56, 16  ;;  %v7189_v1 = vld [vmem:[%s9745_s1 + $0x20] sm:$0xff]  }
  0x23   : > { %v2284_v11 = vshll.u32 %v7439_v61, 16  ;;  %6676 = vmatprep.mubr.msk.bf16.mxu0 %vm841_vm3, %v6018_v2  ;;  %v429_v13 = vsel %vm7419_vm2, %v424_v3, %v428_v53  ;;  %v2270_v14 = vrot.slane %v2268_v6, 5  ;;  %v3003_v18 = vrot.slane %v7431_v56, 5 }
  0x24   : > { %v2276_v17 = vrot.slane %v2274_v7, 5  ;;  %v434_v20 = vrot.slane %v433_v8, 4  ;;  %v2280_v21 = vrot.slane %v2278_v10, 4  ;;  %v3006_v23 = vrot.slane %v7439_v61, 5  ;;  %v376_v7 = vld [vmem:[%s7394_s14 + $0x2c] sm:$0x1] }
  0x25   : > { %v2286_v22 = vrot.slane %v2284_v11, 5  ;;  %v2271_v24 = vor.u32 %v2270_v14, %v2267_v9  ;;  %v7455_v25 = vrot.slane %v3003_v18, 4  ;;  %v441_v27 = vshrl.u32 %v341_v12, 16 }
  0x26   : > { %v444_v28 = vshll.u32 %v341_v12, 16  ;;  %v439_v29 = vsel %vm7419_vm2, %v434_v20, %v438_v0  ;;  %v2281_v31 = vor.u32 %v2280_v21, %v2276_v17  ;;  %v450_v32 = vshll.u32 %v342_v19, 16  ;;  %v344_v0 = vld [vmem:[%s7394_s14 + $0x28] sm:$0xf]  ;;  %v5975_v12 = vld [vmem:[%s7394_s14 + $0x30] sm:$0xf] }
  0x27   : > { %v454_v33 = vshrl.u32 %v342_v19, 16  ;;  %v5775_v35 = vcombine.low %v429_v13, %v439_v29  ;;  %v2272_v36 = vrot.slane %v2271_v24, 4  ;;  %v443_v37 = vrot.slane %v441_v27, 4  ;;  %v7501_v27 = vld [vmem:[%s9745_s1 + $0x60] sm:$0xff]  }
  0x28   : > { %v446_v38 = vrot.slane %v444_v28, 5  ;;  %v2282_v41 = vrot.slane %v2281_v31, 4  ;;  %v452_v42 = vrot.slane %v450_v32, 5  ;;  %v460_v44 = vshll.u32 %v375_v26, 16  ;;  %v7496_v26 = vld [vmem:[%s7394_s14 + $0x34] sm:$0xf] }
  0x29   : > { %v456_v43 = vrot.slane %v454_v33, 4  ;;  %6533 = vmatmul.mubr.msk.bf16.vlgmr.msra.gmra.mrb[0].mxu1 %vm841_vm3, %v5775_v35  ;;  %v2277_v45 = vsel %vm7419_vm2, %v2272_v36, %v2276_v17  ;;  %v2289_v48 = vshrl.u32 %v5972_v34, 16  ;;  %v2292_v49 = vshll.u32 %v5972_v34, 16  ;;  %v7507_v34 = vld [vmem:[%s7394_s14 + $0x38] sm:$0x1] }
  0x2a   : > { %v447_v46 = vor.u32 %v446_v38, %v443_v37  ;;  %v2287_v50 = vsel %vm7419_vm2, %v2282_v41, %v2286_v22  ;;  %v462_v52 = vrot.slane %v460_v44, 5  ;;  %v2298_v53 = vshll.u32 %v7462_v39, 16  ;;  %6565 = vmatpush3.bf16.msra.mxu1 %v7399_v5 }
  0x2b   : > { %v457_v51 = vor.u32 %v456_v43, %v452_v42  ;;  %v6019_v57 = vcombine.low %v2277_v45, %v2287_v50  ;;  %v2291_v62 = vrot.slane %v2289_v48, 4  ;;  %v2294_v63 = vrot.slane %v2292_v49, 5  ;;  %6566 = vmatprep.subr.bf16.mxu1 %v7182_v40 }
  0x2c   : > { %v448_v60 = vrot.slane %v447_v46, 4  ;;  %v2300_v3 = vrot.slane %v2298_v53, 5  ;;  %v2302_v6 = vshrl.u32 %v7462_v39, 16  ;;  %v2308_v5 = vshll.u32 %v7471_v47, 16  ;;  %v345_v46 = vld [vmem:[%s7394_s14 + $0x30] sm:$0xf] }
  0x2d   : > { %v458_v2 = vrot.slane %v457_v51, 4  ;;  %6677 = vmatmul.mubr.msk.bf16.vlgmr.msra.gmra.mrb[0].mxu0 %vm841_vm3, %v6019_v57  ;;  %v2295_v9 = vor.u32 %v2294_v63, %v2291_v62  ;;  %v465_v10 = vshrl.u32 %v343_v54, 16  ;;  %v468_v11 = vshll.u32 %v343_v54, 16 }
  0x2e   : > { %v453_v8 = vsel %vm7419_vm2, %v448_v60, %v452_v42  ;;  %6709 = vmatpush3.bf16.msra.mxu0 %v7389_v4  ;;  %v2304_v14 = vrot.slane %v2302_v6, 4  ;;  %v2310_v17 = vrot.slane %v2308_v5, 5  ;;  %v474_v19 = vshll.u32 %v344_v0, 16  ;;  %6567 = vmatpush3.bf16.msra.mxu1 %v7182_v40  ;;  %v377_v60 = vld [vmem:[%s7394_s14 + $0x38] sm:$0x1] }
  0x2f   : > { %v463_v13 = vsel %vm7419_vm2, %v458_v2, %v462_v52  ;;  %v2296_v21 = vrot.slane %v2295_v9, 4  ;;  %v467_v22 = vrot.slane %v465_v10, 4  ;;  %v470_v24 = vrot.slane %v468_v11, 5  ;;  %6710 = vmatprep.subr.bf16.mxu0 %v7180_v55  ;;  %6600 = vmatprep.subr.bf16.mxu1 %v7189_v1  ;;  %v346_v52 = vld [vmem:[%s7394_s14 + $0x34] sm:$0xf] }
  0x30   : > { %v5776_v20 = vcombine.low %v453_v8, %v463_v13  ;;  %v2305_v4 = vor.u32 %v2304_v14, %v2300_v3  ;;  %v476_v28 = vrot.slane %v474_v19, 5  ;;  %v478_v29 = vshrl.u32 %v344_v0, 16 }
  0x31   : > { %v484_v31 = vshll.u32 %v376_v7, 16  ;;  %v2301_v32 = vsel %vm7419_vm2, %v2296_v21, %v2300_v3  ;;  %v471_v33 = vor.u32 %v470_v24, %v467_v22  ;;  %v2313_v35 = vshrl.u32 %v5975_v12, 16  ;;  %v5978_v7 = vld [vmem:[%s7394_s14 + $0x3c] sm:$0xf]  ;;  %v7530_v24 = vld [vmem:[%s7394_s14 + $0x44] sm:$0x1] }
  0x32   : > { %6536 = vmatprep.mubr.msk.bf16.mxu1 %vm841_vm3, %v5776_v20  ;;  %v2316_v36 = vshll.u32 %v5975_v12, 16  ;;  %v2306_v37 = vrot.slane %v2305_v4, 4  ;;  %v480_v38 = vrot.slane %v478_v29, 4  ;;  %v2322_v41 = vshll.u32 %v7496_v26, 16  ;;  %6711 = vmatpush3.bf16.msra.mxu0 %v7180_v55  ;;  %v7525_v12 = vld [vmem:[%s7394_s14 + $0x40] sm:$0xf] }
  0x33   : > { %v486_v40 = vrot.slane %v484_v31, 5  ;;  %v472_v42 = vrot.slane %v471_v33, 4  ;;  %v2315_v43 = vrot.slane %v2313_v35, 4  ;;  %v2326_v45 = vshrl.u32 %v7496_v26, 16  ;;  %6744 = vmatprep.subr.bf16.mxu0 %v7501_v27  ;;  %v347_v33 = vld [vmem:[%s7394_s14 + $0x3c] sm:$0xf] }
  0x34   : > { %v2318_v44 = vrot.slane %v2316_v36, 5  ;;  %v2311_v48 = vsel %vm7419_vm2, %v2306_v37, %v2310_v17  ;;  %v481_v49 = vor.u32 %v480_v38, %v476_v28  ;;  %v2324_v50 = vrot.slane %v2322_v41, 5 }
  0x35   : > { %v2332_v51 = vshll.u32 %v7507_v34, 16  ;;  %v6020_v53 = vcombine.low %v2301_v32, %v2311_v48  ;;  %v477_v54 = vsel %vm7419_vm2, %v472_v42, %v476_v28  ;;  %v2328_v57 = vrot.slane %v2326_v45, 4 }
  0x36   : > { %v2319_v55 = vor.u32 %v2318_v44, %v2315_v43  ;;  %v482_v62 = vrot.slane %v481_v49, 4  ;;  %v489_v0 = vshrl.u32 %v345_v46, 16  ;;  %v492_v1 = vshll.u32 %v345_v46, 16 }
  0x37   : > { %v2334_v63 = vrot.slane %v2332_v51, 5  ;;  %6680 = vmatprep.mubr.msk.bf16.mxu0 %vm841_vm3, %v6020_v53  ;;  %v2329_v3 = vor.u32 %v2328_v57, %v2324_v50  ;;  %v498_v6 = vshll.u32 %v346_v52, 16  ;;  %v502_v5 = vshrl.u32 %v346_v52, 16  ;;  %v378_v53 = vld [vmem:[%s7394_s14 + $0x44] sm:$0x1] }
  0x38   : > { %v2320_v2 = vrot.slane %v2319_v55, 4  ;;  %v487_v8 = vsel %vm7419_vm2, %v482_v62, %v486_v40  ;;  %v491_v9 = vrot.slane %v489_v0, 4  ;;  %v494_v10 = vrot.slane %v492_v1, 5  ;;  %v348_v40 = vld [vmem:[%s7394_s14 + $0x40] sm:$0xf] }
  0x39   : > { %v508_v11 = vshll.u32 %v377_v60, 16  ;;  %v5777_v13 = vcombine.low %v477_v54, %v487_v8  ;;  %v2330_v17 = vrot.slane %v2329_v3, 4  ;;  %v500_v19 = vrot.slane %v498_v6, 5  ;;  %v5981_v55 = vld [vmem:[%s7394_s14 + $0x48] sm:$0xf] }
  0x3a   : > { %v2325_v14 = vsel %vm7419_vm2, %v2320_v2, %v2324_v50  ;;  %v495_v20 = vor.u32 %v494_v10, %v491_v9  ;;  %v504_v21 = vrot.slane %v502_v5, 4  ;;  %v2337_v4 = vshrl.u32 %v5978_v7, 16  ;;  %v7548_v0 = vld [vmem:[%s7394_s14 + $0x4c] sm:$0xf]  ;;  %v7551_v9 = vld [vmem:[%s7394_s14 + $0x50] sm:$0x1] }
  0x3b   : > { %v510_v22 = vrot.slane %v508_v11, 5  ;;  %6537 = vmatmul.mubr.msk.bf16.gmra.mrb[4].mxu1 %vm841_vm3, %v5777_v13  ;;  %v2335_v28 = vsel %vm7419_vm2, %v2330_v17, %v2334_v63  ;;  %v2340_v29 = vshll.u32 %v5978_v7, 16  ;;  %v2346_v31 = vshll.u32 %v7525_v12, 16 }
  0x3c   : > { %v2350_v32 = vshrl.u32 %v7525_v12, 16  ;;  %v6021_v35 = vcombine.low %v2325_v14, %v2335_v28  ;;  %v496_v36 = vrot.slane %v495_v20, 4  ;;  %v505_v37 = vor.u32 %v504_v21, %v500_v19  ;;  %v350_v20 = vld [vmem:[%s7394_s14 + $0x4c] sm:$0xf] }
  0x3d   : > { %v2339_v38 = vrot.slane %v2337_v4, 4  ;;  %v2342_v41 = vrot.slane %v2340_v29, 5  ;;  %v2348_v42 = vrot.slane %v2346_v31, 5  ;;  %v2356_v44 = vshll.u32 %v7530_v24, 16 }
  0x3e   : > { %v2352_v43 = vrot.slane %v2350_v32, 4  ;;  %6681 = vmatmul.mubr.msk.bf16.gmra.mrb[4].mxu0 %vm841_vm3, %v6021_v35  ;;  %v501_v45 = vsel %vm7419_vm2, %v496_v36, %v500_v19  ;;  %v506_v46 = vrot.slane %v505_v37, 4  ;;  %v513_v48 = vshrl.u32 %v347_v33, 16  ;;  %v349_v19 = vld [vmem:[%s7394_s14 + $0x48] sm:$0xf] }
  0x3f   : > { %v516_v49 = vshll.u32 %v347_v33, 16  ;;  %v2343_v50 = vor.u32 %v2342_v41, %v2339_v38  ;;  %v2358_v52 = vrot.slane %v2356_v44, 5  ;;  %v522_v54 = vshll.u32 %v348_v40, 16  ;;  %v379_v38 = vld [vmem:[%s7394_s14 + $0x50] sm:$0x1] }
  0x40   : > { %v2353_v51 = vor.u32 %v2352_v43, %v2348_v42  ;;  %v511_v57 = vsel %vm7419_vm2, %v506_v46, %v510_v22  ;;  %v515_v60 = vrot.slane %v513_v48, 4  ;;  %v526_v63 = vshrl.u32 %v348_v40, 16 }
  0x41   : > { %v518_v62 = vrot.slane %v516_v49, 5  ;;  %v5778_v1 = vcombine.low %v501_v45, %v511_v57  ;;  %v2344_v2 = vrot.slane %v2343_v50, 4  ;;  %v524_v6 = vrot.slane %v522_v54, 5  ;;  %v5984_v45 = vld [vmem:[%s7394_s14 + $0x54] sm:$0xf] }
  0x42   : > { %v2354_v3 = vrot.slane %v2353_v51, 4  ;;  %v528_v7 = vrot.slane %v526_v63, 4  ;;  %v532_v8 = vshll.u32 %v378_v53, 16  ;;  %v2361_v10 = vshrl.u32 %v5981_v55, 16  ;;  %v7574_v63 = vld [vmem:[%s7394_s14 + $0x5c] sm:$0x1] }
  0x43   : > { %v519_v5 = vor.u32 %v518_v62, %v515_v60  ;;  %6540 = vmatprep.mubr.msk.bf16.mxu1 %vm841_vm3, %v5778_v1  ;;  %v2349_v11 = vsel %vm7419_vm2, %v2344_v2, %v2348_v42  ;;  %v2364_v14 = vshll.u32 %v5981_v55, 16  ;;  %v2370_v17 = vshll.u32 %v7548_v0, 16  ;;  %v7571_v55 = vld [vmem:[%s7394_s14 + $0x58] sm:$0xf] }
  0x44   : > { %v2359_v13 = vsel %vm7419_vm2, %v2354_v3, %v2358_v52  ;;  %v529_v4 = vor.u32 %v528_v7, %v524_v6  ;;  %v534_v28 = vrot.slane %v532_v8, 5  ;;  %v2363_v29 = vrot.slane %v2361_v10, 4 }
  0x45   : > { %v6022_v21 = vcombine.low %v2349_v11, %v2359_v13  ;;  %v520_v22 = vrot.slane %v519_v5, 4  ;;  %v2366_v31 = vrot.slane %v2364_v14, 5  ;;  %v2372_v32 = vrot.slane %v2370_v17, 5  ;;  %v7581_v13 = vld [vmem:[%s7394_s14 + $0x54] sm:$0xf] }
  0x46   : > { %v2374_v33 = vshrl.u32 %v7548_v0, 16  ;;  %v530_v36 = vrot.slane %v529_v4, 4  ;;  %v2380_v37 = vshll.u32 %v7551_v9, 16  ;;  %v537_v40 = vshrl.u32 %v349_v19, 16 }
  0x47   : > { %6684 = vmatprep.mubr.msk.bf16.mxu0 %vm841_vm3, %v6022_v21  ;;  %v525_v35 = vsel %vm7419_vm2, %v520_v22, %v524_v6  ;;  %v2367_v41 = vor.u32 %v2366_v31, %v2363_v29  ;;  %v540_v43 = vshll.u32 %v349_v19, 16  ;;  %v546_v44 = vshll.u32 %v350_v20, 16  ;;  %v7587_v21 = vld [vmem:[%s7394_s14 + $0x58] sm:$0xf] }
  0x48   : > { %v2376_v42 = vrot.slane %v2374_v33, 4  ;;  %v535_v46 = vsel %vm7419_vm2, %v530_v36, %v534_v28  ;;  %v2382_v48 = vrot.slane %v2380_v37, 5  ;;  %v539_v49 = vrot.slane %v537_v40, 4 }
  0x49   : > { %v550_v50 = vshrl.u32 %v350_v20, 16  ;;  %v5779_v51 = vcombine.low %v525_v35, %v535_v46  ;;  %v2368_v52 = vrot.slane %v2367_v41, 4  ;;  %v542_v54 = vrot.slane %v540_v43, 5  ;;  %v380_v35 = vld [vmem:[%s7394_s14 + $0x5c] sm:$0x1] }
  0x4a   : > { %v2377_v53 = vor.u32 %v2376_v42, %v2372_v32  ;;  %v548_v57 = vrot.slane %v546_v44, 5  ;;  %v556_v62 = vshll.u32 %v379_v38, 16  ;;  %v2385_v1 = vshrl.u32 %v5984_v45, 16  ;;  %v5987_v42 = vld [vmem:[%s7394_s14 + $0x60] sm:$0xf] }
  0x4b   : > { %v552_v60 = vrot.slane %v550_v50, 4  ;;  %6541 = vmatmul.mubr.msk.bf16.gmra.mrb[8].mxu1 %vm841_vm3, %v5779_v51  ;;  %v2373_v2 = vsel %vm7419_vm2, %v2368_v52, %v2372_v32  ;;  %v543_v6 = vor.u32 %v542_v54, %v539_v49  ;;  %v2388_v5 = vshll.u32 %v5984_v45, 16 }
  0x4c   : > { %v2378_v3 = vrot.slane %v2377_v53, 4  ;;  %v558_v8 = vrot.slane %v556_v62, 5  ;;  %v2387_v10 = vrot.slane %v2385_v1, 4  ;;  %v2394_v11 = vshll.u32 %v7571_v55, 16 }
  0x4d   : > { %v553_v7 = vor.u32 %v552_v60, %v548_v57  ;;  %v544_v17 = vrot.slane %v543_v6, 4  ;;  %v2390_v19 = vrot.slane %v2388_v5, 5  ;;  %v2398_v20 = vshrl.u32 %v7571_v55, 16  ;;  %v7612_v5 = vld [vmem:[%s7394_s14 + $0x60] sm:$0xf] }
  0x4e   : > { %v2383_v14 = vsel %vm7419_vm2, %v2378_v3, %v2382_v48  ;;  %v2396_v28 = vrot.slane %v2394_v11, 5  ;;  %v2404_v29 = vshll.u32 %v7574_v63, 16  ;;  %v561_v36 = vshrl.u32 %v7581_v13, 16  ;;  %v7601_v48 = vld [vmem:[%s7394_s14 + $0x64] sm:$0xf] }
  0x4f   : > { %v6023_v22 = vcombine.low %v2373_v2, %v2383_v14  ;;  %v554_v4 = vrot.slane %v553_v7, 4  ;;  %v549_v31 = vsel %vm7419_vm2, %v544_v17, %v548_v57  ;;  %v2391_v32 = vor.u32 %v2390_v19, %v2387_v10  ;;  %v7608_v57 = vld [vmem:[%s7394_s14 + $0x68] sm:$0x1]  ;;  %v7618_v14 = vld [vmem:[%s7394_s14 + $0x64] sm:$0xf] }
  0x50   : > { %v2400_v33 = vrot.slane %v2398_v20, 4  ;;  %v2406_v38 = vrot.slane %v2404_v29, 5  ;;  %v564_v40 = vshll.u32 %v7581_v13, 16  ;;  %v570_v41 = vshll.u32 %v7587_v21, 16 }
  0x51   : > { %6685 = vmatmul.mubr.msk.bf16.gmra.mrb[8].mxu0 %vm841_vm3, %v6023_v22  ;;  %v559_v37 = vsel %vm7419_vm2, %v554_v4, %v558_v8  ;;  %v2392_v44 = vrot.slane %v2391_v32, 4  ;;  %v563_v46 = vrot.slane %v561_v36, 4  ;;  %v574_v51 = vshrl.u32 %v7587_v21, 16  ;;  %v381_v4 = vld [vmem:[%s7394_s14 + $0x68] sm:$0x1] }
  0x52   : > { %v5780_v43 = vcombine.low %v549_v31, %v559_v37  ;;  %v2401_v45 = vor.u32 %v2400_v33, %v2396_v28  ;;  %v566_v49 = vrot.slane %v564_v40, 5  ;;  %v572_v50 = vrot.slane %v570_v41, 5  ;;  %v5990_v33 = vld [vmem:[%s7394_s14 + $0x6c] sm:$0xf]  ;;  %v7630_v40 = vld [vmem:[%s7394_s14 + $0x70] sm:$0xf] }
  0x53   : > { %v580_v52 = vshll.u32 %v380_v35, 16  ;;  %v2397_v53 = vsel %vm7419_vm2, %v2392_v44, %v2396_v28  ;;  %v2409_v60 = vshrl.u32 %v5987_v42, 16  ;;  %v2412_v62 = vshll.u32 %v5987_v42, 16 }
  0x54   : > { %6544 = vmatprep.mubr.msk.bf16.mxu1 %vm841_vm3, %v5780_v43  ;;  %v2402_v54 = vrot.slane %v2401_v45, 4  ;;  %v567_v1 = vor.u32 %v566_v49, %v563_v46  ;;  %v576_v2 = vrot.slane %v574_v51, 4  ;;  %v2418_v6 = vshll.u32 %v7601_v48, 16 }
  0x55   : > { %v582_v3 = vrot.slane %v580_v52, 5  ;;  %v2411_v8 = vrot.slane %v2409_v60, 4  ;;  %v2414_v10 = vrot.slane %v2412_v62, 5  ;;  %v2422_v11 = vshrl.u32 %v7601_v48, 16  ;;  %v7638_v60 = vld [vmem:[%s7394_s14 + $0x74] sm:$0x1] }
  0x56   : > { %v2407_v7 = vsel %vm7419_vm2, %v2402_v54, %v2406_v38  ;;  %v568_v19 = vrot.slane %v567_v1, 4  ;;  %v577_v20 = vor.u32 %v576_v2, %v572_v50  ;;  %v2420_v22 = vrot.slane %v2418_v6, 5 }
  0x57   : > { %v6024_v17 = vcombine.low %v2397_v53, %v2407_v7  ;;  %v2415_v28 = vor.u32 %v2414_v10, %v2411_v8  ;;  %v2424_v29 = vrot.slane %v2422_v11, 4  ;;  %v2428_v31 = vshll.u32 %v7608_v57, 16  ;;  %v7646_v11 = vld [vmem:[%s7394_s14 + $0x6c] sm:$0xf] }
  0x58   : > { %v585_v32 = vshrl.u32 %v7612_v5, 16  ;;  %v573_v35 = vsel %vm7419_vm2, %v568_v19, %v572_v50  ;;  %v578_v36 = vrot.slane %v577_v20, 4  ;;  %v588_v37 = vshll.u32 %v7612_v5, 16 }
  0x59   : > { %6688 = vmatprep.mubr.msk.bf16.mxu0 %vm841_vm3, %v6024_v17  ;;  %v594_v38 = vshll.u32 %v7618_v14, 16  ;;  %v2416_v41 = vrot.slane %v2415_v28, 4  ;;  %v2425_v42 = vor.u32 %v2424_v29, %v2420_v22  ;;  %v2430_v43 = vrot.slane %v2428_v31, 5 }
  0x5a   : > { %v587_v44 = vrot.slane %v585_v32, 4  ;;  %v583_v45 = vsel %vm7419_vm2, %v578_v36, %v582_v3  ;;  %v590_v46 = vrot.slane %v588_v37, 5  ;;  %v598_v50 = vshrl.u32 %v7618_v14, 16 }
  0x5b   : > { %v596_v49 = vrot.slane %v594_v38, 5  ;;  %v5781_v51 = vcombine.low %v573_v35, %v583_v45  ;;  %v2421_v52 = vsel %vm7419_vm2, %v2416_v41, %v2420_v22  ;;  %v2426_v53 = vrot.slane %v2425_v42, 4  ;;  %v5993_v45 = vld [vmem:[%s7394_s14 + $0x78] sm:$0xf] }
  0x5c   : > { %v604_v54 = vshll.u32 %v381_v4, 16  ;;  %v591_v62 = vor.u32 %v590_v46, %v587_v44  ;;  %v600_v1 = vrot.slane %v598_v50, 4  ;;  %v2433_v2 = vshrl.u32 %v5990_v33, 16  ;;  %v7649_v4 = vld [vmem:[%s7394_s14 + $0x70] sm:$0xf] }
  0x5d   : > { %v2436_v6 = vshll.u32 %v5990_v33, 16  ;;  %6545 = vmatmul.mubr.msk.bf16.gmra.mrb[12].mxu1 %vm841_vm3, %v5781_v51  ;;  %v2431_v3 = vsel %vm7419_vm2, %v2426_v53, %v2430_v43  ;;  %v2442_v8 = vshll.u32 %v7630_v40, 16  ;;  %v2446_v10 = vshrl.u32 %v7630_v40, 16  ;;  %v382_v43 = vld [vmem:[%s7394_s14 + $0x74] sm:$0x1] }
  0x5e   : > { %v606_v7 = vrot.slane %v604_v54, 5  ;;  %v6025_v17 = vcombine.low %v2421_v52, %v2431_v3  ;;  %v592_v19 = vrot.slane %v591_v62, 4  ;;  %v601_v20 = vor.u32 %v600_v1, %v596_v49  ;;  %v7664_v52 = vld [vmem:[%s7394_s14 + $0x7c] sm:$0xf] }
  0x5f   : > { %v2435_v22 = vrot.slane %v2433_v2, 4  ;;  %v2438_v28 = vrot.slane %v2436_v6, 5  ;;  %v2444_v29 = vrot.slane %v2442_v8, 5  ;;  %v2448_v31 = vrot.slane %v2446_v10, 4 }
  0x60   : > { %v2452_v32 = vshll.u32 %v7638_v60, 16  ;;  %6689 = vmatmul.mubr.msk.bf16.gmra.mrb[12].mxu0 %vm841_vm3, %v6025_v17  ;;  %v597_v33 = vsel %vm7419_vm2, %v592_v19, %v596_v49  ;;  %v602_v35 = vrot.slane %v601_v20, 4  ;;  %v609_v36 = vshrl.u32 %v7646_v11, 16  ;;  %v7672_v17 = vld [vmem:[%s7394_s14 + $0x80] sm:$0x1] }
  0x61   : > { %v612_v37 = vshll.u32 %v7646_v11, 16  ;;  %v2439_v38 = vor.u32 %v2438_v28, %v2435_v22  ;;  %v2449_v41 = vor.u32 %v2448_v31, %v2444_v29  ;;  %v618_v44 = vshll.u32 %v7649_v4, 16  ;;  %v7676_v22 = vld [vmem:[%s7394_s14 + $0x78] sm:$0xf] }
  0x62   : > { %v2454_v42 = vrot.slane %v2452_v32, 5  ;;  %v607_v46 = vsel %vm7419_vm2, %v602_v35, %v606_v7  ;;  %v611_v49 = vrot.slane %v609_v36, 4  ;;  %v622_v51 = vshrl.u32 %v7649_v4, 16  ;;  %v7679_v35 = vld [vmem:[%s7394_s14 + $0x7c] sm:$0xf] }
  0x63   : > { %v614_v50 = vrot.slane %v612_v37, 5  ;;  %v5782_v53 = vcombine.low %v597_v33, %v607_v46  ;;  %v2440_v54 = vrot.slane %v2439_v38, 4  ;;  %v2450_v62 = vrot.slane %v2449_v41, 4 }
  0x64   : > { %v620_v1 = vrot.slane %v618_v44, 5  ;;  %v624_v6 = vrot.slane %v622_v51, 4  ;;  %v628_v3 = vshll.u32 %v382_v43, 16  ;;  %v2457_v8 = vshrl.u32 %v5993_v45, 16  ;;  %v383_v44 = vld [vmem:[%s7394_s14 + $0x80] sm:$0x1] }
  0x65   : > { %v615_v2 = vor.u32 %v614_v50, %v611_v49  ;;  %6548 = vmatprep.mubr.msk.bf16.mxu1 %vm841_vm3, %v5782_v53  ;;  %v2445_v7 = vsel %vm7419_vm2, %v2440_v54, %v2444_v29  ;;  %v2455_v10 = vsel %vm7419_vm2, %v2450_v62, %v2454_v42  ;;  %v2460_v19 = vshll.u32 %v5993_v45, 16  ;;  %v6052_v53 = vld [vmem:[%s7394_s14 + $0xc] sm:$0xe] }
  0x66   : > { %v2466_v20 = vshll.u32 %v7664_v52, 16  ;;  %v6026_v28 = vcombine.low %v2445_v7, %v2455_v10  ;;  %v625_v32 = vor.u32 %v624_v6, %v620_v1  ;;  %v630_v33 = vrot.slane %v628_v3, 5  ;;  %v7695_v6 = vld [vmem:[%s7394_s14 + $0x84] sm:$0xf] }
  0x67   : > { %v616_v31 = vrot.slane %v615_v2, 4  ;;  %v2459_v36 = vrot.slane %v2457_v8, 4  ;;  %v2462_v29 = vrot.slane %v2460_v19, 5  ;;  %v2470_v38 = vshrl.u32 %v7664_v52, 16 }
  0x68   : > { %v2468_v37 = vrot.slane %v2466_v20, 5  ;;  %6692 = vmatprep.mubr.msk.bf16.mxu0 %vm841_vm3, %v6026_v28  ;;  %v626_v42 = vrot.slane %v625_v32, 4  ;;  %v2476_v43 = vshll.u32 %v7672_v17, 16  ;;  %v633_v45 = vshrl.u32 %v7676_v22, 16 }
  0x69   : > { %v621_v41 = vsel %vm7419_vm2, %v616_v31, %v620_v1  ;;  %v2463_v46 = vor.u32 %v2462_v29, %v2459_v36  ;;  %v2472_v49 = vrot.slane %v2470_v38, 4  ;;  %v636_v50 = vshll.u32 %v7676_v22, 16 }
  0x6a   : > { %v642_v51 = vshll.u32 %v7679_v35, 16  ;;  %v631_v54 = vsel %vm7419_vm2, %v626_v42, %v630_v33  ;;  %v2478_v62 = vrot.slane %v2476_v43, 5  ;;  %v635_v2 = vrot.slane %v633_v45, 4  ;;  %v7704_v33 = vld [vmem:[%s7394_s14 + $0x88] sm:$0xf] }
  0x6b   : > { %v646_v1 = vshrl.u32 %v7679_v35, 16  ;;  %v5783_v3 = vcombine.low %v621_v41, %v631_v54  ;;  %v2464_v8 = vrot.slane %v2463_v46, 4  ;;  %v2473_v7 = vor.u32 %v2472_v49, %v2468_v37  ;;  %v384_v42 = vld [vmem:[%s7394_s14 + $0x8c] sm:$0x1]  ;;  %v6053_v43 = vld [vmem:[%s7394_s14 + $0x18] sm:$0xe] }
  0x6c   : > { %v638_v10 = vrot.slane %v636_v50, 5  ;;  %v644_v20 = vrot.slane %v642_v51, 5  ;;  %v652_v31 = vshll.u32 %v383_v44, 16  ;;  %v6068_v32 = vrot.slane %v6052_v53, 9  ;;  %v7726_v54 = vld [vmem:[%s7394_s14 + $0x90] sm:$0xf] }
  0x6d   : > { %v648_v28 = vrot.slane %v646_v1, 4  ;;  %6549 = vmatmul.mubr.msk.bf16.gmra.mrb[16].mxu1 %vm841_vm3, %v5783_v3  ;;  %v2469_v36 = vsel %vm7419_vm2, %v2464_v8, %v2468_v37  ;;  %v2474_v29 = vrot.slane %v2473_v7, 4  ;;  %v2998_v41 = vrot.slane %v2996_v58, 4  ;;  %v7729_v3 = vld [vmem:[%s7394_s14 + $0x94] sm:$0xf] }
  0x6e   : > { %v639_v38 = vor.u32 %v638_v10, %v635_v2  ;;  %v654_v46 = vrot.slane %v652_v31, 5  ;;  %v2997_v44 = vsel %vm7699_vm6, %v6068_v32, %v2996_v58  ;;  %v657_v49 = vshrl.u32 %v7695_v6, 16  ;;  %v6054_v32 = vld [vmem:[%s7394_s14 + $0x24] sm:$0xe] }
  0x6f   : > { %v649_v45 = vor.u32 %v648_v28, %v644_v20  ;;  %v2479_v37 = vsel %vm7419_vm2, %v2474_v29, %v2478_v62  ;;  %v3000_v51 = vsel %vm7699_vm6, %v2998_v41, %v2999_v59  ;;  %v660_v53 = vshll.u32 %v7695_v6, 16  ;;  %v385_v59 = vld [vmem:[%s7394_s14 + $0x98] sm:$0x1] }
  0x70   : > { %v640_v50 = vrot.slane %v639_v38, 4  ;;  %v6027_v15 = vcombine.low %v2469_v36, %v2479_v37  ;;  %v6088_v58 = vcombine.low %v2997_v44, %v3000_v51  ;;  %v659_v1 = vrot.slane %v657_v49, 4 }
  0x71   : > { %v650_v2 = vrot.slane %v649_v45, 4  ;;  %v662_v8 = vrot.slane %v660_v53, 5  ;;  %v666_v16 = vshll.u32 %v7704_v33, 16  ;;  %v670_v7 = vshrl.u32 %v7704_v33, 16 }
  0x72   : > { %v645_v62 = vsel %vm7419_vm2, %v640_v50, %v644_v20  ;;  %6693 = vmatmul.mubr.msk.bf16.gmra.mrb[16].mxu0 %vm841_vm3, %v6027_v15  ;;  %v676_v28 = vshll.u32 %v384_v42, 16  ;;  %v6069_v31 = vrot.slane %v6053_v43, 9  ;;  %v3007_v20 = vsel %vm7699_vm6, %v7455_v25, %v3006_v23  ;;  %v7753_v23 = vld [vmem:[%s7394_s14 + $0x9c] sm:$0xf] }
  0x73   : > { %v655_v10 = vsel %vm7419_vm2, %v650_v2, %v654_v46  ;;  %6712 = vmatprep.mubr.msk.bf16.mxu0 %vm841_vm3, %v6088_v58  ;;  %v663_v29 = vor.u32 %v662_v8, %v659_v1  ;;  %v668_v38 = vrot.slane %v666_v16, 5  ;;  %v672_v41 = vrot.slane %v670_v7, 4  ;;  %v386_v1 = vld [vmem:[%s7394_s14 + $0xa4] sm:$0x1] }
  0x74   : > { %v5784_v36 = vcombine.low %v645_v62, %v655_v10  ;;  %v678_v45 = vrot.slane %v676_v28, 5  ;;  %v3004_v42 = vsel %vm7699_vm6, %v6069_v31, %v3003_v18  ;;  %v681_v61 = vshrl.u32 %v7726_v54, 16  ;;  %v7759_v18 = vld [vmem:[%s7394_s14 + $0xa0] sm:$0xf]  ;;  %v7186_v10 = vld [vmem:[%s9745_s1 + $0x68] sm:$0xff]  }
  0x75   : > { %v684_v43 = vshll.u32 %v7726_v54, 16  ;;  %v664_v25 = vrot.slane %v663_v29, 4  ;;  %v673_v46 = vor.u32 %v672_v41, %v668_v38  ;;  %v6089_v44 = vcombine.low %v3004_v42, %v3007_v20 }
  0x76   : > { %6552 = vmatprep.mubr.msk.bf16.mxu1 %vm841_vm3, %v5784_v36  ;;  %v690_v49 = vshll.u32 %v7729_v3, 16  ;;  %v683_v37 = vrot.slane %v681_v61, 4  ;;  %v694_v56 = vshrl.u32 %v7729_v3, 16  ;;  %v700_v51 = vshll.u32 %v385_v59, 16  ;;  %v7780_v61 = vld [vmem:[%s7394_s14 + $0xa8] sm:$0xf] }
  0x77   : > { %v686_v50 = vrot.slane %v684_v43, 5  ;;  %v669_v53 = vsel %vm7419_vm2, %v664_v25, %v668_v38  ;;  %v674_v15 = vrot.slane %v673_v46, 4  ;;  %v6070_v58 = vrot.slane %v6054_v32, 9  ;;  %v6055_v32 = vld [vmem:[%s7394_s14 + $0x30] sm:$0xe] }
  0x78   : > { %v692_v2 = vrot.slane %v690_v49, 5  ;;  %v696_v8 = vrot.slane %v694_v56, 4  ;;  %v702_v16 = vrot.slane %v700_v51, 5  ;;  %v3010_v7 = vrot.slane %v7462_v39, 5  ;;  %v7794_v51 = vld [vmem:[%s7394_s14 + $0xac] sm:$0xf] }
  0x79   : > { %v687_v62 = vor.u32 %v686_v50, %v683_v37  ;;  %v679_v59 = vsel %vm7419_vm2, %v674_v15, %v678_v45  ;;  %v3013_v28 = vrot.slane %v7471_v47, 5  ;;  %v705_v31 = vshrl.u32 %v7753_v23, 16 }
  0x7a   : > { %v708_v20 = vshll.u32 %v7753_v23, 16  ;;  %v5785_v36 = vcombine.low %v669_v53, %v679_v59  ;;  %6713 = vmatmul.mubr.msk.bf16.vlgmr.msra.gmra.mrb[0].mxu0 %vm841_vm3, %v6089_v44  ;;  %v697_v39 = vor.u32 %v696_v8, %v692_v2  ;;  %v3011_v38 = vsel %vm7699_vm6, %v6070_v58, %v3010_v7 }
  0x7b   : > { %v688_v29 = vrot.slane %v687_v62, 4  ;;  %6745 = vmatpush3.bf16.msra.mxu0 %v7501_v27  ;;  %v3012_v41 = vrot.slane %v3010_v7, 4  ;;  %v707_v45 = vrot.slane %v705_v31, 4  ;;  %v714_v47 = vshll.u32 %v7759_v18, 16  ;;  %v7789_v27 = vld [vmem:[%s9745_s1 + $0x70] sm:$0xff]  }
  0x7c   : > { %v710_v42 = vrot.slane %v708_v20, 5  ;;  %6553 = vmatmul.mubr.msk.bf16.gmra.mrb[20].mxu1 %vm841_vm3, %v5785_v36  ;;  %v698_v25 = vrot.slane %v697_v39, 4  ;;  %v718_v46 = vshrl.u32 %v7759_v18, 16  ;;  %v724_v44 = vshll.u32 %v386_v1, 16  ;;  %6746 = vmatprep.subr.bf16.mxu0 %v7186_v10  ;;  %v387_v1 = vld [vmem:[%s7394_s14 + $0xb0] sm:$0x1] }
  0x7d   : > { %v693_v43 = vsel %vm7419_vm2, %v688_v29, %v692_v2  ;;  %v3014_v49 = vsel %vm7699_vm6, %v3012_v41, %v3013_v28  ;;  %v716_v50 = vrot.slane %v714_v47, 5  ;;  %v6071_v56 = vrot.slane %v6055_v32, 9  ;;  %v6056_v62 = vld [vmem:[%s7394_s14 + $0x3c] sm:$0xe]  ;;  %v7814_v29 = vld [vmem:[%s7394_s14 + $0xb4] sm:$0xf] }
  0x7e   : > { %v711_v37 = vor.u32 %v710_v42, %v707_v45  ;;  %v703_v53 = vsel %vm7419_vm2, %v698_v25, %v702_v16  ;;  %v6090_v15 = vcombine.low %v3011_v38, %v3014_v49  ;;  %v720_v2 = vrot.slane %v718_v46, 4  ;;  %v7817_v42 = vld [vmem:[%s7394_s14 + $0xb8] sm:$0xf] }
  0x7f   : > { %v726_v58 = vrot.slane %v724_v44, 5  ;;  %v5786_v8 = vcombine.low %v693_v43, %v703_v53  ;;  %v3017_v59 = vrot.slane %v7496_v26, 5  ;;  %v3020_v28 = vrot.slane %v7507_v34, 5  ;;  %6747 = vmatpush3.bf16.msra.mxu0 %v7186_v10 }
  0x80   : > { %v712_v7 = vrot.slane %v711_v37, 4  ;;  %6716 = vmatprep.mubr.msk.bf16.mxu0 %vm841_vm3, %v6090_v15  ;;  %v721_v31 = vor.u32 %v720_v2, %v716_v50  ;;  %v729_v20 = vshrl.u32 %v7780_v61, 16  ;;  %v732_v16 = vshll.u32 %v7780_v61, 16  ;;  %6780 = vmatprep.subr.bf16.mxu0 %v7789_v27 }
  0x81   : > { %v738_v32 = vshll.u32 %v7794_v51, 16  ;;  %6556 = vmatprep.mubr.msk.bf16.mxu1 %vm841_vm3, %v5786_v8  ;;  %v3018_v34 = vsel %vm7699_vm6, %v6071_v56, %v3017_v59  ;;  %v3019_v10 = vrot.slane %v3017_v59, 4  ;;  %v742_v36 = vshrl.u32 %v7794_v51, 16  ;;  %v7825_v56 = vld [vmem:[%s7394_s14 + $0xbc] sm:$0x1] }
  0x82   : > { %v717_v26 = vsel %vm7419_vm2, %v712_v7, %v716_v50  ;;  %v722_v39 = vrot.slane %v721_v31, 4  ;;  %v731_v38 = vrot.slane %v729_v20, 4  ;;  %v734_v41 = vrot.slane %v732_v16, 5  ;;  %v6057_v59 = vld [vmem:[%s7394_s14 + $0x48] sm:$0xe] }
  0x83   : > { %v740_v45 = vrot.slane %v738_v32, 5  ;;  %v3021_v47 = vsel %vm7699_vm6, %v3019_v10, %v3020_v28  ;;  %v744_v43 = vrot.slane %v742_v36, 4  ;;  %v748_v25 = vshll.u32 %v387_v1, 16 }
  0x84   : > { %v6072_v46 = vrot.slane %v6056_v62, 9  ;;  %v727_v44 = vsel %vm7419_vm2, %v722_v39, %v726_v58  ;;  %v6091_v49 = vcombine.low %v3018_v34, %v3021_v47  ;;  %v735_v37 = vor.u32 %v734_v41, %v731_v38  ;;  %v6058_v34 = vld [vmem:[%s7394_s14 + $0x54] sm:$0xe] }
  0x85   : > { %v3024_v50 = vrot.slane %v7525_v12, 5  ;;  %v5787_v53 = vcombine.low %v717_v26, %v727_v44  ;;  %v745_v15 = vor.u32 %v744_v43, %v740_v45  ;;  %v750_v2 = vrot.slane %v748_v25, 5  ;;  %v6059_v25 = vld [vmem:[%s7394_s14 + $0x60] sm:$0xe] }
  0x86   : > { %v3027_v8 = vrot.slane %v7530_v24, 5  ;;  %6717 = vmatmul.mubr.msk.bf16.gmra.mrb[4].mxu0 %vm841_vm3, %v6091_v49  ;;  %v736_v1 = vrot.slane %v735_v37, 4  ;;  %v753_v58 = vshrl.u32 %v7814_v29, 16  ;;  %v756_v28 = vshll.u32 %v7814_v29, 16 }
  0x87   : > { %v3025_v62 = vsel %vm7699_vm6, %v6072_v46, %v3024_v50  ;;  %v3026_v7 = vrot.slane %v3024_v50, 4  ;;  %6557 = vmatmul.mubr.msk.bf16.gmra.mrb[24].mxu1 %vm841_vm3, %v5787_v53  ;;  %v746_v12 = vrot.slane %v745_v15, 4  ;;  %v762_v31 = vshll.u32 %v7817_v42, 16 }
  0x88   : > { %v766_v24 = vshrl.u32 %v7817_v42, 16  ;;  %v741_v20 = vsel %vm7419_vm2, %v736_v1, %v740_v45  ;;  %v755_v32 = vrot.slane %v753_v58, 4  ;;  %v772_v26 = vshll.u32 %v7825_v56, 16  ;;  %v6060_v58 = vld [vmem:[%s7394_s14 + $0x6c] sm:$0xe] }
  0x89   : > { %v3028_v16 = vsel %vm7699_vm6, %v3026_v7, %v3027_v8  ;;  %v751_v10 = vsel %vm7419_vm2, %v746_v12, %v750_v2  ;;  %v758_v39 = vrot.slane %v756_v28, 5  ;;  %v764_v38 = vrot.slane %v762_v31, 5 }
  0x8a   : > { %v6092_v36 = vcombine.low %v3025_v62, %v3028_v16  ;;  %v5788_v41 = vcombine.low %v741_v20, %v751_v10  ;;  %v768_v47 = vrot.slane %v766_v24, 4  ;;  %v6073_v43 = vrot.slane %v6057_v59, 9  ;;  %v7242_v24 = vld [vmem:[%s7394_s14] sm:$0xf]  ;;  %v7867_v20 = vld [vmem:[%s7394_s14 + $0x4] sm:$0xf] }
  0x8b   : > { %v759_v45 = vor.u32 %v758_v39, %v755_v32  ;;  %v3031_v46 = vrot.slane %v7548_v0, 5  ;;  %v3034_v44 = vrot.slane %v7551_v9, 5  ;;  %v6074_v49 = vrot.slane %v6058_v34, 9  ;;  %v5997_v39 = vld [vmem:[%s7394_s14 + $0x88] sm:$0xf] }
  0x8c   : > { %6720 = vmatprep.mubr.msk.bf16.mxu0 %vm841_vm3, %v6092_v36  ;;  %6560 = vmatprep.mubr.msk.bf16.mxu1 %vm841_vm3, %v5788_v41  ;;  %v769_v37 = vor.u32 %v768_v47, %v764_v38  ;;  %v774_v50 = vrot.slane %v772_v26, 5  ;;  %v3038_v53 = vrot.slane %v7571_v55, 5  ;;  %v3041_v15 = vrot.slane %v7574_v63, 5 }
  0x8d   : > { %v760_v2 = vrot.slane %v759_v45, 4  ;;  %v3032_v8 = vsel %vm7699_vm6, %v6073_v43, %v3031_v46  ;;  %v3033_v1 = vrot.slane %v3031_v46, 4  ;;  %v3045_v7 = vrot.slane %v7601_v48, 5  ;;  %v6061_v43 = vld [vmem:[%s7394_s14 + $0x78] sm:$0xe] }
  0x8e   : > { %v770_v62 = vrot.slane %v769_v37, 4  ;;  %v3039_v0 = vsel %vm7699_vm6, %v6074_v49, %v3038_v53  ;;  %v3040_v9 = vrot.slane %v3038_v53, 4  ;;  %v6075_v59 = vrot.slane %v6059_v25, 9  ;;  %v5998_v25 = vld [vmem:[%s7394_s14 + $0x8c] sm:$0x1] }
  0x8f   : > { %v765_v55 = vsel %vm7419_vm2, %v760_v2, %v764_v38  ;;  %v3035_v63 = vsel %vm7699_vm6, %v3033_v1, %v3034_v44  ;;  %v3048_v12 = vrot.slane %v7608_v57, 5  ;;  %v5808_v48 = vcombine.low %v7242_v24, %v7867_v20  ;;  %v6062_v45 = vld [vmem:[%s7394_s14 + $0x84] sm:$0xe]  ;;  %v7244_v44 = vld [vmem:[%s7394_s14 + $0xc] sm:$0xf] }
  0x90   : > { %v775_v28 = vsel %vm7419_vm2, %v770_v62, %v774_v50  ;;  %v6093_v31 = vcombine.low %v3032_v8, %v3035_v63  ;;  %v3042_v16 = vsel %vm7699_vm6, %v3040_v9, %v3041_v15  ;;  %v3047_v34 = vrot.slane %v3045_v7, 4  ;;  %v7891_v49 = vld [vmem:[%s7394_s14 + $0x10] sm:$0xf]  ;;  %v7246_v1 = vld [vmem:[%s7394_s14 + $0x18] sm:$0xf] }
  0x91   : > { %v5789_v32 = vcombine.low %v765_v55, %v775_v28  ;;  %v6094_v26 = vcombine.low %v3039_v0, %v3042_v16  ;;  %v6076_v10 = vrot.slane %v6060_v58, 9  ;;  %v3052_v57 = vrot.slane %v7630_v40, 5  ;;  %v7899_v62 = vld [vmem:[%s7394_s14 + $0x1c] sm:$0xf]  ;;  %v7903_v55 = vld [vmem:[%s7394_s14 + $0x94] sm:$0xf] }
  0x92   : > { %6721 = vmatmul.mubr.msk.bf16.gmra.mrb[8].mxu0 %vm841_vm3, %v6093_v31  ;;  %v3055_v36 = vrot.slane %v7638_v60, 5  ;;  %v3046_v38 = vsel %vm7699_vm6, %v6075_v59, %v3045_v7  ;;  %v3049_v41 = vsel %vm7699_vm6, %v3047_v34, %v3048_v12  ;;  %v3059_v47 = vrot.slane %v7664_v52, 5  ;;  %v6003_v63 = vld [vmem:[%s7394_s14 + $0xa0] sm:$0xf]  ;;  %v7201_v59 = vld [vmem:[%s9745_s1 + $0x28] sm:$0xff]  }
  0x93   : > { %6561 = vmatmul.mubr.msk.bf16.gmra.mrb[28].mxu1 %vm841_vm3, %v5789_v32  ;;  %6724 = vmatprep.mubr.msk.bf16.mxu0 %vm841_vm3, %v6094_v26  ;;  %v3053_v40 = vsel %vm7699_vm6, %v6076_v10, %v3052_v57  ;;  %v3054_v60 = vrot.slane %v3052_v57, 4  ;;  %v3066_v46 = vrot.slane %v5997_v39, 5  ;;  %v5809_v37 = vcombine.low %v7244_v44, %v7891_v49  ;;  %v7926_v16 = vld [vmem:[%s7394_s14 + $0x98] sm:$0x1]  ;;  %v6063_v32 = vld [vmem:[%s7394_s14 + $0x90] sm:$0xe] }
  0x94   : > { %6568 = vmatprep.mubr.msk.bf16.mxu1 %vm841_vm3, %v5808_v48  ;;  %v6095_v52 = vcombine.low %v3046_v38, %v3049_v41  ;;  %v6077_v15 = vrot.slane %v6061_v43, 9  ;;  %v3061_v2 = vrot.slane %v3059_v47, 4  ;;  %v3062_v8 = vrot.slane %v7672_v17, 5  ;;  %v7248_v48 = vld [vmem:[%s9745_s1 + $0x20] sm:$0xff]   ;;  %v6064_v10 = vld [vmem:[%s7394_s14 + $0x9c] sm:$0xe] }
  0x95   : > { %v3056_v50 = vsel %vm7699_vm6, %v3054_v60, %v3055_v36  ;;  %v5810_v0 = vcombine.low %v7246_v1, %v7899_v62  ;;  %v6078_v9 = vrot.slane %v6062_v45, 9  ;;  %v3068_v7 = vrot.slane %v3066_v46, 4  ;;  %v6004_v34 = vld [vmem:[%s7394_s14 + $0xa4] sm:$0x1]  ;;  %v7934_v57 = vld [vmem:[%s9745_s1 + $0x30] sm:$0xff]  }
  0x96   : > { %v6096_v53 = vcombine.low %v3053_v40, %v3056_v50  ;;  %v3069_v58 = vrot.slane %v5998_v25, 5  ;;  %v3060_v17 = vsel %vm7699_vm6, %v6077_v15, %v3059_v47  ;;  %v3063_v12 = vsel %vm7699_vm6, %v3061_v2, %v3062_v8  ;;  %v7249_v36 = vld [vmem:[%s7394_s14 + $0x24] sm:$0xf]  ;;  %v7938_v39 = vld [vmem:[%s7394_s14 + $0x28] sm:$0xf] }
  0x97   : > { %v3073_v28 = vrot.slane %v7903_v55, 5  ;;  %v3067_v31 = vsel %vm7699_vm6, %v6078_v9, %v3066_v46  ;;  %v3080_v26 = vrot.slane %v6003_v63, 5  ;;  %v5811_v38 = vcombine.low %v7249_v36, %v7938_v39  ;;  %v6006_v25 = vld [vmem:[%s7394_s14 + $0xac] sm:$0xf]  ;;  %v7251_v45 = vld [vmem:[%s7394_s14 + $0x30] sm:$0xf] }
  0x98   : > { %v3070_v24 = vsel %vm7699_vm6, %v3068_v7, %v3069_v58  ;;  %v6097_v41 = vcombine.low %v3060_v17, %v3063_v12  ;;  %v6079_v40 = vrot.slane %v6063_v32, 9  ;;  %v3076_v43 = vrot.slane %v7926_v16, 5  ;;  %v7945_v46 = vld [vmem:[%s7394_s14 + $0x34] sm:$0xf]  ;;  %v6065_v15 = vld [vmem:[%s7394_s14 + $0xa8] sm:$0xe] }
  0x99   : > { %v6098_v47 = vcombine.low %v3067_v31, %v3070_v24  ;;  %v3075_v60 = vrot.slane %v3073_v28, 4  ;;  %v5812_v44 = vcombine.low %v7251_v45, %v7945_v46  ;;  %v3083_v50 = vrot.slane %v6004_v34, 5  ;;  %v6007_v7 = vld [vmem:[%s7394_s14 + $0xb0] sm:$0x1]  ;;  %v6010_v63 = vld [vmem:[%s7394_s14 + $0xbc] sm:$0x1] }
  0x9a   : > { %6725 = vmatmul.mubr.msk.bf16.gmra.mrb[12].mxu0 %vm841_vm3, %v6095_v52  ;;  %v3082_v52 = vrot.slane %v3080_v26, 4  ;;  %v3074_v2 = vsel %vm7699_vm6, %v6079_v40, %v3073_v28  ;;  %v3087_v1 = vrot.slane %v6006_v25, 5  ;;  %v6081_v12 = vrot.slane %v6065_v15, 9  ;;  %v7253_v28 = vld [vmem:[%s7394_s14 + $0x3c] sm:$0xf] }
  0x9b   : > { %6569 = vmatmul.mubr.msk.bf16.vlgmr.msra.gmra.mrb[0].mxu1 %vm841_vm3, %v5809_v37  ;;  %6728 = vmatprep.mubr.msk.bf16.mxu0 %vm841_vm3, %v6096_v53  ;;  %v6080_v37 = vrot.slane %v6064_v10, 9  ;;  %v6009_v53 = vld [vmem:[%s7394_s14 + $0xb8] sm:$0xf]  ;;  %v3077_v8 = vsel %vm7699_vm6, %v3075_v60, %v3076_v43  ;;  %v7968_v31 = vld [vmem:[%s7394_s14 + $0x40] sm:$0xf]  ;;  %v3090_v34 = vrot.slane %v6007_v7, 5 }
  0x9c   : > { %6572 = vmatprep.mubr.msk.bf16.mxu1 %vm841_vm3, %v5810_v0  ;;  %6601 = vmatpush3.bf16.msra.mxu1 %v7248_v48  ;;  %v3084_v9 = vsel %vm7699_vm6, %v3082_v52, %v3083_v50  ;;  %v3094_v58 = vrot.slane %v6009_v53, 5  ;;  %v6099_v17 = vcombine.low %v3074_v2, %v3077_v8  ;;  %v5813_v24 = vcombine.low %v7253_v28, %v7968_v31  ;;  %v7255_v10 = vld [vmem:[%s7394_s14 + $0x48] sm:$0xf]  ;;  %v6012_v40 = vld [vmem:[%s7394_s14 + $0xc4] sm:$0xf] }
  0x9d   : > { %6602 = vmatprep.subr.bf16.mxu1 %v7201_v59  ;;  %v3081_v0 = vsel %vm7699_vm6, %v6080_v37, %v3080_v26  ;;  %v3089_v32 = vrot.slane %v3087_v1, 4  ;;  %v7973_v26 = vld [vmem:[%s7394_s14 + $0x4c] sm:$0xf]  ;;  %v3088_v60 = vsel %vm7699_vm6, %v6081_v12, %v3087_v1  ;;  %v3101_v25 = vrot.slane %v6012_v40, 5  ;;  %v6013_v37 = vld [vmem:[%s7394_s14 + $0xc8] sm:$0x1] }
  0x9e   : > { %v6100_v48 = vcombine.low %v3081_v0, %v3084_v9  ;;  %v5814_v36 = vcombine.low %v7255_v10, %v7973_v26  ;;  %v6067_v52 = vld [vmem:[%s7394_s14 + $0xc0] sm:$0xe]  ;;  %v5815_v50 = vcombine.low %v7581_v13, %v7587_v21  ;;  %v3104_v1 = vrot.slane %v6013_v37, 5  ;;  %v1353_v12 = vld [vmem:[%s7394_s14 + $0xc] sm:$0xe] }
  0x9f   : > { %v3091_v43 = vsel %vm7699_vm6, %v3089_v32, %v3090_v34  ;;  %v6083_v2 = vrot.slane %v6067_v52, 9  ;;  %v3103_v8 = vrot.slane %v3101_v25, 4  ;;  %v5816_v0 = vcombine.low %v7612_v5, %v7618_v14  ;;  %v7258_v34 = vld [vmem:[%s7394_s14 + $0x14] sm:$0x1] }
  0xa0   : > { %6603 = vmatpush3.bf16.msra.mxu1 %v7201_v59  ;;  %v6066_v59 = vld [vmem:[%s7394_s14 + $0xb4] sm:$0xe]  ;;  %v6101_v53 = vcombine.low %v3088_v60, %v3091_v43  ;;  %v2514_v9 = vshll.u32 %v7903_v55, 16  ;;  %v2518_v7 = vshrl.u32 %v7903_v55, 16  ;;  %v1412_v5 = vrot.slane %v7891_v49, 5 }
  0xa1   : > { %6636 = vmatprep.subr.bf16.mxu1 %v7934_v57  ;;  %v3102_v13 = vsel %vm7699_vm6, %v6083_v2, %v3101_v25  ;;  %v3105_v21 = vsel %vm7699_vm6, %v3103_v8, %v3104_v1  ;;  %v5818_v28 = vcombine.low %v7676_v22, %v7679_v35  ;;  %v1354_v49 = vld [vmem:[%s7394_s14 + $0x18] sm:$0xe]  ;;  %v1415_v10 = vrot.slane %v7258_v34, 5  ;;  %v1355_v43 = vld [vmem:[%s7394_s14 + $0x24] sm:$0xe] }
  0xa2   : > { %6729 = vmatmul.mubr.msk.bf16.gmra.mrb[16].mxu0 %vm841_vm3, %v6097_v41  ;;  %v3096_v41 = vrot.slane %v3094_v58, 4  ;;  %v6103_v14 = vcombine.low %v3102_v13, %v3105_v21  ;;  %v8007_v55 = vrot.slane %v2514_v9, 5  ;;  %v5819_v22 = vcombine.low %v7695_v6, %v7704_v33  ;;  %v1356_v6 = vld [vmem:[%s7394_s14 + $0x30] sm:$0xe]  ;;  %v7259_v8 = vld [vmem:[%s7394_s14 + $0x20] sm:$0x1] }
  0xa3   : > { %6573 = vmatmul.mubr.msk.bf16.gmra.mrb[4].mxu1 %vm841_vm3, %v5811_v38  ;;  %6732 = vmatprep.mubr.msk.bf16.mxu0 %vm841_vm3, %v6098_v47  ;;  %v6082_v38 = vrot.slane %v6066_v59, 9  ;;  %v3097_v47 = vrot.slane %v6010_v63, 5  ;;  %v8009_v63 = vrot.slane %v2518_v7, 4  ;;  %v5817_v59 = vcombine.low %v7646_v11, %v7649_v4  ;;  %v7260_v7 = vld [vmem:[%s7394_s14 + $0x2c] sm:$0x1] }
  0xa4   : > { %6576 = vmatprep.mubr.msk.bf16.mxu1 %vm841_vm3, %v5812_v44  ;;  %9775 = vst [vmem:[#allocation2_spill] sm:$0xff] %v8007_v55  ;;  %v5843_v4 = vrot.slane %v1353_v12, 9  ;;  %v5821_v40 = vcombine.low %v7753_v23, %v7759_v18  ;;  %v1426_v25 = vrot.slane %v7938_v39, 5  ;;  %v1433_v37 = vrot.slane %v7945_v46, 5  ;;  %v7262_v12 = vld [vmem:[%s7394_s14 + $0x44] sm:$0x1] }
  0xa5   : > { %v3095_v45 = vsel %vm7699_vm6, %v6082_v38, %v3094_v58  ;;  %v3098_v44 = vsel %vm7699_vm6, %v3096_v41, %v3097_v47  ;;  %v7196_v58 = vld [vmem:[%s7394_s14 + $0x18] sm:$0xff]   ;;  %v2521_v38 = vor.u32 %v8009_v63, %v8007_v55  ;;  %v1419_v41 = vrot.slane %v7899_v62, 5  ;;  %v7268_v18 = vld [vmem:[%s7394_s14 + $0x68] sm:$0x1]  ;;  %v1366_v55 = vld [vmem:[%s7394_s14 + $0xa8] sm:$0xe] }
  0xa6   : > { %v6102_v15 = vcombine.low %v3095_v45, %v3098_v44  ;;  %v5820_v47 = vcombine.low %v7726_v54, %v7729_v3  ;;  %v5822_v62 = vcombine.low %v7780_v61, %v7794_v51  ;;  %v5823_v45 = vcombine.low %v7814_v29, %v7817_v42  ;;  %v1357_v54 = vld [vmem:[%s7394_s14 + $0x3c] sm:$0xe] }
  0xa7   : > { %v5844_v44 = vrot.slane %v1354_v49, 9  ;;  %v8051_v52 = vsel %vm7699_vm6, %v5843_v4, %v1412_v5  ;;  %v1440_v39 = vrot.slane %v7968_v31, 5  ;;  %v1421_v2 = vrot.slane %v1419_v41, 4  ;;  %v7212_v31 = vld [vmem:[%s9745_s1 + $0x78] sm:$0xff]   ;;  %v1359_v4 = vld [vmem:[%s7394_s14 + $0x54] sm:$0xe] }
  0xa8   : > { %v1422_v1 = vrot.slane %v7259_v8, 5  ;;  %v1429_v13 = vrot.slane %v7260_v7, 5  ;;  %v5846_v21 = vrot.slane %v1356_v6, 9  ;;  %v5847_v63 = vrot.slane %v1357_v54, 9  ;;  %v8271_v7 = vld [vmem:[%s7394_s14 + $0x38] sm:$0x1] }
  0xa9   : > { %9781 = vst [vmem:[#allocation8_spill] sm:$0xff] %v8271_v7 }
  0xaa   : > { %6733 = vmatmul.mubr.msk.bf16.gmra.mrb[20].mxu0 %vm841_vm3, %v6099_v17  ;;  %v1352_v17 = vld [vmem:[%s7394_s14] sm:$0xe]  ;;  %v8122_v6 = vsel %vm7699_vm6, %v5847_v63, %v1440_v39  ;;  %v1361_v63 = vld [vmem:[%s7394_s14 + $0x6c] sm:$0xe] }
  0xab   : > { %6577 = vmatmul.mubr.msk.bf16.gmra.mrb[8].mxu1 %vm841_vm3, %v5813_v24  ;;  %6736 = vmatprep.mubr.msk.bf16.mxu0 %vm841_vm3, %v6100_v48  ;;  %v1405_v24 = vrot.slane %v7867_v20, 5  ;;  %v7257_v48 = vld [vmem:[%s7394_s14 + $0x8] sm:$0x1]  ;;  %v5842_v11 = vrot.slane %v1352_v17, 9  ;;  %v1414_v20 = vrot.slane %v1412_v5, 4  ;;  %v1435_v5 = vrot.slane %v1433_v37, 4 }
  0xac   : > { %6580 = vmatprep.mubr.msk.bf16.mxu1 %vm841_vm3, %v5814_v36  ;;  %v1408_v32 = vrot.slane %v7257_v48, 5  ;;  %v2524_v36 = vshll.u32 %v7926_v16, 16  ;;  %v7199_v16 = vld [vmem:[%s7394_s14 + $0x24] sm:$0xff]   ;;  %v1442_v17 = vrot.slane %v1440_v39, 4  ;;  %v7263_v48 = vld [vmem:[%s7394_s14 + $0x50] sm:$0x1] }
  0xad   : > { %v1407_v60 = vrot.slane %v1405_v24, 4  ;;  %v8047_v3 = vsel %vm7699_vm6, %v5842_v11, %v1405_v24  ;;  %v8059_v46 = vsel %vm7699_vm6, %v1414_v20, %v1415_v10  ;;  %v8084_v11 = vsel %vm7699_vm6, %v5844_v44, %v1419_v41 }
  0xae   : > { %v8074_v49 = vrot.slane %v2524_v36, 5  ;;  %v5863_v10 = vcombine.low %v8051_v52, %v8059_v46  ;;  %v8087_v20 = vrot.slane %v2521_v38, 4  ;;  %v7204_v36 = vld [vmem:[%s7394_s14 + $0x3c] sm:$0xff]   ;;  %v8102_v41 = vsel %vm7699_vm6, %v5846_v21, %v1433_v37  ;;  %v6192_v38 = vld [vmem:[%s7394_s14 + $0x18] sm:$0xf] }
  0xaf   : > { %v8064_v9 = vsel %vm7699_vm6, %v1407_v60, %v1408_v32  ;;  %v1450_v32 = vrot.slane %v7263_v48, 5  ;;  %v7206_v60 = vld [vmem:[%s7394_s14 + $0x48] sm:$0xff]   ;;  %v1360_v37 = vld [vmem:[%s7394_s14 + $0x60] sm:$0xe]  ;;  %v3832_v8 = vshrl.u32 %v6192_v38, 16 }
  0xb0   : > { %9776 = vst [vmem:[#allocation3_spill] sm:$0xff] %v8074_v49  ;;  %v5862_v34 = vcombine.low %v8047_v3, %v8064_v9  ;;  %9777 = vst [vmem:[#allocation4_spill] sm:$0xff] %v8087_v20  ;;  %v7265_v21 = vld [vmem:[%s7394_s14 + $0x64] sm:$0xf]  ;;  %v7277_v20 = vld [vmem:[%s7394_s14 + $0xb0] sm:$0x1] }
  0xb1   : > { %v1506_v49 = vrot.slane %v7277_v20, 5 }
  0xb2   : > { %6737 = vmatmul.mubr.msk.bf16.gmra.mrb[24].mxu0 %vm841_vm3, %v6101_v53  ;;  %v1447_v53 = vrot.slane %v7973_v26, 5  ;;  %v1428_v26 = vrot.slane %v1426_v25, 4 }
  0xb3   : > { %6581 = vmatmul.mubr.msk.bf16.gmra.mrb[12].mxu1 %vm841_vm3, %v5815_v50  ;;  %6740 = vmatprep.mubr.msk.bf16.mxu0 %vm841_vm3, %v6102_v15  ;;  %v1358_v50 = vld [vmem:[%s7394_s14 + $0x48] sm:$0xe]  ;;  %v7202_v15 = vld [vmem:[%s7394_s14 + $0x30] sm:$0xff]  }
  0xb4   : > { %6584 = vmatprep.mubr.msk.bf16.mxu1 %vm841_vm3, %v5816_v0  ;;  %v5845_v0 = vrot.slane %v1355_v43, 9  ;;  %v1449_v24 = vrot.slane %v1447_v53, 4  ;;  %v8114_v43 = vsel %vm7699_vm6, %v1428_v26, %v1429_v13 }
  0xba   : > { %6741 = vmatmul.mubr.msk.bf16.gmra.mrb[28].mxu0 %vm841_vm3, %v6103_v14  ;;  %v7261_v14 = vld [vmem:[%s7394_s14 + $0x38] sm:$0x1] }
  0xbb   : > { %6585 = vmatmul.mubr.msk.bf16.gmra.mrb[16].mxu1 %vm841_vm3, %v5817_v59  ;;  %6748 = vmatprep.mubr.msk.bf16.mxu0 %vm841_vm3, %v7196_v58  ;;  %v1436_v58 = vrot.slane %v7261_v14, 5  ;;  %v5848_v59 = vrot.slane %v1358_v50, 9  ;;  %v8135_v50 = vsel %vm7699_vm6, %v1449_v24, %v1450_v32  ;;  %v7266_v14 = vld [vmem:[%s7394_s14 + $0x5c] sm:$0x1]  ;;  %v5850_v32 = vrot.slane %v1360_v37, 9 }
  0xbc   : > { %6588 = vmatprep.mubr.msk.bf16.mxu1 %vm841_vm3, %v5818_v28  ;;  %v1443_v28 = vrot.slane %v7262_v12, 5  ;;  %v1475_v12 = vrot.slane %v7679_v35, 5  ;;  %v3834_v35 = vrot.slane %v3832_v8, 4  ;;  %v5851_v37 = vrot.slane %v1361_v63, 9 }
  0xbd   : > { %v8126_v44 = vsel %vm7699_vm6, %v5848_v59, %v1447_v53  ;;  %v7267_v59 = vld [vmem:[%s7394_s14 + $0x70] sm:$0xf] }
  0xbe   : > { %v8131_v54 = vsel %vm7699_vm6, %v1442_v17, %v1443_v28  ;;  %v1468_v17 = vrot.slane %v7267_v59, 5  ;;  %v7208_v59 = vld [vmem:[%s7394_s14 + $0x54] sm:$0xff]  }
  0xc0   : > { %v1470_v8 = vrot.slane %v1468_v17, 4 }
  0xc2   : > { %6749 = vmatmul.mubr.msk.bf16.vlgmr.msra.gmra.mrb[0].mxu0 %vm841_vm3, %v7199_v16  ;;  %v6193_v16 = vld [vmem:[%s7394_s14 + $0x1c] sm:$0xf] }
  0xc3   : > { %6589 = vmatmul.mubr.msk.bf16.gmra.mrb[20].mxu1 %vm841_vm3, %v5819_v22  ;;  %6781 = vmatpush3.bf16.msra.mxu0 %v7789_v27  ;;  %v8094_v27 = vsel %vm7699_vm6, %v1421_v2, %v1422_v1  ;;  %v8098_v22 = vsel %vm7699_vm6, %v5845_v0, %v1426_v25  ;;  %v8118_v25 = vsel %vm7699_vm6, %v1435_v5, %v1436_v58  ;;  %v7264_v2 = vld [vmem:[%s7394_s14 + $0x58] sm:$0xf]  ;;  %v3835_v1 = vshll.u32 %v6192_v38, 16 }
  0xc4   : > { %6592 = vmatprep.mubr.msk.bf16.mxu1 %vm841_vm3, %v5820_v47  ;;  %6752 = vmatprep.mubr.msk.bf16.mxu0 %vm841_vm3, %v7202_v15  ;;  %v8109_v47 = vld [vmem:[%s9745_s1 + $0x80] sm:$0xff]   ;;  %v5849_v15 = vrot.slane %v1359_v4, 9  ;;  %v1454_v39 = vrot.slane %v7264_v2, 5  ;;  %v3841_v53 = vshll.u32 %v6193_v16, 16  ;;  %v3845_v0 = vshrl.u32 %v6193_v16, 16 }
  0xc5   : > { %6782 = vmatprep.subr.bf16.mxu0 %v7212_v31  ;;  %v5864_v26 = vcombine.low %v8084_v11, %v8094_v27  ;;  %v1461_v5 = vrot.slane %v7265_v21, 5  ;;  %v1457_v58 = vrot.slane %v7266_v14, 5  ;;  %v1362_v4 = vld [vmem:[%s7394_s14 + $0x78] sm:$0xe]  ;;  %v8177_v14 = vld [vmem:[%s7394_s14 + $0x28] sm:$0xf] }
  0xc6   : > { %v8157_v24 = vsel %vm7699_vm6, %v5849_v15, %v1454_v39  ;;  %v1456_v48 = vrot.slane %v1454_v39, 4  ;;  %v8165_v38 = vrot.slane %v3841_v53, 5  ;;  %v3847_v16 = vrot.slane %v3845_v0, 4  ;;  %v6195_v15 = vld [vmem:[%s7394_s14 + $0x24] sm:$0xf]  ;;  %9778 = vst [vmem:[#allocation5_spill] sm:$0xff] %v8177_v14 }
  0xc7   : > { %6783 = vmatpush3.bf16.msra.mxu0 %v7212_v31  ;;  %v1463_v23 = vrot.slane %v1461_v5, 4  ;;  %v6194_v39 = vld [vmem:[%s7394_s14 + $0x20] sm:$0x1]  ;;  %v1477_v53 = vrot.slane %v1475_v12, 4  ;;  %v8182_v61 = vsel %vm7699_vm6, %v5850_v32, %v1461_v5  ;;  %v3856_v63 = vshrl.u32 %v6195_v15, 16 }
  0xc8   : > { %6816 = vmatprep.subr.bf16.mxu0 %v8109_v47  ;;  %v7270_v0 = vld [vmem:[%s7394_s14 + $0x80] sm:$0x1]  ;;  %v3859_v28 = vshll.u32 %v6195_v15, 16  ;;  %v3848_v31 = vor.u32 %v3847_v16, %v8165_v38  ;;  %v3851_v13 = vshll.u32 %v6194_v39, 16  ;;  %v3865_v32 = vshll.u32 %v8177_v14, 16 }
  0xc9   : > { %v1478_v21 = vrot.slane %v7270_v0, 5  ;;  %v3869_v15 = vshrl.u32 %v8177_v14, 16 }
  0xca   : > { %6753 = vmatmul.mubr.msk.bf16.gmra.mrb[4].mxu0 %vm841_vm3, %v7204_v36  ;;  %v3837_v36 = vrot.slane %v3835_v1, 5  ;;  %v5852_v1 = vrot.slane %v1362_v4, 9  ;;  %v8189_v4 = vsel %vm7699_vm6, %v1456_v48, %v1457_v58  ;;  %v3861_v39 = vrot.slane %v3859_v28, 5  ;;  %v1364_v28 = vld [vmem:[%s7394_s14 + $0x90] sm:$0xe] }
  0xcb   : > { %6593 = vmatmul.mubr.msk.bf16.gmra.mrb[24].mxu1 %vm841_vm3, %v5821_v40  ;;  %6756 = vmatprep.mubr.msk.bf16.mxu0 %vm841_vm3, %v7206_v60  ;;  %v1464_v40 = vrot.slane %v7268_v18, 5  ;;  %v7269_v60 = vld [vmem:[%s7394_s14 + $0x74] sm:$0x1]  ;;  %v1482_v18 = vrot.slane %v7704_v33, 5  ;;  %v8198_v33 = vsel %vm7699_vm6, %v5851_v37, %v1468_v17  ;;  %v6198_v17 = vld [vmem:[%s7394_s14 + $0x30] sm:$0xf] }
  0xcc   : > { %6596 = vmatprep.mubr.msk.bf16.mxu1 %vm841_vm3, %v5822_v62  ;;  %v1471_v2 = vrot.slane %v7269_v60, 5  ;;  %v1363_v62 = vld [vmem:[%s7394_s14 + $0x84] sm:$0xe]  ;;  %v3838_v0 = vor.u32 %v3837_v36, %v3834_v35  ;;  %v8208_v48 = vsel %vm7699_vm6, %v5852_v1, %v1475_v12  ;;  %v8212_v35 = vsel %vm7699_vm6, %v1477_v53, %v1478_v21  ;;  %v8218_v37 = vld [vmem:[%s7394_s14 + $0x2c] sm:$0x1] }
  0xcd   : > { %v7209_v60 = vld [vmem:[%s7394_s14 + $0x60] sm:$0xff]   ;;  %v8194_v5 = vsel %vm7699_vm6, %v1463_v23, %v1464_v40  ;;  %v5853_v36 = vrot.slane %v1363_v62, 9  ;;  %v1484_v16 = vrot.slane %v1482_v18, 4  ;;  %v7271_v23 = vld [vmem:[%s7394_s14 + $0x8c] sm:$0x1]  ;;  %9779 = vst [vmem:[#allocation6_spill] sm:$0xff] %v8218_v37 }
  0xce   : > { %v8204_v58 = vsel %vm7699_vm6, %v1470_v8, %v1471_v2  ;;  %v1485_v40 = vrot.slane %v7271_v23, 5  ;;  %v3858_v2 = vrot.slane %v3856_v63, 4  ;;  %v3839_v8 = vrot.slane %v3838_v0, 4  ;;  %v8228_v21 = vld [vmem:[%s7394_s14 + $0x34] sm:$0xf]  ;;  %v7210_v63 = vld [vmem:[%s7394_s14 + $0x6c] sm:$0xff]  }
  0xcf   : > { %v3849_v1 = vrot.slane %v3848_v31, 4  ;;  %v3853_v53 = vrot.slane %v3851_v13, 5  ;;  %9780 = vst [vmem:[#allocation7_spill] sm:$0xff] %v8228_v21  ;;  %v8234_v29 = vrot.slane %v3865_v32, 5  ;;  %v3883_v62 = vshll.u32 %v6198_v17, 16  ;;  %v7211_v23 = vld [vmem:[%s7394_s14 + $0x78] sm:$0xff]  }
  0xd0   : > { %v8246_v9 = vsel %vm7699_vm6, %v5853_v36, %v1482_v18  ;;  %v3889_v0 = vshll.u32 %v8228_v21, 16  ;;  %v3893_v32 = vshrl.u32 %v8228_v21, 16  ;;  %v3844_v3 = vsel %vm7419_vm2, %v3839_v8, %v8165_v38  ;;  %v7222_v31 = vld [vmem:[%s9745_s1 + $0x38] sm:$0xff]  }
  0xd1   : > { %v3854_v18 = vsel %vm7419_vm2, %v3849_v1, %v3853_v53  ;;  %v3875_v36 = vshll.u32 %v8218_v37, 16  ;;  %v3885_v12 = vrot.slane %v3883_v62, 5 }
  0xd2   : > { %6757 = vmatmul.mubr.msk.bf16.gmra.mrb[8].mxu0 %vm841_vm3, %v7208_v59  ;;  %v3880_v59 = vshrl.u32 %v6198_v17, 16  ;;  %v8256_v17 = vld [vmem:[%s7394_s14 + $0x40] sm:$0xf]  ;;  %v3895_v62 = vrot.slane %v3893_v32, 4  ;;  %v1365_v32 = vld [vmem:[%s7394_s14 + $0x9c] sm:$0xe] }
  0xd3   : > { %6597 = vmatmul.mubr.msk.bf16.gmra.mrb[28].mxu1 %vm841_vm3, %v5823_v45  ;;  %6760 = vmatprep.mubr.msk.bf16.mxu0 %vm841_vm3, %v7209_v60  ;;  %v3871_v45 = vrot.slane %v3869_v15, 4  ;;  %v3862_v60 = vor.u32 %v3861_v39, %v3858_v2  ;;  %v6201_v15 = vld [vmem:[%s7394_s14 + $0x3c] sm:$0xf]  ;;  %v7272_v2 = vld [vmem:[%s7394_s14 + $0x94] sm:$0xf]  ;;  %v3913_v1 = vshll.u32 %v8256_v17, 16 }
  0xd4   : > { %6604 = vmatprep.mubr.msk.bf16.mxu1 %vm841_vm3, %v5862_v34  ;;  %v8250_v34 = vsel %vm7699_vm6, %v1484_v16, %v1485_v40  ;;  %v5854_v16 = vrot.slane %v1364_v28, 9  ;;  %v1489_v39 = vrot.slane %v7272_v2, 5  ;;  %v3882_v13 = vrot.slane %v3880_v59, 4 }
  0xd5   : > { %v3872_v40 = vor.u32 %v3871_v45, %v8234_v29  ;;  %v3904_v38 = vshrl.u32 %v6201_v15, 16  ;;  %v3907_v8 = vshll.u32 %v6201_v15, 16  ;;  %v3917_v53 = vshrl.u32 %v8256_v17, 16  ;;  %v6204_v45 = vld [vmem:[%s7394_s14 + $0x48] sm:$0xf] }
  0xd6   : > { %v8278_v28 = vrot.slane %v3862_v60, 4  ;;  %v8280_v59 = vrot.slane %v3889_v0, 5  ;;  %v8287_v15 = vcombine.low %v3844_v3, %v3854_v18  ;;  %v8293_v60 = vsel %vm7699_vm6, %v5854_v16, %v1489_v39  ;;  %v7273_v0 = vld [vmem:[%s7394_s14 + $0x98] sm:$0x1]  ;;  %v8310_v18 = vld [vmem:[%s7394_s14 + $0x44] sm:$0x1] }
  0xd7   : > { %v1492_v2 = vrot.slane %v7273_v0, 5  ;;  %v8303_v52 = vrot.slane %v3872_v40, 4  ;;  %v1491_v46 = vrot.slane %v1489_v39, 4  ;;  %v3899_v3 = vshll.u32 %v8271_v7, 16  ;;  %v7215_v39 = vld [vmem:[%s7394_s14 + $0x90] sm:$0xff]  }
  0xd8   : > { %v3909_v16 = vrot.slane %v3907_v8, 5  ;;  %v8312_v11 = vrot.slane %v3913_v1, 5  ;;  %v3919_v27 = vrot.slane %v3917_v53, 4  ;;  %v3931_v40 = vshll.u32 %v6204_v45, 16  ;;  %v7275_v7 = vld [vmem:[%s7394_s14 + $0xa4] sm:$0x1] }
  0xd9   : > { %v5855_v0 = vrot.slane %v1365_v32, 9  ;;  %v3923_v32 = vshll.u32 %v8310_v18, 16  ;;  %v1499_v21 = vrot.slane %v7275_v7, 5 }
  0xda   : > { %6761 = vmatmul.mubr.msk.bf16.gmra.mrb[12].mxu0 %vm841_vm3, %v7210_v63  ;;  %v8289_v63 = vrot.slane %v3875_v36, 5  ;;  %v3906_v36 = vrot.slane %v3904_v38, 4  ;;  %v7274_v38 = vld [vmem:[%s7394_s14 + $0xa0] sm:$0xf]  ;;  %v3920_v14 = vor.u32 %v3919_v27, %v8312_v11  ;;  %v3933_v7 = vrot.slane %v3931_v40, 5 }
  0xdb   : > { %6605 = vmatmul.mubr.msk.bf16.vlgmr.msra.gmra.mrb[0].mxu1 %vm841_vm3, %v5863_v10  ;;  %6764 = vmatprep.mubr.msk.bf16.mxu0 %vm841_vm3, %v7211_v23  ;;  %v3886_v10 = vor.u32 %v3885_v12, %v3882_v13  ;;  %v8307_v23 = vld [vmem:[%s7394_s14 + $0x4c] sm:$0xf]  ;;  %v3896_v12 = vor.u32 %v3895_v62, %v8280_v59  ;;  %v3928_v13 = vshrl.u32 %v6204_v45, 16  ;;  %v1496_v8 = vrot.slane %v7274_v38, 5 }
  0xdc   : > { %6608 = vmatprep.mubr.msk.bf16.mxu1 %vm841_vm3, %v5864_v26  ;;  %6637 = vmatpush3.bf16.msra.mxu1 %v7934_v57  ;;  %v7213_v26 = vld [vmem:[%s7394_s14 + $0x84] sm:$0xff]   ;;  %v3937_v1 = vshll.u32 %v8307_v23, 16  ;;  %v3941_v53 = vshrl.u32 %v8307_v23, 16  ;;  %v8330_v62 = vsel %vm7699_vm6, %v1491_v46, %v1492_v2  ;;  %v8332_v45 = vrot.slane %v3899_v3, 5  ;;  %v6207_v57 = vld [vmem:[%s7394_s14 + $0x54] sm:$0xf] }
  0xdd   : > { %6638 = vmatprep.subr.bf16.mxu1 %v7222_v31  ;;  %v8335_v38 = vrot.slane %v3886_v10, 4  ;;  %v3910_v37 = vor.u32 %v3909_v16, %v3906_v36  ;;  %v8344_v2 = vld [vmem:[%s9745_s1 + $0x40] sm:$0xff]   ;;  %v1503_v46 = vrot.slane %v7794_v51, 5  ;;  %v3930_v10 = vrot.slane %v3928_v13, 4  ;;  %v8350_v3 = vld [vmem:[%s7394_s14 + $0x58] sm:$0xf] }
  0xde   : > { %9782 = vst [vmem:[#allocation9_spill] sm:$0xff] %v8344_v2  ;;  %9783 = vst [vmem:[#allocation10_spill] sm:$0xff] %v8350_v3  ;;  %v9784_v36 = vcombine.low %v8098_v22, %v8114_v43  ;;  %v8359_v16 = vsel %vm7699_vm6, %v5855_v0, %v1496_v8  ;;  %v1498_v27 = vrot.slane %v1496_v8, 4  ;;  %v8364_v51 = vrot.slane %v3937_v1, 5 }
  0xdf   : > { %v9785_v13 = vcombine.low %v8102_v41, %v8118_v25  ;;  %v3925_v22 = vrot.slane %v3923_v32, 5  ;;  %v5856_v43 = vrot.slane %v1366_v55, 9  ;;  %v3952_v40 = vshrl.u32 %v6207_v57, 16  ;;  %v7217_v32 = vld [vmem:[%s7394_s14 + $0xa8] sm:$0xff]  }
  0xe0   : > { %6639 = vmatpush3.bf16.msra.mxu1 %v7222_v31  ;;  %v3897_v31 = vrot.slane %v3896_v12, 4  ;;  %v3943_v12 = vrot.slane %v3941_v53, 4  ;;  %v3911_v0 = vrot.slane %v3910_v37, 4  ;;  %v3961_v8 = vshll.u32 %v8350_v3, 16 }
  0xe1   : > { %6886 = vmatprep.subr.bf16.mxu1 %v8344_v2  ;;  %v3965_v1 = vshrl.u32 %v8350_v3, 16  ;;  %v7216_v2 = vld [vmem:[%s7394_s14 + $0x9c] sm:$0xff]   ;;  %v1505_v53 = vrot.slane %v1503_v46, 4  ;;  %v3934_v41 = vor.u32 %v3933_v7, %v3930_v10  ;;  %v3892_v55 = vsel %vm7419_vm2, %v8335_v38, %v8280_v59 }
  0xe2   : > { %6765 = vmatmul.mubr.msk.bf16.gmra.mrb[16].mxu0 %vm841_vm3, %v7213_v26  ;;  %v8362_v26 = vld [vmem:[%s7394_s14 + $0x50] sm:$0x1]  ;;  %v3944_v37 = vor.u32 %v3943_v12, %v8364_v51  ;;  %v8388_v20 = vsel %vm7699_vm6, %v1498_v27, %v1499_v21  ;;  %v8392_v10 = vsel %vm7699_vm6, %v5856_v43, %v1503_v46  ;;  %v8395_v7 = vld [vmem:[%s7394_s14 + $0x5c] sm:$0x1]  ;;  %v3954_v59 = vrot.slane %v3952_v40, 4 }
  0xe3   : > { %6609 = vmatmul.mubr.msk.bf16.gmra.mrb[4].mxu1 %vm841_vm3, %v9784_v36  ;;  %6768 = vmatprep.mubr.msk.bf16.mxu0 %vm841_vm3, %v7215_v39  ;;  %v3955_v39 = vshll.u32 %v6207_v57, 16  ;;  %v3921_v36 = vrot.slane %v3920_v14, 4  ;;  %v3947_v25 = vshll.u32 %v8362_v26, 16  ;;  %v3902_v14 = vsel %vm7419_vm2, %v3897_v31, %v8332_v45  ;;  %v1367_v57 = vld [vmem:[%s7394_s14 + $0xb4] sm:$0xe]  ;;  %9786 = vst [vmem:[#allocation11_spill] sm:$0xff] %v8392_v10 }
  0xe4   : > { %6612 = vmatprep.mubr.msk.bf16.mxu1 %vm841_vm3, %v9785_v13  ;;  %v1510_v13 = vrot.slane %v7817_v42, 5  ;;  %9787 = vst [vmem:[#allocation12_spill] sm:$0xff] %v8395_v7  ;;  %v3916_v45 = vsel %vm7419_vm2, %v3911_v0, %v8312_v11  ;;  %v8402_v42 = vrot.slane %v3961_v8, 5  ;;  %v3967_v12 = vrot.slane %v3965_v1, 4  ;;  %v6210_v21 = vld [vmem:[%s7394_s14 + $0x60] sm:$0xf] }
  0xe5   : > { %v3957_v38 = vrot.slane %v3955_v39, 5  ;;  %v3926_v31 = vsel %vm7419_vm2, %v3921_v36, %v3925_v22  ;;  %v8408_v46 = vsel %vm7699_vm6, %v1505_v53, %v1506_v49  ;;  %v8410_v27 = vrot.slane %v3934_v41, 4  ;;  %v7218_v1 = vld [vmem:[%s7394_s14 + $0xb4] sm:$0xff]   ;;  %v7219_v41 = vld [vmem:[%s7394_s14 + $0xc0] sm:$0xff]  }
  0xe6   : > { %9788 = vst [vmem:[#allocation13_spill] sm:$0xff] %v8408_v46  ;;  %v8412_v43 = vrot.slane %v3947_v25, 5  ;;  %v5857_v11 = vrot.slane %v1367_v57, 9  ;;  %v9789_v22 = vcombine.low %v8122_v6, %v8131_v54  ;;  %v8419_v40 = vrot.slane %v3944_v37, 4  ;;  %v6213_v37 = vld [vmem:[%s7394_s14 + $0x6c] sm:$0xf] }
  0xe7   : > { %v1513_v49 = vrot.slane %v7825_v56, 5  ;;  %v3971_v39 = vshll.u32 %v8395_v7, 16  ;;  %v9790_v0 = vcombine.low %v8126_v44, %v8135_v50  ;;  %v9791_v6 = vsel %vm7419_vm2, %v8303_v52, %v8289_v63  ;;  %v8442_v50 = vld [vmem:[%s7394_s14 + $0x64] sm:$0xf]  ;;  %v8468_v57 = vld [vmem:[%s7394_s14 + $0x70] sm:$0xf] }
  0xe8   : > { %v9792_v54 = vsel %vm7419_vm2, %v8278_v28, %v8234_v29  ;;  %v3958_v44 = vor.u32 %v3957_v38, %v3954_v59  ;;  %9793 = vst [vmem:[#allocation14_spill] sm:$0xff] %v8442_v50  ;;  %v3976_v8 = vshrl.u32 %v6210_v21, 16  ;;  %v8445_v53 = vcombine.low %v3892_v55, %v3902_v14  ;;  %v8451_v28 = vld [vmem:[%s7394_s14 + $0x68] sm:$0x1]  ;;  %9795 = vst [vmem:[#allocation16_spill] sm:$0xff] %v8468_v57 }
  0xe9   : > { %v8437_v36 = vcombine.low %v9792_v54, %v9791_v6  ;;  %v3968_v29 = vor.u32 %v3967_v12, %v8402_v42  ;;  %9794 = vst [vmem:[#allocation15_spill] sm:$0xff] %v8451_v28  ;;  %v3979_v52 = vshll.u32 %v6210_v21, 16  ;;  %v8454_v25 = vcombine.low %v3916_v45, %v3926_v31  ;;  %v6216_v12 = vld [vmem:[%s7394_s14 + $0x78] sm:$0xf]  ;;  %v6219_v6 = vld [vmem:[%s7394_s14 + $0x84] sm:$0xf] }
  0xea   : > { %6769 = vmatmul.mubr.msk.bf16.gmra.mrb[20].mxu0 %vm841_vm3, %v7216_v2  ;;  %v1512_v2 = vrot.slane %v1510_v13, 4  ;;  %v8464_v14 = vsel %vm7699_vm6, %v5857_v11, %v1510_v13  ;;  %v8478_v45 = vrot.slane %v3971_v39, 5  ;;  %v3985_v31 = vshll.u32 %v8442_v50, 16  ;;  %v8483_v13 = vld [vmem:[%s7394_s14 + $0x7c] sm:$0xf] }
  0xeb   : > { %6613 = vmatmul.mubr.msk.bf16.gmra.mrb[8].mxu1 %vm841_vm3, %v9789_v22  ;;  %6772 = vmatprep.mubr.msk.bf16.mxu0 %vm841_vm3, %v7217_v32  ;;  %9796 = vst [vmem:[#allocation17_spill] sm:$0xff] %v8483_v13  ;;  %v8485_v21 = vrot.slane %v3958_v44, 4  ;;  %v8487_v11 = vrot.slane %v3976_v8, 4  ;;  %v3989_v22 = vshrl.u32 %v8442_v50, 16  ;;  %v8492_v54 = vrot.slane %v3968_v29, 4 }
  0xec   : > { %6616 = vmatprep.mubr.msk.bf16.mxu1 %vm841_vm3, %v9790_v0  ;;  %v8476_v38 = vsel %vm7699_vm6, %v1512_v2, %v1513_v49  ;;  %v3995_v0 = vshll.u32 %v8451_v28, 16  ;;  %v3981_v2 = vrot.slane %v3979_v52, 5  ;;  %v4000_v49 = vshrl.u32 %v6213_v37, 16  ;;  %v8495_v32 = vld [vmem:[%s7394_s14 + $0x88] sm:$0xf] }
  0xed   : > { %v4003_v39 = vshll.u32 %v6213_v37, 16  ;;  %9797 = vst [vmem:[#allocation18_spill] sm:$0xff] %v8495_v32  ;;  %v4009_v44 = vshll.u32 %v8468_v57, 16  ;;  %v4013_v8 = vshrl.u32 %v8468_v57, 16  ;;  %v4024_v63 = vshrl.u32 %v6216_v12, 16 }
  0xee   : > { %v4027_v55 = vshll.u32 %v6216_v12, 16  ;;  %v9798_v59 = vcombine.low %v8157_v24, %v8189_v4  ;;  %v4033_v29 = vshll.u32 %v8483_v13, 16  ;;  %v4037_v52 = vshrl.u32 %v8483_v13, 16  ;;  %v7220_v12 = vld [vmem:[%s7394_s14 + $0xcc] sm:$0xff]   ;;  %v8528_v7 = vld [vmem:[%s7394_s14 + $0x94] sm:$0xf] }
  0xef   : > { %v4051_v37 = vshll.u32 %v6219_v6, 16  ;;  %v9799_v56 = vcombine.low %v8182_v61, %v8194_v5  ;;  %v8512_v24 = vrot.slane %v3985_v31, 5  ;;  %v3991_v4 = vrot.slane %v3989_v22, 4  ;;  %v8522_v5 = vld [vmem:[%s7394_s14 + $0x74] sm:$0x1]  ;;  %9800 = vst [vmem:[#allocation19_spill] sm:$0xff] %v8528_v7 }
  0xf0   : > { %v3982_v61 = vor.u32 %v3981_v2, %v8487_v11  ;;  %v4005_v13 = vrot.slane %v4003_v39, 5  ;;  %v6222_v57 = vld [vmem:[%s7394_s14 + $0x90] sm:$0xf]  ;;  %v8525_v31 = vrot.slane %v4009_v44, 5  ;;  %v4015_v22 = vrot.slane %v4013_v8, 4 }
  0xf1   : > { %v4026_v28 = vrot.slane %v4024_v63, 4  ;;  %v4029_v50 = vrot.slane %v4027_v55, 5  ;;  %v8533_v3 = vrot.slane %v4033_v29, 5  ;;  %v4053_v10 = vrot.slane %v4051_v37, 5  ;;  %v8536_v11 = vld [vmem:[%s7394_s14 + $0x8c] sm:$0x1] }
  0xf2   : > { %6773 = vmatmul.mubr.msk.bf16.gmra.mrb[24].mxu0 %vm841_vm3, %v7218_v1  ;;  %v4048_v1 = vshrl.u32 %v6219_v6, 16  ;;  %v4039_v6 = vrot.slane %v4037_v52, 4  ;;  %9802 = vst [vmem:[#allocation21_spill] sm:$0xff] %v8536_v11  ;;  %v4072_v39 = vshrl.u32 %v6222_v57, 16  ;;  %v4075_v44 = vshll.u32 %v6222_v57, 16 }
  0xf3   : > { %6617 = vmatmul.mubr.msk.bf16.gmra.mrb[12].mxu1 %vm841_vm3, %v9798_v59  ;;  %6776 = vmatprep.mubr.msk.bf16.mxu0 %vm841_vm3, %v7219_v41  ;;  %v4057_v41 = vshll.u32 %v8495_v32, 16  ;;  %v4061_v59 = vshrl.u32 %v8495_v32, 16  ;;  %v8531_v32 = vld [vmem:[%s7394_s14 + $0x80] sm:$0x1]  ;;  %v3992_v8 = vor.u32 %v3991_v4, %v8512_v24  ;;  %v4019_v63 = vshll.u32 %v8522_v5, 16 }
  0xf4   : > { %6620 = vmatprep.mubr.msk.bf16.mxu1 %vm841_vm3, %v9799_v56  ;;  %v4002_v56 = vrot.slane %v4000_v49, 4  ;;  %9801 = vst [vmem:[#allocation20_spill] sm:$0xff] %v8531_v32  ;;  %v4050_v46 = vrot.slane %v4048_v1, 4  ;;  %v4081_v55 = vshll.u32 %v8528_v7, 16  ;;  %v4085_v29 = vshrl.u32 %v8528_v7, 16 }
  0xf5   : > { %v8538_v2 = vrot.slane %v4057_v41, 5  ;;  %v4063_v49 = vrot.slane %v4061_v59, 4  ;;  %v4016_v1 = vor.u32 %v4015_v22, %v8525_v31  ;;  %v4030_v37 = vor.u32 %v4029_v50, %v4026_v28 }
  0xf6   : > { %v4006_v52 = vor.u32 %v4005_v13, %v4002_v56  ;;  %v4043_v41 = vshll.u32 %v8531_v32, 16  ;;  %v9803_v57 = vcombine.low %v8198_v33, %v8204_v58  ;;  %v3997_v4 = vrot.slane %v3995_v0, 5  ;;  %v8561_v58 = vld [vmem:[%s7394_s14 + $0x98] sm:$0x1] }
  0xf7   : > { %v4040_v59 = vor.u32 %v4039_v6, %v8533_v3  ;;  %v4054_v7 = vor.u32 %v4053_v10, %v4050_v46  ;;  %v4067_v13 = vshll.u32 %v8536_v11, 16  ;;  %v9804_v50 = vcombine.low %v8208_v48, %v8212_v35  ;;  %v6225_v46 = vld [vmem:[%s7394_s14 + $0x9c] sm:$0xf]  ;;  %v8567_v35 = vld [vmem:[%s7394_s14 + $0xa0] sm:$0xf] }
  0xf8   : > { %v3983_v28 = vrot.slane %v3982_v61, 4  ;;  %v4064_v33 = vor.u32 %v4063_v49, %v8538_v2  ;;  %v4077_v56 = vrot.slane %v4075_v44, 5  ;;  %v4021_v0 = vrot.slane %v4019_v63, 5 }
  0xf9   : > { %v8563_v22 = vrot.slane %v4081_v55, 5  ;;  %v4087_v10 = vrot.slane %v4085_v29, 4  ;;  %v4007_v6 = vrot.slane %v4006_v52, 4  ;;  %v4031_v11 = vrot.slane %v4030_v37, 4  ;;  %v7226_v29 = vld [vmem:[%s9745_s1 + $0x88] sm:$0xff]  }
  0xfa   : > { %6777 = vmatmul.mubr.msk.bf16.gmra.mrb[28].mxu0 %vm841_vm3, %v7220_v12  ;;  %v4074_v12 = vrot.slane %v4072_v39, 4  ;;  %v4045_v48 = vrot.slane %v4043_v41, 5  ;;  %v4055_v61 = vrot.slane %v4054_v7, 4  ;;  %v4069_v32 = vrot.slane %v4067_v13, 5 }
  0xfb   : > { %6621 = vmatmul.mubr.msk.bf16.gmra.mrb[16].mxu1 %vm841_vm3, %v9803_v57  ;;  %6784 = vmatprep.mubr.msk.bf16.mxu0 %vm841_vm3, %v8287_v15  ;;  %v3993_v15 = vrot.slane %v3992_v8, 4  ;;  %v4017_v57 = vrot.slane %v4016_v1, 4  ;;  %v4091_v49 = vshll.u32 %v8561_v58, 16  ;;  %v4065_v39 = vrot.slane %v4064_v33, 4 }
  0xfc   : > { %6624 = vmatprep.mubr.msk.bf16.mxu1 %vm841_vm3, %v9804_v50  ;;  %v4041_v50 = vrot.slane %v4040_v59, 4  ;;  %v4078_v44 = vor.u32 %v4077_v56, %v4074_v12  ;;  %v4096_v8 = vshrl.u32 %v6225_v46, 16  ;;  %v4099_v63 = vshll.u32 %v6225_v46, 16  ;;  %v8593_v59 = vld [vmem:[%s7394_s14 + $0xa4] sm:$0x1] }
  0xfd   : > { %v3974_v55 = vsel %vm7419_vm2, %v8492_v54, %v8478_v45  ;;  %v4088_v52 = vor.u32 %v4087_v10, %v8563_v22  ;;  %v4105_v7 = vshll.u32 %v8567_v35, 16  ;;  %v4109_v1 = vshrl.u32 %v8567_v35, 16 }
  0xfe   : > { %v3988_v37 = vsel %vm7419_vm2, %v3983_v28, %v8512_v24  ;;  %v3998_v45 = vsel %vm7419_vm2, %v3993_v15, %v3997_v4  ;;  %v4012_v54 = vsel %vm7419_vm2, %v4007_v6, %v8525_v31  ;;  %v4022_v41 = vsel %vm7419_vm2, %v4017_v57, %v4021_v0  ;;  %v6281_v28 = vld [vmem:[%s7394_s14 + $0x3c] sm:$0xe] }
  0xff   : > { %v4036_v24 = vsel %vm7419_vm2, %v4031_v11, %v8533_v3  ;;  %v4046_v31 = vsel %vm7419_vm2, %v4041_v50, %v4045_v48  ;;  %v4060_v4 = vsel %vm7419_vm2, %v4055_v61, %v8538_v2  ;;  %v4093_v13 = vrot.slane %v4091_v49, 5  ;;  %v8651_v50 = vld [vmem:[%s7394_s14 + $0xac] sm:$0xf]  ;;  %v6283_v61 = vld [vmem:[%s7394_s14 + $0x54] sm:$0xe] }
 0x100   : > { %v4098_v3 = vrot.slane %v4096_v8, 4  ;;  %v4101_v11 = vrot.slane %v4099_v63, 5  ;;  %v4089_v33 = vrot.slane %v4088_v52, 4  ;;  %v8617_v2 = vrot.slane %v4105_v7, 5 }
 0x101   : > { %v4111_v12 = vrot.slane %v4109_v1, 4  ;;  %v5877_v15 = vcombine.low %v8464_v14, %v8476_v38  ;;  %v9809_v0 = vsel %vm7419_vm2, %v8485_v21, %v8402_v42  ;;  %v8638_v46 = vcombine.low %v3988_v37, %v3998_v45  ;;  %v9811_v37 = vld [vmem:[#allocation11_spill] sm:$0xff]  ;;  %v9812_v45 = vld [vmem:[#allocation13_spill] sm:$0xff]  ;;  %v6234_v14 = vld [vmem:[%s7394_s14 + $0xc0] sm:$0xf] }
 0x102   : > { %6785 = vmatmul.mubr.msk.bf16.vlgmr.msra.gmra.mrb[0].mxu0 %vm841_vm3, %v8437_v36  ;;  %v9805_v36 = vcombine.low %v8246_v9, %v8250_v34  ;;  %v9806_v9 = vcombine.low %v8293_v60, %v8330_v62  ;;  %v4079_v34 = vrot.slane %v4078_v44, 4  ;;  %v4115_v60 = vshll.u32 %v8593_v59, 16  ;;  %v6228_v62 = vld [vmem:[%s7394_s14 + $0xa8] sm:$0xf] }
 0x103   : > { %6817 = vmatpush3.bf16.msra.mxu0 %v8109_v47  ;;  %6788 = vmatprep.mubr.msk.bf16.mxu0 %vm841_vm3, %v8445_v53  ;;  %v4070_v47 = vsel %vm7419_vm2, %v4065_v39, %v4069_v32  ;;  %v9807_v53 = vsel %vm7419_vm2, %v8419_v40, %v8412_v43  ;;  %v9808_v32 = vsel %vm7419_vm2, %v8410_v27, %v8364_v51  ;;  %v6297_v51 = vrot.slane %v6281_v28, 9  ;;  %v6282_v27 = vld [vmem:[%s7394_s14 + $0x48] sm:$0xe] }
 0x104   : > { %6625 = vmatmul.mubr.msk.bf16.gmra.mrb[20].mxu1 %vm841_vm3, %v9805_v36  ;;  %6818 = vmatprep.subr.bf16.mxu0 %v7226_v29  ;;  %v6248_v56 = vcombine.low %v9808_v32, %v9807_v53  ;;  %v6249_v10 = vcombine.low %v9809_v0, %v3974_v55  ;;  %v8640_v6 = vcombine.low %v4012_v54, %v4022_v41  ;;  %v4120_v42 = vshrl.u32 %v6228_v62, 16  ;;  %v9814_v41 = vld [vmem:[#allocation10_spill] sm:$0xff]  ;;  %v5999_v32 = vld [vmem:[%s7394_s14 + $0x90] sm:$0xf] }
 0x105   : > { %6628 = vmatprep.mubr.msk.bf16.mxu1 %vm841_vm3, %v9806_v9  ;;  %v8642_v43 = vcombine.low %v4036_v24, %v4046_v31  ;;  %v8644_v40 = vcombine.low %v4060_v4, %v4070_v47  ;;  %v4084_v57 = vsel %vm7419_vm2, %v4079_v34, %v8563_v22  ;;  %v4102_v48 = vor.u32 %v4101_v11, %v4098_v3  ;;  %v6231_v31 = vld [vmem:[%s7394_s14 + $0xb4] sm:$0xf]  ;;  %v8694_v4 = vld [vmem:[%s7394_s14 + $0xb8] sm:$0xf] }
 0x106   : > { %v4608_v21 = vrot.slane %v8256_v17, 5  ;;  %v4094_v49 = vsel %vm7419_vm2, %v4089_v33, %v4093_v13  ;;  %v4112_v39 = vor.u32 %v4111_v12, %v8617_v2  ;;  %v8658_v44 = vrot.slane %v4115_v60, 5  ;;  %v6284_v33 = vld [vmem:[%s7394_s14 + $0x60] sm:$0xe] }
 0x107   : > { %6819 = vmatpush3.bf16.msra.mxu0 %v7226_v29  ;;  %v4123_v8 = vshll.u32 %v6228_v62, 16  ;;  %v4611_v17 = vrot.slane %v8310_v18, 5  ;;  %v6298_v55 = vrot.slane %v6282_v27, 9  ;;  %v9810_v29 = vcombine.low %v8359_v16, %v8388_v20  ;;  %v8682_v16 = vld [vmem:[%s7394_s14 + $0xb0] sm:$0x1] }
 0x108   : > { %v8664_v22 = vsel %vm7699_vm6, %v6297_v51, %v4608_v21  ;;  %v4610_v63 = vrot.slane %v4608_v21, 4  ;;  %v4129_v52 = vshll.u32 %v8651_v50, 16  ;;  %v4618_v7 = vrot.slane %v8362_v26, 5 }
 0x109   : > { %v6299_v1 = vrot.slane %v6283_v61, 9  ;;  %v9813_v54 = vcombine.low %v9811_v37, %v9812_v45  ;;  %v8679_v18 = vrot.slane %v4102_v48, 4  ;;  %v4622_v36 = vrot.slane %v9814_v41, 5 }
 0x10a   : > { %6789 = vmatmul.mubr.msk.bf16.gmra.mrb[4].mxu0 %vm841_vm3, %v8454_v25  ;;  %v4615_v25 = vrot.slane %v8307_v23, 5  ;;  %v8686_v20 = vsel %vm7699_vm6, %v4610_v63, %v4611_v17  ;;  %v9815_v23 = vld [vmem:[#allocation12_spill] sm:$0xff]  ;;  %v8690_v26 = vcombine.low %v4084_v57, %v4094_v49  ;;  %v8702_v34 = vrot.slane %v4120_v42, 4  ;;  %v6285_v49 = vld [vmem:[%s7394_s14 + $0x6c] sm:$0xe] }
 0x10b   : > { %6792 = vmatprep.mubr.msk.bf16.mxu0 %vm841_vm3, %v6248_v56  ;;  %v4625_v24 = vrot.slane %v9815_v23, 5  ;;  %v6317_v13 = vcombine.low %v8664_v22, %v8686_v20  ;;  %v8704_v3 = vrot.slane %v4123_v8, 5  ;;  %v8708_v11 = vsel %vm7699_vm6, %v6299_v1, %v4622_v36  ;;  %v7223_v56 = vld [vmem:[%s7394_s14 + $0xc] sm:$0xff]   ;;  %v9816_v8 = vld [vmem:[#allocation14_spill] sm:$0xff] }
 0x10c   : > { %6629 = vmatmul.mubr.msk.bf16.gmra.mrb[24].mxu1 %vm841_vm3, %v9810_v29  ;;  %v8700_v9 = vsel %vm7699_vm6, %v6298_v55, %v4615_v25  ;;  %v4617_v47 = vrot.slane %v4615_v25, 4  ;;  %v4624_v28 = vrot.slane %v4622_v36, 4  ;;  %v8711_v12 = vrot.slane %v4112_v39, 4  ;;  %v9817_v17 = vld [vmem:[#allocation15_spill] sm:$0xff]  ;;  %v9819_v1 = vld [vmem:[#allocation4_spill] sm:$0xff] }
 0x10d   : > { %6632 = vmatprep.mubr.msk.bf16.mxu1 %vm841_vm3, %v9813_v54  ;;  %v8713_v60 = vrot.slane %v4129_v52, 5  ;;  %v4133_v62 = vshrl.u32 %v8651_v50, 16  ;;  %v4108_v0 = vsel %vm7419_vm2, %v8679_v18, %v8617_v2  ;;  %v4139_v51 = vshll.u32 %v8682_v16, 16  ;;  %v8760_v36 = vld [vmem:[%s7394_s14 + $0xc4] sm:$0xf] }
 0x10e   : > { %v8718_v53 = vsel %vm7699_vm6, %v4617_v47, %v4618_v7  ;;  %v8731_v57 = vsel %vm7699_vm6, %v4624_v28, %v4625_v24  ;;  %v4144_v48 = vshrl.u32 %v6231_v31, 16  ;;  %v4147_v42 = vshll.u32 %v6231_v31, 16  ;;  %v9818_v7 = vld [vmem:[#allocation3_spill] sm:$0xff]  ;;  %v9820_v24 = vld [vmem:[#allocation16_spill] sm:$0xff]  ;;  %v7224_v47 = vld [vmem:[%s7394_s14 + $0x18] sm:$0xff]  }
 0x10f   : > { %v6318_v27 = vcombine.low %v8700_v9, %v8718_v53  ;;  %v6319_v21 = vcombine.low %v8708_v11, %v8731_v57  ;;  %v6300_v61 = vrot.slane %v6284_v33, 9  ;;  %v4153_v39 = vshll.u32 %v8694_v4, 16  ;;  %v7285_v22 = vld [vmem:[%s7394_s14 + $0xac] sm:$0xf]  ;;  %v7287_v11 = vld [vmem:[%s7394_s14 + $0xb0] sm:$0x1] }
 0x110   : > { %v4629_v63 = vrot.slane %v9816_v8, 5  ;;  %v4632_v55 = vrot.slane %v9817_v17, 5  ;;  %v2505_v29 = vshrl.u32 %v5999_v32, 16  ;;  %v4157_v52 = vshrl.u32 %v8694_v4, 16  ;;  %v7225_v8 = vld [vmem:[%s7394_s14 + $0x24] sm:$0xff]  }
 0x111   : > { %v2508_v25 = vshll.u32 %v5999_v32, 16  ;;  %v2527_v37 = vsel %vm7419_vm2, %v9819_v1, %v9818_v7  ;;  %v6301_v45 = vrot.slane %v6285_v49, 9  ;;  %v4135_v54 = vrot.slane %v4133_v62, 4  ;;  %v8772_v32 = vld [vmem:[%s7394_s14 + $0xbc] sm:$0x1] }
 0x112   : > { %6793 = vmatmul.mubr.msk.bf16.gmra.mrb[8].mxu0 %vm841_vm3, %v6249_v10  ;;  %v4126_v10 = vor.u32 %v8704_v3, %v8702_v34  ;;  %v8757_v38 = vsel %vm7699_vm6, %v6300_v61, %v4629_v63  ;;  %v4146_v41 = vrot.slane %v4144_v48, 4  ;;  %v4636_v31 = vrot.slane %v9820_v24, 5  ;;  %v6286_v49 = vld [vmem:[%s7394_s14 + $0x78] sm:$0xe] }
 0x113   : > { %6796 = vmatprep.mubr.msk.bf16.mxu0 %vm841_vm3, %v8638_v46  ;;  %v2507_v46 = vrot.slane %v2505_v29, 4  ;;  %v2510_v23 = vrot.slane %v2508_v25, 5  ;;  %v4149_v34 = vrot.slane %v4147_v42, 5  ;;  %v8764_v3 = vrot.slane %v4153_v39, 5 }
 0x114   : > { %6633 = vmatmul.mubr.msk.bf16.gmra.mrb[28].mxu1 %vm841_vm3, %v5877_v15  ;;  %v4631_v15 = vrot.slane %v4629_v63, 4  ;;  %v4639_v33 = vrot.slane %v8522_v5, 5  ;;  %v4168_v62 = vshrl.u32 %v6234_v14, 16  ;;  %v4159_v63 = vrot.slane %v4157_v52, 4 }
 0x115   : > { %6640 = vmatprep.mubr.msk.bf16.mxu1 %vm841_vm3, %v7223_v56  ;;  %v4171_v56 = vshll.u32 %v6234_v14, 16  ;;  %v2511_v61 = vor.u32 %v2510_v23, %v2507_v46  ;;  %v4177_v42 = vshll.u32 %v8760_v36, 16  ;;  %v8781_v39 = vsel %vm7699_vm6, %v6301_v45, %v4636_v31  ;;  %v9821_v14 = vld [vmem:[#allocation17_spill] sm:$0xff]  ;;  %v6237_v46 = vld [vmem:[%s7394_s14 + $0xcc] sm:$0xf]  ;;  %v9822_v45 = vld [vmem:[#allocation2_spill] sm:$0xff] }
 0x116   : > { %v8768_v28 = vsel %vm7699_vm6, %v4631_v15, %v4632_v55  ;;  %v4638_v17 = vrot.slane %v4636_v31, 4  ;;  %v4118_v5 = vsel %vm7419_vm2, %v8711_v12, %v8658_v44  ;;  %v4136_v55 = vor.u32 %v4135_v54, %v8713_v60  ;;  %v9823_v23 = vld [vmem:[#allocation9_spill] sm:$0xff]  ;;  %v8810_v31 = vld [vmem:[%s7394_s14 + $0xc8] sm:$0x1] }
 0x117   : > { %v4181_v29 = vshrl.u32 %v8760_v36, 16  ;;  %v2512_v25 = vrot.slane %v2511_v61, 4  ;;  %v4163_v52 = vshll.u32 %v8772_v32, 16  ;;  %v6302_v1 = vrot.slane %v6286_v49, 9 }
 0x118   : > { %v8794_v7 = vsel %vm7699_vm6, %v4638_v17, %v4639_v33  ;;  %v4643_v15 = vrot.slane %v9821_v14, 5  ;;  %v4150_v44 = vor.u32 %v4149_v34, %v4146_v41  ;;  %v4170_v12 = vrot.slane %v4168_v62, 4  ;;  %v8817_v33 = vld [vmem:[%s7394_s14 + $0xd0] sm:$0xf]  ;;  %v7278_v62 = vld [vmem:[%s9745_s1 + $0x48] sm:$0xff]  }
 0x119   : > { %v4160_v24 = vor.u32 %v4159_v63, %v8764_v3  ;;  %v8812_v41 = vrot.slane %v4177_v42, 5  ;;  %v4183_v34 = vrot.slane %v4181_v29, 4  ;;  %v4127_v63 = vrot.slane %v4126_v10, 4  ;;  %v6287_v29 = vld [vmem:[%s7394_s14 + $0x84] sm:$0xe] }
 0x11a   : > { %6797 = vmatmul.mubr.msk.bf16.gmra.mrb[12].mxu0 %vm841_vm3, %v8640_v6  ;;  %v2517_v6 = vsel %vm7419_vm2, %v2512_v25, %v9822_v45  ;;  %v8824_v61 = vsel %vm7699_vm6, %v6302_v1, %v4643_v15  ;;  %v4645_v49 = vrot.slane %v4643_v15, 4  ;;  %v4192_v42 = vshrl.u32 %v6237_v46, 16  ;;  %v7227_v25 = vld [vmem:[%s7394_s14 + $0x30] sm:$0xff]   ;;  %v7228_v1 = vld [vmem:[%s7394_s14 + $0x3c] sm:$0xff]  }
 0x11b   : > { %6800 = vmatprep.mubr.msk.bf16.mxu0 %vm841_vm3, %v8642_v43  ;;  %v4173_v43 = vrot.slane %v4171_v56, 5  ;;  %v4195_v17 = vshll.u32 %v6237_v46, 16  ;;  %v4137_v14 = vrot.slane %v4136_v55, 4  ;;  %v4151_v45 = vrot.slane %v4150_v44, 4  ;;  %v9825_v44 = vld [vmem:[#allocation18_spill] sm:$0xff] }
 0x11c   : > { %6641 = vmatmul.mubr.msk.bf16.vlgmr.msra.gmra.mrb[0].mxu1 %vm841_vm3, %v7224_v47  ;;  %v8814_v47 = vcombine.low %v2517_v6, %v2527_v37  ;;  %v4141_v37 = vrot.slane %v4139_v51, 5  ;;  %v4165_v6 = vrot.slane %v4163_v52, 5  ;;  %v4161_v54 = vrot.slane %v4160_v24, 4 }
 0x11d   : > { %6644 = vmatprep.mubr.msk.bf16.mxu1 %vm841_vm3, %v7225_v8  ;;  %6888 = vmatpush3.bf16.msra.mxu1 %v9823_v23  ;;  %v9824_v8 = vld [vmem:[#allocation20_spill] sm:$0xff]  ;;  %v4174_v15 = vor.u32 %v4173_v43, %v4170_v12  ;;  %v4184_v10 = vor.u32 %v4183_v34, %v8812_v41  ;;  %v4201_v46 = vshll.u32 %v8817_v33, 16  ;;  %v6303_v55 = vrot.slane %v6287_v29, 9  ;;  %v9826_v43 = vld [vmem:[#allocation21_spill] sm:$0xff] }
 0x11e   : > { %6887 = vmatprep.subr.bf16.mxu1 %v7278_v62  ;;  %v4646_v56 = vrot.slane %v9824_v8, 5  ;;  %v4187_v8 = vshll.u32 %v8810_v31, 16  ;;  %v4650_v52 = vrot.slane %v9825_v44, 5  ;;  %v4197_v24 = vrot.slane %v4195_v17, 5 }
 0x11f   : > { %v4205_v12 = vshrl.u32 %v8817_v33, 16  ;;  %v6255_v34 = vcombine.low %v4108_v0, %v4118_v5  ;;  %v4156_v2 = vsel %vm7419_vm2, %v4151_v45, %v8764_v3  ;;  %v8868_v0 = vld [vmem:[%s7394_s14 + $0xd4] sm:$0x1]  ;;  %v4166_v5 = vsel %vm7419_vm2, %v4161_v54, %v4165_v6  ;;  %v6278_v3 = vld [vmem:[%s7394_s14 + $0x18] sm:$0xe]  ;;  %v9830_v45 = vld [vmem:[#allocation7_spill] sm:$0xff] }
 0x120   : > { %v8833_v23 = vsel %vm7699_vm6, %v4645_v49, %v4646_v56  ;;  %v4194_v49 = vrot.slane %v4192_v42, 4  ;;  %v4652_v56 = vrot.slane %v4650_v52, 4  ;;  %v4132_v42 = vsel %vm7419_vm2, %v4127_v63, %v8713_v60  ;;  %v6288_v63 = vld [vmem:[%s7394_s14 + $0x90] sm:$0xe] }
 0x121   : > { %6889 = vmatpush3.bf16.msra.mxu1 %v7278_v62  ;;  %v4653_v62 = vrot.slane %v9826_v43, 5  ;;  %v4189_v18 = vrot.slane %v4187_v8, 5  ;;  %v4175_v17 = vrot.slane %v4174_v15, 4  ;;  %v4185_v29 = vrot.slane %v4184_v10, 4  ;;  %v7230_v8 = vld [vmem:[%s7394_s14 + $0x54] sm:$0xff]  }
 0x122   : > { %6801 = vmatmul.mubr.msk.bf16.gmra.mrb[16].mxu0 %vm841_vm3, %v8644_v40  ;;  %v8856_v40 = vsel %vm7699_vm6, %v6303_v55, %v4650_v52  ;;  %v4211_v6 = vshll.u32 %v8868_v0, 16  ;;  %v7279_v15 = vld [vmem:[%s7394_s14 + $0x1c] sm:$0xf]  ;;  %v8887_v55 = vld [vmem:[%s7394_s14 + $0x24] sm:$0xe]  ;;  %v6304_v44 = vrot.slane %v6288_v63, 9  ;;  %6874 = vmatprep.subr.bf16.mxu1 %v7315_v30 }
 0x123   : > { %6804 = vmatprep.mubr.msk.bf16.mxu0 %vm841_vm3, %v8690_v26  ;;  %v4142_v26 = vsel %vm7419_vm2, %v4137_v14, %v4141_v37  ;;  %v8874_v60 = vsel %vm7699_vm6, %v4652_v56, %v4653_v62  ;;  %v4198_v37 = vor.u32 %v4197_v24, %v4194_v49  ;;  %v4207_v14 = vrot.slane %v4205_v12, 4  ;;  %v9827_v52 = vld [vmem:[#allocation19_spill] sm:$0xff]  ;;  %v6289_v56 = vld [vmem:[%s7394_s14 + $0x9c] sm:$0xe]  ;;  %v8911_v63 = vld [vmem:[%s7394_s14 + $0x30] sm:$0xe] }
 0x124   : > { %6645 = vmatmul.mubr.msk.bf16.gmra.mrb[4].mxu1 %vm841_vm3, %v7227_v25  ;;  %v8877_v25 = vrot.slane %v4201_v46, 5  ;;  %v6256_v54 = vcombine.low %v4132_v42, %v4142_v26  ;;  %v4587_v10 = vrot.slane %v7279_v15, 5  ;;  %v4657_v46 = vrot.slane %v9827_v52, 5  ;;  %v9829_v15 = vld [vmem:[#allocation6_spill] sm:$0xff]  ;;  %v7232_v52 = vld [vmem:[%s7394_s14 + $0x6c] sm:$0xff]  }
 0x125   : > { %6648 = vmatprep.mubr.msk.bf16.mxu1 %vm841_vm3, %v7228_v1  ;;  %v7229_v1 = vld [vmem:[%s7394_s14 + $0x48] sm:$0xff]   ;;  %v4660_v49 = vrot.slane %v8561_v58, 5  ;;  %v6257_v24 = vcombine.low %v4156_v2, %v4166_v5  ;;  %v4180_v12 = vsel %vm7419_vm2, %v4175_v17, %v8812_v41  ;;  %v4190_v43 = vsel %vm7419_vm2, %v4185_v29, %v4189_v18  ;;  %v7280_v18 = vld [vmem:[%s7394_s14 + $0x20] sm:$0x1]  ;;  %v9828_v17 = vld [vmem:[#allocation5_spill] sm:$0xff] }
 0x126   : > { %v6294_v62 = vrot.slane %v6278_v3, 9  ;;  %v8898_v42 = vrot.slane %v4198_v37, 4  ;;  %v4208_v26 = vor.u32 %v4207_v14, %v8877_v25  ;;  %v8903_v58 = vsel %vm7699_vm6, %v6304_v44, %v4657_v46 }
 0x127   : > { %v4659_v2 = vrot.slane %v4657_v46, 4  ;;  %v4213_v41 = vrot.slane %v4211_v6, 5  ;;  %v4590_v5 = vrot.slane %v7280_v18, 5  ;;  %v4594_v29 = vrot.slane %v9828_v17, 5  ;;  %v6291_v46 = vld [vmem:[%s7394_s14 + $0xb4] sm:$0xe] }
 0x128   : > { %v6258_v37 = vcombine.low %v4180_v12, %v4190_v43  ;;  %v4589_v14 = vrot.slane %v4587_v10, 4  ;;  %v8921_v6 = vsel %vm7699_vm6, %v6294_v62, %v4587_v10  ;;  %v4597_v44 = vrot.slane %v9829_v15, 5  ;;  %v7231_v62 = vld [vmem:[%s7394_s14 + $0x60] sm:$0xff]  }
 0x129   : > { %v8916_v3 = vsel %vm7699_vm6, %v4659_v2, %v4660_v49  ;;  %v4204_v49 = vsel %vm7419_vm2, %v8898_v42, %v8877_v25  ;;  %v4209_v12 = vrot.slane %v4208_v26, 4  ;;  %v6296_v43 = vrot.slane %v8911_v63, 9  ;;  %v6292_v63 = vld [vmem:[%s7394_s14 + $0xc0] sm:$0xe] }
 0x12a   : > { %6805 = vmatmul.mubr.msk.bf16.gmra.mrb[20].mxu0 %vm841_vm3, %v6255_v34  ;;  %v6295_v34 = vrot.slane %v8887_v55, 9  ;;  %v4667_v10 = vrot.slane %v8593_v59, 5  ;;  %v4591_v25 = vsel %vm7699_vm6, %v4589_v14, %v4590_v5  ;;  %v4671_v42 = vrot.slane %v8651_v50, 5  ;;  %v9831_v5 = vld [vmem:[#allocation8_spill] sm:$0xff] }
 0x12b   : > { %6808 = vmatprep.mubr.msk.bf16.mxu0 %vm841_vm3, %v6256_v54  ;;  %v6290_v54 = vld [vmem:[%s7394_s14 + $0xa8] sm:$0xe]  ;;  %v4674_v26 = vrot.slane %v8682_v16, 5  ;;  %v6307_v59 = vrot.slane %v6291_v46, 9  ;;  %v4601_v51 = vrot.slane %v9830_v45, 5  ;;  %v4604_v14 = vrot.slane %v9831_v5, 5 }
 0x12c   : > { %6649 = vmatmul.mubr.msk.bf16.gmra.mrb[8].mxu1 %vm841_vm3, %v7229_v1  ;;  %v6305_v1 = vrot.slane %v6289_v56, 9  ;;  %v4596_v56 = vrot.slane %v4594_v29, 4  ;;  %v6306_v18 = vrot.slane %v6290_v54, 9  ;;  %v4681_v54 = vrot.slane %v8772_v32, 5 }
 0x12d   : > { %6652 = vmatprep.mubr.msk.bf16.mxu1 %vm841_vm3, %v7230_v8  ;;  %v4664_v8 = vrot.slane %v8567_v35, 5  ;;  %v4673_v45 = vrot.slane %v4671_v42, 4  ;;  %v6308_v46 = vrot.slane %v6292_v63, 9  ;;  %v6314_v63 = vcombine.low %v8921_v6, %v4591_v25 }
 0x12e   : > { %v8961_v16 = vsel %vm7699_vm6, %v6306_v18, %v4671_v42  ;;  %v4695_v18 = vrot.slane %v8868_v0, 5  ;;  %v4595_v6 = vsel %vm7699_vm6, %v6295_v34, %v4594_v29  ;;  %v4602_v55 = vsel %vm7699_vm6, %v6296_v43, %v4601_v51 }
 0x12f   : > { %v8939_v35 = vsel %vm7699_vm6, %v6305_v1, %v4664_v8  ;;  %v4666_v2 = vrot.slane %v4664_v8, 4  ;;  %v4678_v1 = vrot.slane %v8694_v4, 5  ;;  %v6293_v8 = vld [vmem:[%s7394_s14 + $0xcc] sm:$0xe]  ;;  %v4214_v4 = vsel %vm7419_vm2, %v4209_v12, %v4213_v41 }
 0x130   : > { %v6259_v42 = vcombine.low %v4204_v49, %v4214_v4  ;;  %v5996_v49 = vld [vmem:[%s7394_s14 + $0x84] sm:$0xf]  ;;  %v4598_v4 = vsel %vm7699_vm6, %v4596_v56, %v4597_v44  ;;  %v2562_v20 = vshll.u32 %v7285_v22, 16  ;;  %v2572_v57 = vshll.u32 %v7287_v11, 16 }
 0x131   : > { %v8950_v48 = vsel %vm7699_vm6, %v4666_v2, %v4667_v10  ;;  %v8969_v32 = vsel %vm7699_vm6, %v6307_v59, %v4678_v1  ;;  %v8974_v10 = vsel %vm7699_vm6, %v4673_v45, %v4674_v26  ;;  %v6309_v2 = vrot.slane %v6293_v8, 9  ;;  %v7233_v59 = vld [vmem:[%s7394_s14 + $0x78] sm:$0xff]   ;;  %v7234_v8 = vld [vmem:[%s7394_s14 + $0x84] sm:$0xff]  }
 0x132   : > { %6809 = vmatmul.mubr.msk.bf16.gmra.mrb[24].mxu0 %vm841_vm3, %v6257_v24  ;;  %v6325_v50 = vcombine.low %v8939_v35, %v8950_v48  ;;  %v4680_v24 = vrot.slane %v4678_v1, 4  ;;  %v6326_v41 = vcombine.low %v8961_v16, %v8974_v10  ;;  %v4603_v1 = vrot.slane %v4601_v51, 4  ;;  %v5042_v48 = vld [vmem:[%s9749_s5] sm:$0xff] }
 0x133   : > { %6812 = vmatprep.mubr.msk.bf16.mxu0 %vm841_vm3, %v6258_v37  ;;  %v4688_v37 = vrot.slane %v8810_v31, 5  ;;  %v2481_v17 = vshrl.u32 %v5996_v49, 16  ;;  %v2484_v29 = vshll.u32 %v5996_v49, 16 }
 0x134   : > { %6653 = vmatmul.mubr.msk.bf16.gmra.mrb[12].mxu1 %vm841_vm3, %v7231_v62  ;;  %v4685_v62 = vrot.slane %v8760_v36, 5  ;;  %v8982_v12 = vsel %vm7699_vm6, %v4680_v24, %v4681_v54  ;;  %v4605_v34 = vsel %vm7699_vm6, %v4603_v1, %v4604_v14  ;;  %v7281_v24 = vld [vmem:[%s7394_s14 + $0x88] sm:$0xf] }
 0x135   : > { %6656 = vmatprep.mubr.msk.bf16.mxu1 %vm841_vm3, %v7232_v52  ;;  %v4692_v52 = vrot.slane %v8817_v33, 5  ;;  %v6327_v36 = vcombine.low %v8969_v32, %v8982_v12  ;;  %v6316_v15 = vcombine.low %v4602_v55, %v4605_v34  ;;  %v2483_v44 = vrot.slane %v2481_v17, 4  ;;  %v7237_v34 = vld [vmem:[%s7394_s14 + $0xa8] sm:$0xff]   ;;  %v7238_v17 = vld [vmem:[%s7394_s14 + $0xb4] sm:$0xff]  }
 0x136   : > { %v8990_v31 = vsel %vm7699_vm6, %v6308_v46, %v4685_v62  ;;  %v4687_v26 = vrot.slane %v4685_v62, 4  ;;  %v2490_v46 = vshll.u32 %v7281_v24, 16  ;;  %v2494_v62 = vshrl.u32 %v7281_v24, 16 }
 0x137   : > { %v8996_v54 = vsel %vm7699_vm6, %v6309_v2, %v4692_v52  ;;  %v4694_v33 = vrot.slane %v4692_v52, 4  ;;  %v7235_v2 = vld [vmem:[%s7394_s14 + $0x90] sm:$0xff]   ;;  %v6002_v52 = vld [vmem:[%s7394_s14 + $0x9c] sm:$0xf]  ;;  %v2486_v56 = vrot.slane %v2484_v29, 5 }
 0x138   : > { %v9001_v0 = vsel %vm7699_vm6, %v4687_v26, %v4688_v37  ;;  %v6315_v37 = vcombine.low %v4595_v6, %v4598_v4  ;;  %v2492_v51 = vrot.slane %v2490_v46, 5  ;;  %v2496_v43 = vrot.slane %v2494_v62, 4  ;;  %v6005_v62 = vld [vmem:[%s7394_s14 + $0xa8] sm:$0xf] }
 0x139   : > { %v6328_v5 = vcombine.low %v8990_v31, %v9001_v0  ;;  %v9008_v45 = vsel %vm7699_vm6, %v4694_v33, %v4695_v18  ;;  %v7236_v18 = vld [vmem:[%s7394_s14 + $0x9c] sm:$0xff]   ;;  %v2529_v19 = vshrl.u32 %v6002_v52, 16  ;;  %v2532_v14 = vshll.u32 %v6002_v52, 16  ;;  %v7283_v33 = vld [vmem:[%s7394_s14 + $0x8c] sm:$0x1] }
 0x13a   : > { %6813 = vmatmul.mubr.msk.bf16.gmra.mrb[28].mxu0 %vm841_vm3, %v6259_v42  ;;  %v6329_v25 = vcombine.low %v8996_v54, %v9008_v45  ;;  %v7282_v42 = vld [vmem:[%s7394_s14 + $0xa0] sm:$0xf]  ;;  %v2497_v1 = vor.u32 %v2496_v43, %v2492_v51 }
 0x13b   : > { %6820 = vmatprep.mubr.msk.bf16.mxu0 %vm841_vm3, %v6314_v63  ;;  %v2538_v26 = vshll.u32 %v7282_v42, 16  ;;  %v2487_v63 = vor.u32 %v2486_v56, %v2483_v44  ;;  %v2531_v49 = vrot.slane %v2529_v19, 4  ;;  %v2534_v6 = vrot.slane %v2532_v14, 5 }
 0x13c   : > { %6657 = vmatmul.mubr.msk.bf16.gmra.mrb[16].mxu1 %vm841_vm3, %v7233_v59  ;;  %v2542_v59 = vshrl.u32 %v7282_v42, 16  ;;  %v2498_v24 = vrot.slane %v2497_v1, 4  ;;  %v2553_v44 = vshrl.u32 %v6005_v62, 16  ;;  %v2556_v56 = vshll.u32 %v6005_v62, 16  ;;  %v7239_v1 = vld [vmem:[%s7394_s14 + $0xc0] sm:$0xff]  }
 0x13d   : > { %6660 = vmatprep.mubr.msk.bf16.mxu1 %vm841_vm3, %v7234_v8  ;;  %v2500_v8 = vshll.u32 %v7283_v33, 16  ;;  %v9040_v4 = vrot.slane %v2538_v26, 5  ;;  %v2488_v29 = vrot.slane %v2487_v63, 4  ;;  %v7286_v26 = vld [vmem:[%s7394_s14 + $0xb8] sm:$0xf]  ;;  %v9832_v62 = vcombine.low %v8757_v38, %v8768_v28 }
 0x13e   : > { %v2544_v55 = vrot.slane %v2542_v59, 4  ;;  %v2586_v9 = vshll.u32 %v7286_v26, 16  ;;  %v2590_v53 = vshrl.u32 %v7286_v26, 16  ;;  %v2555_v33 = vrot.slane %v2553_v44, 4 }
 0x13f   : > { %v2502_v46 = vrot.slane %v2500_v8, 5  ;;  %v2493_v43 = vsel %vm7419_vm2, %v2488_v29, %v2492_v51  ;;  %v2558_v8 = vrot.slane %v2556_v56, 5 }
 0x140   : > { %v2592_v29 = vrot.slane %v2590_v53, 4 }
 0x141   : > { %v2503_v19 = vsel %vm7419_vm2, %v2498_v24, %v2502_v46  ;;  %v6011_v24 = vld [vmem:[%s7394_s14 + $0xc0] sm:$0xf] }
 0x142   : > { %6821 = vmatmul.mubr.msk.bf16.vlgmr.msra.gmra.mrb[0].mxu0 %vm841_vm3, %v6315_v37  ;;  %v2535_v37 = vor.u32 %v2534_v6, %v2531_v49  ;;  %v2564_v49 = vrot.slane %v2562_v20, 5  ;;  %v7289_v20 = vld [vmem:[%s7394_s14 + $0xbc] sm:$0x1] }
 0x143   : > { %6824 = vmatprep.mubr.msk.bf16.mxu0 %vm841_vm3, %v6316_v15  ;;  %v7284_v15 = vld [vmem:[%s7394_s14 + $0xa4] sm:$0x1]  ;;  %v2596_v38 = vshll.u32 %v7289_v20, 16 }
 0x144   : > { %6661 = vmatmul.mubr.msk.bf16.gmra.mrb[20].mxu1 %vm841_vm3, %v7235_v2  ;;  %v2545_v2 = vor.u32 %v2544_v55, %v9040_v4  ;;  %v2548_v52 = vshll.u32 %v7284_v15, 16  ;;  %v6028_v55 = vcombine.low %v2493_v43, %v2503_v19  ;;  %v2574_v19 = vrot.slane %v2572_v57, 5 }
 0x145   : > { %6664 = vmatprep.mubr.msk.bf16.mxu1 %vm841_vm3, %v7236_v18  ;;  %v6008_v18 = vld [vmem:[%s7394_s14 + $0xb4] sm:$0xf] }
 0x146   : > { %v2577_v14 = vshrl.u32 %v6008_v18, 16  ;;  %v2580_v42 = vshll.u32 %v6008_v18, 16  ;;  %v2546_v59 = vrot.slane %v2545_v2, 4  ;;  %v2550_v63 = vrot.slane %v2548_v52, 5 }
 0x147   : > { %v2559_v2 = vor.u32 %v2558_v8, %v2555_v33  ;;  %v2604_v52 = vshll.u32 %v6011_v24, 16 }
 0x148   : > { %v2579_v51 = vrot.slane %v2577_v14, 4 }
 0x14a   : > { %6825 = vmatmul.mubr.msk.bf16.gmra.mrb[4].mxu0 %vm841_vm3, %v6317_v13  ;;  %v2566_v13 = vshrl.u32 %v7285_v22, 16 }
 0x14b   : > { %6828 = vmatprep.mubr.msk.bf16.mxu0 %vm841_vm3, %v6318_v27  ;;  %v2536_v27 = vrot.slane %v2535_v37, 4  ;;  %v2551_v37 = vsel %vm7419_vm2, %v2546_v59, %v2550_v63  ;;  %v2598_v59 = vrot.slane %v2596_v38, 5  ;;  %v9833_v63 = vcombine.low %v8781_v39, %v8794_v7  ;;  %v7290_v7 = vld [vmem:[%s7394_s14 + $0xc8] sm:$0x1] }
 0x14c   : > { %6665 = vmatmul.mubr.msk.bf16.gmra.mrb[24].mxu1 %vm841_vm3, %v7237_v34  ;;  %v2568_v6 = vrot.slane %v2566_v13, 4  ;;  %v2582_v34 = vrot.slane %v2580_v42, 5  ;;  %v2560_v13 = vrot.slane %v2559_v2, 4  ;;  %v2606_v42 = vrot.slane %v2604_v52, 5 }
 0x14d   : > { %6668 = vmatprep.mubr.msk.bf16.mxu1 %vm841_vm3, %v7238_v17  ;;  %v2588_v17 = vrot.slane %v2586_v9, 5  ;;  %v2541_v46 = vsel %vm7419_vm2, %v2536_v27, %v9040_v4  ;;  %v7288_v4 = vld [vmem:[%s7394_s14 + $0xc4] sm:$0xf] }
 0x14e   : > { %v2569_v15 = vor.u32 %v2568_v6, %v2564_v49  ;;  %v2610_v18 = vshll.u32 %v7288_v4, 16  ;;  %v2614_v44 = vshrl.u32 %v7288_v4, 16  ;;  %v2583_v56 = vor.u32 %v2582_v34, %v2579_v51 }
 0x14f   : > { %v2593_v22 = vor.u32 %v2592_v29, %v2588_v17  ;;  %v6030_v28 = vcombine.low %v2541_v46, %v2551_v37  ;;  %v2565_v33 = vsel %vm7419_vm2, %v2560_v13, %v2564_v49  ;;  %v9836_v46 = vcombine.low %v8903_v58, %v8916_v3  ;;  %v5044_v58 = vld [vmem:[%s9749_s5 + $0x10] sm:$0xff]  ;;  %v5045_v3 = vld [vmem:[%s9749_s5 + $0x18] sm:$0xff] }
 0x150   : > { %v2570_v43 = vrot.slane %v2569_v15, 4  ;;  %v2612_v26 = vrot.slane %v2610_v18, 5  ;;  %v2616_v9 = vrot.slane %v2614_v44, 4  ;;  %v2584_v53 = vrot.slane %v2583_v56, 4 }
 0x151   : > { %v2594_v27 = vrot.slane %v2593_v22, 4  ;;  %v9156_v35 = vpack.c.bf16 %v5045_v3, %v5044_v58  ;;  %v9181_v22 = vld [vmem:[%s9746_s2] ss:$0 sm:$0xff] }
 0x152   : > { %6829 = vmatmul.mubr.msk.bf16.gmra.mrb[8].mxu0 %vm841_vm3, %v6319_v21  ;;  %v2601_v21 = vshrl.u32 %v6011_v24, 16  ;;  %v2575_v8 = vsel %vm7419_vm2, %v2570_v43, %v2574_v19  ;;  %v2617_v39 = vor.u32 %v2616_v9, %v2612_v26  ;;  %v9835_v24 = vcombine.low %v8856_v40, %v8874_v60  ;;  %v5043_v40 = vld [vmem:[%s9749_s5 + $0x8] sm:$0xff] }
 0x153   : > { %6832 = vmatprep.mubr.msk.bf16.mxu0 %vm841_vm3, %v9832_v62  ;;  %v9146_v60 = vpack.c.bf16 %v5043_v40, %v5042_v48 }
 0x154   : > { %6669 = vmatmul.mubr.msk.bf16.gmra.mrb[28].mxu1 %vm841_vm3, %v7239_v1  ;;  %v2603_v14 = vrot.slane %v2601_v21, 4  ;;  %v9834_v1 = vcombine.low %v8824_v61, %v8833_v23  ;;  %v2599_v61 = vsel %vm7419_vm2, %v2594_v27, %v2598_v59  ;;  %v6031_v23 = vcombine.low %v2565_v33, %v2575_v8 }
 0x155   : > { %6696 = vmatprep.mubr.msk.bf16.mxu1 %vm841_vm3, %v6028_v55  ;;  %v2620_v55 = vshll.u32 %v7290_v7, 16  ;;  %v2618_v29 = vrot.slane %v2617_v39, 4 }
 0x156   : > { %v2607_v6 = vor.u32 %v2606_v42, %v2603_v14 }
 0x157   : > { %v2622_v49 = vrot.slane %v2620_v55, 5 }
 0x158   : > { %v2608_v34 = vrot.slane %v2607_v6, 4 }
 0x159   : > { %v2623_v62 = vsel %vm7419_vm2, %v2618_v29, %v2622_v49 }
 0x15a   : > { %6833 = vmatmul.mubr.msk.bf16.gmra.mrb[12].mxu0 %vm841_vm3, %v9833_v63 }
 0x15b   : > { %6836 = vmatprep.mubr.msk.bf16.mxu0 %vm841_vm3, %v9834_v1 }
 0x15c   : > { %6697 = vmatmul.mubr.msk.bf16.vlgmr.msra.gmra.mrb[20].mxu1 %vm841_vm3, %v8814_v47  ;;  %v2589_v47 = vsel %vm7419_vm2, %v2584_v53, %v2588_v17  ;;  %v2613_v17 = vsel %vm7419_vm2, %v2608_v34, %v2612_v26 }
 0x15d   : > { %6700 = vmatprep.mubr.msk.bf16.mxu1 %vm841_vm3, %v6030_v28  ;;  %v6032_v51 = vcombine.low %v2589_v47, %v2599_v61  ;;  %v6033_v37 = vcombine.low %v2613_v17, %v2623_v62  ;;  %6876 = vmatpush3.bf16.msra.mxu1 %v9146_v60 }
 0x15e   : > { %6877 = vmatprep.subr.bf16.mxu1 %v7315_v30 }
 0x161   : > { %6879 = vmatpush3.bf16.msra.mxu1 %v9156_v35 }
 0x162   : > { %6837 = vmatmul.mubr.msk.bf16.gmra.mrb[16].mxu0 %vm841_vm3, %v9835_v24  ;;  %6880 = vmatprep.subr.bf16.mxu1 %v7315_v30 }
 0x163   : > { %6840 = vmatprep.mubr.msk.bf16.mxu0 %vm841_vm3, %v9836_v46 }
 0x164   : > { %6701 = vmatmul.mubr.msk.bf16.gmra.mrb[24].mxu1 %vm841_vm3, %v6031_v23 }
 0x165   : > { %6704 = vmatprep.mubr.msk.bf16.mxu1 %vm841_vm3, %v6032_v51 }
 0x16a   : > { %6841 = vmatmul.mubr.msk.bf16.gmra.mrb[20].mxu0 %vm841_vm3, %v6325_v50  ;;  %v7317_v50 = vmov 0.0  }
 0x16b   : > { %6844 = vmatprep.mubr.msk.bf16.mxu0 %vm841_vm3, %v6326_v41 }
 0x16c   : > { %6705 = vmatmul.mubr.msk.bf16.gmra.mrb[28].mxu1 %vm841_vm3, %v6033_v37 }
 0x16d   : > { %6860 = vmatprep.mubr.msk.f32.mxu1 %vm7316_vm7, %v7317_v50 }
 0x172   : > { %6845 = vmatmul.mubr.msk.bf16.gmra.mrb[24].mxu0 %vm841_vm3, %v6327_v36 }
 0x173   : > { %6848 = vmatprep.mubr.msk.bf16.mxu0 %vm841_vm3, %v6328_v5 }
 0x17a   : > { %6849 = vmatmul.mubr.msk.bf16.gmra.mrb[28].mxu0 %vm841_vm3, %v6329_v25 }
 0x1ef   : > { %v6642_v16 = vpop.f32.mrb[0].mxu1 }
 0x1f0   : > { %v2033_v32 = vpop.f32.mrb[1].mxu1 }
 0x1f1   : > { %v6643_v10 = vpop.f32.mrb[2].mxu1 }
 0x1f2   : > { %v2036_v41 = vpop.f32.mrb[3].mxu1 }
 0x1f7   : > { %v6646_v12 = vpop.f32.mrb[4].mxu1 }
 0x1f8   : > { %v2049_v36 = vpop.f32.mrb[5].mxu1 }
 0x1f9   : > { %v6647_v31 = vpop.f32.mrb[6].mxu1 }
 0x1fa   : > { %v2052_v54 = vpop.f32.mrb[7].mxu1 }
 0x1ff   : > { %v6650_v0 = vpop.f32.mrb[8].mxu1 }
 0x200   : > { %v2065_v5 = vpop.f32.mrb[9].mxu1 }
 0x201   : > { %v6651_v45 = vpop.f32.mrb[10].mxu1 }
 0x202   : > { %v2068_v25 = vpop.f32.mrb[11].mxu1 }
 0x207   : > { %v9162_v2 = vpop.f32.mrb[12].mxu1 }
 0x208   : > { %v9164_v15 = vpop.f32.mrb[13].mxu1 }
 0x209   : > { %v9166_v11 = vpop.f32.mrb[14].mxu1 }
 0x20a   : > { %v9168_v57 = vpop.f32.mrb[15].mxu1 }
 0x20f   : > { %v9170_v21 = vpop.f32.mrb[16].mxu1 }
 0x210   : > { %v9172_v52 = vpop.f32.mrb[17].mxu1 }
 0x211   : > { %v9174_v4 = vpop.f32.mrb[18].mxu1 }
 0x212   : > { %v9176_v18 = vpop.f32.mrb[19].mxu1 }
 0x215   : > { %v6822_v44 = vpop.f32.mrb[0].mxu0 }
 0x216   : > { %v6890_v56 = vadd.f32 %v6822_v44, %v6642_v16  ;;  %v4844_v20 = vpop.f32.mrb[1].mxu0 }
 0x217   : > { %v6891_v38 = vadd.f32 %v4844_v20, %v2033_v32  ;;  %v6823_v28 = vpop.f32.mrb[2].mxu0 }
 0x218   : > { %v6892_v13 = vadd.f32 %v6823_v28, %v6643_v10  ;;  %v4847_v43 = vpop.f32.mrb[3].mxu0  ;;  %v9187_v42 = vadd.f32 %v6890_v56, %v9181_v22 }
 0x219   : > { %v9184_v19 = vadd.f32 %v6891_v38, %v9181_v22  ;;  %v6893_v14 = vadd.f32 %v4847_v43, %v2036_v41 }
 0x21a   : > { %v9195_v53 = vadd.f32 %v6892_v13, %v9181_v22  ;;  %v5049_v8 = vsel %vm841_vm3, %v9187_v42, 0.0 }
 0x21b   : > { %v9190_v26 = vadd.f32 %v6893_v14, %v9181_v22  ;;  %v5046_v9 = vsel %vm841_vm3, %v9184_v19, 0.0 }
 0x21c   : > { %v5051_v61 = vsel %vm841_vm3, %v9195_v53, 0.0 }
 0x21d   : > { %v5047_v27 = vsel %vm841_vm3, %v9190_v26, 0.0  ;;  %v6826_v59 = vpop.f32.mrb[4].mxu0 }
 0x21e   : > { %v5048_v63 = vadd.f32 %v5047_v27, %v5046_v9  ;;  %v6894_v1 = vadd.f32 %v6826_v59, %v6646_v12  ;;  %v4860_v33 = vpop.f32.mrb[5].mxu0 }
 0x21f   : > { %v6895_v6 = vadd.f32 %v4860_v33, %v2049_v36  ;;  %v6827_v39 = vpop.f32.mrb[6].mxu0 }
 0x220   : > { %v5050_v7 = vadd.f32 %v5049_v8, %v5048_v63  ;;  %v6896_v55 = vadd.f32 %v6827_v39, %v6647_v31  ;;  %v4863_v47 = vpop.f32.mrb[7].mxu0  ;;  %v9207_v29 = vadd.f32 %v6894_v1, %v9181_v22 }
 0x221   : > { %v9204_v23 = vadd.f32 %v6895_v6, %v9181_v22  ;;  %v6897_v51 = vadd.f32 %v4863_v47, %v2052_v54 }
 0x222   : > { %v5052_v34 = vadd.f32 %v5051_v61, %v5050_v7  ;;  %v9215_v17 = vadd.f32 %v6896_v55, %v9181_v22  ;;  %v5057_v3 = vsel %vm841_vm3, %v9207_v29, 0.0 }
 0x223   : > { %v5053_v49 = vsel %vm841_vm3, %v9204_v23, 0.0  ;;  %v9212_v24 = vadd.f32 %v6897_v51, %v9181_v22 }
 0x224   : > { %v5054_v46 = vadd.f32 %v5053_v49, %v5052_v34  ;;  %v5059_v36 = vsel %vm841_vm3, %v9215_v17, 0.0 }
 0x225   : > { %v5055_v62 = vsel %vm841_vm3, %v9212_v24, 0.0  ;;  %v6830_v37 = vpop.f32.mrb[8].mxu0 }
 0x226   : > { %v5056_v48 = vadd.f32 %v5055_v62, %v5054_v46  ;;  %v6898_v40 = vadd.f32 %v6830_v37, %v6650_v0  ;;  %v4876_v58 = vpop.f32.mrb[9].mxu0 }
 0x227   : > { %v6899_v16 = vadd.f32 %v4876_v58, %v2065_v5  ;;  %v6831_v32 = vpop.f32.mrb[10].mxu0 }
 0x228   : > { %v5058_v10 = vadd.f32 %v5057_v3, %v5056_v48  ;;  %v6900_v41 = vadd.f32 %v6831_v32, %v6651_v45  ;;  %v4879_v12 = vpop.f32.mrb[11].mxu0  ;;  %v9227_v56 = vadd.f32 %v6898_v40, %v9181_v22 }
 0x229   : > { %v9224_v31 = vadd.f32 %v6899_v16, %v9181_v22  ;;  %v6901_v54 = vadd.f32 %v4879_v12, %v2068_v25 }
 0x22a   : > { %v5060_v44 = vadd.f32 %v5059_v36, %v5058_v10  ;;  %v9235_v45 = vadd.f32 %v6900_v41, %v9181_v22  ;;  %v5065_v9 = vsel %vm841_vm3, %v9227_v56, 0.0 }
 0x22b   : > { %v5061_v0 = vsel %vm841_vm3, %v9224_v31, 0.0  ;;  %v9232_v5 = vadd.f32 %v6901_v54, %v9181_v22 }
 0x22c   : > { %v5062_v20 = vadd.f32 %v5061_v0, %v5060_v44  ;;  %v5067_v39 = vsel %vm841_vm3, %v9235_v45, 0.0 }
 0x22d   : > { %v5063_v38 = vsel %vm841_vm3, %v9232_v5, 0.0  ;;  %v6834_v28 = vpop.f32.mrb[12].mxu0 }
 0x22e   : > { %v5064_v13 = vadd.f32 %v5063_v38, %v5062_v20  ;;  %v6902_v43 = vadd.f32 %v6834_v28, %v9162_v2  ;;  %v4892_v14 = vpop.f32.mrb[13].mxu0 }
 0x22f   : > { %v6698_v25 = vpop.f32.mrb[20].mxu1  ;;  %v6903_v59 = vadd.f32 %v4892_v14, %v9164_v15  ;;  %v6835_v63 = vpop.f32.mrb[14].mxu0 }
 0x230   : > { %v2851_v27 = vpop.f32.mrb[21].mxu1  ;;  %v5066_v1 = vadd.f32 %v5065_v9, %v5064_v13  ;;  %v6904_v8 = vadd.f32 %v6835_v63, %v9166_v11  ;;  %v4895_v6 = vpop.f32.mrb[15].mxu0  ;;  %v9251_v61 = vadd.f32 %v6902_v43, %v9181_v22 }
 0x231   : > { %v6699_v33 = vpop.f32.mrb[22].mxu1  ;;  %v9247_v7 = vadd.f32 %v6903_v59, %v9181_v22  ;;  %v6905_v55 = vadd.f32 %v4895_v6, %v9168_v57 }
 0x232   : > { %v2854_v2 = vpop.f32.mrb[23].mxu1  ;;  %v5068_v47 = vadd.f32 %v5067_v39, %v5066_v1  ;;  %v9259_v34 = vadd.f32 %v6904_v8, %v9181_v22  ;;  %v5073_v40 = vsel %vm841_vm3, %v9251_v61, 0.0 }
 0x233   : > { %v5069_v15 = vsel %vm841_vm3, %v9247_v7, 0.0  ;;  %v9256_v51 = vadd.f32 %v6905_v55, %v9181_v22 }
 0x234   : > { %v5070_v11 = vadd.f32 %v5069_v15, %v5068_v47  ;;  %v5075_v36 = vsel %vm841_vm3, %v9259_v34, 0.0 }
 0x235   : > { %v5071_v49 = vsel %vm841_vm3, %v9256_v51, 0.0  ;;  %v6838_v46 = vpop.f32.mrb[16].mxu0 }
 0x236   : > { %v5072_v62 = vadd.f32 %v5071_v49, %v5070_v11  ;;  %v6906_v37 = vadd.f32 %v6838_v46, %v9170_v21  ;;  %v4908_v48 = vpop.f32.mrb[17].mxu0 }
 0x237   : > { %v6702_v57 = vpop.f32.mrb[24].mxu1  ;;  %v6907_v3 = vadd.f32 %v4908_v48, %v9172_v52  ;;  %v6839_v16 = vpop.f32.mrb[18].mxu0 }
 0x238   : > { %v2867_v58 = vpop.f32.mrb[25].mxu1  ;;  %v5074_v32 = vadd.f32 %v5073_v40, %v5072_v62  ;;  %v6908_v41 = vadd.f32 %v6839_v16, %v9174_v4  ;;  %v4911_v12 = vpop.f32.mrb[19].mxu0  ;;  %v9275_v20 = vadd.f32 %v6906_v37, %v9181_v22 }
 0x239   : > { %v6703_v10 = vpop.f32.mrb[26].mxu1  ;;  %v9271_v54 = vadd.f32 %v6907_v3, %v9181_v22  ;;  %v6909_v44 = vadd.f32 %v4911_v12, %v9176_v18 }
 0x23a   : > { %v2870_v21 = vpop.f32.mrb[27].mxu1  ;;  %v5076_v0 = vadd.f32 %v5075_v36, %v5074_v32  ;;  %v9283_v28 = vadd.f32 %v6908_v41, %v9181_v22  ;;  %v5081_v63 = vsel %vm841_vm3, %v9275_v20, 0.0 }
 0x23b   : > { %v5077_v52 = vsel %vm841_vm3, %v9271_v54, 0.0  ;;  %v9280_v38 = vadd.f32 %v6909_v44, %v9181_v22 }
 0x23c   : > { %v5078_v4 = vadd.f32 %v5077_v52, %v5076_v0  ;;  %v5083_v11 = vsel %vm841_vm3, %v9283_v28, 0.0 }
 0x23d   : > { %v5079_v13 = vsel %vm841_vm3, %v9280_v38, 0.0  ;;  %v6842_v43 = vpop.f32.mrb[20].mxu0 }
 0x23e   : > { %v5080_v14 = vadd.f32 %v5079_v13, %v5078_v4  ;;  %v6910_v9 = vadd.f32 %v6842_v43, %v6698_v25  ;;  %v4924_v59 = vpop.f32.mrb[21].mxu0 }
 0x23f   : > { %v6706_v18 = vpop.f32.mrb[28].mxu1  ;;  %v6911_v8 = vadd.f32 %v4924_v59, %v2851_v27  ;;  %v6843_v6 = vpop.f32.mrb[22].mxu0 }
 0x240   : > { %v2883_v1 = vpop.f32.mrb[29].mxu1  ;;  %v5082_v39 = vadd.f32 %v5081_v63, %v5080_v14  ;;  %v6912_v47 = vadd.f32 %v6843_v6, %v6699_v33  ;;  %v4927_v15 = vpop.f32.mrb[23].mxu0  ;;  %v9295_v37 = vadd.f32 %v6910_v9, %v9181_v22 }
 0x241   : > { %v6707_v55 = vpop.f32.mrb[30].mxu1  ;;  %v9292_v49 = vadd.f32 %v6911_v8, %v9181_v22  ;;  %v6913_v62 = vadd.f32 %v4927_v15, %v2854_v2 }
 0x242   : > { %v2886_v46 = vpop.f32.mrb[31].mxu1  ;;  %v5084_v25 = vadd.f32 %v5083_v11, %v5082_v39  ;;  %v9303_v40 = vadd.f32 %v6912_v47, %v9181_v22  ;;  %v5089_v12 = vsel %vm841_vm3, %v9295_v37, 0.0 }
 0x243   : > { %v5085_v27 = vsel %vm841_vm3, %v9292_v49, 0.0  ;;  %v9300_v48 = vadd.f32 %v6913_v62, %v9181_v22 }
 0x244   : > { %v5086_v33 = vadd.f32 %v5085_v27, %v5084_v25  ;;  %v5091_v13 = vsel %vm841_vm3, %v9303_v40, 0.0 }
 0x245   : > { %v5087_v3 = vsel %vm841_vm3, %v9300_v48, 0.0  ;;  %v6846_v16 = vpop.f32.mrb[24].mxu0 }
 0x246   : > { %v5088_v32 = vadd.f32 %v5087_v3, %v5086_v33  ;;  %v6914_v2 = vadd.f32 %v6846_v16, %v6702_v57  ;;  %v4940_v41 = vpop.f32.mrb[25].mxu0 }
 0x247   : > { %v6915_v36 = vadd.f32 %v4940_v41, %v2867_v58  ;;  %v6847_v44 = vpop.f32.mrb[26].mxu0 }
 0x248   : > { %v5090_v0 = vadd.f32 %v5089_v12, %v5088_v32  ;;  %v6916_v52 = vadd.f32 %v6847_v44, %v6703_v10  ;;  %v4943_v4 = vpop.f32.mrb[27].mxu0  ;;  %v9315_v59 = vadd.f32 %v6914_v2, %v9181_v22 }
 0x249   : > { %v9312_v43 = vadd.f32 %v6915_v36, %v9181_v22  ;;  %v6917_v14 = vadd.f32 %v4943_v4, %v2870_v21 }
 0x24a   : > { %v5092_v9 = vadd.f32 %v5091_v13, %v5090_v0  ;;  %v9323_v10 = vadd.f32 %v6916_v52, %v9181_v22  ;;  %v5097_v15 = vsel %vm841_vm3, %v9315_v59, 0.0 }
 0x24b   : > { %v5093_v57 = vsel %vm841_vm3, %v9312_v43, 0.0  ;;  %v9320_v58 = vadd.f32 %v6917_v14, %v9181_v22 }
 0x24c   : > { %v5094_v63 = vadd.f32 %v5093_v57, %v5092_v9  ;;  %v5099_v3 = vsel %vm841_vm3, %v9323_v10, 0.0 }
 0x24d   : > { %v5095_v8 = vsel %vm841_vm3, %v9320_v58, 0.0  ;;  %v6850_v6 = vpop.f32.mrb[28].mxu0 }
 0x24e   : > { %v5096_v39 = vadd.f32 %v5095_v8, %v5094_v63  ;;  %v6918_v21 = vadd.f32 %v6850_v6, %v6706_v18  ;;  %v4956_v47 = vpop.f32.mrb[29].mxu0 }
 0x24f   : > { %v6919_v11 = vadd.f32 %v4956_v47, %v2883_v1  ;;  %v6851_v62 = vpop.f32.mrb[30].mxu0 }
 0x250   : > { %v5098_v25 = vadd.f32 %v5097_v15, %v5096_v39  ;;  %v6920_v27 = vadd.f32 %v6851_v62, %v6707_v55  ;;  %v4959_v33 = vpop.f32.mrb[31].mxu0  ;;  %v9335_v41 = vadd.f32 %v6918_v21, %v9181_v22 }
 0x251   : > { %v9332_v16 = vadd.f32 %v6919_v11, %v9181_v22  ;;  %v6921_v32 = vadd.f32 %v4959_v33, %v2886_v46 }
 0x252   : > { %v5100_v2 = vadd.f32 %v5099_v3, %v5098_v25  ;;  %v9343_v55 = vadd.f32 %v6920_v27, %v9181_v22  ;;  %v5105_v46 = vsel %vm841_vm3, %v9335_v41, 0.0 }
 0x253   : > { %v5101_v18 = vsel %vm841_vm3, %v9332_v16, 0.0  ;;  %v9340_v1 = vadd.f32 %v6921_v32, %v9181_v22  ;;  %v5189_v22 = vlaneseq }
 0x254   : > { %v5102_v12 = vadd.f32 %v5101_v18, %v5100_v2  ;;  %v5107_v52 = vsel %vm841_vm3, %v9343_v55, 0.0 }
 0x255   : > { %v5103_v36 = vsel %vm841_vm3, %v9340_v1, 0.0  ;;  %v9357_v39 = vshrl.u32 %v5189_v22, 7 }
 0x256   : > { %v5104_v44 = vadd.f32 %v5103_v36, %v5102_v12 }
 0x257   : > { %v5191_v15 = vsub.s32 0, %v9357_v39  ;;  %v9609_v39 = vld [vmem:[%s9748_s4] ss:$0 sm:$0xff] }
 0x258   : > { %v5106_v0 = vadd.f32 %v5105_v46, %v5104_v44 }
 0x25a   : > { %v5108_v4 = vadd.f32 %v5107_v52, %v5106_v0 }
 0x25c   : > { %v5109_v13 = vrot.slane %v5108_v4, 4 }
 0x25e   : > { %v5110_v14 = vadd.f32 %v5109_v13, %v5108_v4 }
 0x260   : > { %v5111_v9 = vrot.slane %v5110_v14, 2 }
 0x262   : > { %v5112_v57 = vadd.f32 %v5111_v9, %v5110_v14 }
 0x264   : > { %v5113_v63 = vrot.slane %v5112_v57, 1 }
 0x266   : > { %v5114_v8 = vadd.f32 %v5113_v63, %v5112_v57 }
 0x268   : > { %6861 = vmatmul.mubr.msk.f32.vlgmr.msra.gmra.mrb[32].mxu1 %vm841_vm3, %v5114_v8 }
 0x269   : > { %6882 = vmatpush3.bf16.msra.mxu1 %v9146_v60  ;;  %6871 = vmatprep.mubr.msk.f32.mxu1 %vm7316_vm7, %v7317_v50 }
 0x26a   : > { %6883 = vmatprep.subr.bf16.mxu1 %v7315_v30 }
 0x26d   : > { %6885 = vmatpush3.bf16.msra.mxu1 %v9156_v35 }
 0x33b   : > { %v5184_v6 = vpop.f32.mrb[32].mxu1 }
 0x33c   : > { %v6862_v21 = vpop.f32.mrb[33].mxu1  ;;  %v5188_v47 = vmul.f32 0.0009765625, %v5184_v6 }
 0x33e   : > { %v9362_v11 = vrot.slane %v5188_v47, %v5191_v15 }
 0x340   : > { %v9366_v60 = vsub.f32 %v9184_v19, %v9362_v11  ;;  %v9370_v30 = vsub.f32 %v9190_v26, %v9362_v11  ;;  %v9374_v35 = vsub.f32 %v9187_v42, %v9362_v11  ;;  %v9378_v50 = vsub.f32 %v9195_v53, %v9362_v11 }
 0x341   : > { %v9386_v19 = vsub.f32 %v9204_v23, %v9362_v11  ;;  %v9392_v42 = vsub.f32 %v9212_v24, %v9362_v11  ;;  %v9400_v32 = vsub.f32 %v9207_v29, %v9362_v11  ;;  %v9407_v24 = vsub.f32 %v9215_v17, %v9362_v11 }
 0x342   : > { %v5225_v62 = vmul.f32 %v9366_v60, %v9366_v60  ;;  %v5226_v25 = vmul.f32 %v9370_v30, %v9370_v30  ;;  %v5227_v26 = vmul.f32 %v9374_v35, %v9374_v35  ;;  %v5228_v53 = vmul.f32 %v9378_v50, %v9378_v50 }
 0x343   : > { %v5229_v23 = vmul.f32 %v9386_v19, %v9386_v19  ;;  %v5230_v12 = vmul.f32 %v9392_v42, %v9392_v42  ;;  %v9414_v29 = vsub.f32 %v9224_v31, %v9362_v11  ;;  %v5231_v46 = vmul.f32 %v9400_v32, %v9400_v32 }
 0x344   : > { %v5257_v27 = vsel %vm841_vm3, %v5225_v62, 0.0  ;;  %v5258_v33 = vsel %vm841_vm3, %v5226_v25, 0.0  ;;  %v5260_v2 = vsel %vm841_vm3, %v5227_v26, 0.0  ;;  %v5262_v36 = vsel %vm841_vm3, %v5228_v53, 0.0 }
 0x345   : > { %v5259_v3 = vadd.f32 %v5258_v33, %v5257_v27  ;;  %v5264_v0 = vsel %vm841_vm3, %v5229_v23, 0.0  ;;  %v9421_v17 = vsub.f32 %v9232_v5, %v9362_v11  ;;  %v5232_v4 = vmul.f32 %v9407_v24, %v9407_v24 }
 0x346   : > { %v5266_v13 = vsel %vm841_vm3, %v5230_v12, 0.0  ;;  %v9428_v31 = vsub.f32 %v9227_v56, %v9362_v11  ;;  %v5233_v9 = vmul.f32 %v9414_v29, %v9414_v29  ;;  %v5268_v57 = vsel %vm841_vm3, %v5231_v46, 0.0 }
 0x347   : > { %v5261_v18 = vadd.f32 %v5260_v2, %v5259_v3  ;;  %v9435_v5 = vsub.f32 %v9235_v45, %v9362_v11  ;;  %v5234_v8 = vmul.f32 %v9421_v17, %v9421_v17  ;;  %v5270_v22 = vsel %vm841_vm3, %v5232_v4, 0.0 }
 0x348   : > { %v9442_v56 = vsub.f32 %v9247_v7, %v9362_v11  ;;  %v5235_v21 = vmul.f32 %v9428_v31, %v9428_v31  ;;  %v5272_v47 = vsel %vm841_vm3, %v5233_v9, 0.0  ;;  %v9449_v45 = vsub.f32 %v9256_v51, %v9362_v11 }
 0x349   : > { %v5263_v44 = vadd.f32 %v5262_v36, %v5261_v18  ;;  %v5236_v25 = vmul.f32 %v9435_v5, %v9435_v5  ;;  %v5274_v26 = vsel %vm841_vm3, %v5234_v8, 0.0  ;;  %v9456_v7 = vsub.f32 %v9251_v61, %v9362_v11 }
 0x34a   : > { %v5237_v27 = vmul.f32 %v9442_v56, %v9442_v56  ;;  %v5276_v33 = vsel %vm841_vm3, %v5235_v21, 0.0  ;;  %v9463_v51 = vsub.f32 %v9259_v34, %v9362_v11  ;;  %v5238_v23 = vmul.f32 %v9449_v45, %v9449_v45 }
 0x34b   : > { %v5265_v52 = vadd.f32 %v5264_v0, %v5263_v44  ;;  %v5278_v2 = vsel %vm841_vm3, %v5236_v25, 0.0  ;;  %v9470_v61 = vsub.f32 %v9271_v54, %v9362_v11  ;;  %v5239_v12 = vmul.f32 %v9456_v7, %v9456_v7 }
 0x34c   : > { %v5280_v36 = vsel %vm841_vm3, %v5237_v27, 0.0  ;;  %v9477_v34 = vsub.f32 %v9280_v38, %v9362_v11  ;;  %v5240_v46 = vmul.f32 %v9463_v51, %v9463_v51  ;;  %v5282_v0 = vsel %vm841_vm3, %v5238_v23, 0.0 }
 0x34d   : > { %v5267_v14 = vadd.f32 %v5266_v13, %v5265_v52  ;;  %v9484_v54 = vsub.f32 %v9275_v20, %v9362_v11  ;;  %v5241_v4 = vmul.f32 %v9470_v61, %v9470_v61  ;;  %v5284_v13 = vsel %vm841_vm3, %v5239_v12, 0.0 }
 0x34e   : > { %v9491_v38 = vsub.f32 %v9283_v28, %v9362_v11  ;;  %v5242_v9 = vmul.f32 %v9477_v34, %v9477_v34  ;;  %v9498_v20 = vsub.f32 %v9292_v49, %v9362_v11  ;;  %v9505_v28 = vsub.f32 %v9300_v48, %v9362_v11 }
 0x34f   : > { %v5269_v63 = vadd.f32 %v5268_v57, %v5267_v14  ;;  %v5286_v57 = vsel %vm841_vm3, %v5240_v46, 0.0  ;;  %v5243_v8 = vmul.f32 %v9484_v54, %v9484_v54  ;;  %v9512_v49 = vsub.f32 %v9295_v37, %v9362_v11 }
 0x350   : > { %v5244_v21 = vmul.f32 %v9491_v38, %v9491_v38  ;;  %v5245_v25 = vmul.f32 %v9498_v20, %v9498_v20  ;;  %v9519_v48 = vsub.f32 %v9303_v40, %v9362_v11  ;;  %v5246_v27 = vmul.f32 %v9505_v28, %v9505_v28 }
 0x351   : > { %v5271_v6 = vadd.f32 %v5270_v22, %v5269_v63  ;;  %v5288_v22 = vsel %vm841_vm3, %v5241_v4, 0.0  ;;  %v9526_v37 = vsub.f32 %v9312_v43, %v9362_v11  ;;  %v5247_v23 = vmul.f32 %v9512_v49, %v9512_v49 }
 0x352   : > { %v9533_v40 = vsub.f32 %v9320_v58, %v9362_v11  ;;  %v5248_v12 = vmul.f32 %v9519_v48, %v9519_v48  ;;  %v9540_v43 = vsub.f32 %v9315_v59, %v9362_v11  ;;  %v9547_v58 = vsub.f32 %v9323_v10, %v9362_v11 }
 0x353   : > { %v5273_v62 = vadd.f32 %v5272_v47, %v5271_v6  ;;  %v5290_v47 = vsel %vm841_vm3, %v5242_v9, 0.0  ;;  %v5249_v46 = vmul.f32 %v9526_v37, %v9526_v37  ;;  %v9554_v59 = vsub.f32 %v9332_v16, %v9362_v11 }
 0x354   : > { %v5250_v4 = vmul.f32 %v9533_v40, %v9533_v40  ;;  %v5251_v9 = vmul.f32 %v9540_v43, %v9540_v43  ;;  %v9561_v10 = vsub.f32 %v9340_v1, %v9362_v11  ;;  %v9568_v16 = vsub.f32 %v9335_v41, %v9362_v11 }
 0x355   : > { %v5275_v53 = vadd.f32 %v5274_v26, %v5273_v62  ;;  %v5292_v26 = vsel %vm841_vm3, %v5243_v8, 0.0  ;;  %v5252_v8 = vmul.f32 %v9547_v58, %v9547_v58  ;;  %v9575_v1 = vsub.f32 %v9343_v55, %v9362_v11 }
 0x356   : > { %v5255_v41 = vmul.f32 %v9568_v16, %v9568_v16 }
 0x357   : > { %v5277_v3 = vadd.f32 %v5276_v33, %v5275_v53  ;;  %v5294_v33 = vsel %vm841_vm3, %v5244_v21, 0.0  ;;  %v5253_v21 = vmul.f32 %v9554_v59, %v9554_v59 }
 0x358   : > { %v5316_v55 = vsel %vm841_vm3, %v5255_v41, 0.0 }
 0x359   : > { %v5279_v18 = vadd.f32 %v5278_v2, %v5277_v3  ;;  %v5296_v2 = vsel %vm841_vm3, %v5245_v25, 0.0  ;;  %v5254_v25 = vmul.f32 %v9561_v10, %v9561_v10 }
 0x35b   : > { %v5281_v44 = vadd.f32 %v5280_v36, %v5279_v18  ;;  %v5298_v36 = vsel %vm841_vm3, %v5246_v27, 0.0  ;;  %v5312_v27 = vsel %vm841_vm3, %v5253_v21, 0.0 }
 0x35d   : > { %v5283_v52 = vadd.f32 %v5282_v0, %v5281_v44  ;;  %v5300_v0 = vsel %vm841_vm3, %v5247_v23, 0.0  ;;  %v5314_v23 = vsel %vm841_vm3, %v5254_v25, 0.0 }
 0x35f   : > { %v5285_v14 = vadd.f32 %v5284_v13, %v5283_v52  ;;  %v5302_v13 = vsel %vm841_vm3, %v5248_v12, 0.0 }
 0x361   : > { %v5287_v63 = vadd.f32 %v5286_v57, %v5285_v14  ;;  %v5304_v57 = vsel %vm841_vm3, %v5249_v46, 0.0 }
 0x363   : > { %v5289_v6 = vadd.f32 %v5288_v22, %v5287_v63  ;;  %v5306_v22 = vsel %vm841_vm3, %v5250_v4, 0.0 }
 0x365   : > { %v5291_v62 = vadd.f32 %v5290_v47, %v5289_v6  ;;  %v5308_v47 = vsel %vm841_vm3, %v5251_v9, 0.0 }
 0x367   : > { %v5293_v53 = vadd.f32 %v5292_v26, %v5291_v62  ;;  %v5310_v26 = vsel %vm841_vm3, %v5252_v8, 0.0 }
 0x369   : > { %v5295_v3 = vadd.f32 %v5294_v33, %v5293_v53 }
 0x36b   : > { %v5297_v18 = vadd.f32 %v5296_v2, %v5295_v3  ;;  %v5256_v3 = vmul.f32 %v9575_v1, %v9575_v1 }
 0x36d   : > { %v5299_v44 = vadd.f32 %v5298_v36, %v5297_v18  ;;  %v5318_v18 = vsel %vm841_vm3, %v5256_v3, 0.0 }
 0x36f   : > { %v5301_v52 = vadd.f32 %v5300_v0, %v5299_v44 }
 0x371   : > { %v5303_v14 = vadd.f32 %v5302_v13, %v5301_v52 }
 0x373   : > { %v5305_v63 = vadd.f32 %v5304_v57, %v5303_v14 }
 0x375   : > { %v5307_v6 = vadd.f32 %v5306_v22, %v5305_v63  ;;  %v9596_v22 = vld [vmem:[%s9747_s3] ss:$0 sm:$0xff] }
 0x377   : > { %v5309_v62 = vadd.f32 %v5308_v47, %v5307_v6 }
 0x379   : > { %v5311_v53 = vadd.f32 %v5310_v26, %v5309_v62 }
 0x37b   : > { %v5313_v33 = vadd.f32 %v5312_v27, %v5311_v53 }
 0x37d   : > { %v5315_v2 = vadd.f32 %v5314_v23, %v5313_v33 }
 0x37f   : > { %v5317_v11 = vadd.f32 %v5316_v55, %v5315_v2 }
 0x381   : > { %v5319_v12 = vadd.f32 %v5318_v18, %v5317_v11 }
 0x383   : > { %v5320_v36 = vrot.slane %v5319_v12, 4 }
 0x385   : > { %v5321_v44 = vadd.f32 %v5320_v36, %v5319_v12 }
 0x387   : > { %v5322_v46 = vrot.slane %v5321_v44, 2 }
 0x389   : > { %v5323_v0 = vadd.f32 %v5322_v46, %v5321_v44 }
 0x38b   : > { %v5324_v52 = vrot.slane %v5323_v0, 1 }
 0x38d   : > { %v5325_v4 = vadd.f32 %v5324_v52, %v5323_v0 }
 0x38f   : > { %6872 = vmatmul.mubr.msk.f32.vlgmr.msra.gmra.mrb[34].mxu1 %vm841_vm3, %v5325_v4 }
 0x462   : > { %v5395_v13 = vpop.f32.mrb[34].mxu1 }
 0x463   : > { %v5399_v14 = vmul.f32 0.0009765625, %v5395_v13  ;;  %v6873_v9 = vpop.f32.mrb[35].mxu1 }
 0x465   : > { %v5400_v57 = vadd.f32 1e-05, %v5399_v14 }
 0x467   : > { %7240 = vrsqrt.f32 %v5400_v57 }
 0x471   : > { %v7241_v63 = vpop.eup %7240 }
 0x472   : > { %v9591_v8 = vrot.slane %v7241_v63, %v5191_v15 }
 0x474   : > { %v5422_v6 = vmul.f32 %v9591_v8, %v9470_v61  ;;  %v5406_v21 = vmul.f32 %v9591_v8, %v9366_v60  ;;  %v5423_v47 = vmul.f32 %v9591_v8, %v9477_v34  ;;  %v5407_v62 = vmul.f32 %v9591_v8, %v9370_v30 }
 0x475   : > { %v5424_v15 = vmul.f32 %v9591_v8, %v9484_v54  ;;  %v5408_v61 = vmul.f32 %v9591_v8, %v9374_v35  ;;  %v5425_v54 = vmul.f32 %v9591_v8, %v9491_v38  ;;  %v5409_v35 = vmul.f32 %v9591_v8, %v9378_v50 }
 0x476   : > { %v5461_v25 = vmul.f32 %v9596_v22, %v5422_v6  ;;  %v5445_v60 = vmul.f32 %v9596_v22, %v5406_v21  ;;  %v5462_v34 = vmul.f32 %v9596_v22, %v5423_v47  ;;  %v5446_v26 = vmul.f32 %v9596_v22, %v5407_v62 }
 0x477   : > { %v5463_v41 = vmul.f32 %v9596_v22, %v5424_v15  ;;  %v5447_v27 = vmul.f32 %v9596_v22, %v5408_v61  ;;  %v5464_v18 = vmul.f32 %v9596_v22, %v5425_v54  ;;  %v5448_v12 = vmul.f32 %v9596_v22, %v5409_v35 }
 0x478   : > { %v5500_v30 = vadd.f32 %v9609_v39, %v5461_v25  ;;  %v5484_v53 = vadd.f32 %v9609_v39, %v5445_v60  ;;  %v5501_v23 = vadd.f32 %v9609_v39, %v5462_v34  ;;  %v5485_v2 = vadd.f32 %v9609_v39, %v5446_v26 }
 0x479   : > { %v5502_v55 = vadd.f32 %v9609_v39, %v5463_v41  ;;  %v5486_v11 = vadd.f32 %v9609_v39, %v5447_v27  ;;  %v5426_v50 = vmul.f32 %v9591_v8, %v9498_v20  ;;  %v5410_v44 = vmul.f32 %v9591_v8, %v9386_v19 }
 0x47a   : > { %v5532_v33 = vmax.f32 %v5500_v30, 0.0  ;;  %v5516_v3 = vmax.f32 %v5484_v53, 0.0  ;;  %v5533_v38 = vmax.f32 %v5501_v23, 0.0  ;;  %v5517_v36 = vmax.f32 %v5485_v2, 0.0 }
 0x47b   : > { %v5534_v46 = vmax.f32 %v5502_v55, 0.0  ;;  %v5503_v0 = vadd.f32 %v9609_v39, %v5464_v18  ;;  %v5487_v52 = vadd.f32 %v9609_v39, %v5448_v12  ;;  %v5427_v4 = vmul.f32 %v9591_v8, %v9505_v28 }
 0x47c   : > { %5580 = vxpose.xlu1.b32.start [1/16] (narrow) %v5532_v33, 32  ;;  %5548 = vxpose.xlu0.b32.start [1/16] (narrow) %v5516_v3, 32  ;;  %v5518_v13 = vmax.f32 %v5486_v11, 0.0  ;;  %v5465_v14 = vmul.f32 %v9596_v22, %v5426_v50  ;;  %v5449_v9 = vmul.f32 %v9596_v22, %v5410_v44  ;;  %v5411_v20 = vmul.f32 %v9591_v8, %v9392_v42 }
 0x47d   : > { %v5535_v19 = vmax.f32 %v5503_v0, 0.0  ;;  %v5466_v57 = vmul.f32 %v9596_v22, %v5427_v4  ;;  %v5428_v63 = vmul.f32 %v9591_v8, %v9512_v49  ;;  %v5412_v6 = vmul.f32 %v9591_v8, %v9400_v32 }
 0x47e   : > { %v5519_v28 = vmax.f32 %v5487_v52, 0.0  ;;  %v5504_v21 = vadd.f32 %v9609_v39, %v5465_v14  ;;  %v5488_v47 = vadd.f32 %v9609_v39, %v5449_v9  ;;  %v5450_v62 = vmul.f32 %v9596_v22, %v5411_v20 }
 0x47f   : > { %v5505_v42 = vadd.f32 %v9609_v39, %v5466_v57  ;;  %v5467_v15 = vmul.f32 %v9596_v22, %v5428_v63  ;;  %v5451_v61 = vmul.f32 %v9596_v22, %v5412_v6  ;;  %v5429_v49 = vmul.f32 %v9591_v8, %v9519_v48 }
 0x480   : > { %5581 = vxpose.xlu1.b32.cont [2/16] (narrow) %v5533_v38, 32  ;;  %5549 = vxpose.xlu0.b32.cont [2/16] (narrow) %v5517_v36, 32  ;;  %v5536_v25 = vmax.f32 %v5504_v21, 0.0  ;;  %v5520_v32 = vmax.f32 %v5488_v47, 0.0  ;;  %v5489_v60 = vadd.f32 %v9609_v39, %v5450_v62  ;;  %v5413_v34 = vmul.f32 %v9591_v8, %v9407_v24 }
 0x481   : > { %v5537_v26 = vmax.f32 %v5505_v42, 0.0  ;;  %v5506_v30 = vadd.f32 %v9609_v39, %v5467_v15  ;;  %v5490_v53 = vadd.f32 %v9609_v39, %v5451_v61  ;;  %v5468_v41 = vmul.f32 %v9596_v22, %v5429_v49 }
 0x482   : > { %v5521_v27 = vmax.f32 %v5489_v60, 0.0  ;;  %v5452_v54 = vmul.f32 %v9596_v22, %v5413_v34  ;;  %v5430_v48 = vmul.f32 %v9591_v8, %v9526_v37  ;;  %v5414_v35 = vmul.f32 %v9591_v8, %v9414_v29 }
 0x483   : > { %v5538_v24 = vmax.f32 %v5506_v30, 0.0  ;;  %v5522_v33 = vmax.f32 %v5490_v53, 0.0  ;;  %v5507_v3 = vadd.f32 %v9609_v39, %v5468_v41  ;;  %v5431_v23 = vmul.f32 %v9591_v8, %v9533_v40 }
 0x484   : > { %5582 = vxpose.xlu1.b32.cont [3/16] (narrow) %v5534_v46, 32  ;;  %5550 = vxpose.xlu0.b32.cont [3/16] (narrow) %v5518_v13, 32  ;;  %v5491_v2 = vadd.f32 %v9609_v39, %v5452_v54  ;;  %v5469_v55 = vmul.f32 %v9596_v22, %v5430_v48  ;;  %v5453_v11 = vmul.f32 %v9596_v22, %v5414_v35 }
 0x485   : > { %v5415_v37 = vmul.f32 %v9591_v8, %v9421_v17  ;;  %v5539_v29 = vmax.f32 %v5507_v3, 0.0  ;;  %v5470_v18 = vmul.f32 %v9596_v22, %v5431_v23  ;;  %v5432_v12 = vmul.f32 %v9591_v8, %v9540_v43 }
 0x486   : > { %v5416_v40 = vmul.f32 %v9591_v8, %v9428_v31  ;;  %v5523_v38 = vmax.f32 %v5491_v2, 0.0  ;;  %v5508_v36 = vadd.f32 %v9609_v39, %v5469_v55  ;;  %v5492_v50 = vadd.f32 %v9609_v39, %v5453_v11 }
 0x487   : > { %v5454_v44 = vmul.f32 %v9596_v22, %v5415_v37  ;;  %v5509_v17 = vadd.f32 %v9609_v39, %v5470_v18  ;;  %v5471_v46 = vmul.f32 %v9596_v22, %v5432_v12  ;;  %v5433_v43 = vmul.f32 %v9591_v8, %v9547_v58 }
 0x488   : > { %5583 = vxpose.xlu1.b32.cont [4/16] (narrow) %v5535_v19, 32  ;;  %5551 = vxpose.xlu0.b32.cont [4/16] (narrow) %v5519_v28, 32  ;;  %v5455_v0 = vmul.f32 %v9596_v22, %v5416_v40  ;;  %v5540_v52 = vmax.f32 %v5508_v36, 0.0  ;;  %v5524_v31 = vmax.f32 %v5492_v50, 0.0  ;;  %v5417_v13 = vmul.f32 %v9591_v8, %v9435_v5 }
 0x489   : > { %v5493_v4 = vadd.f32 %v9609_v39, %v5454_v44  ;;  %v5541_v14 = vmax.f32 %v5509_v17, 0.0  ;;  %v5510_v9 = vadd.f32 %v9609_v39, %v5471_v46  ;;  %v5472_v19 = vmul.f32 %v9596_v22, %v5433_v43 }
 0x48a   : > { %v5494_v20 = vadd.f32 %v9609_v39, %v5455_v0  ;;  %v5456_v63 = vmul.f32 %v9596_v22, %v5417_v13  ;;  %v5434_v58 = vmul.f32 %v9591_v8, %v9554_v59  ;;  %v5418_v6 = vmul.f32 %v9591_v8, %v9442_v56 }
 0x48b   : > { %v5525_v57 = vmax.f32 %v5493_v4, 0.0  ;;  %v5542_v5 = vmax.f32 %v5510_v9, 0.0  ;;  %v5511_v21 = vadd.f32 %v9609_v39, %v5472_v19  ;;  %v5435_v47 = vmul.f32 %v9591_v8, %v9561_v10 }
 0x48c   : > { %5584 = vxpose.xlu1.b32.cont [5/16] (narrow) %v5536_v25, 32  ;;  %5552 = vxpose.xlu0.b32.cont [5/16] (narrow) %v5520_v32, 32  ;;  %v5526_v28 = vmax.f32 %v5494_v20, 0.0  ;;  %v5495_v62 = vadd.f32 %v9609_v39, %v5456_v63  ;;  %v5473_v42 = vmul.f32 %v9596_v22, %v5434_v58  ;;  %v5457_v15 = vmul.f32 %v9596_v22, %v5418_v6 }
 0x48d   : > { %v5419_v59 = vmul.f32 %v9591_v8, %v9449_v45  ;;  %v5543_v56 = vmax.f32 %v5511_v21, 0.0  ;;  %v5474_v61 = vmul.f32 %v9596_v22, %v5435_v47  ;;  %v5436_v49 = vmul.f32 %v9591_v8, %v9568_v16 }
 0x48e   : > { %v5420_v10 = vmul.f32 %v9591_v8, %v9456_v7  ;;  %v5527_v25 = vmax.f32 %v5495_v62, 0.0  ;;  %v5512_v32 = vadd.f32 %v9609_v39, %v5473_v42  ;;  %v5496_v60 = vadd.f32 %v9609_v39, %v5457_v15 }
 0x48f   : > { %v5458_v34 = vmul.f32 %v9596_v22, %v5419_v59  ;;  %v5513_v45 = vadd.f32 %v9609_v39, %v5474_v61  ;;  %v5437_v16 = vmul.f32 %v9591_v8, %v9575_v1 }
 0x490   : > { %5585 = vxpose.xlu1.b32.cont [6/16] (narrow) %v5537_v26, 32  ;;  %5553 = vxpose.xlu0.b32.cont [6/16] (narrow) %v5521_v27, 32  ;;  %v5475_v26 = vmul.f32 %v9596_v22, %v5436_v49  ;;  %v5459_v30 = vmul.f32 %v9596_v22, %v5420_v10  ;;  %v5544_v53 = vmax.f32 %v5512_v32, 0.0  ;;  %v5528_v7 = vmax.f32 %v5496_v60, 0.0 }
 0x491   : > { %v5497_v41 = vadd.f32 %v9609_v39, %v5458_v34  ;;  %v5421_v27 = vmul.f32 %v9591_v8, %v9463_v51  ;;  %v5476_v48 = vmul.f32 %v9596_v22, %v5437_v16  ;;  %v5545_v35 = vmax.f32 %v5513_v45, 0.0 }
 0x492   : > { %v5514_v54 = vadd.f32 %v9609_v39, %v5475_v26 }
 0x493   : > { %v5460_v1 = vmul.f32 %v9596_v22, %v5421_v27  ;;  %v5515_v2 = vadd.f32 %v9609_v39, %v5476_v48 }
 0x494   : > { %5586 = vxpose.xlu1.b32.cont [7/16] (narrow) %v5538_v24, 32  ;;  %5554 = vxpose.xlu0.b32.cont [7/16] (narrow) %v5522_v33, 32  ;;  %v5529_v24 = vmax.f32 %v5497_v41, 0.0  ;;  %v5498_v33 = vadd.f32 %v9609_v39, %v5459_v30  ;;  %v5546_v3 = vmax.f32 %v5514_v54, 0.0 }
 0x495   : > { %v5499_v51 = vadd.f32 %v9609_v39, %v5460_v1  ;;  %v5547_v8 = vmax.f32 %v5515_v2, 0.0 }
 0x496   : > { %v5530_v23 = vmax.f32 %v5498_v33, 0.0 }
 0x497   : > { %v5531_v55 = vmax.f32 %v5499_v51, 0.0 }
 0x498   : > { %5587 = vxpose.xlu1.b32.cont [8/16] (narrow) %v5539_v29, 32  ;;  %5555 = vxpose.xlu0.b32.cont [8/16] (narrow) %v5523_v38, 32 }
 0x49c   : > { %5588 = vxpose.xlu1.b32.cont [9/16] (narrow) %v5540_v52, 32  ;;  %5556 = vxpose.xlu0.b32.cont [9/16] (narrow) %v5524_v31, 32 }
 0x4a0   : > { %5589 = vxpose.xlu1.b32.cont [10/16] (narrow) %v5541_v14, 32  ;;  %5557 = vxpose.xlu0.b32.cont [10/16] (narrow) %v5525_v57, 32 }
 0x4a4   : > { %5590 = vxpose.xlu1.b32.cont [11/16] (narrow) %v5542_v5, 32  ;;  %5558 = vxpose.xlu0.b32.cont [11/16] (narrow) %v5526_v28, 32 }
 0x4a8   : > { %5591 = vxpose.xlu1.b32.cont [12/16] (narrow) %v5543_v56, 32  ;;  %5559 = vxpose.xlu0.b32.cont [12/16] (narrow) %v5527_v25, 32 }
 0x4ac   : > { %5592 = vxpose.xlu1.b32.cont [13/16] (narrow) %v5544_v53, 32  ;;  %5560 = vxpose.xlu0.b32.cont [13/16] (narrow) %v5528_v7, 32 }
 0x4b0   : > { %5593 = vxpose.xlu1.b32.cont [14/16] (narrow) %v5545_v35, 32  ;;  %5561 = vxpose.xlu0.b32.cont [14/16] (narrow) %v5529_v24, 32 }
 0x4b4   : > { %5594 = vxpose.xlu1.b32.cont [15/16] (narrow) %v5546_v3, 32  ;;  %5562 = vxpose.xlu0.b32.cont [15/16] (narrow) %v5530_v23, 32 }
 0x4b8   : > { %5595 = vxpose.xlu1.b32.end [16/16] (narrow) %v5547_v8, 32  ;;  %5563 = vxpose.xlu0.b32.end [16/16] (narrow) %v5531_v55, 32 }
 0x4fc   : > { %v5596_v22 = vpop.trf.xlu1  ;;  %v5564_v11 = vpop.trf.xlu0 }
 0x4fd   : > { %5613 = vst [vmem:[%s334_s29 + $0x8] sm:$0xff] %v5596_v22  ;;  %5612 = vst [vmem:[%s334_s29] sm:$0xff] %v5564_v11 }
 0x500   : > { %v5597_v37 = vpop.trf.xlu1  ;;  %v5565_v29 = vpop.trf.xlu0 }
 0x501   : > { %5615 = vst [vmem:[%s334_s29 + $0x18] sm:$0xff] %v5597_v37  ;;  %5614 = vst [vmem:[%s334_s29 + $0x10] sm:$0xff] %v5565_v29 }
 0x504   : > { %v5598_v39 = vpop.trf.xlu1  ;;  %v5566_v18 = vpop.trf.xlu0 }
 0x505   : > { %5617 = vst [vmem:[%s334_s29 + $0x28] sm:$0xff] %v5598_v39  ;;  %5616 = vst [vmem:[%s334_s29 + $0x20] sm:$0xff] %v5566_v18 }
 0x508   : > { %v5599_v12 = vpop.trf.xlu1  ;;  %v5567_v40 = vpop.trf.xlu0 }
 0x509   : > { %5619 = vst [vmem:[%s334_s29 + $0x38] sm:$0xff] %v5599_v12  ;;  %5618 = vst [vmem:[%s334_s29 + $0x30] sm:$0xff] %v5567_v40 }
 0x50a PF: > { %s16_s23 = sadd.s32 1, %s7313_s23   ;;  %s9837_s21 = smov %s7309_s22 }
 0x50b   : > { %p13_p5 = scmp.ge.s32.totalorder %s16_s23, 4   ;;  %s9838_s22 = smov %s9840_s24 }
 0x50d   :  { %15 = sbr.rel (!%p13_p5) target bundleno = 2 (0x2), region = 96 }

</bundles_post_ra>
